<compile_context>
chip_gen: v7x
topology: tpu7x:2x2x1
jax: 0.10.0
libtpu: 0.0.40
codegen_flags: <defaults>
</compile_context>

<pallas_src>
import functools

import jax
import jax.numpy as jnp
from jax.experimental import pallas as pl
from jax.experimental.pallas import tpu as pltpu

BN_EPS = 1e-5
LANE = 128
VMEM_LIMIT = 48 * 1024 * 1024  # safe on v7x (64 MiB phys), generous on v5e/v6e


def _round_up(x, m):
    return ((x + m - 1) // m) * m


def _pick_tile(dim, candidates):
    for c in candidates:
        if dim >= c and dim % c == 0:
            return c
    return dim  # full dim is always a legal block size


# ----------------------------- Pallas kernels ------------------------------

def _gemm_bias_kernel(a_ref, w_ref, b_ref, o_ref, acc_ref, *, relu):
    # Tiled conv-as-GEMM; BN scale is pre-folded into W, so epilogue is +bias (+ReLU).
    k = pl.program_id(2)

    @pl.when(k == 0)
    def _():
        acc_ref[...] = jnp.zeros_like(acc_ref)

    acc_ref[...] += jnp.dot(a_ref[...], w_ref[...],
                            preferred_element_type=jnp.float32)

    @pl.when(k == pl.num_programs(2) - 1)
    def _():
        y = acc_ref[...] + b_ref[...]
        if relu:
            y = jnp.maximum(y, 0.0)
        o_ref[...] = y.astype(o_ref.dtype)


def _gemm_bias_add_relu_kernel(a_ref, w_ref, b_ref, r_ref, o_ref, acc_ref):
    # Tiled conv-as-GEMM + bias + residual add + ReLU (bottleneck tail).
    k = pl.program_id(2)

    @pl.when(k == 0)
    def _():
        acc_ref[...] = jnp.zeros_like(acc_ref)

    acc_ref[...] += jnp.dot(a_ref[...], w_ref[...],
                            preferred_element_type=jnp.float32)

    @pl.when(k == pl.num_programs(2) - 1)
    def _():
        y = acc_ref[...] + b_ref[...] + r_ref[...].astype(jnp.float32)
        o_ref[...] = jnp.maximum(y, 0.0).astype(o_ref.dtype)


def _max9_kernel(x_ref, o_ref):
    # 3x3 max-pool reduction: x_ref block is [9, tm, C] (9 shifted windows).
    o_ref[...] = jnp.max(x_ref[...], axis=0)


# ----------------------------- Pallas wrappers -----------------------------

def _gemm_bias(A, Wm, bias, *, relu, residual=None, out_dtype=jnp.bfloat16):
    M, K = A.shape
    N = Wm.shape[1]

    tm = _pick_tile(M, (1024, 512, 256, 128, 64, 32, 16, 8))
    tn = _pick_tile(N, (512, 256, 128))
    tk = _pick_tile(K, (512, 384, 256, 128))
    grid = (M // tm, N // tn, K // tk)

    in_specs = [
        pl.BlockSpec((tm, tk), lambda i, j, k: (i, k)),   # A tile
        pl.BlockSpec((tk, tn), lambda i, j, k: (k, j)),   # W tile (BN scale folded)
        pl.BlockSpec((1, tn), lambda i, j, k: (0, j)),    # BN bias
    ]
    args = [A, Wm, bias]
    bytes_accessed = M * K * 2 + K * N * 2 + M * N * 2 + N * 4
    if residual is None:
        kernel = functools.partial(_gemm_bias_kernel, relu=relu)
    else:
        kernel = _gemm_bias_add_relu_kernel
        in_specs.append(pl.BlockSpec((tm, tn), lambda i, j, k: (i, j)))
        args.append(residual)
        bytes_accessed += M * N * 2

    return pl.pallas_call(
        kernel,
        out_shape=jax.ShapeDtypeStruct((M, N), out_dtype),
        grid=grid,
        in_specs=in_specs,
        out_specs=pl.BlockSpec((tm, tn), lambda i, j, k: (i, j)),
        scratch_shapes=[pltpu.VMEM((tm, tn), jnp.float32)],
        compiler_params=pltpu.CompilerParams(
            dimension_semantics=("parallel", "parallel", "arbitrary"),
            vmem_limit_bytes=VMEM_LIMIT),
        cost_estimate=pl.CostEstimate(flops=2 * M * K * N,
                                      transcendentals=0,
                                      bytes_accessed=bytes_accessed),
    )(*args)


def _im2col(x, kh, kw, stride, pad):
    # x: NHWC (bf16).  Returns [B*Ho*Wo, kh*kw*C] patches (layout glue only).
    # TODO(synk): stream the kh*kw taps straight from the NHWC tensor inside the
    # kernel (tap grid axis with halo reads) to avoid materializing the expanded
    # im2col in HBM for the 3x3 convolutions.
    B, H, W, C = x.shape
    if pad:
        x = jnp.pad(x, ((0, 0), (pad, pad), (pad, pad), (0, 0)))
    Hp, Wp = H + 2 * pad, W + 2 * pad
    Ho = (Hp - kh) // stride + 1
    Wo = (Wp - kw) // stride + 1
    if kh == 1 and kw == 1:
        A = x[:, ::stride, ::stride, :].reshape(B * Ho * Wo, C)
        return A, (B, Ho, Wo)
    cols = []
    for i in range(kh):
        for j in range(kw):
            cols.append(x[:, i:i + stride * (Ho - 1) + 1:stride,
                           j:j + stride * (Wo - 1) + 1:stride, :])
    patches = jnp.stack(cols, axis=3)               # [B, Ho, Wo, kh*kw, C]
    A = patches.reshape(B * Ho * Wo, kh * kw * C)
    return A, (B, Ho, Wo)


def conv_bn(x, pk, *, stride, pad, relu=True, residual=None):
    """Conv2d + folded BatchNorm (+ residual add) (+ ReLU).  x in NHWC bf16 with
    channels already padded to the layer's expected (lane-dense) input width."""
    A, (B, Ho, Wo) = _im2col(x, pk["kh"], pk["kw"], stride, pad)
    res = None if residual is None else residual.reshape(-1, pk["cout_p"])
    out = _gemm_bias(A, pk["wm"], pk["bias"], relu=relu, residual=res)
    return out.reshape(B, Ho, Wo, pk["cout_p"])


def maxpool3x3_s2p1(x):
    """MaxPool2d(kernel=3, stride=2, padding=1), x in NHWC bf16 (lane-padded C)."""
    B, H, W, C = x.shape
    k, s, pad = 3, 2, 1
    xp = jnp.pad(x, ((0, 0), (pad, pad), (pad, pad), (0, 0)),
                 constant_values=float("-inf"))
    Ho = (H + 2 * pad - k) // s + 1
    Wo = (W + 2 * pad - k) // s + 1
    wins = []
    for i in range(k):
        for j in range(k):
            wins.append(xp[:, i:i + s * (Ho - 1) + 1:s,
                            j:j + s * (Wo - 1) + 1:s, :])
    M = B * Ho * Wo
    stacked = jnp.stack(wins, axis=0).reshape(k * k, M, C)
    tm = _pick_tile(M, (1024, 512, 256, 128, 64, 32, 16, 8))
    out = pl.pallas_call(
        _max9_kernel,
        out_shape=jax.ShapeDtypeStruct((M, C), x.dtype),
        grid=(M // tm,),
        in_specs=[pl.BlockSpec((k * k, tm, C), lambda i: (0, i, 0))],
        out_specs=pl.BlockSpec((tm, C), lambda i: (i, 0)),
        compiler_params=pltpu.CompilerParams(
            dimension_semantics=("parallel",),
            vmem_limit_bytes=VMEM_LIMIT),
        cost_estimate=pl.CostEstimate(flops=8 * M * C,
                                      transcendentals=0,
                                      bytes_accessed=(k * k + 1) * M * C * 2),
    )(stacked)
    return out.reshape(B, Ho, Wo, C)


# --------------------------- parameter construction ------------------------

def _conv_bn_params(key, cout, cin, kh, kw):
    kw_, kg, kb = jax.random.split(key, 3)
    fan_in = cin * kh * kw
    w = jax.random.normal(kw_, (cout, cin, kh, kw), jnp.float32) / jnp.sqrt(
        jnp.float32(fan_in))
    gamma = 1.0 + 0.1 * jax.random.normal(kg, (cout,), jnp.float32)
    beta = 0.1 * jax.random.normal(kb, (cout,), jnp.float32)
    running_mean = jnp.zeros((cout,), jnp.float32)
    running_var = jnp.ones((cout,), jnp.float32)
    scale = gamma / jnp.sqrt(running_var + BN_EPS)
    bias = beta - running_mean * scale
    return {"w": w, "scale": scale, "bias": bias}


def _init_bottleneck(key, inplanes, planes, stride):
    k1, k2, k3, k4 = jax.random.split(key, 4)
    p = {
        "conv1": _conv_bn_params(k1, planes, inplanes, 1, 1),
        "conv2": _conv_bn_params(k2, planes, planes, 3, 3),
        "conv3": _conv_bn_params(k3, planes * 4, planes, 1, 1),
        "stride": stride,
    }
    if stride != 1 or inplanes != planes * 4:
        p["down"] = _conv_bn_params(k4, planes * 4, inplanes, 1, 1)
    return p


def _init_layer(key, inplanes, planes, blocks, stride):
    keys = jax.random.split(key, blocks)
    ps = [_init_bottleneck(keys[0], inplanes, planes, stride)]
    for i in range(1, blocks):
        ps.append(_init_bottleneck(keys[i], planes * 4, planes, 1))
    return ps


def init_resnet50_features(key):
    k_stem, k1, k2, k3 = jax.random.split(key, 4)
    return {
        "stem": _conv_bn_params(k_stem, 64, 3, 7, 7),     # conv1 7x7/2
        "layer1": _init_layer(k1, 64, 64, 3, 1),          # 3 bottlenecks -> 256ch
        "layer2": _init_layer(k2, 256, 128, 4, 2),        # 4 bottlenecks -> 512ch
        "layer3": _init_layer(k3, 512, 256, 6, 2),        # 6 bottlenecks -> 1024ch
    }


# ----------------------------- parameter packing ----------------------------
# One-time layout work: fold BN scale into weights (f32), pad channels to lane
# multiples, transpose PyTorch [Cout,Cin,kh,kw] -> GEMM [kh*kw*Cin_p, Cout_p],
# cast to bf16.  Padded input channels / output channels are exactly zero so the
# padded lanes stay zero through conv / bias / ReLU / residual.

def _pack_conv_bn(p):
    w, scale, bias = p["w"], p["scale"], p["bias"]
    cout, cin, kh, kw = w.shape
    cin_p = cin if cin == 3 else _round_up(cin, LANE)   # raw RGB image stays 3-wide
    cout_p = _round_up(cout, LANE)
    w = w * scale[:, None, None, None]                   # fold BN scale (f32)
    w = jnp.pad(w, ((0, cout_p - cout), (0, cin_p - cin), (0, 0), (0, 0)))
    wm = jnp.transpose(w, (2, 3, 1, 0)).reshape(kh * kw * cin_p, cout_p)
    b = jnp.pad(bias, (0, cout_p - cout)).reshape(1, cout_p)
    return {"wm": wm.astype(jnp.bfloat16), "bias": b.astype(jnp.float32),
            "kh": kh, "kw": kw, "cin_p": cin_p, "cout_p": cout_p}


def _pack_bottleneck(p):
    out = {"conv1": _pack_conv_bn(p["conv1"]),
           "conv2": _pack_conv_bn(p["conv2"]),
           "conv3": _pack_conv_bn(p["conv3"]),
           "stride": p["stride"]}
    if "down" in p:
        out["down"] = _pack_conv_bn(p["down"])
    return out


def pack_params(params):
    return {
        "stem": _pack_conv_bn(params["stem"]),
        "layer1": [_pack_bottleneck(b) for b in params["layer1"]],
        "layer2": [_pack_bottleneck(b) for b in params["layer2"]],
        "layer3": [_pack_bottleneck(b) for b in params["layer3"]],
    }


# ------------------------------- forward pass -------------------------------

def _bottleneck_forward(x, p):
    s = p["stride"]
    if "down" in p:
        identity = conv_bn(x, p["down"], stride=s, pad=0, relu=False)
    else:
        identity = x
    out = conv_bn(x, p["conv1"], stride=1, pad=0, relu=True)
    out = conv_bn(out, p["conv2"], stride=s, pad=1, relu=True)
    # conv3 + BN + residual add + ReLU fused in one Pallas kernel
    out = conv_bn(out, p["conv3"], stride=1, pad=0, relu=False, residual=identity)
    return out


def resnet50_with_features(x_nchw, packed):
    x = jnp.transpose(x_nchw, (0, 2, 3, 1)).astype(jnp.bfloat16)   # NCHW -> NHWC
    x = conv_bn(x, packed["stem"], stride=2, pad=3, relu=True)     # Cout padded 64->128
    x = maxpool3x3_s2p1(x)
    for bp in packed["layer1"]:
        x = _bottleneck_forward(x, bp)
    out1 = x
    for bp in packed["layer2"]:
        x = _bottleneck_forward(x, bp)
    out2 = x
    for bp in packed["layer3"]:
        x = _bottleneck_forward(x, bp)
    out3 = x

    def finish(t, c):
        # slice off lane padding (no-op here: 256/512/1024 are 128-multiples),
        # return NCHW float32 to match the PyTorch module.
        return jnp.transpose(t[..., :c], (0, 3, 1, 2)).astype(jnp.float32)

    return finish(out1, 256), finish(out2, 512), finish(out3, 1024)


if __name__ == "__main__":
    key = jax.random.PRNGKey(0)
    k_param, k_x = jax.random.split(key)
    params = init_resnet50_features(k_param)
    packed = jax.tree_util.tree_map(lambda a: a, pack_params(params))  # eager pack

    # Small input consistent with the module (RGB image, NCHW).
    x = jax.random.normal(k_x, (2, 3, 32, 32), jnp.float32)

    fwd = jax.jit(lambda inp: resnet50_with_features(inp, packed))
    out1, out2, out3 = fwd(x)
    jax.block_until_ready((out1, out2, out3))

    assert out1.shape == (2, 256, 8, 8), out1.shape
    assert out2.shape == (2, 512, 4, 4), out2.shape
    assert out3.shape == (2, 1024, 2, 2), out3.shape
    assert out1.dtype == out2.dtype == out3.dtype == jnp.float32
    assert bool(jnp.isfinite(out3).all())

    print("KERNEL_OK")
</pallas_src>

<mosaic_0001>
module attributes {stable_mosaic.version = 11 : i64} {
  func.func @_gemm_bias_kernel(%arg0: i32, %arg1: i32, %arg2: i32, %arg3: memref<512x147xbf16, #tpu.memory_space<vmem>>, %arg4: memref<147x128xbf16, #tpu.memory_space<vmem>>, %arg5: memref<1x128xf32, #tpu.memory_space<vmem>>, %arg6: memref<512x128xbf16, #tpu.memory_space<vmem>>, %arg7: memref<512x128xf32, #tpu.memory_space<vmem>>) attributes {dimension_semantics = [#tpu.dimension_semantics<parallel>, #tpu.dimension_semantics<parallel>, #tpu.dimension_semantics<arbitrary>], iteration_bounds = array<i64: 1, 1, 1>, scalar_prefetch = 0 : i64, scratch_operands = 1 : i64, tpu.core_type = #tpu.core_type<tc>, window_params = [{transform_indices = @transform_0, window_bounds = array<i64: 512, 147>}, {transform_indices = @transform_1, window_bounds = array<i64: 147, 128>}, {transform_indices = @transform_2, window_bounds = array<i64: 1, 128>}, {transform_indices = @transform_3, window_bounds = array<i64: 512, 128>}]} {
    %c0_i32 = arith.constant 0 : i32
    %0 = arith.cmpi eq, %arg2, %c0_i32 : i32
    %1 = arith.extui %0 : i1 to i32
    %c0_i32_0 = arith.constant 0 : i32
    %2 = arith.cmpi ne, %1, %c0_i32_0 : i32
    scf.if %2 {
      %cst_10 = arith.constant 0.000000e+00 : f32
      %12 = vector.broadcast %cst_10 : f32 to vector<512x128xf32>
      %c0_11 = arith.constant 0 : index
      %c0_12 = arith.constant 0 : index
      %13 = vector.load %arg7[%c0_11, %c0_12] : memref<512x128xf32, #tpu.memory_space<vmem>>, vector<512x128xf32>
      tpu.vector_store %arg7[%c0_11, %c0_12], %12 {strides = array<i32>} : memref<512x128xf32, #tpu.memory_space<vmem>>, vector<512x128xf32>,
    } else {
    }
    %c0 = arith.constant 0 : index
    %c0_1 = arith.constant 0 : index
    %3 = vector.load %arg7[%c0, %c0_1] : memref<512x128xf32, #tpu.memory_space<vmem>>, vector<512x128xf32>
    %c0_2 = arith.constant 0 : index
    %c0_3 = arith.constant 0 : index
    %4 = vector.load %arg3[%c0_2, %c0_3] : memref<512x147xbf16, #tpu.memory_space<vmem>>, vector<512x147xbf16>
    %c0_4 = arith.constant 0 : index
    %c0_5 = arith.constant 0 : index
    %5 = vector.load %arg4[%c0_4, %c0_5] : memref<147x128xbf16, #tpu.memory_space<vmem>>, vector<147x128xbf16>
    %cst = arith.constant dense<0.000000e+00> : vector<512x128xf32>
    %6 = tpu.matmul %4, %5, %cst {dimension_numbers = #tpu.dot_dimension_numbers<[1], [0], [0], [1], [0, 0, 1, 1], [], []>} : vector<512x147xbf16>, vector<147x128xbf16>, vector<512x128xf32> -> vector<512x128xf32>
    %7 = arith.addf %3, %6 : vector<512x128xf32>
    %c0_6 = arith.constant 0 : index
    %c0_7 = arith.constant 0 : index
    %8 = vector.load %arg7[%c0_6, %c0_7] : memref<512x128xf32, #tpu.memory_space<vmem>>, vector<512x128xf32>
    tpu.vector_store %arg7[%c0_6, %c0_7], %7 {strides = array<i32>} : memref<512x128xf32, #tpu.memory_space<vmem>>, vector<512x128xf32>,
    %c0_i32_8 = arith.constant 0 : i32
    %9 = arith.cmpi eq, %arg2, %c0_i32_8 : i32
    %10 = arith.extui %9 : i1 to i32
    %c0_i32_9 = arith.constant 0 : i32
    %11 = arith.cmpi ne, %10, %c0_i32_9 : i32
    scf.if %11 {
      %c0_10 = arith.constant 0 : index
      %c0_11 = arith.constant 0 : index
      %12 = vector.load %arg7[%c0_10, %c0_11] : memref<512x128xf32, #tpu.memory_space<vmem>>, vector<512x128xf32>
      %c0_12 = arith.constant 0 : index
      %c0_13 = arith.constant 0 : index
      %13 = vector.load %arg5[%c0_12, %c0_13] : memref<1x128xf32, #tpu.memory_space<vmem>>, vector<1x128xf32>
      %14 = vector.broadcast %13 : vector<1x128xf32> to vector<512x128xf32>
      %15 = arith.addf %12, %14 : vector<512x128xf32>
      %cst_14 = arith.constant 0.000000e+00 : f32
      %16 = vector.broadcast %cst_14 : f32 to vector<512x128xf32>
      %17 = arith.maximumf %15, %16 : vector<512x128xf32>
      %18 = arith.truncf %17 : vector<512x128xf32> to vector<512x128xbf16>
      %c0_15 = arith.constant 0 : index
      %c0_16 = arith.constant 0 : index
      %19 = vector.load %arg6[%c0_15, %c0_16] : memref<512x128xbf16, #tpu.memory_space<vmem>>, vector<512x128xbf16>
      tpu.vector_store %arg6[%c0_15, %c0_16], %18 {strides = array<i32>} : memref<512x128xbf16, #tpu.memory_space<vmem>>, vector<512x128xbf16>,
    } else {
    }
    return
  }
  func.func @transform_0(%arg0: i32, %arg1: i32, %arg2: i32) -> (i32, i32) {
    %c0_i32 = arith.constant 0 : i32
    return %arg0, %arg2 : i32, i32
  }
  func.func @transform_1(%arg0: i32, %arg1: i32, %arg2: i32) -> (i32, i32) {
    %c0_i32 = arith.constant 0 : i32
    return %arg2, %arg1 : i32, i32
  }
  func.func @transform_2(%arg0: i32, %arg1: i32, %arg2: i32) -> (i32, i32) {
    %c0_i32 = arith.constant 0 : i32
    %c0_i32_0 = arith.constant 0 : i32
    return %c0_i32, %arg1 : i32, i32
  }
  func.func @transform_3(%arg0: i32, %arg1: i32, %arg2: i32) -> (i32, i32) {
    %c0_i32 = arith.constant 0 : i32
    return %arg0, %arg1 : i32, i32
  }
}

module attributes {stable_mosaic.version = 11 : i64} {
  func.func @_max9_kernel(%arg0: i32, %arg1: memref<9x128x128xbf16, #tpu.memory_space<vmem>>, %arg2: memref<128x128xbf16, #tpu.memory_space<vmem>>) attributes {dimension_semantics = [#tpu.dimension_semantics<parallel>], iteration_bounds = array<i64: 1>, scalar_prefetch = 0 : i64, scratch_operands = 0 : i64, tpu.core_type = #tpu.core_type<tc>, window_params = [{transform_indices = @transform_0, window_bounds = array<i64: 9, 128, 128>}, {transform_indices = @transform_1, window_bounds = array<i64: 128, 128>}]} {
    %c0 = arith.constant 0 : index
    %c0_0 = arith.constant 0 : index
    %c0_1 = arith.constant 0 : index
    %0 = vector.load %arg1[%c0, %c0_0, %c0_1] : memref<9x128x128xbf16, #tpu.memory_space<vmem>>, vector<9x128x128xbf16>
    %cst = arith.constant dense<0xFF80> : vector<128x128xbf16>
    %1 = vector.multi_reduction <maximumf>, %0, %cst [0] : vector<9x128x128xbf16> to vector<128x128xbf16>
    %c0_2 = arith.constant 0 : index
    %c0_3 = arith.constant 0 : index
    %2 = vector.load %arg2[%c0_2, %c0_3] : memref<128x128xbf16, #tpu.memory_space<vmem>>, vector<128x128xbf16>
    tpu.vector_store %arg2[%c0_2, %c0_3], %1 {strides = array<i32>} : memref<128x128xbf16, #tpu.memory_space<vmem>>, vector<128x128xbf16>,
    return
  }
  func.func @transform_0(%arg0: i32) -> (i32, i32, i32) {
    %c0_i32 = arith.constant 0 : i32
    %c0_i32_0 = arith.constant 0 : i32
    %c0_i32_1 = arith.constant 0 : i32
    return %c0_i32, %arg0, %c0_i32_0 : i32, i32, i32
  }
  func.func @transform_1(%arg0: i32) -> (i32, i32) {
    %c0_i32 = arith.constant 0 : i32
    %c0_i32_0 = arith.constant 0 : i32
    return %arg0, %c0_i32 : i32, i32
  }
}

module attributes {stable_mosaic.version = 11 : i64} {
  func.func @_gemm_bias_kernel(%arg0: i32, %arg1: i32, %arg2: i32, %arg3: memref<128x128xbf16, #tpu.memory_space<vmem>>, %arg4: memref<128x128xbf16, #tpu.memory_space<vmem>>, %arg5: memref<1x128xf32, #tpu.memory_space<vmem>>, %arg6: memref<128x128xbf16, #tpu.memory_space<vmem>>, %arg7: memref<128x128xf32, #tpu.memory_space<vmem>>) attributes {dimension_semantics = [#tpu.dimension_semantics<parallel>, #tpu.dimension_semantics<parallel>, #tpu.dimension_semantics<arbitrary>], iteration_bounds = array<i64: 1, 1, 1>, scalar_prefetch = 0 : i64, scratch_operands = 1 : i64, tpu.core_type = #tpu.core_type<tc>, window_params = [{transform_indices = @transform_0, window_bounds = array<i64: 128, 128>}, {transform_indices = @transform_1, window_bounds = array<i64: 128, 128>}, {transform_indices = @transform_2, window_bounds = array<i64: 1, 128>}, {transform_indices = @transform_3, window_bounds = array<i64: 128, 128>}]} {
    %c0_i32 = arith.constant 0 : i32
    %0 = arith.cmpi eq, %arg2, %c0_i32 : i32
    %1 = arith.extui %0 : i1 to i32
    %c0_i32_0 = arith.constant 0 : i32
    %2 = arith.cmpi ne, %1, %c0_i32_0 : i32
    scf.if %2 {
      %cst_10 = arith.constant 0.000000e+00 : f32
      %12 = vector.broadcast %cst_10 : f32 to vector<128x128xf32>
      %c0_11 = arith.constant 0 : index
      %c0_12 = arith.constant 0 : index
      %13 = vector.load %arg7[%c0_11, %c0_12] : memref<128x128xf32, #tpu.memory_space<vmem>>, vector<128x128xf32>
      tpu.vector_store %arg7[%c0_11, %c0_12], %12 {strides = array<i32>} : memref<128x128xf32, #tpu.memory_space<vmem>>, vector<128x128xf32>,
    } else {
    }
    %c0 = arith.constant 0 : index
    %c0_1 = arith.constant 0 : index
    %3 = vector.load %arg7[%c0, %c0_1] : memref<128x128xf32, #tpu.memory_space<vmem>>, vector<128x128xf32>
    %c0_2 = arith.constant 0 : index
    %c0_3 = arith.constant 0 : index
    %4 = vector.load %arg3[%c0_2, %c0_3] : memref<128x128xbf16, #tpu.memory_space<vmem>>, vector<128x128xbf16>
    %c0_4 = arith.constant 0 : index
    %c0_5 = arith.constant 0 : index
    %5 = vector.load %arg4[%c0_4, %c0_5] : memref<128x128xbf16, #tpu.memory_space<vmem>>, vector<128x128xbf16>
    %cst = arith.constant dense<0.000000e+00> : vector<128x128xf32>
    %6 = tpu.matmul %4, %5, %cst {dimension_numbers = #tpu.dot_dimension_numbers<[1], [0], [0], [1], [0, 0, 1, 1], [], []>} : vector<128x128xbf16>, vector<128x128xbf16>, vector<128x128xf32> -> vector<128x128xf32>
    %7 = arith.addf %3, %6 : vector<128x128xf32>
    %c0_6 = arith.constant 0 : index
    %c0_7 = arith.constant 0 : index
    %8 = vector.load %arg7[%c0_6, %c0_7] : memref<128x128xf32, #tpu.memory_space<vmem>>, vector<128x128xf32>
    tpu.vector_store %arg7[%c0_6, %c0_7], %7 {strides = array<i32>} : memref<128x128xf32, #tpu.memory_space<vmem>>, vector<128x128xf32>,
    %c0_i32_8 = arith.constant 0 : i32
    %9 = arith.cmpi eq, %arg2, %c0_i32_8 : i32
    %10 = arith.extui %9 : i1 to i32
    %c0_i32_9 = arith.constant 0 : i32
    %11 = arith.cmpi ne, %10, %c0_i32_9 : i32
    scf.if %11 {
      %c0_10 = arith.constant 0 : index
      %c0_11 = arith.constant 0 : index
      %12 = vector.load %arg7[%c0_10, %c0_11] : memref<128x128xf32, #tpu.memory_space<vmem>>, vector<128x128xf32>
      %c0_12 = arith.constant 0 : index
      %c0_13 = arith.constant 0 : index
      %13 = vector.load %arg5[%c0_12, %c0_13] : memref<1x128xf32, #tpu.memory_space<vmem>>, vector<1x128xf32>
      %14 = vector.broadcast %13 : vector<1x128xf32> to vector<128x128xf32>
      %15 = arith.addf %12, %14 : vector<128x128xf32>
      %cst_14 = arith.constant 0.000000e+00 : f32
      %16 = vector.broadcast %cst_14 : f32 to vector<128x128xf32>
      %17 = arith.maximumf %15, %16 : vector<128x128xf32>
      %18 = arith.truncf %17 : vector<128x128xf32> to vector<128x128xbf16>
      %c0_15 = arith.constant 0 : index
      %c0_16 = arith.constant 0 : index
      %19 = vector.load %arg6[%c0_15, %c0_16] : memref<128x128xbf16, #tpu.memory_space<vmem>>, vector<128x128xbf16>
      tpu.vector_store %arg6[%c0_15, %c0_16], %18 {strides = array<i32>} : memref<128x128xbf16, #tpu.memory_space<vmem>>, vector<128x128xbf16>,
    } else {
    }
    return
  }
  func.func @transform_0(%arg0: i32, %arg1: i32, %arg2: i32) -> (i32, i32) {
    %c0_i32 = arith.constant 0 : i32
    return %arg0, %arg2 : i32, i32
  }
  func.func @transform_1(%arg0: i32, %arg1: i32, %arg2: i32) -> (i32, i32) {
    %c0_i32 = arith.constant 0 : i32
    return %arg2, %arg1 : i32, i32
  }
  func.func @transform_2(%arg0: i32, %arg1: i32, %arg2: i32) -> (i32, i32) {
    %c0_i32 = arith.constant 0 : i32
    %c0_i32_0 = arith.constant 0 : i32
    return %c0_i32, %arg1 : i32, i32
  }
  func.func @transform_3(%arg0: i32, %arg1: i32, %arg2: i32) -> (i32, i32) {
    %c0_i32 = arith.constant 0 : i32
    return %arg0, %arg1 : i32, i32
  }
}

module attributes {stable_mosaic.version = 11 : i64} {
  func.func @_gemm_bias_kernel(%arg0: i32, %arg1: i32, %arg2: i32, %arg3: memref<128x384xbf16, #tpu.memory_space<vmem>>, %arg4: memref<384x128xbf16, #tpu.memory_space<vmem>>, %arg5: memref<1x128xf32, #tpu.memory_space<vmem>>, %arg6: memref<128x128xbf16, #tpu.memory_space<vmem>>, %arg7: memref<128x128xf32, #tpu.memory_space<vmem>>) attributes {dimension_semantics = [#tpu.dimension_semantics<parallel>, #tpu.dimension_semantics<parallel>, #tpu.dimension_semantics<arbitrary>], iteration_bounds = array<i64: 1, 1, 3>, scalar_prefetch = 0 : i64, scratch_operands = 1 : i64, tpu.core_type = #tpu.core_type<tc>, window_params = [{transform_indices = @transform_0, window_bounds = array<i64: 128, 384>}, {transform_indices = @transform_1, window_bounds = array<i64: 384, 128>}, {transform_indices = @transform_2, window_bounds = array<i64: 1, 128>}, {transform_indices = @transform_3, window_bounds = array<i64: 128, 128>}]} {
    %c0_i32 = arith.constant 0 : i32
    %0 = arith.cmpi eq, %arg2, %c0_i32 : i32
    %1 = arith.extui %0 : i1 to i32
    %c0_i32_0 = arith.constant 0 : i32
    %2 = arith.cmpi ne, %1, %c0_i32_0 : i32
    scf.if %2 {
      %cst_9 = arith.constant 0.000000e+00 : f32
      %12 = vector.broadcast %cst_9 : f32 to vector<128x128xf32>
      %c0_10 = arith.constant 0 : index
      %c0_11 = arith.constant 0 : index
      %13 = vector.load %arg7[%c0_10, %c0_11] : memref<128x128xf32, #tpu.memory_space<vmem>>, vector<128x128xf32>
      tpu.vector_store %arg7[%c0_10, %c0_11], %12 {strides = array<i32>} : memref<128x128xf32, #tpu.memory_space<vmem>>, vector<128x128xf32>,
    } else {
    }
    %c0 = arith.constant 0 : index
    %c0_1 = arith.constant 0 : index
    %3 = vector.load %arg7[%c0, %c0_1] : memref<128x128xf32, #tpu.memory_space<vmem>>, vector<128x128xf32>
    %c0_2 = arith.constant 0 : index
    %c0_3 = arith.constant 0 : index
    %4 = vector.load %arg3[%c0_2, %c0_3] : memref<128x384xbf16, #tpu.memory_space<vmem>>, vector<128x384xbf16>
    %c0_4 = arith.constant 0 : index
    %c0_5 = arith.constant 0 : index
    %5 = vector.load %arg4[%c0_4, %c0_5] : memref<384x128xbf16, #tpu.memory_space<vmem>>, vector<384x128xbf16>
    %cst = arith.constant dense<0.000000e+00> : vector<128x128xf32>
    %6 = tpu.matmul %4, %5, %cst {dimension_numbers = #tpu.dot_dimension_numbers<[1], [0], [0], [1], [0, 0, 1, 1], [], []>} : vector<128x384xbf16>, vector<384x128xbf16>, vector<128x128xf32> -> vector<128x128xf32>
    %7 = arith.addf %3, %6 : vector<128x128xf32>
    %c0_6 = arith.constant 0 : index
    %c0_7 = arith.constant 0 : index
    %8 = vector.load %arg7[%c0_6, %c0_7] : memref<128x128xf32, #tpu.memory_space<vmem>>, vector<128x128xf32>
    tpu.vector_store %arg7[%c0_6, %c0_7], %7 {strides = array<i32>} : memref<128x128xf32, #tpu.memory_space<vmem>>, vector<128x128xf32>,
    %c2_i32 = arith.constant 2 : i32
    %9 = arith.cmpi eq, %arg2, %c2_i32 : i32
    %10 = arith.extui %9 : i1 to i32
    %c0_i32_8 = arith.constant 0 : i32
    %11 = arith.cmpi ne, %10, %c0_i32_8 : i32
    scf.if %11 {
      %c0_9 = arith.constant 0 : index
      %c0_10 = arith.constant 0 : index
      %12 = vector.load %arg7[%c0_9, %c0_10] : memref<128x128xf32, #tpu.memory_space<vmem>>, vector<128x128xf32>
      %c0_11 = arith.constant 0 : index
      %c0_12 = arith.constant 0 : index
      %13 = vector.load %arg5[%c0_11, %c0_12] : memref<1x128xf32, #tpu.memory_space<vmem>>, vector<1x128xf32>
      %14 = vector.broadcast %13 : vector<1x128xf32> to vector<128x128xf32>
      %15 = arith.addf %12, %14 : vector<128x128xf32>
      %cst_13 = arith.constant 0.000000e+00 : f32
      %16 = vector.broadcast %cst_13 : f32 to vector<128x128xf32>
      %17 = arith.maximumf %15, %16 : vector<128x128xf32>
      %18 = arith.truncf %17 : vector<128x128xf32> to vector<128x128xbf16>
      %c0_14 = arith.constant 0 : index
      %c0_15 = arith.constant 0 : index
      %19 = vector.load %arg6[%c0_14, %c0_15] : memref<128x128xbf16, #tpu.memory_space<vmem>>, vector<128x128xbf16>
      tpu.vector_store %arg6[%c0_14, %c0_15], %18 {strides = array<i32>} : memref<128x128xbf16, #tpu.memory_space<vmem>>, vector<128x128xbf16>,
    } else {
    }
    return
  }
  func.func @transform_0(%arg0: i32, %arg1: i32, %arg2: i32) -> (i32, i32) {
    %c0_i32 = arith.constant 0 : i32
    return %arg0, %arg2 : i32, i32
  }
  func.func @transform_1(%arg0: i32, %arg1: i32, %arg2: i32) -> (i32, i32) {
    %c0_i32 = arith.constant 0 : i32
    return %arg2, %arg1 : i32, i32
  }
  func.func @transform_2(%arg0: i32, %arg1: i32, %arg2: i32) -> (i32, i32) {
    %c0_i32 = arith.constant 0 : i32
    %c0_i32_0 = arith.constant 0 : i32
    return %c0_i32, %arg1 : i32, i32
  }
  func.func @transform_3(%arg0: i32, %arg1: i32, %arg2: i32) -> (i32, i32) {
    %c0_i32 = arith.constant 0 : i32
    return %arg0, %arg1 : i32, i32
  }
}

module attributes {stable_mosaic.version = 11 : i64} {
  func.func @_gemm_bias_kernel(%arg0: i32, %arg1: i32, %arg2: i32, %arg3: memref<128x128xbf16, #tpu.memory_space<vmem>>, %arg4: memref<128x256xbf16, #tpu.memory_space<vmem>>, %arg5: memref<1x256xf32, #tpu.memory_space<vmem>>, %arg6: memref<128x256xbf16, #tpu.memory_space<vmem>>, %arg7: memref<128x256xf32, #tpu.memory_space<vmem>>) attributes {dimension_semantics = [#tpu.dimension_semantics<parallel>, #tpu.dimension_semantics<parallel>, #tpu.dimension_semantics<arbitrary>], iteration_bounds = array<i64: 1, 1, 1>, scalar_prefetch = 0 : i64, scratch_operands = 1 : i64, tpu.core_type = #tpu.core_type<tc>, window_params = [{transform_indices = @transform_0, window_bounds = array<i64: 128, 128>}, {transform_indices = @transform_1, window_bounds = array<i64: 128, 256>}, {transform_indices = @transform_2, window_bounds = array<i64: 1, 256>}, {transform_indices = @transform_3, window_bounds = array<i64: 128, 256>}]} {
    %c0_i32 = arith.constant 0 : i32
    %0 = arith.cmpi eq, %arg2, %c0_i32 : i32
    %1 = arith.extui %0 : i1 to i32
    %c0_i32_0 = arith.constant 0 : i32
    %2 = arith.cmpi ne, %1, %c0_i32_0 : i32
    scf.if %2 {
      %cst_10 = arith.constant 0.000000e+00 : f32
      %12 = vector.broadcast %cst_10 : f32 to vector<128x256xf32>
      %c0_11 = arith.constant 0 : index
      %c0_12 = arith.constant 0 : index
      %13 = vector.load %arg7[%c0_11, %c0_12] : memref<128x256xf32, #tpu.memory_space<vmem>>, vector<128x256xf32>
      tpu.vector_store %arg7[%c0_11, %c0_12], %12 {strides = array<i32>} : memref<128x256xf32, #tpu.memory_space<vmem>>, vector<128x256xf32>,
    } else {
    }
    %c0 = arith.constant 0 : index
    %c0_1 = arith.constant 0 : index
    %3 = vector.load %arg7[%c0, %c0_1] : memref<128x256xf32, #tpu.memory_space<vmem>>, vector<128x256xf32>
    %c0_2 = arith.constant 0 : index
    %c0_3 = arith.constant 0 : index
    %4 = vector.load %arg3[%c0_2, %c0_3] : memref<128x128xbf16, #tpu.memory_space<vmem>>, vector<128x128xbf16>
    %c0_4 = arith.constant 0 : index
    %c0_5 = arith.constant 0 : index
    %5 = vector.load %arg4[%c0_4, %c0_5] : memref<128x256xbf16, #tpu.memory_space<vmem>>, vector<128x256xbf16>
    %cst = arith.constant dense<0.000000e+00> : vector<128x256xf32>
    %6 = tpu.matmul %4, %5, %cst {dimension_numbers = #tpu.dot_dimension_numbers<[1], [0], [0], [1], [0, 0, 1, 1], [], []>} : vector<128x128xbf16>, vector<128x256xbf16>, vector<128x256xf32> -> vector<128x256xf32>
    %7 = arith.addf %3, %6 : vector<128x256xf32>
    %c0_6 = arith.constant 0 : index
    %c0_7 = arith.constant 0 : index
    %8 = vector.load %arg7[%c0_6, %c0_7] : memref<128x256xf32, #tpu.memory_space<vmem>>, vector<128x256xf32>
    tpu.vector_store %arg7[%c0_6, %c0_7], %7 {strides = array<i32>} : memref<128x256xf32, #tpu.memory_space<vmem>>, vector<128x256xf32>,
    %c0_i32_8 = arith.constant 0 : i32
    %9 = arith.cmpi eq, %arg2, %c0_i32_8 : i32
    %10 = arith.extui %9 : i1 to i32
    %c0_i32_9 = arith.constant 0 : i32
    %11 = arith.cmpi ne, %10, %c0_i32_9 : i32
    scf.if %11 {
      %c0_10 = arith.constant 0 : index
      %c0_11 = arith.constant 0 : index
      %12 = vector.load %arg7[%c0_10, %c0_11] : memref<128x256xf32, #tpu.memory_space<vmem>>, vector<128x256xf32>
      %c0_12 = arith.constant 0 : index
      %c0_13 = arith.constant 0 : index
      %13 = vector.load %arg5[%c0_12, %c0_13] : memref<1x256xf32, #tpu.memory_space<vmem>>, vector<1x256xf32>
      %14 = vector.broadcast %13 : vector<1x256xf32> to vector<128x256xf32>
      %15 = arith.addf %12, %14 : vector<128x256xf32>
      %16 = arith.truncf %15 : vector<128x256xf32> to vector<128x256xbf16>
      %c0_14 = arith.constant 0 : index
      %c0_15 = arith.constant 0 : index
      %17 = vector.load %arg6[%c0_14, %c0_15] : memref<128x256xbf16, #tpu.memory_space<vmem>>, vector<128x256xbf16>
      tpu.vector_store %arg6[%c0_14, %c0_15], %16 {strides = array<i32>} : memref<128x256xbf16, #tpu.memory_space<vmem>>, vector<128x256xbf16>,
    } else {
    }
    return
  }
  func.func @transform_0(%arg0: i32, %arg1: i32, %arg2: i32) -> (i32, i32) {
    %c0_i32 = arith.constant 0 : i32
    return %arg0, %arg2 : i32, i32
  }
  func.func @transform_1(%arg0: i32, %arg1: i32, %arg2: i32) -> (i32, i32) {
    %c0_i32 = arith.constant 0 : i32
    return %arg2, %arg1 : i32, i32
  }
  func.func @transform_2(%arg0: i32, %arg1: i32, %arg2: i32) -> (i32, i32) {
    %c0_i32 = arith.constant 0 : i32
    %c0_i32_0 = arith.constant 0 : i32
    return %c0_i32, %arg1 : i32, i32
  }
  func.func @transform_3(%arg0: i32, %arg1: i32, %arg2: i32) -> (i32, i32) {
    %c0_i32 = arith.constant 0 : i32
    return %arg0, %arg1 : i32, i32
  }
}

module attributes {stable_mosaic.version = 11 : i64} {
  func.func @_gemm_bias_add_relu_kernel(%arg0: i32, %arg1: i32, %arg2: i32, %arg3: memref<128x128xbf16, #tpu.memory_space<vmem>>, %arg4: memref<128x256xbf16, #tpu.memory_space<vmem>>, %arg5: memref<1x256xf32, #tpu.memory_space<vmem>>, %arg6: memref<128x256xbf16, #tpu.memory_space<vmem>>, %arg7: memref<128x256xbf16, #tpu.memory_space<vmem>>, %arg8: memref<128x256xf32, #tpu.memory_space<vmem>>) attributes {dimension_semantics = [#tpu.dimension_semantics<parallel>, #tpu.dimension_semantics<parallel>, #tpu.dimension_semantics<arbitrary>], iteration_bounds = array<i64: 1, 1, 1>, scalar_prefetch = 0 : i64, scratch_operands = 1 : i64, tpu.core_type = #tpu.core_type<tc>, window_params = [{transform_indices = @transform_0, window_bounds = array<i64: 128, 128>}, {transform_indices = @transform_1, window_bounds = array<i64: 128, 256>}, {transform_indices = @transform_2, window_bounds = array<i64: 1, 256>}, {transform_indices = @transform_3, window_bounds = array<i64: 128, 256>}, {transform_indices = @transform_4, window_bounds = array<i64: 128, 256>}]} {
    %c0_i32 = arith.constant 0 : i32
    %0 = arith.cmpi eq, %arg2, %c0_i32 : i32
    %1 = arith.extui %0 : i1 to i32
    %c0_i32_0 = arith.constant 0 : i32
    %2 = arith.cmpi ne, %1, %c0_i32_0 : i32
    scf.if %2 {
      %cst_10 = arith.constant 0.000000e+00 : f32
      %12 = vector.broadcast %cst_10 : f32 to vector<128x256xf32>
      %c0_11 = arith.constant 0 : index
      %c0_12 = arith.constant 0 : index
      %13 = vector.load %arg8[%c0_11, %c0_12] : memref<128x256xf32, #tpu.memory_space<vmem>>, vector<128x256xf32>
      tpu.vector_store %arg8[%c0_11, %c0_12], %12 {strides = array<i32>} : memref<128x256xf32, #tpu.memory_space<vmem>>, vector<128x256xf32>,
    } else {
    }
    %c0 = arith.constant 0 : index
    %c0_1 = arith.constant 0 : index
    %3 = vector.load %arg8[%c0, %c0_1] : memref<128x256xf32, #tpu.memory_space<vmem>>, vector<128x256xf32>
    %c0_2 = arith.constant 0 : index
    %c0_3 = arith.constant 0 : index
    %4 = vector.load %arg3[%c0_2, %c0_3] : memref<128x128xbf16, #tpu.memory_space<vmem>>, vector<128x128xbf16>
    %c0_4 = arith.constant 0 : index
    %c0_5 = arith.constant 0 : index
    %5 = vector.load %arg4[%c0_4, %c0_5] : memref<128x256xbf16, #tpu.memory_space<vmem>>, vector<128x256xbf16>
    %cst = arith.constant dense<0.000000e+00> : vector<128x256xf32>
    %6 = tpu.matmul %4, %5, %cst {dimension_numbers = #tpu.dot_dimension_numbers<[1], [0], [0], [1], [0, 0, 1, 1], [], []>} : vector<128x128xbf16>, vector<128x256xbf16>, vector<128x256xf32> -> vector<128x256xf32>
    %7 = arith.addf %3, %6 : vector<128x256xf32>
    %c0_6 = arith.constant 0 : index
    %c0_7 = arith.constant 0 : index
    %8 = vector.load %arg8[%c0_6, %c0_7] : memref<128x256xf32, #tpu.memory_space<vmem>>, vector<128x256xf32>
    tpu.vector_store %arg8[%c0_6, %c0_7], %7 {strides = array<i32>} : memref<128x256xf32, #tpu.memory_space<vmem>>, vector<128x256xf32>,
    %c0_i32_8 = arith.constant 0 : i32
    %9 = arith.cmpi eq, %arg2, %c0_i32_8 : i32
    %10 = arith.extui %9 : i1 to i32
    %c0_i32_9 = arith.constant 0 : i32
    %11 = arith.cmpi ne, %10, %c0_i32_9 : i32
    scf.if %11 {
      %c0_10 = arith.constant 0 : index
      %c0_11 = arith.constant 0 : index
      %12 = vector.load %arg8[%c0_10, %c0_11] : memref<128x256xf32, #tpu.memory_space<vmem>>, vector<128x256xf32>
      %c0_12 = arith.constant 0 : index
      %c0_13 = arith.constant 0 : index
      %13 = vector.load %arg5[%c0_12, %c0_13] : memref<1x256xf32, #tpu.memory_space<vmem>>, vector<1x256xf32>
      %14 = vector.broadcast %13 : vector<1x256xf32> to vector<128x256xf32>
      %15 = arith.addf %12, %14 : vector<128x256xf32>
      %c0_14 = arith.constant 0 : index
      %c0_15 = arith.constant 0 : index
      %16 = vector.load %arg6[%c0_14, %c0_15] : memref<128x256xbf16, #tpu.memory_space<vmem>>, vector<128x256xbf16>
      %17 = arith.extf %16 : vector<128x256xbf16> to vector<128x256xf32>
      %18 = arith.addf %15, %17 : vector<128x256xf32>
      %cst_16 = arith.constant 0.000000e+00 : f32
      %19 = vector.broadcast %cst_16 : f32 to vector<128x256xf32>
      %20 = arith.maximumf %18, %19 : vector<128x256xf32>
      %21 = arith.truncf %20 : vector<128x256xf32> to vector<128x256xbf16>
      %c0_17 = arith.constant 0 : index
      %c0_18 = arith.constant 0 : index
      %22 = vector.load %arg7[%c0_17, %c0_18] : memref<128x256xbf16, #tpu.memory_space<vmem>>, vector<128x256xbf16>
      tpu.vector_store %arg7[%c0_17, %c0_18], %21 {strides = array<i32>} : memref<128x256xbf16, #tpu.memory_space<vmem>>, vector<128x256xbf16>,
    } else {
    }
    return
  }
  func.func @transform_0(%arg0: i32, %arg1: i32, %arg2: i32) -> (i32, i32) {
    %c0_i32 = arith.constant 0 : i32
    return %arg0, %arg2 : i32, i32
  }
  func.func @transform_1(%arg0: i32, %arg1: i32, %arg2: i32) -> (i32, i32) {
    %c0_i32 = arith.constant 0 : i32
    return %arg2, %arg1 : i32, i32
  }
  func.func @transform_2(%arg0: i32, %arg1: i32, %arg2: i32) -> (i32, i32) {
    %c0_i32 = arith.constant 0 : i32
    %c0_i32_0 = arith.constant 0 : i32
    return %c0_i32, %arg1 : i32, i32
  }
  func.func @transform_3(%arg0: i32, %arg1: i32, %arg2: i32) -> (i32, i32) {
    %c0_i32 = arith.constant 0 : i32
    return %arg0, %arg1 : i32, i32
  }
  func.func @transform_4(%arg0: i32, %arg1: i32, %arg2: i32) -> (i32, i32) {
    %c0_i32 = arith.constant 0 : i32
    return %arg0, %arg1 : i32, i32
  }
}

module attributes {stable_mosaic.version = 11 : i64} {
  func.func @_gemm_bias_kernel(%arg0: i32, %arg1: i32, %arg2: i32, %arg3: memref<128x256xbf16, #tpu.memory_space<vmem>>, %arg4: memref<256x128xbf16, #tpu.memory_space<vmem>>, %arg5: memref<1x128xf32, #tpu.memory_space<vmem>>, %arg6: memref<128x128xbf16, #tpu.memory_space<vmem>>, %arg7: memref<128x128xf32, #tpu.memory_space<vmem>>) attributes {dimension_semantics = [#tpu.dimension_semantics<parallel>, #tpu.dimension_semantics<parallel>, #tpu.dimension_semantics<arbitrary>], iteration_bounds = array<i64: 1, 1, 1>, scalar_prefetch = 0 : i64, scratch_operands = 1 : i64, tpu.core_type = #tpu.core_type<tc>, window_params = [{transform_indices = @transform_0, window_bounds = array<i64: 128, 256>}, {transform_indices = @transform_1, window_bounds = array<i64: 256, 128>}, {transform_indices = @transform_2, window_bounds = array<i64: 1, 128>}, {transform_indices = @transform_3, window_bounds = array<i64: 128, 128>}]} {
    %c0_i32 = arith.constant 0 : i32
    %0 = arith.cmpi eq, %arg2, %c0_i32 : i32
    %1 = arith.extui %0 : i1 to i32
    %c0_i32_0 = arith.constant 0 : i32
    %2 = arith.cmpi ne, %1, %c0_i32_0 : i32
    scf.if %2 {
      %cst_10 = arith.constant 0.000000e+00 : f32
      %12 = vector.broadcast %cst_10 : f32 to vector<128x128xf32>
      %c0_11 = arith.constant 0 : index
      %c0_12 = arith.constant 0 : index
      %13 = vector.load %arg7[%c0_11, %c0_12] : memref<128x128xf32, #tpu.memory_space<vmem>>, vector<128x128xf32>
      tpu.vector_store %arg7[%c0_11, %c0_12], %12 {strides = array<i32>} : memref<128x128xf32, #tpu.memory_space<vmem>>, vector<128x128xf32>,
    } else {
    }
    %c0 = arith.constant 0 : index
    %c0_1 = arith.constant 0 : index
    %3 = vector.load %arg7[%c0, %c0_1] : memref<128x128xf32, #tpu.memory_space<vmem>>, vector<128x128xf32>
    %c0_2 = arith.constant 0 : index
    %c0_3 = arith.constant 0 : index
    %4 = vector.load %arg3[%c0_2, %c0_3] : memref<128x256xbf16, #tpu.memory_space<vmem>>, vector<128x256xbf16>
    %c0_4 = arith.constant 0 : index
    %c0_5 = arith.constant 0 : index
    %5 = vector.load %arg4[%c0_4, %c0_5] : memref<256x128xbf16, #tpu.memory_space<vmem>>, vector<256x128xbf16>
    %cst = arith.constant dense<0.000000e+00> : vector<128x128xf32>
    %6 = tpu.matmul %4, %5, %cst {dimension_numbers = #tpu.dot_dimension_numbers<[1], [0], [0], [1], [0, 0, 1, 1], [], []>} : vector<128x256xbf16>, vector<256x128xbf16>, vector<128x128xf32> -> vector<128x128xf32>
    %7 = arith.addf %3, %6 : vector<128x128xf32>
    %c0_6 = arith.constant 0 : index
    %c0_7 = arith.constant 0 : index
    %8 = vector.load %arg7[%c0_6, %c0_7] : memref<128x128xf32, #tpu.memory_space<vmem>>, vector<128x128xf32>
    tpu.vector_store %arg7[%c0_6, %c0_7], %7 {strides = array<i32>} : memref<128x128xf32, #tpu.memory_space<vmem>>, vector<128x128xf32>,
    %c0_i32_8 = arith.constant 0 : i32
    %9 = arith.cmpi eq, %arg2, %c0_i32_8 : i32
    %10 = arith.extui %9 : i1 to i32
    %c0_i32_9 = arith.constant 0 : i32
    %11 = arith.cmpi ne, %10, %c0_i32_9 : i32
    scf.if %11 {
      %c0_10 = arith.constant 0 : index
      %c0_11 = arith.constant 0 : index
      %12 = vector.load %arg7[%c0_10, %c0_11] : memref<128x128xf32, #tpu.memory_space<vmem>>, vector<128x128xf32>
      %c0_12 = arith.constant 0 : index
      %c0_13 = arith.constant 0 : index
      %13 = vector.load %arg5[%c0_12, %c0_13] : memref<1x128xf32, #tpu.memory_space<vmem>>, vector<1x128xf32>
      %14 = vector.broadcast %13 : vector<1x128xf32> to vector<128x128xf32>
      %15 = arith.addf %12, %14 : vector<128x128xf32>
      %cst_14 = arith.constant 0.000000e+00 : f32
      %16 = vector.broadcast %cst_14 : f32 to vector<128x128xf32>
      %17 = arith.maximumf %15, %16 : vector<128x128xf32>
      %18 = arith.truncf %17 : vector<128x128xf32> to vector<128x128xbf16>
      %c0_15 = arith.constant 0 : index
      %c0_16 = arith.constant 0 : index
      %19 = vector.load %arg6[%c0_15, %c0_16] : memref<128x128xbf16, #tpu.memory_space<vmem>>, vector<128x128xbf16>
      tpu.vector_store %arg6[%c0_15, %c0_16], %18 {strides = array<i32>} : memref<128x128xbf16, #tpu.memory_space<vmem>>, vector<128x128xbf16>,
    } else {
    }
    return
  }
  func.func @transform_0(%arg0: i32, %arg1: i32, %arg2: i32) -> (i32, i32) {
    %c0_i32 = arith.constant 0 : i32
    return %arg0, %arg2 : i32, i32
  }
  func.func @transform_1(%arg0: i32, %arg1: i32, %arg2: i32) -> (i32, i32) {
    %c0_i32 = arith.constant 0 : i32
    return %arg2, %arg1 : i32, i32
  }
  func.func @transform_2(%arg0: i32, %arg1: i32, %arg2: i32) -> (i32, i32) {
    %c0_i32 = arith.constant 0 : i32
    %c0_i32_0 = arith.constant 0 : i32
    return %c0_i32, %arg1 : i32, i32
  }
  func.func @transform_3(%arg0: i32, %arg1: i32, %arg2: i32) -> (i32, i32) {
    %c0_i32 = arith.constant 0 : i32
    return %arg0, %arg1 : i32, i32
  }
}

module attributes {stable_mosaic.version = 11 : i64} {
  func.func @_gemm_bias_kernel(%arg0: i32, %arg1: i32, %arg2: i32, %arg3: memref<32x384xbf16, #tpu.memory_space<vmem>>, %arg4: memref<384x128xbf16, #tpu.memory_space<vmem>>, %arg5: memref<1x128xf32, #tpu.memory_space<vmem>>, %arg6: memref<32x128xbf16, #tpu.memory_space<vmem>>, %arg7: memref<32x128xf32, #tpu.memory_space<vmem>>) attributes {dimension_semantics = [#tpu.dimension_semantics<parallel>, #tpu.dimension_semantics<parallel>, #tpu.dimension_semantics<arbitrary>], iteration_bounds = array<i64: 1, 1, 3>, scalar_prefetch = 0 : i64, scratch_operands = 1 : i64, tpu.core_type = #tpu.core_type<tc>, window_params = [{transform_indices = @transform_0, window_bounds = array<i64: 32, 384>}, {transform_indices = @transform_1, window_bounds = array<i64: 384, 128>}, {transform_indices = @transform_2, window_bounds = array<i64: 1, 128>}, {transform_indices = @transform_3, window_bounds = array<i64: 32, 128>}]} {
    %c0_i32 = arith.constant 0 : i32
    %0 = arith.cmpi eq, %arg2, %c0_i32 : i32
    %1 = arith.extui %0 : i1 to i32
    %c0_i32_0 = arith.constant 0 : i32
    %2 = arith.cmpi ne, %1, %c0_i32_0 : i32
    scf.if %2 {
      %cst_9 = arith.constant 0.000000e+00 : f32
      %12 = vector.broadcast %cst_9 : f32 to vector<32x128xf32>
      %c0_10 = arith.constant 0 : index
      %c0_11 = arith.constant 0 : index
      %13 = vector.load %arg7[%c0_10, %c0_11] : memref<32x128xf32, #tpu.memory_space<vmem>>, vector<32x128xf32>
      tpu.vector_store %arg7[%c0_10, %c0_11], %12 {strides = array<i32>} : memref<32x128xf32, #tpu.memory_space<vmem>>, vector<32x128xf32>,
    } else {
    }
    %c0 = arith.constant 0 : index
    %c0_1 = arith.constant 0 : index
    %3 = vector.load %arg7[%c0, %c0_1] : memref<32x128xf32, #tpu.memory_space<vmem>>, vector<32x128xf32>
    %c0_2 = arith.constant 0 : index
    %c0_3 = arith.constant 0 : index
    %4 = vector.load %arg3[%c0_2, %c0_3] : memref<32x384xbf16, #tpu.memory_space<vmem>>, vector<32x384xbf16>
    %c0_4 = arith.constant 0 : index
    %c0_5 = arith.constant 0 : index
    %5 = vector.load %arg4[%c0_4, %c0_5] : memref<384x128xbf16, #tpu.memory_space<vmem>>, vector<384x128xbf16>
    %cst = arith.constant dense<0.000000e+00> : vector<32x128xf32>
    %6 = tpu.matmul %4, %5, %cst {dimension_numbers = #tpu.dot_dimension_numbers<[1], [0], [0], [1], [0, 0, 1, 1], [], []>} : vector<32x384xbf16>, vector<384x128xbf16>, vector<32x128xf32> -> vector<32x128xf32>
    %7 = arith.addf %3, %6 : vector<32x128xf32>
    %c0_6 = arith.constant 0 : index
    %c0_7 = arith.constant 0 : index
    %8 = vector.load %arg7[%c0_6, %c0_7] : memref<32x128xf32, #tpu.memory_space<vmem>>, vector<32x128xf32>
    tpu.vector_store %arg7[%c0_6, %c0_7], %7 {strides = array<i32>} : memref<32x128xf32, #tpu.memory_space<vmem>>, vector<32x128xf32>,
    %c2_i32 = arith.constant 2 : i32
    %9 = arith.cmpi eq, %arg2, %c2_i32 : i32
    %10 = arith.extui %9 : i1 to i32
    %c0_i32_8 = arith.constant 0 : i32
    %11 = arith.cmpi ne, %10, %c0_i32_8 : i32
    scf.if %11 {
      %c0_9 = arith.constant 0 : index
      %c0_10 = arith.constant 0 : index
      %12 = vector.load %arg7[%c0_9, %c0_10] : memref<32x128xf32, #tpu.memory_space<vmem>>, vector<32x128xf32>
      %c0_11 = arith.constant 0 : index
      %c0_12 = arith.constant 0 : index
      %13 = vector.load %arg5[%c0_11, %c0_12] : memref<1x128xf32, #tpu.memory_space<vmem>>, vector<1x128xf32>
      %14 = vector.broadcast %13 : vector<1x128xf32> to vector<32x128xf32>
      %15 = arith.addf %12, %14 : vector<32x128xf32>
      %cst_13 = arith.constant 0.000000e+00 : f32
      %16 = vector.broadcast %cst_13 : f32 to vector<32x128xf32>
      %17 = arith.maximumf %15, %16 : vector<32x128xf32>
      %18 = arith.truncf %17 : vector<32x128xf32> to vector<32x128xbf16>
      %c0_14 = arith.constant 0 : index
      %c0_15 = arith.constant 0 : index
      %19 = vector.load %arg6[%c0_14, %c0_15] : memref<32x128xbf16, #tpu.memory_space<vmem>>, vector<32x128xbf16>
      tpu.vector_store %arg6[%c0_14, %c0_15], %18 {strides = array<i32>} : memref<32x128xbf16, #tpu.memory_space<vmem>>, vector<32x128xbf16>,
    } else {
    }
    return
  }
  func.func @transform_0(%arg0: i32, %arg1: i32, %arg2: i32) -> (i32, i32) {
    %c0_i32 = arith.constant 0 : i32
    return %arg0, %arg2 : i32, i32
  }
  func.func @transform_1(%arg0: i32, %arg1: i32, %arg2: i32) -> (i32, i32) {
    %c0_i32 = arith.constant 0 : i32
    return %arg2, %arg1 : i32, i32
  }
  func.func @transform_2(%arg0: i32, %arg1: i32, %arg2: i32) -> (i32, i32) {
    %c0_i32 = arith.constant 0 : i32
    %c0_i32_0 = arith.constant 0 : i32
    return %c0_i32, %arg1 : i32, i32
  }
  func.func @transform_3(%arg0: i32, %arg1: i32, %arg2: i32) -> (i32, i32) {
    %c0_i32 = arith.constant 0 : i32
    return %arg0, %arg1 : i32, i32
  }
}

module attributes {stable_mosaic.version = 11 : i64} {
  func.func @_gemm_bias_kernel(%arg0: i32, %arg1: i32, %arg2: i32, %arg3: memref<32x256xbf16, #tpu.memory_space<vmem>>, %arg4: memref<256x512xbf16, #tpu.memory_space<vmem>>, %arg5: memref<1x512xf32, #tpu.memory_space<vmem>>, %arg6: memref<32x512xbf16, #tpu.memory_space<vmem>>, %arg7: memref<32x512xf32, #tpu.memory_space<vmem>>) attributes {dimension_semantics = [#tpu.dimension_semantics<parallel>, #tpu.dimension_semantics<parallel>, #tpu.dimension_semantics<arbitrary>], iteration_bounds = array<i64: 1, 1, 1>, scalar_prefetch = 0 : i64, scratch_operands = 1 : i64, tpu.core_type = #tpu.core_type<tc>, window_params = [{transform_indices = @transform_0, window_bounds = array<i64: 32, 256>}, {transform_indices = @transform_1, window_bounds = array<i64: 256, 512>}, {transform_indices = @transform_2, window_bounds = array<i64: 1, 512>}, {transform_indices = @transform_3, window_bounds = array<i64: 32, 512>}]} {
    %c0_i32 = arith.constant 0 : i32
    %0 = arith.cmpi eq, %arg2, %c0_i32 : i32
    %1 = arith.extui %0 : i1 to i32
    %c0_i32_0 = arith.constant 0 : i32
    %2 = arith.cmpi ne, %1, %c0_i32_0 : i32
    scf.if %2 {
      %cst_10 = arith.constant 0.000000e+00 : f32
      %12 = vector.broadcast %cst_10 : f32 to vector<32x512xf32>
      %c0_11 = arith.constant 0 : index
      %c0_12 = arith.constant 0 : index
      %13 = vector.load %arg7[%c0_11, %c0_12] : memref<32x512xf32, #tpu.memory_space<vmem>>, vector<32x512xf32>
      tpu.vector_store %arg7[%c0_11, %c0_12], %12 {strides = array<i32>} : memref<32x512xf32, #tpu.memory_space<vmem>>, vector<32x512xf32>,
    } else {
    }
    %c0 = arith.constant 0 : index
    %c0_1 = arith.constant 0 : index
    %3 = vector.load %arg7[%c0, %c0_1] : memref<32x512xf32, #tpu.memory_space<vmem>>, vector<32x512xf32>
    %c0_2 = arith.constant 0 : index
    %c0_3 = arith.constant 0 : index
    %4 = vector.load %arg3[%c0_2, %c0_3] : memref<32x256xbf16, #tpu.memory_space<vmem>>, vector<32x256xbf16>
    %c0_4 = arith.constant 0 : index
    %c0_5 = arith.constant 0 : index
    %5 = vector.load %arg4[%c0_4, %c0_5] : memref<256x512xbf16, #tpu.memory_space<vmem>>, vector<256x512xbf16>
    %cst = arith.constant dense<0.000000e+00> : vector<32x512xf32>
    %6 = tpu.matmul %4, %5, %cst {dimension_numbers = #tpu.dot_dimension_numbers<[1], [0], [0], [1], [0, 0, 1, 1], [], []>} : vector<32x256xbf16>, vector<256x512xbf16>, vector<32x512xf32> -> vector<32x512xf32>
    %7 = arith.addf %3, %6 : vector<32x512xf32>
    %c0_6 = arith.constant 0 : index
    %c0_7 = arith.constant 0 : index
    %8 = vector.load %arg7[%c0_6, %c0_7] : memref<32x512xf32, #tpu.memory_space<vmem>>, vector<32x512xf32>
    tpu.vector_store %arg7[%c0_6, %c0_7], %7 {strides = array<i32>} : memref<32x512xf32, #tpu.memory_space<vmem>>, vector<32x512xf32>,
    %c0_i32_8 = arith.constant 0 : i32
    %9 = arith.cmpi eq, %arg2, %c0_i32_8 : i32
    %10 = arith.extui %9 : i1 to i32
    %c0_i32_9 = arith.constant 0 : i32
    %11 = arith.cmpi ne, %10, %c0_i32_9 : i32
    scf.if %11 {
      %c0_10 = arith.constant 0 : index
      %c0_11 = arith.constant 0 : index
      %12 = vector.load %arg7[%c0_10, %c0_11] : memref<32x512xf32, #tpu.memory_space<vmem>>, vector<32x512xf32>
      %c0_12 = arith.constant 0 : index
      %c0_13 = arith.constant 0 : index
      %13 = vector.load %arg5[%c0_12, %c0_13] : memref<1x512xf32, #tpu.memory_space<vmem>>, vector<1x512xf32>
      %14 = vector.broadcast %13 : vector<1x512xf32> to vector<32x512xf32>
      %15 = arith.addf %12, %14 : vector<32x512xf32>
      %16 = arith.truncf %15 : vector<32x512xf32> to vector<32x512xbf16>
      %c0_14 = arith.constant 0 : index
      %c0_15 = arith.constant 0 : index
      %17 = vector.load %arg6[%c0_14, %c0_15] : memref<32x512xbf16, #tpu.memory_space<vmem>>, vector<32x512xbf16>
      tpu.vector_store %arg6[%c0_14, %c0_15], %16 {strides = array<i32>} : memref<32x512xbf16, #tpu.memory_space<vmem>>, vector<32x512xbf16>,
    } else {
    }
    return
  }
  func.func @transform_0(%arg0: i32, %arg1: i32, %arg2: i32) -> (i32, i32) {
    %c0_i32 = arith.constant 0 : i32
    return %arg0, %arg2 : i32, i32
  }
  func.func @transform_1(%arg0: i32, %arg1: i32, %arg2: i32) -> (i32, i32) {
    %c0_i32 = arith.constant 0 : i32
    return %arg2, %arg1 : i32, i32
  }
  func.func @transform_2(%arg0: i32, %arg1: i32, %arg2: i32) -> (i32, i32) {
    %c0_i32 = arith.constant 0 : i32
    %c0_i32_0 = arith.constant 0 : i32
    return %c0_i32, %arg1 : i32, i32
  }
  func.func @transform_3(%arg0: i32, %arg1: i32, %arg2: i32) -> (i32, i32) {
    %c0_i32 = arith.constant 0 : i32
    return %arg0, %arg1 : i32, i32
  }
}

module attributes {stable_mosaic.version = 11 : i64} {
  func.func @_gemm_bias_add_relu_kernel(%arg0: i32, %arg1: i32, %arg2: i32, %arg3: memref<32x128xbf16, #tpu.memory_space<vmem>>, %arg4: memref<128x512xbf16, #tpu.memory_space<vmem>>, %arg5: memref<1x512xf32, #tpu.memory_space<vmem>>, %arg6: memref<32x512xbf16, #tpu.memory_space<vmem>>, %arg7: memref<32x512xbf16, #tpu.memory_space<vmem>>, %arg8: memref<32x512xf32, #tpu.memory_space<vmem>>) attributes {dimension_semantics = [#tpu.dimension_semantics<parallel>, #tpu.dimension_semantics<parallel>, #tpu.dimension_semantics<arbitrary>], iteration_bounds = array<i64: 1, 1, 1>, scalar_prefetch = 0 : i64, scratch_operands = 1 : i64, tpu.core_type = #tpu.core_type<tc>, window_params = [{transform_indices = @transform_0, window_bounds = array<i64: 32, 128>}, {transform_indices = @transform_1, window_bounds = array<i64: 128, 512>}, {transform_indices = @transform_2, window_bounds = array<i64: 1, 512>}, {transform_indices = @transform_3, window_bounds = array<i64: 32, 512>}, {transform_indices = @transform_4, window_bounds = array<i64: 32, 512>}]} {
    %c0_i32 = arith.constant 0 : i32
    %0 = arith.cmpi eq, %arg2, %c0_i32 : i32
    %1 = arith.extui %0 : i1 to i32
    %c0_i32_0 = arith.constant 0 : i32
    %2 = arith.cmpi ne, %1, %c0_i32_0 : i32
    scf.if %2 {
      %cst_10 = arith.constant 0.000000e+00 : f32
      %12 = vector.broadcast %cst_10 : f32 to vector<32x512xf32>
      %c0_11 = arith.constant 0 : index
      %c0_12 = arith.constant 0 : index
      %13 = vector.load %arg8[%c0_11, %c0_12] : memref<32x512xf32, #tpu.memory_space<vmem>>, vector<32x512xf32>
      tpu.vector_store %arg8[%c0_11, %c0_12], %12 {strides = array<i32>} : memref<32x512xf32, #tpu.memory_space<vmem>>, vector<32x512xf32>,
    } else {
    }
    %c0 = arith.constant 0 : index
    %c0_1 = arith.constant 0 : index
    %3 = vector.load %arg8[%c0, %c0_1] : memref<32x512xf32, #tpu.memory_space<vmem>>, vector<32x512xf32>
    %c0_2 = arith.constant 0 : index
    %c0_3 = arith.constant 0 : index
    %4 = vector.load %arg3[%c0_2, %c0_3] : memref<32x128xbf16, #tpu.memory_space<vmem>>, vector<32x128xbf16>
    %c0_4 = arith.constant 0 : index
    %c0_5 = arith.constant 0 : index
    %5 = vector.load %arg4[%c0_4, %c0_5] : memref<128x512xbf16, #tpu.memory_space<vmem>>, vector<128x512xbf16>
    %cst = arith.constant dense<0.000000e+00> : vector<32x512xf32>
    %6 = tpu.matmul %4, %5, %cst {dimension_numbers = #tpu.dot_dimension_numbers<[1], [0], [0], [1], [0, 0, 1, 1], [], []>} : vector<32x128xbf16>, vector<128x512xbf16>, vector<32x512xf32> -> vector<32x512xf32>
    %7 = arith.addf %3, %6 : vector<32x512xf32>
    %c0_6 = arith.constant 0 : index
    %c0_7 = arith.constant 0 : index
    %8 = vector.load %arg8[%c0_6, %c0_7] : memref<32x512xf32, #tpu.memory_space<vmem>>, vector<32x512xf32>
    tpu.vector_store %arg8[%c0_6, %c0_7], %7 {strides = array<i32>} : memref<32x512xf32, #tpu.memory_space<vmem>>, vector<32x512xf32>,
    %c0_i32_8 = arith.constant 0 : i32
    %9 = arith.cmpi eq, %arg2, %c0_i32_8 : i32
    %10 = arith.extui %9 : i1 to i32
    %c0_i32_9 = arith.constant 0 : i32
    %11 = arith.cmpi ne, %10, %c0_i32_9 : i32
    scf.if %11 {
      %c0_10 = arith.constant 0 : index
      %c0_11 = arith.constant 0 : index
      %12 = vector.load %arg8[%c0_10, %c0_11] : memref<32x512xf32, #tpu.memory_space<vmem>>, vector<32x512xf32>
      %c0_12 = arith.constant 0 : index
      %c0_13 = arith.constant 0 : index
      %13 = vector.load %arg5[%c0_12, %c0_13] : memref<1x512xf32, #tpu.memory_space<vmem>>, vector<1x512xf32>
      %14 = vector.broadcast %13 : vector<1x512xf32> to vector<32x512xf32>
      %15 = arith.addf %12, %14 : vector<32x512xf32>
      %c0_14 = arith.constant 0 : index
      %c0_15 = arith.constant 0 : index
      %16 = vector.load %arg6[%c0_14, %c0_15] : memref<32x512xbf16, #tpu.memory_space<vmem>>, vector<32x512xbf16>
      %17 = arith.extf %16 : vector<32x512xbf16> to vector<32x512xf32>
      %18 = arith.addf %15, %17 : vector<32x512xf32>
      %cst_16 = arith.constant 0.000000e+00 : f32
      %19 = vector.broadcast %cst_16 : f32 to vector<32x512xf32>
      %20 = arith.maximumf %18, %19 : vector<32x512xf32>
      %21 = arith.truncf %20 : vector<32x512xf32> to vector<32x512xbf16>
      %c0_17 = arith.constant 0 : index
      %c0_18 = arith.constant 0 : index
      %22 = vector.load %arg7[%c0_17, %c0_18] : memref<32x512xbf16, #tpu.memory_space<vmem>>, vector<32x512xbf16>
      tpu.vector_store %arg7[%c0_17, %c0_18], %21 {strides = array<i32>} : memref<32x512xbf16, #tpu.memory_space<vmem>>, vector<32x512xbf16>,
    } else {
    }
    return
  }
  func.func @transform_0(%arg0: i32, %arg1: i32, %arg2: i32) -> (i32, i32) {
    %c0_i32 = arith.constant 0 : i32
    return %arg0, %arg2 : i32, i32
  }
  func.func @transform_1(%arg0: i32, %arg1: i32, %arg2: i32) -> (i32, i32) {
    %c0_i32 = arith.constant 0 : i32
    return %arg2, %arg1 : i32, i32
  }
  func.func @transform_2(%arg0: i32, %arg1: i32, %arg2: i32) -> (i32, i32) {
    %c0_i32 = arith.constant 0 : i32
    %c0_i32_0 = arith.constant 0 : i32
    return %c0_i32, %arg1 : i32, i32
  }
  func.func @transform_3(%arg0: i32, %arg1: i32, %arg2: i32) -> (i32, i32) {
    %c0_i32 = arith.constant 0 : i32
    return %arg0, %arg1 : i32, i32
  }
  func.func @transform_4(%arg0: i32, %arg1: i32, %arg2: i32) -> (i32, i32) {
    %c0_i32 = arith.constant 0 : i32
    return %arg0, %arg1 : i32, i32
  }
}

module attributes {stable_mosaic.version = 11 : i64} {
  func.func @_gemm_bias_kernel(%arg0: i32, %arg1: i32, %arg2: i32, %arg3: memref<32x512xbf16, #tpu.memory_space<vmem>>, %arg4: memref<512x128xbf16, #tpu.memory_space<vmem>>, %arg5: memref<1x128xf32, #tpu.memory_space<vmem>>, %arg6: memref<32x128xbf16, #tpu.memory_space<vmem>>, %arg7: memref<32x128xf32, #tpu.memory_space<vmem>>) attributes {dimension_semantics = [#tpu.dimension_semantics<parallel>, #tpu.dimension_semantics<parallel>, #tpu.dimension_semantics<arbitrary>], iteration_bounds = array<i64: 1, 1, 1>, scalar_prefetch = 0 : i64, scratch_operands = 1 : i64, tpu.core_type = #tpu.core_type<tc>, window_params = [{transform_indices = @transform_0, window_bounds = array<i64: 32, 512>}, {transform_indices = @transform_1, window_bounds = array<i64: 512, 128>}, {transform_indices = @transform_2, window_bounds = array<i64: 1, 128>}, {transform_indices = @transform_3, window_bounds = array<i64: 32, 128>}]} {
    %c0_i32 = arith.constant 0 : i32
    %0 = arith.cmpi eq, %arg2, %c0_i32 : i32
    %1 = arith.extui %0 : i1 to i32
    %c0_i32_0 = arith.constant 0 : i32
    %2 = arith.cmpi ne, %1, %c0_i32_0 : i32
    scf.if %2 {
      %cst_10 = arith.constant 0.000000e+00 : f32
      %12 = vector.broadcast %cst_10 : f32 to vector<32x128xf32>
      %c0_11 = arith.constant 0 : index
      %c0_12 = arith.constant 0 : index
      %13 = vector.load %arg7[%c0_11, %c0_12] : memref<32x128xf32, #tpu.memory_space<vmem>>, vector<32x128xf32>
      tpu.vector_store %arg7[%c0_11, %c0_12], %12 {strides = array<i32>} : memref<32x128xf32, #tpu.memory_space<vmem>>, vector<32x128xf32>,
    } else {
    }
    %c0 = arith.constant 0 : index
    %c0_1 = arith.constant 0 : index
    %3 = vector.load %arg7[%c0, %c0_1] : memref<32x128xf32, #tpu.memory_space<vmem>>, vector<32x128xf32>
    %c0_2 = arith.constant 0 : index
    %c0_3 = arith.constant 0 : index
    %4 = vector.load %arg3[%c0_2, %c0_3] : memref<32x512xbf16, #tpu.memory_space<vmem>>, vector<32x512xbf16>
    %c0_4 = arith.constant 0 : index
    %c0_5 = arith.constant 0 : index
    %5 = vector.load %arg4[%c0_4, %c0_5] : memref<512x128xbf16, #tpu.memory_space<vmem>>, vector<512x128xbf16>
    %cst = arith.constant dense<0.000000e+00> : vector<32x128xf32>
    %6 = tpu.matmul %4, %5, %cst {dimension_numbers = #tpu.dot_dimension_numbers<[1], [0], [0], [1], [0, 0, 1, 1], [], []>} : vector<32x512xbf16>, vector<512x128xbf16>, vector<32x128xf32> -> vector<32x128xf32>
    %7 = arith.addf %3, %6 : vector<32x128xf32>
    %c0_6 = arith.constant 0 : index
    %c0_7 = arith.constant 0 : index
    %8 = vector.load %arg7[%c0_6, %c0_7] : memref<32x128xf32, #tpu.memory_space<vmem>>, vector<32x128xf32>
    tpu.vector_store %arg7[%c0_6, %c0_7], %7 {strides = array<i32>} : memref<32x128xf32, #tpu.memory_space<vmem>>, vector<32x128xf32>,
    %c0_i32_8 = arith.constant 0 : i32
    %9 = arith.cmpi eq, %arg2, %c0_i32_8 : i32
    %10 = arith.extui %9 : i1 to i32
    %c0_i32_9 = arith.constant 0 : i32
    %11 = arith.cmpi ne, %10, %c0_i32_9 : i32
    scf.if %11 {
      %c0_10 = arith.constant 0 : index
      %c0_11 = arith.constant 0 : index
      %12 = vector.load %arg7[%c0_10, %c0_11] : memref<32x128xf32, #tpu.memory_space<vmem>>, vector<32x128xf32>
      %c0_12 = arith.constant 0 : index
      %c0_13 = arith.constant 0 : index
      %13 = vector.load %arg5[%c0_12, %c0_13] : memref<1x128xf32, #tpu.memory_space<vmem>>, vector<1x128xf32>
      %14 = vector.broadcast %13 : vector<1x128xf32> to vector<32x128xf32>
      %15 = arith.addf %12, %14 : vector<32x128xf32>
      %cst_14 = arith.constant 0.000000e+00 : f32
      %16 = vector.broadcast %cst_14 : f32 to vector<32x128xf32>
      %17 = arith.maximumf %15, %16 : vector<32x128xf32>
      %18 = arith.truncf %17 : vector<32x128xf32> to vector<32x128xbf16>
      %c0_15 = arith.constant 0 : index
      %c0_16 = arith.constant 0 : index
      %19 = vector.load %arg6[%c0_15, %c0_16] : memref<32x128xbf16, #tpu.memory_space<vmem>>, vector<32x128xbf16>
      tpu.vector_store %arg6[%c0_15, %c0_16], %18 {strides = array<i32>} : memref<32x128xbf16, #tpu.memory_space<vmem>>, vector<32x128xbf16>,
    } else {
    }
    return
  }
  func.func @transform_0(%arg0: i32, %arg1: i32, %arg2: i32) -> (i32, i32) {
    %c0_i32 = arith.constant 0 : i32
    return %arg0, %arg2 : i32, i32
  }
  func.func @transform_1(%arg0: i32, %arg1: i32, %arg2: i32) -> (i32, i32) {
    %c0_i32 = arith.constant 0 : i32
    return %arg2, %arg1 : i32, i32
  }
  func.func @transform_2(%arg0: i32, %arg1: i32, %arg2: i32) -> (i32, i32) {
    %c0_i32 = arith.constant 0 : i32
    %c0_i32_0 = arith.constant 0 : i32
    return %c0_i32, %arg1 : i32, i32
  }
  func.func @transform_3(%arg0: i32, %arg1: i32, %arg2: i32) -> (i32, i32) {
    %c0_i32 = arith.constant 0 : i32
    return %arg0, %arg1 : i32, i32
  }
}

module attributes {stable_mosaic.version = 11 : i64} {
  func.func @_gemm_bias_kernel(%arg0: i32, %arg1: i32, %arg2: i32, %arg3: memref<32x512xbf16, #tpu.memory_space<vmem>>, %arg4: memref<512x256xbf16, #tpu.memory_space<vmem>>, %arg5: memref<1x256xf32, #tpu.memory_space<vmem>>, %arg6: memref<32x256xbf16, #tpu.memory_space<vmem>>, %arg7: memref<32x256xf32, #tpu.memory_space<vmem>>) attributes {dimension_semantics = [#tpu.dimension_semantics<parallel>, #tpu.dimension_semantics<parallel>, #tpu.dimension_semantics<arbitrary>], iteration_bounds = array<i64: 1, 1, 1>, scalar_prefetch = 0 : i64, scratch_operands = 1 : i64, tpu.core_type = #tpu.core_type<tc>, window_params = [{transform_indices = @transform_0, window_bounds = array<i64: 32, 512>}, {transform_indices = @transform_1, window_bounds = array<i64: 512, 256>}, {transform_indices = @transform_2, window_bounds = array<i64: 1, 256>}, {transform_indices = @transform_3, window_bounds = array<i64: 32, 256>}]} {
    %c0_i32 = arith.constant 0 : i32
    %0 = arith.cmpi eq, %arg2, %c0_i32 : i32
    %1 = arith.extui %0 : i1 to i32
    %c0_i32_0 = arith.constant 0 : i32
    %2 = arith.cmpi ne, %1, %c0_i32_0 : i32
    scf.if %2 {
      %cst_10 = arith.constant 0.000000e+00 : f32
      %12 = vector.broadcast %cst_10 : f32 to vector<32x256xf32>
      %c0_11 = arith.constant 0 : index
      %c0_12 = arith.constant 0 : index
      %13 = vector.load %arg7[%c0_11, %c0_12] : memref<32x256xf32, #tpu.memory_space<vmem>>, vector<32x256xf32>
      tpu.vector_store %arg7[%c0_11, %c0_12], %12 {strides = array<i32>} : memref<32x256xf32, #tpu.memory_space<vmem>>, vector<32x256xf32>,
    } else {
    }
    %c0 = arith.constant 0 : index
    %c0_1 = arith.constant 0 : index
    %3 = vector.load %arg7[%c0, %c0_1] : memref<32x256xf32, #tpu.memory_space<vmem>>, vector<32x256xf32>
    %c0_2 = arith.constant 0 : index
    %c0_3 = arith.constant 0 : index
    %4 = vector.load %arg3[%c0_2, %c0_3] : memref<32x512xbf16, #tpu.memory_space<vmem>>, vector<32x512xbf16>
    %c0_4 = arith.constant 0 : index
    %c0_5 = arith.constant 0 : index
    %5 = vector.load %arg4[%c0_4, %c0_5] : memref<512x256xbf16, #tpu.memory_space<vmem>>, vector<512x256xbf16>
    %cst = arith.constant dense<0.000000e+00> : vector<32x256xf32>
    %6 = tpu.matmul %4, %5, %cst {dimension_numbers = #tpu.dot_dimension_numbers<[1], [0], [0], [1], [0, 0, 1, 1], [], []>} : vector<32x512xbf16>, vector<512x256xbf16>, vector<32x256xf32> -> vector<32x256xf32>
    %7 = arith.addf %3, %6 : vector<32x256xf32>
    %c0_6 = arith.constant 0 : index
    %c0_7 = arith.constant 0 : index
    %8 = vector.load %arg7[%c0_6, %c0_7] : memref<32x256xf32, #tpu.memory_space<vmem>>, vector<32x256xf32>
    tpu.vector_store %arg7[%c0_6, %c0_7], %7 {strides = array<i32>} : memref<32x256xf32, #tpu.memory_space<vmem>>, vector<32x256xf32>,
    %c0_i32_8 = arith.constant 0 : i32
    %9 = arith.cmpi eq, %arg2, %c0_i32_8 : i32
    %10 = arith.extui %9 : i1 to i32
    %c0_i32_9 = arith.constant 0 : i32
    %11 = arith.cmpi ne, %10, %c0_i32_9 : i32
    scf.if %11 {
      %c0_10 = arith.constant 0 : index
      %c0_11 = arith.constant 0 : index
      %12 = vector.load %arg7[%c0_10, %c0_11] : memref<32x256xf32, #tpu.memory_space<vmem>>, vector<32x256xf32>
      %c0_12 = arith.constant 0 : index
      %c0_13 = arith.constant 0 : index
      %13 = vector.load %arg5[%c0_12, %c0_13] : memref<1x256xf32, #tpu.memory_space<vmem>>, vector<1x256xf32>
      %14 = vector.broadcast %13 : vector<1x256xf32> to vector<32x256xf32>
      %15 = arith.addf %12, %14 : vector<32x256xf32>
      %cst_14 = arith.constant 0.000000e+00 : f32
      %16 = vector.broadcast %cst_14 : f32 to vector<32x256xf32>
      %17 = arith.maximumf %15, %16 : vector<32x256xf32>
      %18 = arith.truncf %17 : vector<32x256xf32> to vector<32x256xbf16>
      %c0_15 = arith.constant 0 : index
      %c0_16 = arith.constant 0 : index
      %19 = vector.load %arg6[%c0_15, %c0_16] : memref<32x256xbf16, #tpu.memory_space<vmem>>, vector<32x256xbf16>
      tpu.vector_store %arg6[%c0_15, %c0_16], %18 {strides = array<i32>} : memref<32x256xbf16, #tpu.memory_space<vmem>>, vector<32x256xbf16>,
    } else {
    }
    return
  }
  func.func @transform_0(%arg0: i32, %arg1: i32, %arg2: i32) -> (i32, i32) {
    %c0_i32 = arith.constant 0 : i32
    return %arg0, %arg2 : i32, i32
  }
  func.func @transform_1(%arg0: i32, %arg1: i32, %arg2: i32) -> (i32, i32) {
    %c0_i32 = arith.constant 0 : i32
    return %arg2, %arg1 : i32, i32
  }
  func.func @transform_2(%arg0: i32, %arg1: i32, %arg2: i32) -> (i32, i32) {
    %c0_i32 = arith.constant 0 : i32
    %c0_i32_0 = arith.constant 0 : i32
    return %c0_i32, %arg1 : i32, i32
  }
  func.func @transform_3(%arg0: i32, %arg1: i32, %arg2: i32) -> (i32, i32) {
    %c0_i32 = arith.constant 0 : i32
    return %arg0, %arg1 : i32, i32
  }
}

module attributes {stable_mosaic.version = 11 : i64} {
  func.func @_gemm_bias_kernel(%arg0: i32, %arg1: i32, %arg2: i32, %arg3: memref<8x384xbf16, #tpu.memory_space<vmem>>, %arg4: memref<384x256xbf16, #tpu.memory_space<vmem>>, %arg5: memref<1x256xf32, #tpu.memory_space<vmem>>, %arg6: memref<8x256xbf16, #tpu.memory_space<vmem>>, %arg7: memref<8x256xf32, #tpu.memory_space<vmem>>) attributes {dimension_semantics = [#tpu.dimension_semantics<parallel>, #tpu.dimension_semantics<parallel>, #tpu.dimension_semantics<arbitrary>], iteration_bounds = array<i64: 1, 1, 6>, scalar_prefetch = 0 : i64, scratch_operands = 1 : i64, tpu.core_type = #tpu.core_type<tc>, window_params = [{transform_indices = @transform_0, window_bounds = array<i64: 8, 384>}, {transform_indices = @transform_1, window_bounds = array<i64: 384, 256>}, {transform_indices = @transform_2, window_bounds = array<i64: 1, 256>}, {transform_indices = @transform_3, window_bounds = array<i64: 8, 256>}]} {
    %c0_i32 = arith.constant 0 : i32
    %0 = arith.cmpi eq, %arg2, %c0_i32 : i32
    %1 = arith.extui %0 : i1 to i32
    %c0_i32_0 = arith.constant 0 : i32
    %2 = arith.cmpi ne, %1, %c0_i32_0 : i32
    scf.if %2 {
      %cst_9 = arith.constant 0.000000e+00 : f32
      %12 = vector.broadcast %cst_9 : f32 to vector<8x256xf32>
      %c0_10 = arith.constant 0 : index
      %c0_11 = arith.constant 0 : index
      %13 = vector.load %arg7[%c0_10, %c0_11] : memref<8x256xf32, #tpu.memory_space<vmem>>, vector<8x256xf32>
      tpu.vector_store %arg7[%c0_10, %c0_11], %12 {strides = array<i32>} : memref<8x256xf32, #tpu.memory_space<vmem>>, vector<8x256xf32>,
    } else {
    }
    %c0 = arith.constant 0 : index
    %c0_1 = arith.constant 0 : index
    %3 = vector.load %arg7[%c0, %c0_1] : memref<8x256xf32, #tpu.memory_space<vmem>>, vector<8x256xf32>
    %c0_2 = arith.constant 0 : index
    %c0_3 = arith.constant 0 : index
    %4 = vector.load %arg3[%c0_2, %c0_3] : memref<8x384xbf16, #tpu.memory_space<vmem>>, vector<8x384xbf16>
    %c0_4 = arith.constant 0 : index
    %c0_5 = arith.constant 0 : index
    %5 = vector.load %arg4[%c0_4, %c0_5] : memref<384x256xbf16, #tpu.memory_space<vmem>>, vector<384x256xbf16>
    %cst = arith.constant dense<0.000000e+00> : vector<8x256xf32>
    %6 = tpu.matmul %4, %5, %cst {dimension_numbers = #tpu.dot_dimension_numbers<[1], [0], [0], [1], [0, 0, 1, 1], [], []>} : vector<8x384xbf16>, vector<384x256xbf16>, vector<8x256xf32> -> vector<8x256xf32>
    %7 = arith.addf %3, %6 : vector<8x256xf32>
    %c0_6 = arith.constant 0 : index
    %c0_7 = arith.constant 0 : index
    %8 = vector.load %arg7[%c0_6, %c0_7] : memref<8x256xf32, #tpu.memory_space<vmem>>, vector<8x256xf32>
    tpu.vector_store %arg7[%c0_6, %c0_7], %7 {strides = array<i32>} : memref<8x256xf32, #tpu.memory_space<vmem>>, vector<8x256xf32>,
    %c5_i32 = arith.constant 5 : i32
    %9 = arith.cmpi eq, %arg2, %c5_i32 : i32
    %10 = arith.extui %9 : i1 to i32
    %c0_i32_8 = arith.constant 0 : i32
    %11 = arith.cmpi ne, %10, %c0_i32_8 : i32
    scf.if %11 {
      %c0_9 = arith.constant 0 : index
      %c0_10 = arith.constant 0 : index
      %12 = vector.load %arg7[%c0_9, %c0_10] : memref<8x256xf32, #tpu.memory_space<vmem>>, vector<8x256xf32>
      %c0_11 = arith.constant 0 : index
      %c0_12 = arith.constant 0 : index
      %13 = vector.load %arg5[%c0_11, %c0_12] : memref<1x256xf32, #tpu.memory_space<vmem>>, vector<1x256xf32>
      %14 = vector.broadcast %13 : vector<1x256xf32> to vector<8x256xf32>
      %15 = arith.addf %12, %14 : vector<8x256xf32>
      %cst_13 = arith.constant 0.000000e+00 : f32
      %16 = vector.broadcast %cst_13 : f32 to vector<8x256xf32>
      %17 = arith.maximumf %15, %16 : vector<8x256xf32>
      %18 = arith.truncf %17 : vector<8x256xf32> to vector<8x256xbf16>
      %c0_14 = arith.constant 0 : index
      %c0_15 = arith.constant 0 : index
      %19 = vector.load %arg6[%c0_14, %c0_15] : memref<8x256xbf16, #tpu.memory_space<vmem>>, vector<8x256xbf16>
      tpu.vector_store %arg6[%c0_14, %c0_15], %18 {strides = array<i32>} : memref<8x256xbf16, #tpu.memory_space<vmem>>, vector<8x256xbf16>,
    } else {
    }
    return
  }
  func.func @transform_0(%arg0: i32, %arg1: i32, %arg2: i32) -> (i32, i32) {
    %c0_i32 = arith.constant 0 : i32
    return %arg0, %arg2 : i32, i32
  }
  func.func @transform_1(%arg0: i32, %arg1: i32, %arg2: i32) -> (i32, i32) {
    %c0_i32 = arith.constant 0 : i32
    return %arg2, %arg1 : i32, i32
  }
  func.func @transform_2(%arg0: i32, %arg1: i32, %arg2: i32) -> (i32, i32) {
    %c0_i32 = arith.constant 0 : i32
    %c0_i32_0 = arith.constant 0 : i32
    return %c0_i32, %arg1 : i32, i32
  }
  func.func @transform_3(%arg0: i32, %arg1: i32, %arg2: i32) -> (i32, i32) {
    %c0_i32 = arith.constant 0 : i32
    return %arg0, %arg1 : i32, i32
  }
}

module attributes {stable_mosaic.version = 11 : i64} {
  func.func @_gemm_bias_kernel(%arg0: i32, %arg1: i32, %arg2: i32, %arg3: memref<8x512xbf16, #tpu.memory_space<vmem>>, %arg4: memref<512x512xbf16, #tpu.memory_space<vmem>>, %arg5: memref<1x512xf32, #tpu.memory_space<vmem>>, %arg6: memref<8x512xbf16, #tpu.memory_space<vmem>>, %arg7: memref<8x512xf32, #tpu.memory_space<vmem>>) attributes {dimension_semantics = [#tpu.dimension_semantics<parallel>, #tpu.dimension_semantics<parallel>, #tpu.dimension_semantics<arbitrary>], iteration_bounds = array<i64: 1, 2, 1>, scalar_prefetch = 0 : i64, scratch_operands = 1 : i64, tpu.core_type = #tpu.core_type<tc>, window_params = [{transform_indices = @transform_0, window_bounds = array<i64: 8, 512>}, {transform_indices = @transform_1, window_bounds = array<i64: 512, 512>}, {transform_indices = @transform_2, window_bounds = array<i64: 1, 512>}, {transform_indices = @transform_3, window_bounds = array<i64: 8, 512>}]} {
    %c0_i32 = arith.constant 0 : i32
    %0 = arith.cmpi eq, %arg2, %c0_i32 : i32
    %1 = arith.extui %0 : i1 to i32
    %c0_i32_0 = arith.constant 0 : i32
    %2 = arith.cmpi ne, %1, %c0_i32_0 : i32
    scf.if %2 {
      %cst_10 = arith.constant 0.000000e+00 : f32
      %12 = vector.broadcast %cst_10 : f32 to vector<8x512xf32>
      %c0_11 = arith.constant 0 : index
      %c0_12 = arith.constant 0 : index
      %13 = vector.load %arg7[%c0_11, %c0_12] : memref<8x512xf32, #tpu.memory_space<vmem>>, vector<8x512xf32>
      tpu.vector_store %arg7[%c0_11, %c0_12], %12 {strides = array<i32>} : memref<8x512xf32, #tpu.memory_space<vmem>>, vector<8x512xf32>,
    } else {
    }
    %c0 = arith.constant 0 : index
    %c0_1 = arith.constant 0 : index
    %3 = vector.load %arg7[%c0, %c0_1] : memref<8x512xf32, #tpu.memory_space<vmem>>, vector<8x512xf32>
    %c0_2 = arith.constant 0 : index
    %c0_3 = arith.constant 0 : index
    %4 = vector.load %arg3[%c0_2, %c0_3] : memref<8x512xbf16, #tpu.memory_space<vmem>>, vector<8x512xbf16>
    %c0_4 = arith.constant 0 : index
    %c0_5 = arith.constant 0 : index
    %5 = vector.load %arg4[%c0_4, %c0_5] : memref<512x512xbf16, #tpu.memory_space<vmem>>, vector<512x512xbf16>
    %cst = arith.constant dense<0.000000e+00> : vector<8x512xf32>
    %6 = tpu.matmul %4, %5, %cst {dimension_numbers = #tpu.dot_dimension_numbers<[1], [0], [0], [1], [0, 0, 1, 1], [], []>} : vector<8x512xbf16>, vector<512x512xbf16>, vector<8x512xf32> -> vector<8x512xf32>
    %7 = arith.addf %3, %6 : vector<8x512xf32>
    %c0_6 = arith.constant 0 : index
    %c0_7 = arith.constant 0 : index
    %8 = vector.load %arg7[%c0_6, %c0_7] : memref<8x512xf32, #tpu.memory_space<vmem>>, vector<8x512xf32>
    tpu.vector_store %arg7[%c0_6, %c0_7], %7 {strides = array<i32>} : memref<8x512xf32, #tpu.memory_space<vmem>>, vector<8x512xf32>,
    %c0_i32_8 = arith.constant 0 : i32
    %9 = arith.cmpi eq, %arg2, %c0_i32_8 : i32
    %10 = arith.extui %9 : i1 to i32
    %c0_i32_9 = arith.constant 0 : i32
    %11 = arith.cmpi ne, %10, %c0_i32_9 : i32
    scf.if %11 {
      %c0_10 = arith.constant 0 : index
      %c0_11 = arith.constant 0 : index
      %12 = vector.load %arg7[%c0_10, %c0_11] : memref<8x512xf32, #tpu.memory_space<vmem>>, vector<8x512xf32>
      %c0_12 = arith.constant 0 : index
      %c0_13 = arith.constant 0 : index
      %13 = vector.load %arg5[%c0_12, %c0_13] : memref<1x512xf32, #tpu.memory_space<vmem>>, vector<1x512xf32>
      %14 = vector.broadcast %13 : vector<1x512xf32> to vector<8x512xf32>
      %15 = arith.addf %12, %14 : vector<8x512xf32>
      %16 = arith.truncf %15 : vector<8x512xf32> to vector<8x512xbf16>
      %c0_14 = arith.constant 0 : index
      %c0_15 = arith.constant 0 : index
      %17 = vector.load %arg6[%c0_14, %c0_15] : memref<8x512xbf16, #tpu.memory_space<vmem>>, vector<8x512xbf16>
      tpu.vector_store %arg6[%c0_14, %c0_15], %16 {strides = array<i32>} : memref<8x512xbf16, #tpu.memory_space<vmem>>, vector<8x512xbf16>,
    } else {
    }
    return
  }
  func.func @transform_0(%arg0: i32, %arg1: i32, %arg2: i32) -> (i32, i32) {
    %c0_i32 = arith.constant 0 : i32
    return %arg0, %arg2 : i32, i32
  }
  func.func @transform_1(%arg0: i32, %arg1: i32, %arg2: i32) -> (i32, i32) {
    %c0_i32 = arith.constant 0 : i32
    return %arg2, %arg1 : i32, i32
  }
  func.func @transform_2(%arg0: i32, %arg1: i32, %arg2: i32) -> (i32, i32) {
    %c0_i32 = arith.constant 0 : i32
    %c0_i32_0 = arith.constant 0 : i32
    return %c0_i32, %arg1 : i32, i32
  }
  func.func @transform_3(%arg0: i32, %arg1: i32, %arg2: i32) -> (i32, i32) {
    %c0_i32 = arith.constant 0 : i32
    return %arg0, %arg1 : i32, i32
  }
}

module attributes {stable_mosaic.version = 11 : i64} {
  func.func @_gemm_bias_add_relu_kernel(%arg0: i32, %arg1: i32, %arg2: i32, %arg3: memref<8x256xbf16, #tpu.memory_space<vmem>>, %arg4: memref<256x512xbf16, #tpu.memory_space<vmem>>, %arg5: memref<1x512xf32, #tpu.memory_space<vmem>>, %arg6: memref<8x512xbf16, #tpu.memory_space<vmem>>, %arg7: memref<8x512xbf16, #tpu.memory_space<vmem>>, %arg8: memref<8x512xf32, #tpu.memory_space<vmem>>) attributes {dimension_semantics = [#tpu.dimension_semantics<parallel>, #tpu.dimension_semantics<parallel>, #tpu.dimension_semantics<arbitrary>], iteration_bounds = array<i64: 1, 2, 1>, scalar_prefetch = 0 : i64, scratch_operands = 1 : i64, tpu.core_type = #tpu.core_type<tc>, window_params = [{transform_indices = @transform_0, window_bounds = array<i64: 8, 256>}, {transform_indices = @transform_1, window_bounds = array<i64: 256, 512>}, {transform_indices = @transform_2, window_bounds = array<i64: 1, 512>}, {transform_indices = @transform_3, window_bounds = array<i64: 8, 512>}, {transform_indices = @transform_4, window_bounds = array<i64: 8, 512>}]} {
    %c0_i32 = arith.constant 0 : i32
    %0 = arith.cmpi eq, %arg2, %c0_i32 : i32
    %1 = arith.extui %0 : i1 to i32
    %c0_i32_0 = arith.constant 0 : i32
    %2 = arith.cmpi ne, %1, %c0_i32_0 : i32
    scf.if %2 {
      %cst_10 = arith.constant 0.000000e+00 : f32
      %12 = vector.broadcast %cst_10 : f32 to vector<8x512xf32>
      %c0_11 = arith.constant 0 : index
      %c0_12 = arith.constant 0 : index
      %13 = vector.load %arg8[%c0_11, %c0_12] : memref<8x512xf32, #tpu.memory_space<vmem>>, vector<8x512xf32>
      tpu.vector_store %arg8[%c0_11, %c0_12], %12 {strides = array<i32>} : memref<8x512xf32, #tpu.memory_space<vmem>>, vector<8x512xf32>,
    } else {
    }
    %c0 = arith.constant 0 : index
    %c0_1 = arith.constant 0 : index
    %3 = vector.load %arg8[%c0, %c0_1] : memref<8x512xf32, #tpu.memory_space<vmem>>, vector<8x512xf32>
    %c0_2 = arith.constant 0 : index
    %c0_3 = arith.constant 0 : index
    %4 = vector.load %arg3[%c0_2, %c0_3] : memref<8x256xbf16, #tpu.memory_space<vmem>>, vector<8x256xbf16>
    %c0_4 = arith.constant 0 : index
    %c0_5 = arith.constant 0 : index
    %5 = vector.load %arg4[%c0_4, %c0_5] : memref<256x512xbf16, #tpu.memory_space<vmem>>, vector<256x512xbf16>
    %cst = arith.constant dense<0.000000e+00> : vector<8x512xf32>
    %6 = tpu.matmul %4, %5, %cst {dimension_numbers = #tpu.dot_dimension_numbers<[1], [0], [0], [1], [0, 0, 1, 1], [], []>} : vector<8x256xbf16>, vector<256x512xbf16>, vector<8x512xf32> -> vector<8x512xf32>
    %7 = arith.addf %3, %6 : vector<8x512xf32>
    %c0_6 = arith.constant 0 : index
    %c0_7 = arith.constant 0 : index
    %8 = vector.load %arg8[%c0_6, %c0_7] : memref<8x512xf32, #tpu.memory_space<vmem>>, vector<8x512xf32>
    tpu.vector_store %arg8[%c0_6, %c0_7], %7 {strides = array<i32>} : memref<8x512xf32, #tpu.memory_space<vmem>>, vector<8x512xf32>,
    %c0_i32_8 = arith.constant 0 : i32
    %9 = arith.cmpi eq, %arg2, %c0_i32_8 : i32
    %10 = arith.extui %9 : i1 to i32
    %c0_i32_9 = arith.constant 0 : i32
    %11 = arith.cmpi ne, %10, %c0_i32_9 : i32
    scf.if %11 {
      %c0_10 = arith.constant 0 : index
      %c0_11 = arith.constant 0 : index
      %12 = vector.load %arg8[%c0_10, %c0_11] : memref<8x512xf32, #tpu.memory_space<vmem>>, vector<8x512xf32>
      %c0_12 = arith.constant 0 : index
      %c0_13 = arith.constant 0 : index
      %13 = vector.load %arg5[%c0_12, %c0_13] : memref<1x512xf32, #tpu.memory_space<vmem>>, vector<1x512xf32>
      %14 = vector.broadcast %13 : vector<1x512xf32> to vector<8x512xf32>
      %15 = arith.addf %12, %14 : vector<8x512xf32>
      %c0_14 = arith.constant 0 : index
      %c0_15 = arith.constant 0 : index
      %16 = vector.load %arg6[%c0_14, %c0_15] : memref<8x512xbf16, #tpu.memory_space<vmem>>, vector<8x512xbf16>
      %17 = arith.extf %16 : vector<8x512xbf16> to vector<8x512xf32>
      %18 = arith.addf %15, %17 : vector<8x512xf32>
      %cst_16 = arith.constant 0.000000e+00 : f32
      %19 = vector.broadcast %cst_16 : f32 to vector<8x512xf32>
      %20 = arith.maximumf %18, %19 : vector<8x512xf32>
      %21 = arith.truncf %20 : vector<8x512xf32> to vector<8x512xbf16>
      %c0_17 = arith.constant 0 : index
      %c0_18 = arith.constant 0 : index
      %22 = vector.load %arg7[%c0_17, %c0_18] : memref<8x512xbf16, #tpu.memory_space<vmem>>, vector<8x512xbf16>
      tpu.vector_store %arg7[%c0_17, %c0_18], %21 {strides = array<i32>} : memref<8x512xbf16, #tpu.memory_space<vmem>>, vector<8x512xbf16>,
    } else {
    }
    return
  }
  func.func @transform_0(%arg0: i32, %arg1: i32, %arg2: i32) -> (i32, i32) {
    %c0_i32 = arith.constant 0 : i32
    return %arg0, %arg2 : i32, i32
  }
  func.func @transform_1(%arg0: i32, %arg1: i32, %arg2: i32) -> (i32, i32) {
    %c0_i32 = arith.constant 0 : i32
    return %arg2, %arg1 : i32, i32
  }
  func.func @transform_2(%arg0: i32, %arg1: i32, %arg2: i32) -> (i32, i32) {
    %c0_i32 = arith.constant 0 : i32
    %c0_i32_0 = arith.constant 0 : i32
    return %c0_i32, %arg1 : i32, i32
  }
  func.func @transform_3(%arg0: i32, %arg1: i32, %arg2: i32) -> (i32, i32) {
    %c0_i32 = arith.constant 0 : i32
    return %arg0, %arg1 : i32, i32
  }
  func.func @transform_4(%arg0: i32, %arg1: i32, %arg2: i32) -> (i32, i32) {
    %c0_i32 = arith.constant 0 : i32
    return %arg0, %arg1 : i32, i32
  }
}

module attributes {stable_mosaic.version = 11 : i64} {
  func.func @_gemm_bias_kernel(%arg0: i32, %arg1: i32, %arg2: i32, %arg3: memref<8x512xbf16, #tpu.memory_space<vmem>>, %arg4: memref<512x256xbf16, #tpu.memory_space<vmem>>, %arg5: memref<1x256xf32, #tpu.memory_space<vmem>>, %arg6: memref<8x256xbf16, #tpu.memory_space<vmem>>, %arg7: memref<8x256xf32, #tpu.memory_space<vmem>>) attributes {dimension_semantics = [#tpu.dimension_semantics<parallel>, #tpu.dimension_semantics<parallel>, #tpu.dimension_semantics<arbitrary>], iteration_bounds = array<i64: 1, 1, 2>, scalar_prefetch = 0 : i64, scratch_operands = 1 : i64, tpu.core_type = #tpu.core_type<tc>, window_params = [{transform_indices = @transform_0, window_bounds = array<i64: 8, 512>}, {transform_indices = @transform_1, window_bounds = array<i64: 512, 256>}, {transform_indices = @transform_2, window_bounds = array<i64: 1, 256>}, {transform_indices = @transform_3, window_bounds = array<i64: 8, 256>}]} {
    %c0_i32 = arith.constant 0 : i32
    %0 = arith.cmpi eq, %arg2, %c0_i32 : i32
    %1 = arith.extui %0 : i1 to i32
    %c0_i32_0 = arith.constant 0 : i32
    %2 = arith.cmpi ne, %1, %c0_i32_0 : i32
    scf.if %2 {
      %cst_9 = arith.constant 0.000000e+00 : f32
      %12 = vector.broadcast %cst_9 : f32 to vector<8x256xf32>
      %c0_10 = arith.constant 0 : index
      %c0_11 = arith.constant 0 : index
      %13 = vector.load %arg7[%c0_10, %c0_11] : memref<8x256xf32, #tpu.memory_space<vmem>>, vector<8x256xf32>
      tpu.vector_store %arg7[%c0_10, %c0_11], %12 {strides = array<i32>} : memref<8x256xf32, #tpu.memory_space<vmem>>, vector<8x256xf32>,
    } else {
    }
    %c0 = arith.constant 0 : index
    %c0_1 = arith.constant 0 : index
    %3 = vector.load %arg7[%c0, %c0_1] : memref<8x256xf32, #tpu.memory_space<vmem>>, vector<8x256xf32>
    %c0_2 = arith.constant 0 : index
    %c0_3 = arith.constant 0 : index
    %4 = vector.load %arg3[%c0_2, %c0_3] : memref<8x512xbf16, #tpu.memory_space<vmem>>, vector<8x512xbf16>
    %c0_4 = arith.constant 0 : index
    %c0_5 = arith.constant 0 : index
    %5 = vector.load %arg4[%c0_4, %c0_5] : memref<512x256xbf16, #tpu.memory_space<vmem>>, vector<512x256xbf16>
    %cst = arith.constant dense<0.000000e+00> : vector<8x256xf32>
    %6 = tpu.matmul %4, %5, %cst {dimension_numbers = #tpu.dot_dimension_numbers<[1], [0], [0], [1], [0, 0, 1, 1], [], []>} : vector<8x512xbf16>, vector<512x256xbf16>, vector<8x256xf32> -> vector<8x256xf32>
    %7 = arith.addf %3, %6 : vector<8x256xf32>
    %c0_6 = arith.constant 0 : index
    %c0_7 = arith.constant 0 : index
    %8 = vector.load %arg7[%c0_6, %c0_7] : memref<8x256xf32, #tpu.memory_space<vmem>>, vector<8x256xf32>
    tpu.vector_store %arg7[%c0_6, %c0_7], %7 {strides = array<i32>} : memref<8x256xf32, #tpu.memory_space<vmem>>, vector<8x256xf32>,
    %c1_i32 = arith.constant 1 : i32
    %9 = arith.cmpi eq, %arg2, %c1_i32 : i32
    %10 = arith.extui %9 : i1 to i32
    %c0_i32_8 = arith.constant 0 : i32
    %11 = arith.cmpi ne, %10, %c0_i32_8 : i32
    scf.if %11 {
      %c0_9 = arith.constant 0 : index
      %c0_10 = arith.constant 0 : index
      %12 = vector.load %arg7[%c0_9, %c0_10] : memref<8x256xf32, #tpu.memory_space<vmem>>, vector<8x256xf32>
      %c0_11 = arith.constant 0 : index
      %c0_12 = arith.constant 0 : index
      %13 = vector.load %arg5[%c0_11, %c0_12] : memref<1x256xf32, #tpu.memory_space<vmem>>, vector<1x256xf32>
      %14 = vector.broadcast %13 : vector<1x256xf32> to vector<8x256xf32>
      %15 = arith.addf %12, %14 : vector<8x256xf32>
      %cst_13 = arith.constant 0.000000e+00 : f32
      %16 = vector.broadcast %cst_13 : f32 to vector<8x256xf32>
      %17 = arith.maximumf %15, %16 : vector<8x256xf32>
      %18 = arith.truncf %17 : vector<8x256xf32> to vector<8x256xbf16>
      %c0_14 = arith.constant 0 : index
      %c0_15 = arith.constant 0 : index
      %19 = vector.load %arg6[%c0_14, %c0_15] : memref<8x256xbf16, #tpu.memory_space<vmem>>, vector<8x256xbf16>
      tpu.vector_store %arg6[%c0_14, %c0_15], %18 {strides = array<i32>} : memref<8x256xbf16, #tpu.memory_space<vmem>>, vector<8x256xbf16>,
    } else {
    }
    return
  }
  func.func @transform_0(%arg0: i32, %arg1: i32, %arg2: i32) -> (i32, i32) {
    %c0_i32 = arith.constant 0 : i32
    return %arg0, %arg2 : i32, i32
  }
  func.func @transform_1(%arg0: i32, %arg1: i32, %arg2: i32) -> (i32, i32) {
    %c0_i32 = arith.constant 0 : i32
    return %arg2, %arg1 : i32, i32
  }
  func.func @transform_2(%arg0: i32, %arg1: i32, %arg2: i32) -> (i32, i32) {
    %c0_i32 = arith.constant 0 : i32
    %c0_i32_0 = arith.constant 0 : i32
    return %c0_i32, %arg1 : i32, i32
  }
  func.func @transform_3(%arg0: i32, %arg1: i32, %arg2: i32) -> (i32, i32) {
    %c0_i32 = arith.constant 0 : i32
    return %arg0, %arg1 : i32, i32
  }
}

</mosaic_0001>

<bundles_post_ra>
// kernel: _lambda_.44
= control target key start
LH: loop header
LB: loop body
LE: loop exit
PB: predicated region body
PF: predicated region fallthrough
CT: control target
= control target key end

     0   :  { %v2176_v0 = vmov 0   ;;  %vm575_vm0 = vcmask 154624   ;;  %vm672_vm1 = vcmask 1040384   ;;  %vm673_vm2 = vcmask 1041408   ;;  %s2617_s1 = inlined_call_operand.vmem [shape: bf16[147,128], index: 1, kind: input, shape index: {}]   ;;  %s2618_s0 = inlined_call_operand.vmem [shape: bf16[512,147], index: 0, kind: input, shape index: {}]   ;;  %s2619_s2 = inlined_call_operand.vmem [shape: f32[1,128], index: 2, kind: input, shape index: {}]   ;;  %s2620_s3 = inlined_call_operand.vmem [shape: bf16[512,128], index: 3, kind: output, shape index: {}]  }
   0x1   :  { %679 = vmatprep.subr.bf16.mxu0 %v2176_v0  ;;  %2048 = vmatprep.subr.bf16.mxu1 %v2176_v0  ;;  %v2070_v1 = vld [vmem:[%s2617_s1] sm:$0xff]   ;;  %v2071_v2 = vld [vmem:[%s2617_s1 + $0x8] sm:$0xff]   ;;  %v2072_v3 = vld [vmem:[%s2617_s1 + $0x10] sm:$0xff]   ;;  %v2177_v11 = vmov 65535  }
   0x2   :  { %680 = vmatpush1.bf16.msra.mxu0 %v2070_v1  ;;  %2058 = vmatpush1.bf16.msra.mxu1 %v2070_v1  ;;  %v2073_v4 = vld [vmem:[%s2617_s1 + $0x18] sm:$0xff]   ;;  %v2082_v5 = vld [vmem:[%s2618_s0 + $0x4] ss:$8 sps:$4 sm:$0xff]   ;;  %v2076_v9 = vld [vmem:[%s2617_s1 + $0x30] sm:$0xff]   ;;  %v674_v12 = vsel %vm672_vm1, 4294967295, %v2177_v11 }
   0x3   :  { %681 = vmatprep.subr.bf16.mxu0 %v2176_v0  ;;  %2049 = vmatprep.subr.bf16.mxu1 %v2176_v0  ;;  %v2085_v6 = vld [vmem:[%s2618_s0 + $0x104] ss:$8 sps:$4 sm:$0xff]   ;;  %v2077_v10 = vld [vmem:[%s2617_s1 + $0x38] sm:$0xff]   ;;  %v2079_v14 = vld [vmem:[%s2617_s1 + $0x48] ss:$0 sps:$4 sm:$0x33]  }
   0x4   :  { %1696 = vmatprep.mubr.msk.bf16.mxu0 %vm575_vm0, %v2082_v5  ;;  %v2074_v7 = vld [vmem:[%s2617_s1 + $0x20] sm:$0xff]   ;;  %1712 = vmatprep.mubr.msk.bf16.mxu1 %vm575_vm0, %v2085_v6  ;;  %v2075_v8 = vld [vmem:[%s2617_s1 + $0x28] sm:$0xff]   ;;  %v675_v15 = vsel %vm673_vm2, %v674_v12, 0  ;;  %v2086_v19 = vld [vmem:[%s2618_s0 + $0x14] ss:$8 sps:$4 sm:$0xff]  }
   0x5   :  { %v2078_v13 = vld [vmem:[%s2617_s1 + $0x40] sm:$0xff]   ;;  %v677_v16 = vand.u32 %v2079_v14, %v675_v15  ;;  %v2088_v20 = vld [vmem:[%s2618_s0 + $0x114] ss:$8 sps:$4 sm:$0xff]   ;;  %v2090_v21 = vld [vmem:[%s2618_s0 + $0x10] ss:$8 sps:$4 sm:$0xff]  }
   0x6   :  { %682 = vmatpush1.bf16.msra.mxu0 %v2071_v2  ;;  %2059 = vmatpush1.bf16.msra.mxu1 %v2071_v2  ;;  %v2080_v17 = vld [vmem:[%s2618_s0] ss:$8 sps:$4 sm:$0xff]   ;;  %v2091_v22 = vld [vmem:[%s2618_s0 + $0x110] ss:$8 sps:$4 sm:$0xff]   ;;  %v2092_v23 = vld [vmem:[%s2618_s0 + $0x24] ss:$8 sps:$4 sm:$0xff]  }
   0x7   :  { %683 = vmatprep.subr.bf16.mxu0 %v2176_v0  ;;  %2050 = vmatprep.subr.bf16.mxu1 %v2176_v0  ;;  %v2083_v18 = vld [vmem:[%s2618_s0 + $0x100] ss:$8 sps:$4 sm:$0xff]   ;;  %v2094_v24 = vld [vmem:[%s2618_s0 + $0x124] ss:$8 sps:$4 sm:$0xff]   ;;  %v2098_v27 = vld [vmem:[%s2618_s0 + $0x34] ss:$8 sps:$4 sm:$0xff]  }
   0x8   :  { %v2096_v25 = vld [vmem:[%s2618_s0 + $0x20] ss:$8 sps:$4 sm:$0xff]   ;;  %v2100_v28 = vld [vmem:[%s2618_s0 + $0x134] ss:$8 sps:$4 sm:$0xff]   ;;  %v2102_v29 = vld [vmem:[%s2618_s0 + $0x30] ss:$8 sps:$4 sm:$0xff]  }
   0x9   :  { %v2097_v26 = vld [vmem:[%s2618_s0 + $0x120] ss:$8 sps:$4 sm:$0xff]   ;;  %v2103_v30 = vld [vmem:[%s2618_s0 + $0x130] ss:$8 sps:$4 sm:$0xff]   ;;  %v2104_v31 = vld [vmem:[%s2618_s0 + $0x44] ss:$8 sps:$4 sm:$0xff]  }
   0xa   :  { %684 = vmatpush1.bf16.msra.mxu0 %v2072_v3  ;;  %2060 = vmatpush1.bf16.msra.mxu1 %v2072_v3  ;;  %v2106_v32 = vld [vmem:[%s2618_s0 + $0x144] ss:$8 sps:$4 sm:$0xff]   ;;  %v2108_v33 = vld [vmem:[%s2618_s0 + $0x40] ss:$8 sps:$4 sm:$0xff]   ;;  %v2110_v35 = vld [vmem:[%s2618_s0 + $0x54] ss:$8 sps:$4 sm:$0xff]  }
   0xb   :  { %685 = vmatprep.subr.bf16.mxu0 %v2176_v0  ;;  %2051 = vmatprep.subr.bf16.mxu1 %v2176_v0  ;;  %v2109_v34 = vld [vmem:[%s2618_s0 + $0x140] ss:$8 sps:$4 sm:$0xff]   ;;  %v2112_v36 = vld [vmem:[%s2618_s0 + $0x154] ss:$8 sps:$4 sm:$0xff]   ;;  %v2114_v37 = vld [vmem:[%s2618_s0 + $0x50] ss:$8 sps:$4 sm:$0xff]  }
   0xc   :  { %v2115_v38 = vld [vmem:[%s2618_s0 + $0x150] ss:$8 sps:$4 sm:$0xff]   ;;  %v2116_v39 = vld [vmem:[%s2618_s0 + $0x64] ss:$8 sps:$4 sm:$0xff]   ;;  %v2120_v41 = vld [vmem:[%s2618_s0 + $0x60] ss:$8 sps:$4 sm:$0xff]  }
   0xd   :  { %v2118_v40 = vld [vmem:[%s2618_s0 + $0x164] ss:$8 sps:$4 sm:$0xff]   ;;  %v2121_v42 = vld [vmem:[%s2618_s0 + $0x160] ss:$8 sps:$4 sm:$0xff]   ;;  %v2122_v43 = vld [vmem:[%s2618_s0 + $0x74] ss:$8 sps:$4 sm:$0xff]  }
   0xe   :  { %686 = vmatpush1.bf16.msra.mxu0 %v2073_v4  ;;  %2061 = vmatpush1.bf16.msra.mxu1 %v2073_v4  ;;  %v2124_v44 = vld [vmem:[%s2618_s0 + $0x174] ss:$8 sps:$4 sm:$0xff]   ;;  %v2126_v45 = vld [vmem:[%s2618_s0 + $0x70] ss:$8 sps:$4 sm:$0xff]   ;;  %v2128_v47 = vld [vmem:[%s2618_s0 + $0x84] ss:$8 sps:$4 sm:$0xff]  }
   0xf   :  { %687 = vmatprep.subr.bf16.mxu0 %v2176_v0  ;;  %2052 = vmatprep.subr.bf16.mxu1 %v2176_v0  ;;  %v2127_v46 = vld [vmem:[%s2618_s0 + $0x170] ss:$8 sps:$4 sm:$0xff]   ;;  %v2130_v48 = vld [vmem:[%s2618_s0 + $0x184] ss:$8 sps:$4 sm:$0xff]   ;;  %v2132_v49 = vld [vmem:[%s2618_s0 + $0x80] ss:$8 sps:$4 sm:$0xff]  }
  0x10   :  { %v2133_v50 = vld [vmem:[%s2618_s0 + $0x180] ss:$8 sps:$4 sm:$0xff]   ;;  %v2134_v51 = vld [vmem:[%s2618_s0 + $0x94] ss:$8 sps:$4 sm:$0xff]   ;;  %v2138_v53 = vld [vmem:[%s2618_s0 + $0x90] ss:$8 sps:$4 sm:$0xff]  }
  0x11   :  { %v2136_v52 = vld [vmem:[%s2618_s0 + $0x194] ss:$8 sps:$4 sm:$0xff]   ;;  %v2139_v54 = vld [vmem:[%s2618_s0 + $0x190] ss:$8 sps:$4 sm:$0xff]   ;;  %v2140_v55 = vld [vmem:[%s2618_s0 + $0xa4] ss:$8 sps:$4 sm:$0xff]  }
  0x12   :  { %688 = vmatpush1.bf16.msra.mxu0 %v2074_v7  ;;  %2062 = vmatpush1.bf16.msra.mxu1 %v2074_v7  ;;  %v2142_v56 = vld [vmem:[%s2618_s0 + $0x1a4] ss:$8 sps:$4 sm:$0xff]   ;;  %v2144_v57 = vld [vmem:[%s2618_s0 + $0xa0] ss:$8 sps:$4 sm:$0xff]   ;;  %v2146_v59 = vld [vmem:[%s2618_s0 + $0xb4] ss:$8 sps:$4 sm:$0xff]  }
  0x13   :  { %689 = vmatprep.subr.bf16.mxu0 %v2176_v0  ;;  %2053 = vmatprep.subr.bf16.mxu1 %v2176_v0  ;;  %v2145_v58 = vld [vmem:[%s2618_s0 + $0x1a0] ss:$8 sps:$4 sm:$0xff]   ;;  %v2148_v60 = vld [vmem:[%s2618_s0 + $0x1b4] ss:$8 sps:$4 sm:$0xff]   ;;  %v2150_v61 = vld [vmem:[%s2618_s0 + $0xb0] ss:$8 sps:$4 sm:$0xff]  }
  0x14   :  { %v2151_v62 = vld [vmem:[%s2618_s0 + $0x1b0] ss:$8 sps:$4 sm:$0xff]   ;;  %v2152_v63 = vld [vmem:[%s2618_s0 + $0xc4] ss:$8 sps:$4 sm:$0xff]   ;;  %v2156_v1 = vld [vmem:[%s2618_s0 + $0xc0] ss:$8 sps:$4 sm:$0xff]  }
  0x15   :  { %v2157_v2 = vld [vmem:[%s2618_s0 + $0x1c0] ss:$8 sps:$4 sm:$0xff]   ;;  %v2158_v3 = vld [vmem:[%s2618_s0 + $0xd4] ss:$8 sps:$4 sm:$0xff]   ;;  %v2162_v5 = vld [vmem:[%s2618_s0 + $0xd0] ss:$8 sps:$4 sm:$0xff]  }
  0x16   :  { %690 = vmatpush1.bf16.msra.mxu0 %v2075_v8  ;;  %2063 = vmatpush1.bf16.msra.mxu1 %v2075_v8  ;;  %v2160_v4 = vld [vmem:[%s2618_s0 + $0x1d4] ss:$8 sps:$4 sm:$0xff]   ;;  %v2163_v6 = vld [vmem:[%s2618_s0 + $0x1d0] ss:$8 sps:$4 sm:$0xff]   ;;  %v2164_v7 = vld [vmem:[%s2618_s0 + $0xe4] ss:$8 sps:$4 sm:$0xff]  }
  0x17   :  { %691 = vmatprep.subr.bf16.mxu0 %v2176_v0  ;;  %2054 = vmatprep.subr.bf16.mxu1 %v2176_v0  ;;  %v2166_v8 = vld [vmem:[%s2618_s0 + $0x1e4] ss:$8 sps:$4 sm:$0xff]   ;;  %v2170_v11 = vld [vmem:[%s2618_s0 + $0xf4] ss:$8 sps:$4 sm:$0xff]   ;;  %v2175_v14 = vld [vmem:[%s2618_s0 + $0x1f0] ss:$8 sps:$4 sm:$0xff]  }
  0x18   :  { %v2172_v12 = vld [vmem:[%s2618_s0 + $0x1f4] ss:$8 sps:$4 sm:$0xff]   ;;  %v2455_v15 = vld [vmem:[%s2619_s2] ss:$0 sm:$0xff] }
  0x1a   :  { %692 = vmatpush1.bf16.msra.mxu0 %v2076_v9  ;;  %2064 = vmatpush1.bf16.msra.mxu1 %v2076_v9  ;;  %v2168_v9 = vld [vmem:[%s2618_s0 + $0xe0] ss:$8 sps:$4 sm:$0xff]  }
  0x1b   :  { %693 = vmatprep.subr.bf16.mxu0 %v2176_v0  ;;  %2055 = vmatprep.subr.bf16.mxu1 %v2176_v0 }
  0x1e   :  { %694 = vmatpush1.bf16.msra.mxu0 %v2077_v10  ;;  %2065 = vmatpush1.bf16.msra.mxu1 %v2077_v10  ;;  %v2169_v10 = vld [vmem:[%s2618_s0 + $0x1e0] ss:$8 sps:$4 sm:$0xff]  }
  0x1f   :  { %695 = vmatprep.subr.bf16.mxu0 %v2176_v0  ;;  %2056 = vmatprep.subr.bf16.mxu1 %v2176_v0 }
  0x22   :  { %696 = vmatpush1.bf16.msra.mxu0 %v2078_v13  ;;  %2066 = vmatpush1.bf16.msra.mxu1 %v2078_v13  ;;  %v2174_v13 = vld [vmem:[%s2618_s0 + $0xf0] ss:$8 sps:$4 sm:$0xff]  }
  0x23   :  { %697 = vmatprep.subr.bf16.mxu0 %v2176_v0  ;;  %2057 = vmatprep.subr.bf16.mxu1 %v2176_v0  ;;  %v2154_v0 = vld [vmem:[%s2618_s0 + $0x1c4] ss:$8 sps:$4 sm:$0xff]  }
  0x26   :  { %698 = vmatpush1.bf16.msra.mxu0 %v677_v16  ;;  %2067 = vmatpush1.bf16.msra.mxu1 %v677_v16 }
  0x29   :  { %712 = vmatmul.mubr.bf16.vlgmr.msra.gmra.mrb[0].mxu0 %v2080_v17  ;;  %840 = vmatmul.mubr.bf16.vlgmr.msra.gmra.mrb[0].mxu1 %v2083_v18 }
  0x2a   :  { %1697 = vmatprep.mubr.msk.bf16.mxu0 %vm575_vm0, %v2086_v19  ;;  %1713 = vmatprep.mubr.msk.bf16.mxu1 %vm575_vm0, %v2088_v20 }
  0x31   :  { %720 = vmatmul.mubr.bf16.gmra.mrb[4].mxu0 %v2090_v21  ;;  %848 = vmatmul.mubr.bf16.gmra.mrb[4].mxu1 %v2091_v22 }
  0x32   :  { %1698 = vmatprep.mubr.msk.bf16.mxu0 %vm575_vm0, %v2092_v23  ;;  %1714 = vmatprep.mubr.msk.bf16.mxu1 %vm575_vm0, %v2094_v24 }
  0x39   :  { %728 = vmatmul.mubr.bf16.gmra.mrb[8].mxu0 %v2096_v25  ;;  %856 = vmatmul.mubr.bf16.gmra.mrb[8].mxu1 %v2097_v26 }
  0x3a   :  { %1699 = vmatprep.mubr.msk.bf16.mxu0 %vm575_vm0, %v2098_v27  ;;  %1715 = vmatprep.mubr.msk.bf16.mxu1 %vm575_vm0, %v2100_v28 }
  0x41   :  { %736 = vmatmul.mubr.bf16.gmra.mrb[12].mxu0 %v2102_v29  ;;  %864 = vmatmul.mubr.bf16.gmra.mrb[12].mxu1 %v2103_v30 }
  0x42   :  { %1700 = vmatprep.mubr.msk.bf16.mxu0 %vm575_vm0, %v2104_v31  ;;  %1716 = vmatprep.mubr.msk.bf16.mxu1 %vm575_vm0, %v2106_v32 }
  0x49   :  { %744 = vmatmul.mubr.bf16.gmra.mrb[16].mxu0 %v2108_v33  ;;  %872 = vmatmul.mubr.bf16.gmra.mrb[16].mxu1 %v2109_v34 }
  0x4a   :  { %1701 = vmatprep.mubr.msk.bf16.mxu0 %vm575_vm0, %v2110_v35  ;;  %1717 = vmatprep.mubr.msk.bf16.mxu1 %vm575_vm0, %v2112_v36 }
  0x51   :  { %752 = vmatmul.mubr.bf16.gmra.mrb[20].mxu0 %v2114_v37  ;;  %880 = vmatmul.mubr.bf16.gmra.mrb[20].mxu1 %v2115_v38 }
  0x52   :  { %1702 = vmatprep.mubr.msk.bf16.mxu0 %vm575_vm0, %v2116_v39  ;;  %1718 = vmatprep.mubr.msk.bf16.mxu1 %vm575_vm0, %v2118_v40 }
  0x59   :  { %760 = vmatmul.mubr.bf16.gmra.mrb[24].mxu0 %v2120_v41  ;;  %888 = vmatmul.mubr.bf16.gmra.mrb[24].mxu1 %v2121_v42 }
  0x5a   :  { %1703 = vmatprep.mubr.msk.bf16.mxu0 %vm575_vm0, %v2122_v43  ;;  %1719 = vmatprep.mubr.msk.bf16.mxu1 %vm575_vm0, %v2124_v44 }
  0x61   :  { %768 = vmatmul.mubr.bf16.gmra.mrb[28].mxu0 %v2126_v45  ;;  %896 = vmatmul.mubr.bf16.gmra.mrb[28].mxu1 %v2127_v46 }
  0x62   :  { %1704 = vmatprep.mubr.msk.bf16.mxu0 %vm575_vm0, %v2128_v47  ;;  %1720 = vmatprep.mubr.msk.bf16.mxu1 %vm575_vm0, %v2130_v48 }
  0x69   :  { %776 = vmatmul.mubr.bf16.gmra.mrb[32].mxu0 %v2132_v49  ;;  %904 = vmatmul.mubr.bf16.gmra.mrb[32].mxu1 %v2133_v50 }
  0x6a   :  { %1705 = vmatprep.mubr.msk.bf16.mxu0 %vm575_vm0, %v2134_v51  ;;  %1721 = vmatprep.mubr.msk.bf16.mxu1 %vm575_vm0, %v2136_v52 }
  0x71   :  { %784 = vmatmul.mubr.bf16.gmra.mrb[36].mxu0 %v2138_v53  ;;  %912 = vmatmul.mubr.bf16.gmra.mrb[36].mxu1 %v2139_v54 }
  0x72   :  { %1706 = vmatprep.mubr.msk.bf16.mxu0 %vm575_vm0, %v2140_v55  ;;  %1722 = vmatprep.mubr.msk.bf16.mxu1 %vm575_vm0, %v2142_v56 }
  0x79   :  { %792 = vmatmul.mubr.bf16.gmra.mrb[40].mxu0 %v2144_v57  ;;  %920 = vmatmul.mubr.bf16.gmra.mrb[40].mxu1 %v2145_v58 }
  0x7a   :  { %1707 = vmatprep.mubr.msk.bf16.mxu0 %vm575_vm0, %v2146_v59  ;;  %1723 = vmatprep.mubr.msk.bf16.mxu1 %vm575_vm0, %v2148_v60 }
  0x81   :  { %800 = vmatmul.mubr.bf16.gmra.mrb[44].mxu0 %v2150_v61  ;;  %928 = vmatmul.mubr.bf16.gmra.mrb[44].mxu1 %v2151_v62 }
  0x82   :  { %1708 = vmatprep.mubr.msk.bf16.mxu0 %vm575_vm0, %v2152_v63  ;;  %1724 = vmatprep.mubr.msk.bf16.mxu1 %vm575_vm0, %v2154_v0 }
  0x89   :  { %808 = vmatmul.mubr.bf16.gmra.mrb[48].mxu0 %v2156_v1  ;;  %936 = vmatmul.mubr.bf16.gmra.mrb[48].mxu1 %v2157_v2 }
  0x8a   :  { %1709 = vmatprep.mubr.msk.bf16.mxu0 %vm575_vm0, %v2158_v3  ;;  %1725 = vmatprep.mubr.msk.bf16.mxu1 %vm575_vm0, %v2160_v4 }
  0x91   :  { %816 = vmatmul.mubr.bf16.gmra.mrb[52].mxu0 %v2162_v5  ;;  %944 = vmatmul.mubr.bf16.gmra.mrb[52].mxu1 %v2163_v6 }
  0x92   :  { %1710 = vmatprep.mubr.msk.bf16.mxu0 %vm575_vm0, %v2164_v7  ;;  %1726 = vmatprep.mubr.msk.bf16.mxu1 %vm575_vm0, %v2166_v8 }
  0x99   :  { %824 = vmatmul.mubr.bf16.gmra.mrb[56].mxu0 %v2168_v9  ;;  %952 = vmatmul.mubr.bf16.gmra.mrb[56].mxu1 %v2169_v10 }
  0x9a   :  { %1711 = vmatprep.mubr.msk.bf16.mxu0 %vm575_vm0, %v2170_v11  ;;  %1727 = vmatprep.mubr.msk.bf16.mxu1 %vm575_vm0, %v2172_v12 }
  0xa1   :  { %832 = vmatmul.mubr.bf16.gmra.mrb[60].mxu0 %v2174_v13  ;;  %960 = vmatmul.mubr.bf16.gmra.mrb[60].mxu1 %v2175_v14 }
  0xfc   :  { %v713_v16 = vpop.f32.mrb[0].mxu0  ;;  %v841_v17 = vpop.f32.mrb[0].mxu1 }
  0xfd   :  { %v1170_v18 = vadd.f32 %v2455_v15, %v713_v16  ;;  %v1202_v19 = vadd.f32 %v2455_v15, %v841_v17  ;;  %v715_v20 = vpop.f32.mrb[1].mxu0  ;;  %v843_v21 = vpop.f32.mrb[1].mxu1 }
  0xfe   :  { %v716_v22 = vpop.f32.mrb[2].mxu0  ;;  %v844_v23 = vpop.f32.mrb[2].mxu1 }
  0xff   :  { %v1171_v24 = vadd.f32 %v2455_v15, %v716_v22  ;;  %v1203_v25 = vadd.f32 %v2455_v15, %v844_v23  ;;  %v718_v26 = vpop.f32.mrb[3].mxu0  ;;  %v846_v27 = vpop.f32.mrb[3].mxu1  ;;  %v1234_v28 = vmax.f32 %v1170_v18, 0.0  ;;  %v1266_v29 = vmax.f32 %v1202_v19, 0.0 }
 0x101   :  { %v1235_v30 = vmax.f32 %v1171_v24, 0.0  ;;  %v1267_v31 = vmax.f32 %v1203_v25, 0.0 }
 0x103   :  { %v1860_v32 = vpack.c.bf16 %v1235_v30, %v1234_v28  ;;  %v1940_v33 = vpack.c.bf16 %v1267_v31, %v1266_v29 }
 0x104   :  { %v721_v34 = vpop.f32.mrb[4].mxu0  ;;  %v849_v35 = vpop.f32.mrb[4].mxu1 }
 0x105   :  { %1861 = vst [vmem:[%s2620_s3] sm:$0xff] %v1860_v32   ;;  %2032 = vst [vmem:[%s2620_s3 + $0x80] sm:$0xff] %v1940_v33   ;;  %v1172_v36 = vadd.f32 %v2455_v15, %v721_v34  ;;  %v1204_v37 = vadd.f32 %v2455_v15, %v849_v35  ;;  %v723_v38 = vpop.f32.mrb[5].mxu0  ;;  %v851_v39 = vpop.f32.mrb[5].mxu1 }
 0x106   :  { %v724_v40 = vpop.f32.mrb[6].mxu0  ;;  %v852_v41 = vpop.f32.mrb[6].mxu1 }
 0x107   :  { %v1173_v42 = vadd.f32 %v2455_v15, %v724_v40  ;;  %v1205_v43 = vadd.f32 %v2455_v15, %v852_v41  ;;  %v726_v44 = vpop.f32.mrb[7].mxu0  ;;  %v854_v45 = vpop.f32.mrb[7].mxu1  ;;  %v1236_v46 = vmax.f32 %v1172_v36, 0.0  ;;  %v1268_v47 = vmax.f32 %v1204_v37, 0.0 }
 0x109   :  { %v1237_v48 = vmax.f32 %v1173_v42, 0.0  ;;  %v1269_v49 = vmax.f32 %v1205_v43, 0.0 }
 0x10b   :  { %v1865_v50 = vpack.c.bf16 %v1237_v48, %v1236_v46  ;;  %v1945_v51 = vpack.c.bf16 %v1269_v49, %v1268_v47 }
 0x10c   :  { %v729_v52 = vpop.f32.mrb[8].mxu0  ;;  %v857_v53 = vpop.f32.mrb[8].mxu1 }
 0x10d   :  { %2017 = vst [vmem:[%s2620_s3 + $0x8] sm:$0xff] %v1865_v50   ;;  %2033 = vst [vmem:[%s2620_s3 + $0x88] sm:$0xff] %v1945_v51   ;;  %v1174_v54 = vadd.f32 %v2455_v15, %v729_v52  ;;  %v1206_v55 = vadd.f32 %v2455_v15, %v857_v53  ;;  %v731_v56 = vpop.f32.mrb[9].mxu0  ;;  %v859_v57 = vpop.f32.mrb[9].mxu1 }
 0x10e   :  { %v732_v58 = vpop.f32.mrb[10].mxu0  ;;  %v860_v59 = vpop.f32.mrb[10].mxu1 }
 0x10f   :  { %v1175_v60 = vadd.f32 %v2455_v15, %v732_v58  ;;  %v1207_v61 = vadd.f32 %v2455_v15, %v860_v59  ;;  %v734_v62 = vpop.f32.mrb[11].mxu0  ;;  %v862_v63 = vpop.f32.mrb[11].mxu1  ;;  %v1238_v0 = vmax.f32 %v1174_v54, 0.0  ;;  %v1270_v1 = vmax.f32 %v1206_v55, 0.0 }
 0x111   :  { %v1239_v2 = vmax.f32 %v1175_v60, 0.0  ;;  %v1271_v3 = vmax.f32 %v1207_v61, 0.0 }
 0x113   :  { %v1870_v4 = vpack.c.bf16 %v1239_v2, %v1238_v0  ;;  %v1950_v5 = vpack.c.bf16 %v1271_v3, %v1270_v1 }
 0x114   :  { %v737_v6 = vpop.f32.mrb[12].mxu0  ;;  %v865_v7 = vpop.f32.mrb[12].mxu1 }
 0x115   :  { %2018 = vst [vmem:[%s2620_s3 + $0x10] sm:$0xff] %v1870_v4   ;;  %2034 = vst [vmem:[%s2620_s3 + $0x90] sm:$0xff] %v1950_v5   ;;  %v1176_v8 = vadd.f32 %v2455_v15, %v737_v6  ;;  %v1208_v9 = vadd.f32 %v2455_v15, %v865_v7  ;;  %v739_v10 = vpop.f32.mrb[13].mxu0  ;;  %v867_v11 = vpop.f32.mrb[13].mxu1 }
 0x116   :  { %v740_v12 = vpop.f32.mrb[14].mxu0  ;;  %v868_v13 = vpop.f32.mrb[14].mxu1 }
 0x117   :  { %v1177_v14 = vadd.f32 %v2455_v15, %v740_v12  ;;  %v1209_v16 = vadd.f32 %v2455_v15, %v868_v13  ;;  %v742_v17 = vpop.f32.mrb[15].mxu0  ;;  %v870_v18 = vpop.f32.mrb[15].mxu1  ;;  %v1240_v19 = vmax.f32 %v1176_v8, 0.0  ;;  %v1272_v20 = vmax.f32 %v1208_v9, 0.0 }
 0x119   :  { %v1241_v21 = vmax.f32 %v1177_v14, 0.0  ;;  %v1273_v22 = vmax.f32 %v1209_v16, 0.0 }
 0x11b   :  { %v1875_v23 = vpack.c.bf16 %v1241_v21, %v1240_v19  ;;  %v1955_v24 = vpack.c.bf16 %v1273_v22, %v1272_v20 }
 0x11c   :  { %v745_v25 = vpop.f32.mrb[16].mxu0  ;;  %v873_v26 = vpop.f32.mrb[16].mxu1 }
 0x11d   :  { %2019 = vst [vmem:[%s2620_s3 + $0x18] sm:$0xff] %v1875_v23   ;;  %2035 = vst [vmem:[%s2620_s3 + $0x98] sm:$0xff] %v1955_v24   ;;  %v1178_v27 = vadd.f32 %v2455_v15, %v745_v25  ;;  %v1210_v28 = vadd.f32 %v2455_v15, %v873_v26  ;;  %v747_v29 = vpop.f32.mrb[17].mxu0  ;;  %v875_v30 = vpop.f32.mrb[17].mxu1 }
 0x11e   :  { %v748_v31 = vpop.f32.mrb[18].mxu0  ;;  %v876_v32 = vpop.f32.mrb[18].mxu1 }
 0x11f   :  { %v1179_v33 = vadd.f32 %v2455_v15, %v748_v31  ;;  %v1211_v34 = vadd.f32 %v2455_v15, %v876_v32  ;;  %v750_v35 = vpop.f32.mrb[19].mxu0  ;;  %v878_v36 = vpop.f32.mrb[19].mxu1  ;;  %v1242_v37 = vmax.f32 %v1178_v27, 0.0  ;;  %v1274_v38 = vmax.f32 %v1210_v28, 0.0 }
 0x121   :  { %v1243_v39 = vmax.f32 %v1179_v33, 0.0  ;;  %v1275_v40 = vmax.f32 %v1211_v34, 0.0 }
 0x123   :  { %v1880_v41 = vpack.c.bf16 %v1243_v39, %v1242_v37  ;;  %v1960_v42 = vpack.c.bf16 %v1275_v40, %v1274_v38 }
 0x124   :  { %v753_v43 = vpop.f32.mrb[20].mxu0  ;;  %v881_v44 = vpop.f32.mrb[20].mxu1 }
 0x125   :  { %2020 = vst [vmem:[%s2620_s3 + $0x20] sm:$0xff] %v1880_v41   ;;  %2036 = vst [vmem:[%s2620_s3 + $0xa0] sm:$0xff] %v1960_v42   ;;  %v1180_v45 = vadd.f32 %v2455_v15, %v753_v43  ;;  %v1212_v46 = vadd.f32 %v2455_v15, %v881_v44  ;;  %v755_v47 = vpop.f32.mrb[21].mxu0  ;;  %v883_v48 = vpop.f32.mrb[21].mxu1 }
 0x126   :  { %v756_v49 = vpop.f32.mrb[22].mxu0  ;;  %v884_v50 = vpop.f32.mrb[22].mxu1 }
 0x127   :  { %v1181_v51 = vadd.f32 %v2455_v15, %v756_v49  ;;  %v1213_v52 = vadd.f32 %v2455_v15, %v884_v50  ;;  %v758_v53 = vpop.f32.mrb[23].mxu0  ;;  %v886_v54 = vpop.f32.mrb[23].mxu1  ;;  %v1244_v55 = vmax.f32 %v1180_v45, 0.0  ;;  %v1276_v56 = vmax.f32 %v1212_v46, 0.0 }
 0x129   :  { %v1245_v57 = vmax.f32 %v1181_v51, 0.0  ;;  %v1277_v58 = vmax.f32 %v1213_v52, 0.0 }
 0x12b   :  { %v1885_v59 = vpack.c.bf16 %v1245_v57, %v1244_v55  ;;  %v1965_v60 = vpack.c.bf16 %v1277_v58, %v1276_v56 }
 0x12c   :  { %v761_v61 = vpop.f32.mrb[24].mxu0  ;;  %v889_v62 = vpop.f32.mrb[24].mxu1 }
 0x12d   :  { %2021 = vst [vmem:[%s2620_s3 + $0x28] sm:$0xff] %v1885_v59   ;;  %2037 = vst [vmem:[%s2620_s3 + $0xa8] sm:$0xff] %v1965_v60   ;;  %v1182_v63 = vadd.f32 %v2455_v15, %v761_v61  ;;  %v1214_v0 = vadd.f32 %v2455_v15, %v889_v62  ;;  %v763_v1 = vpop.f32.mrb[25].mxu0  ;;  %v891_v2 = vpop.f32.mrb[25].mxu1 }
 0x12e   :  { %v764_v3 = vpop.f32.mrb[26].mxu0  ;;  %v892_v4 = vpop.f32.mrb[26].mxu1 }
 0x12f   :  { %v1183_v5 = vadd.f32 %v2455_v15, %v764_v3  ;;  %v1215_v6 = vadd.f32 %v2455_v15, %v892_v4  ;;  %v766_v7 = vpop.f32.mrb[27].mxu0  ;;  %v894_v8 = vpop.f32.mrb[27].mxu1  ;;  %v1246_v9 = vmax.f32 %v1182_v63, 0.0  ;;  %v1278_v10 = vmax.f32 %v1214_v0, 0.0 }
 0x131   :  { %v1247_v11 = vmax.f32 %v1183_v5, 0.0  ;;  %v1279_v12 = vmax.f32 %v1215_v6, 0.0 }
 0x133   :  { %v1890_v13 = vpack.c.bf16 %v1247_v11, %v1246_v9  ;;  %v1970_v14 = vpack.c.bf16 %v1279_v12, %v1278_v10 }
 0x134   :  { %v769_v16 = vpop.f32.mrb[28].mxu0  ;;  %v897_v17 = vpop.f32.mrb[28].mxu1 }
 0x135   :  { %2022 = vst [vmem:[%s2620_s3 + $0x30] sm:$0xff] %v1890_v13   ;;  %2038 = vst [vmem:[%s2620_s3 + $0xb0] sm:$0xff] %v1970_v14   ;;  %v1184_v18 = vadd.f32 %v2455_v15, %v769_v16  ;;  %v1216_v19 = vadd.f32 %v2455_v15, %v897_v17  ;;  %v771_v20 = vpop.f32.mrb[29].mxu0  ;;  %v899_v21 = vpop.f32.mrb[29].mxu1 }
 0x136   :  { %v772_v22 = vpop.f32.mrb[30].mxu0  ;;  %v900_v23 = vpop.f32.mrb[30].mxu1 }
 0x137   :  { %v1185_v24 = vadd.f32 %v2455_v15, %v772_v22  ;;  %v1217_v25 = vadd.f32 %v2455_v15, %v900_v23  ;;  %v774_v26 = vpop.f32.mrb[31].mxu0  ;;  %v902_v27 = vpop.f32.mrb[31].mxu1  ;;  %v1248_v28 = vmax.f32 %v1184_v18, 0.0  ;;  %v1280_v29 = vmax.f32 %v1216_v19, 0.0 }
 0x139   :  { %v1249_v30 = vmax.f32 %v1185_v24, 0.0  ;;  %v1281_v31 = vmax.f32 %v1217_v25, 0.0 }
 0x13b   :  { %v1895_v32 = vpack.c.bf16 %v1249_v30, %v1248_v28  ;;  %v1975_v33 = vpack.c.bf16 %v1281_v31, %v1280_v29 }
 0x13c   :  { %v777_v34 = vpop.f32.mrb[32].mxu0  ;;  %v905_v35 = vpop.f32.mrb[32].mxu1 }
 0x13d   :  { %2023 = vst [vmem:[%s2620_s3 + $0x38] sm:$0xff] %v1895_v32   ;;  %2039 = vst [vmem:[%s2620_s3 + $0xb8] sm:$0xff] %v1975_v33   ;;  %v1186_v36 = vadd.f32 %v2455_v15, %v777_v34  ;;  %v1218_v37 = vadd.f32 %v2455_v15, %v905_v35  ;;  %v779_v38 = vpop.f32.mrb[33].mxu0  ;;  %v907_v39 = vpop.f32.mrb[33].mxu1 }
 0x13e   :  { %v780_v40 = vpop.f32.mrb[34].mxu0  ;;  %v908_v41 = vpop.f32.mrb[34].mxu1 }
 0x13f   :  { %v1187_v42 = vadd.f32 %v2455_v15, %v780_v40  ;;  %v1219_v43 = vadd.f32 %v2455_v15, %v908_v41  ;;  %v782_v44 = vpop.f32.mrb[35].mxu0  ;;  %v910_v45 = vpop.f32.mrb[35].mxu1  ;;  %v1250_v46 = vmax.f32 %v1186_v36, 0.0  ;;  %v1282_v47 = vmax.f32 %v1218_v37, 0.0 }
 0x141   :  { %v1251_v48 = vmax.f32 %v1187_v42, 0.0  ;;  %v1283_v49 = vmax.f32 %v1219_v43, 0.0 }
 0x143   :  { %v1900_v50 = vpack.c.bf16 %v1251_v48, %v1250_v46  ;;  %v1980_v51 = vpack.c.bf16 %v1283_v49, %v1282_v47 }
 0x144   :  { %v785_v52 = vpop.f32.mrb[36].mxu0  ;;  %v913_v53 = vpop.f32.mrb[36].mxu1 }
 0x145   :  { %2024 = vst [vmem:[%s2620_s3 + $0x40] sm:$0xff] %v1900_v50   ;;  %2040 = vst [vmem:[%s2620_s3 + $0xc0] sm:$0xff] %v1980_v51   ;;  %v1188_v54 = vadd.f32 %v2455_v15, %v785_v52  ;;  %v1220_v55 = vadd.f32 %v2455_v15, %v913_v53  ;;  %v787_v56 = vpop.f32.mrb[37].mxu0  ;;  %v915_v57 = vpop.f32.mrb[37].mxu1 }
 0x146   :  { %v788_v58 = vpop.f32.mrb[38].mxu0  ;;  %v916_v59 = vpop.f32.mrb[38].mxu1 }
 0x147   :  { %v1189_v60 = vadd.f32 %v2455_v15, %v788_v58  ;;  %v1221_v61 = vadd.f32 %v2455_v15, %v916_v59  ;;  %v790_v62 = vpop.f32.mrb[39].mxu0  ;;  %v918_v63 = vpop.f32.mrb[39].mxu1  ;;  %v1252_v0 = vmax.f32 %v1188_v54, 0.0  ;;  %v1284_v1 = vmax.f32 %v1220_v55, 0.0 }
 0x149   :  { %v1253_v2 = vmax.f32 %v1189_v60, 0.0  ;;  %v1285_v3 = vmax.f32 %v1221_v61, 0.0 }
 0x14b   :  { %v1905_v4 = vpack.c.bf16 %v1253_v2, %v1252_v0  ;;  %v1985_v5 = vpack.c.bf16 %v1285_v3, %v1284_v1 }
 0x14c   :  { %v793_v6 = vpop.f32.mrb[40].mxu0  ;;  %v921_v7 = vpop.f32.mrb[40].mxu1 }
 0x14d   :  { %2025 = vst [vmem:[%s2620_s3 + $0x48] sm:$0xff] %v1905_v4   ;;  %2041 = vst [vmem:[%s2620_s3 + $0xc8] sm:$0xff] %v1985_v5   ;;  %v1190_v8 = vadd.f32 %v2455_v15, %v793_v6  ;;  %v1222_v9 = vadd.f32 %v2455_v15, %v921_v7  ;;  %v795_v10 = vpop.f32.mrb[41].mxu0  ;;  %v923_v11 = vpop.f32.mrb[41].mxu1 }
 0x14e   :  { %v796_v12 = vpop.f32.mrb[42].mxu0  ;;  %v924_v13 = vpop.f32.mrb[42].mxu1 }
 0x14f   :  { %v1191_v14 = vadd.f32 %v2455_v15, %v796_v12  ;;  %v1223_v16 = vadd.f32 %v2455_v15, %v924_v13  ;;  %v798_v17 = vpop.f32.mrb[43].mxu0  ;;  %v926_v18 = vpop.f32.mrb[43].mxu1  ;;  %v1254_v19 = vmax.f32 %v1190_v8, 0.0  ;;  %v1286_v20 = vmax.f32 %v1222_v9, 0.0 }
 0x151   :  { %v1255_v21 = vmax.f32 %v1191_v14, 0.0  ;;  %v1287_v22 = vmax.f32 %v1223_v16, 0.0 }
 0x153   :  { %v1910_v23 = vpack.c.bf16 %v1255_v21, %v1254_v19  ;;  %v1990_v24 = vpack.c.bf16 %v1287_v22, %v1286_v20 }
 0x154   :  { %v801_v25 = vpop.f32.mrb[44].mxu0  ;;  %v929_v26 = vpop.f32.mrb[44].mxu1 }
 0x155   :  { %2026 = vst [vmem:[%s2620_s3 + $0x50] sm:$0xff] %v1910_v23   ;;  %2042 = vst [vmem:[%s2620_s3 + $0xd0] sm:$0xff] %v1990_v24   ;;  %v1192_v27 = vadd.f32 %v2455_v15, %v801_v25  ;;  %v1224_v28 = vadd.f32 %v2455_v15, %v929_v26  ;;  %v803_v29 = vpop.f32.mrb[45].mxu0  ;;  %v931_v30 = vpop.f32.mrb[45].mxu1 }
 0x156   :  { %v804_v31 = vpop.f32.mrb[46].mxu0  ;;  %v932_v32 = vpop.f32.mrb[46].mxu1 }
 0x157   :  { %v1193_v33 = vadd.f32 %v2455_v15, %v804_v31  ;;  %v1225_v34 = vadd.f32 %v2455_v15, %v932_v32  ;;  %v806_v35 = vpop.f32.mrb[47].mxu0  ;;  %v934_v36 = vpop.f32.mrb[47].mxu1  ;;  %v1256_v37 = vmax.f32 %v1192_v27, 0.0  ;;  %v1288_v38 = vmax.f32 %v1224_v28, 0.0 }
 0x159   :  { %v1257_v39 = vmax.f32 %v1193_v33, 0.0  ;;  %v1289_v40 = vmax.f32 %v1225_v34, 0.0 }
 0x15b   :  { %v1915_v41 = vpack.c.bf16 %v1257_v39, %v1256_v37  ;;  %v1995_v42 = vpack.c.bf16 %v1289_v40, %v1288_v38 }
 0x15c   :  { %v809_v43 = vpop.f32.mrb[48].mxu0  ;;  %v937_v44 = vpop.f32.mrb[48].mxu1 }
 0x15d   :  { %2027 = vst [vmem:[%s2620_s3 + $0x58] sm:$0xff] %v1915_v41   ;;  %2043 = vst [vmem:[%s2620_s3 + $0xd8] sm:$0xff] %v1995_v42   ;;  %v1194_v45 = vadd.f32 %v2455_v15, %v809_v43  ;;  %v1226_v46 = vadd.f32 %v2455_v15, %v937_v44  ;;  %v811_v47 = vpop.f32.mrb[49].mxu0  ;;  %v939_v48 = vpop.f32.mrb[49].mxu1 }
 0x15e   :  { %v812_v49 = vpop.f32.mrb[50].mxu0  ;;  %v940_v50 = vpop.f32.mrb[50].mxu1 }
 0x15f   :  { %v1195_v51 = vadd.f32 %v2455_v15, %v812_v49  ;;  %v1227_v52 = vadd.f32 %v2455_v15, %v940_v50  ;;  %v814_v53 = vpop.f32.mrb[51].mxu0  ;;  %v942_v54 = vpop.f32.mrb[51].mxu1  ;;  %v1258_v55 = vmax.f32 %v1194_v45, 0.0  ;;  %v1290_v56 = vmax.f32 %v1226_v46, 0.0 }
 0x161   :  { %v1259_v57 = vmax.f32 %v1195_v51, 0.0  ;;  %v1291_v58 = vmax.f32 %v1227_v52, 0.0 }
 0x163   :  { %v1920_v59 = vpack.c.bf16 %v1259_v57, %v1258_v55  ;;  %v2000_v60 = vpack.c.bf16 %v1291_v58, %v1290_v56 }
 0x164   :  { %v817_v61 = vpop.f32.mrb[52].mxu0  ;;  %v945_v62 = vpop.f32.mrb[52].mxu1 }
 0x165   :  { %2028 = vst [vmem:[%s2620_s3 + $0x60] sm:$0xff] %v1920_v59   ;;  %2044 = vst [vmem:[%s2620_s3 + $0xe0] sm:$0xff] %v2000_v60   ;;  %v1196_v63 = vadd.f32 %v2455_v15, %v817_v61  ;;  %v1228_v0 = vadd.f32 %v2455_v15, %v945_v62  ;;  %v819_v1 = vpop.f32.mrb[53].mxu0  ;;  %v947_v2 = vpop.f32.mrb[53].mxu1 }
 0x166   :  { %v820_v3 = vpop.f32.mrb[54].mxu0  ;;  %v948_v4 = vpop.f32.mrb[54].mxu1 }
 0x167   :  { %v1197_v5 = vadd.f32 %v2455_v15, %v820_v3  ;;  %v1229_v6 = vadd.f32 %v2455_v15, %v948_v4  ;;  %v822_v7 = vpop.f32.mrb[55].mxu0  ;;  %v950_v8 = vpop.f32.mrb[55].mxu1  ;;  %v1260_v9 = vmax.f32 %v1196_v63, 0.0  ;;  %v1292_v10 = vmax.f32 %v1228_v0, 0.0 }
 0x169   :  { %v1261_v11 = vmax.f32 %v1197_v5, 0.0  ;;  %v1293_v12 = vmax.f32 %v1229_v6, 0.0 }
 0x16b   :  { %v1925_v13 = vpack.c.bf16 %v1261_v11, %v1260_v9  ;;  %v2005_v14 = vpack.c.bf16 %v1293_v12, %v1292_v10 }
 0x16c   :  { %v825_v16 = vpop.f32.mrb[56].mxu0  ;;  %v953_v17 = vpop.f32.mrb[56].mxu1 }
 0x16d   :  { %2029 = vst [vmem:[%s2620_s3 + $0x68] sm:$0xff] %v1925_v13   ;;  %2045 = vst [vmem:[%s2620_s3 + $0xe8] sm:$0xff] %v2005_v14   ;;  %v1198_v18 = vadd.f32 %v2455_v15, %v825_v16  ;;  %v1230_v19 = vadd.f32 %v2455_v15, %v953_v17  ;;  %v827_v20 = vpop.f32.mrb[57].mxu0  ;;  %v955_v21 = vpop.f32.mrb[57].mxu1 }
 0x16e   :  { %v828_v22 = vpop.f32.mrb[58].mxu0  ;;  %v956_v23 = vpop.f32.mrb[58].mxu1 }
 0x16f   :  { %v1199_v24 = vadd.f32 %v2455_v15, %v828_v22  ;;  %v1231_v25 = vadd.f32 %v2455_v15, %v956_v23  ;;  %v830_v26 = vpop.f32.mrb[59].mxu0  ;;  %v958_v27 = vpop.f32.mrb[59].mxu1  ;;  %v1262_v28 = vmax.f32 %v1198_v18, 0.0  ;;  %v1294_v29 = vmax.f32 %v1230_v19, 0.0 }
 0x171   :  { %v1263_v30 = vmax.f32 %v1199_v24, 0.0  ;;  %v1295_v31 = vmax.f32 %v1231_v25, 0.0 }
 0x173   :  { %v1930_v32 = vpack.c.bf16 %v1263_v30, %v1262_v28  ;;  %v2010_v33 = vpack.c.bf16 %v1295_v31, %v1294_v29 }
 0x174   :  { %v833_v34 = vpop.f32.mrb[60].mxu0  ;;  %v961_v35 = vpop.f32.mrb[60].mxu1 }
 0x175   :  { %2030 = vst [vmem:[%s2620_s3 + $0x70] sm:$0xff] %v1930_v32   ;;  %2046 = vst [vmem:[%s2620_s3 + $0xf0] sm:$0xff] %v2010_v33   ;;  %v1200_v36 = vadd.f32 %v2455_v15, %v833_v34  ;;  %v1232_v37 = vadd.f32 %v2455_v15, %v961_v35  ;;  %v835_v38 = vpop.f32.mrb[61].mxu0  ;;  %v963_v39 = vpop.f32.mrb[61].mxu1 }
 0x176   :  { %v836_v40 = vpop.f32.mrb[62].mxu0  ;;  %v964_v41 = vpop.f32.mrb[62].mxu1 }
 0x177   :  { %v1201_v42 = vadd.f32 %v2455_v15, %v836_v40  ;;  %v1233_v43 = vadd.f32 %v2455_v15, %v964_v41  ;;  %v838_v44 = vpop.f32.mrb[63].mxu0  ;;  %v966_v45 = vpop.f32.mrb[63].mxu1  ;;  %v1264_v46 = vmax.f32 %v1200_v36, 0.0  ;;  %v1296_v47 = vmax.f32 %v1232_v37, 0.0 }
 0x179   :  { %v1265_v48 = vmax.f32 %v1201_v42, 0.0  ;;  %v1297_v49 = vmax.f32 %v1233_v43, 0.0 }
 0x17b   :  { %v1935_v50 = vpack.c.bf16 %v1265_v48, %v1264_v46  ;;  %v2015_v51 = vpack.c.bf16 %v1297_v49, %v1296_v47 }
 0x17d   :  { %2031 = vst [vmem:[%s2620_s3 + $0x78] sm:$0xff] %v1935_v50   ;;  %2047 = vst [vmem:[%s2620_s3 + $0xf8] sm:$0xff] %v2015_v51  }

// kernel: _lambda_.47
= control target key start
LH: loop header
LB: loop body
LE: loop exit
PB: predicated region body
PF: predicated region fallthrough
CT: control target
= control target key end

     0   :  { %s721_s1 = inlined_call_operand.vmem [shape: bf16[128,128], index: 1, kind: input, shape index: {}]   ;;  %s722_s0 = inlined_call_operand.vmem [shape: bf16[128,128], index: 0, kind: input, shape index: {}]   ;;  %s723_s2 = inlined_call_operand.vmem [shape: f32[1,128], index: 2, kind: input, shape index: {}]   ;;  %s724_s3 = inlined_call_operand.vmem [shape: bf16[128,128], index: 3, kind: output, shape index: {}]  }
   0x1   :  { %v610_v0 = vld [vmem:[%s721_s1] sm:$0xff]   ;;  %v611_v1 = vld [vmem:[%s721_s1 + $0x8] sm:$0xff]   ;;  %v612_v2 = vld [vmem:[%s721_s1 + $0x10] sm:$0xff]  }
   0x2   :  { %562 = vmatprep.subr.bf16.mxu0 %v610_v0  ;;  %594 = vmatprep.subr.bf16.mxu1 %v610_v0  ;;  %v613_v3 = vld [vmem:[%s721_s1 + $0x18] sm:$0xff]   ;;  %v618_v4 = vld [vmem:[%s722_s0] sm:$0xff]   ;;  %v615_v7 = vld [vmem:[%s721_s1 + $0x28] sm:$0xff]  }
   0x3   :  { %563 = vmatpush3.bf16.msra.mxu0 %v610_v0  ;;  %602 = vmatpush3.bf16.msra.mxu1 %v610_v0  ;;  %v619_v5 = vld [vmem:[%s722_s0 + $0x20] sm:$0xff]   ;;  %v616_v8 = vld [vmem:[%s721_s1 + $0x30] sm:$0xff]   ;;  %v617_v9 = vld [vmem:[%s721_s1 + $0x38] sm:$0xff]  }
   0x4   :  { %564 = vmatprep.subr.bf16.mxu0 %v611_v1  ;;  %595 = vmatprep.subr.bf16.mxu1 %v611_v1  ;;  %v614_v6 = vld [vmem:[%s721_s1 + $0x20] sm:$0xff]   ;;  %v620_v10 = vld [vmem:[%s722_s0 + $0x8] sm:$0xff]   ;;  %v622_v12 = vld [vmem:[%s722_s0 + $0x10] sm:$0xff]  }
   0x5   :  { %578 = vmatprep.mubr.bf16.mxu0 %v618_v4  ;;  %586 = vmatprep.mubr.bf16.mxu1 %v619_v5  ;;  %v621_v11 = vld [vmem:[%s722_s0 + $0x28] sm:$0xff]   ;;  %v623_v13 = vld [vmem:[%s722_s0 + $0x30] sm:$0xff]   ;;  %v624_v14 = vld [vmem:[%s722_s0 + $0x18] sm:$0xff]  }
   0x6   :  { %v625_v15 = vld [vmem:[%s722_s0 + $0x38] sm:$0xff]   ;;  %v466_v16 = vld [vmem:[%s723_s2] ss:$0 sm:$0xff] }
   0x7   :  { %565 = vmatpush3.bf16.msra.mxu0 %v611_v1  ;;  %603 = vmatpush3.bf16.msra.mxu1 %v611_v1 }
   0x8   :  { %566 = vmatprep.subr.bf16.mxu0 %v612_v2  ;;  %596 = vmatprep.subr.bf16.mxu1 %v612_v2 }
   0xb   :  { %567 = vmatpush3.bf16.msra.mxu0 %v612_v2  ;;  %604 = vmatpush3.bf16.msra.mxu1 %v612_v2 }
   0xc   :  { %568 = vmatprep.subr.bf16.mxu0 %v613_v3  ;;  %597 = vmatprep.subr.bf16.mxu1 %v613_v3 }
   0xf   :  { %569 = vmatpush3.bf16.msra.mxu0 %v613_v3  ;;  %605 = vmatpush3.bf16.msra.mxu1 %v613_v3 }
  0x10   :  { %570 = vmatprep.subr.bf16.mxu0 %v614_v6  ;;  %598 = vmatprep.subr.bf16.mxu1 %v614_v6 }
  0x13   :  { %571 = vmatpush3.bf16.msra.mxu0 %v614_v6  ;;  %606 = vmatpush3.bf16.msra.mxu1 %v614_v6 }
  0x14   :  { %572 = vmatprep.subr.bf16.mxu0 %v615_v7  ;;  %599 = vmatprep.subr.bf16.mxu1 %v615_v7 }
  0x17   :  { %573 = vmatpush3.bf16.msra.mxu0 %v615_v7  ;;  %607 = vmatpush3.bf16.msra.mxu1 %v615_v7 }
  0x18   :  { %574 = vmatprep.subr.bf16.mxu0 %v616_v8  ;;  %600 = vmatprep.subr.bf16.mxu1 %v616_v8 }
  0x1b   :  { %575 = vmatpush3.bf16.msra.mxu0 %v616_v8  ;;  %608 = vmatpush3.bf16.msra.mxu1 %v616_v8 }
  0x1c   :  { %576 = vmatprep.subr.bf16.mxu0 %v617_v9  ;;  %601 = vmatprep.subr.bf16.mxu1 %v617_v9 }
  0x1f   :  { %577 = vmatpush3.bf16.msra.mxu0 %v617_v9  ;;  %609 = vmatpush3.bf16.msra.mxu1 %v617_v9 }
  0x22   :  { %579 = vmatmul.mubr.bf16.vlgmr.msra.gmra.mrb[0].mxu0 %v620_v10  ;;  %587 = vmatmul.mubr.bf16.vlgmr.msra.gmra.mrb[0].mxu1 %v621_v11 }
  0x23   :  { %582 = vmatprep.mubr.bf16.mxu0 %v622_v12  ;;  %590 = vmatprep.mubr.bf16.mxu1 %v623_v13 }
  0x2a   :  { %583 = vmatmul.mubr.bf16.gmra.mrb[4].mxu0 %v624_v14  ;;  %591 = vmatmul.mubr.bf16.gmra.mrb[4].mxu1 %v625_v15 }
  0xf5   :  { %v580_v17 = vpop.f32.mrb[0].mxu0  ;;  %v588_v18 = vpop.f32.mrb[0].mxu1 }
  0xf6   :  { %v336_v19 = vadd.f32 %v580_v17, %v466_v16  ;;  %v344_v20 = vadd.f32 %v588_v18, %v466_v16  ;;  %v213_v21 = vpop.f32.mrb[1].mxu0  ;;  %v245_v22 = vpop.f32.mrb[1].mxu1 }
  0xf7   :  { %v334_v23 = vadd.f32 %v466_v16, %v213_v21  ;;  %v342_v24 = vadd.f32 %v466_v16, %v245_v22  ;;  %v581_v25 = vpop.f32.mrb[2].mxu0  ;;  %v589_v26 = vpop.f32.mrb[2].mxu1 }
  0xf8   :  { %v337_v27 = vadd.f32 %v581_v25, %v466_v16  ;;  %v345_v28 = vadd.f32 %v589_v26, %v466_v16  ;;  %v216_v29 = vpop.f32.mrb[3].mxu0  ;;  %v248_v30 = vpop.f32.mrb[3].mxu1  ;;  %v352_v33 = vmax.f32 %v336_v19, 0.0  ;;  %v360_v34 = vmax.f32 %v344_v20, 0.0 }
  0xf9   :  { %v335_v31 = vadd.f32 %v466_v16, %v216_v29  ;;  %v343_v32 = vadd.f32 %v466_v16, %v248_v30  ;;  %v350_v37 = vmax.f32 %v334_v23, 0.0  ;;  %v358_v38 = vmax.f32 %v342_v24, 0.0 }
  0xfa   :  { %v353_v35 = vmax.f32 %v337_v27, 0.0  ;;  %v361_v36 = vmax.f32 %v345_v28, 0.0 }
  0xfb   :  { %v351_v39 = vmax.f32 %v335_v31, 0.0  ;;  %v359_v40 = vmax.f32 %v343_v32, 0.0 }
  0xfc   :  { %v507_v41 = vpack.c.bf16 %v353_v35, %v352_v33  ;;  %v527_v42 = vpack.c.bf16 %v361_v36, %v360_v34 }
  0xfd   :  { %v502_v43 = vpack.c.bf16 %v351_v39, %v350_v37  ;;  %v522_v44 = vpack.c.bf16 %v359_v40, %v358_v38  ;;  %v584_v45 = vpop.f32.mrb[4].mxu0  ;;  %v592_v46 = vpop.f32.mrb[4].mxu1 }
  0xfe   :  { %539 = vst [vmem:[%s724_s3 + $0x8] sm:$0xff] %v507_v41   ;;  %543 = vst [vmem:[%s724_s3 + $0x28] sm:$0xff] %v527_v42   ;;  %v340_v47 = vadd.f32 %v584_v45, %v466_v16  ;;  %v348_v48 = vadd.f32 %v592_v46, %v466_v16  ;;  %v229_v49 = vpop.f32.mrb[5].mxu0  ;;  %v261_v50 = vpop.f32.mrb[5].mxu1 }
  0xff   :  { %503 = vst [vmem:[%s724_s3] sm:$0xff] %v502_v43   ;;  %542 = vst [vmem:[%s724_s3 + $0x20] sm:$0xff] %v522_v44   ;;  %v338_v51 = vadd.f32 %v466_v16, %v229_v49  ;;  %v346_v52 = vadd.f32 %v466_v16, %v261_v50  ;;  %v585_v53 = vpop.f32.mrb[6].mxu0  ;;  %v593_v54 = vpop.f32.mrb[6].mxu1 }
 0x100   :  { %v341_v55 = vadd.f32 %v585_v53, %v466_v16  ;;  %v349_v56 = vadd.f32 %v593_v54, %v466_v16  ;;  %v232_v57 = vpop.f32.mrb[7].mxu0  ;;  %v264_v58 = vpop.f32.mrb[7].mxu1  ;;  %v356_v61 = vmax.f32 %v340_v47, 0.0  ;;  %v364_v62 = vmax.f32 %v348_v48, 0.0 }
 0x101   :  { %v339_v59 = vadd.f32 %v466_v16, %v232_v57  ;;  %v347_v60 = vadd.f32 %v466_v16, %v264_v58  ;;  %v354_v1 = vmax.f32 %v338_v51, 0.0  ;;  %v362_v2 = vmax.f32 %v346_v52, 0.0 }
 0x102   :  { %v357_v63 = vmax.f32 %v341_v55, 0.0  ;;  %v365_v0 = vmax.f32 %v349_v56, 0.0 }
 0x103   :  { %v355_v3 = vmax.f32 %v339_v59, 0.0  ;;  %v363_v4 = vmax.f32 %v347_v60, 0.0 }
 0x104   :  { %v517_v5 = vpack.c.bf16 %v357_v63, %v356_v61  ;;  %v537_v6 = vpack.c.bf16 %v365_v0, %v364_v62 }
 0x105   :  { %v512_v7 = vpack.c.bf16 %v355_v3, %v354_v1  ;;  %v532_v8 = vpack.c.bf16 %v363_v4, %v362_v2 }
 0x106   :  { %541 = vst [vmem:[%s724_s3 + $0x18] sm:$0xff] %v517_v5   ;;  %545 = vst [vmem:[%s724_s3 + $0x38] sm:$0xff] %v537_v6  }
 0x107   :  { %540 = vst [vmem:[%s724_s3 + $0x10] sm:$0xff] %v512_v7   ;;  %544 = vst [vmem:[%s724_s3 + $0x30] sm:$0xff] %v532_v8  }

// kernel: _lambda_.45
= control target key start
LH: loop header
LB: loop body
LE: loop exit
PB: predicated region body
PF: predicated region fallthrough
CT: control target
= control target key end

     0   :  { %vm153_vm0 = vcmask 1043456   ;;  %s1400_s0 = inlined_call_operand.vmem [shape: bf16[9,128,128], index: 0, kind: input, shape index: {}]   ;;  %s1401_s1 = inlined_call_operand.vmem [shape: bf16[128,128], index: 1, kind: output, shape index: {}]  }
   0x1   :  { %v9_v0 = vld [vmem:[%s1400_s0] sm:$0xf]  ;;  %v10_v3 = vld [vmem:[%s1400_s0 + $0x4] sm:$0xf]  ;;  %v11_v39 = vld [vmem:[%s1400_s0 + $0x8] sm:$0xf] }
   0x2   :  { %v25_v1 = vld [vmem:[%s1400_s0 + $0x40] sm:$0xf]  ;;  %v26_v4 = vld [vmem:[%s1400_s0 + $0x44] sm:$0xf]  ;;  %v156_v7 = vsel %vm153_vm0, %v9_v0, 4286644096 }
   0x3   :  { %v41_v2 = vld [vmem:[%s1400_s0 + $0x80] sm:$0xf]  ;;  %v42_v5 = vld [vmem:[%s1400_s0 + $0x84] sm:$0xf]  ;;  %v159_v8 = vsel %vm153_vm0, %v25_v1, 4286644096 }
   0x4   :  { %v57_v6 = vld [vmem:[%s1400_s0 + $0xc0] sm:$0xf]  ;;  %v163_v9 = vsel %vm153_vm0, %v41_v2, 4286644096  ;;  %v161_v11 = vmax.bf16 %v159_v8, %v156_v7  ;;  %v58_v12 = vld [vmem:[%s1400_s0 + $0xc4] sm:$0xf] }
   0x5   :  { %v73_v10 = vld [vmem:[%s1400_s0 + $0x100] sm:$0xf]  ;;  %v167_v14 = vsel %vm153_vm0, %v57_v6, 4286644096  ;;  %v191_v16 = vsel %vm153_vm0, %v10_v3, 4286644096 }
   0x6   :  { %v89_v13 = vld [vmem:[%s1400_s0 + $0x140] sm:$0xf]  ;;  %v165_v15 = vmax.bf16 %v163_v9, %v161_v11  ;;  %v194_v17 = vsel %vm153_vm0, %v26_v4, 4286644096  ;;  %v198_v18 = vsel %vm153_vm0, %v42_v5, 4286644096 }
   0x7   :  { %v74_v19 = vld [vmem:[%s1400_s0 + $0x104] sm:$0xf]  ;;  %v171_v20 = vsel %vm153_vm0, %v73_v10, 4286644096  ;;  %v196_v21 = vmax.bf16 %v194_v17, %v191_v16  ;;  %v105_v23 = vld [vmem:[%s1400_s0 + $0x180] sm:$0xf] }
   0x8   :  { %v90_v22 = vld [vmem:[%s1400_s0 + $0x144] sm:$0xf]  ;;  %v169_v24 = vmax.bf16 %v167_v14, %v165_v15  ;;  %v202_v25 = vsel %vm153_vm0, %v58_v12, 4286644096  ;;  %v175_v27 = vsel %vm153_vm0, %v89_v13, 4286644096 }
   0x9   :  { %v106_v26 = vld [vmem:[%s1400_s0 + $0x184] sm:$0xf]  ;;  %v200_v28 = vmax.bf16 %v198_v18, %v196_v21  ;;  %v121_v29 = vld [vmem:[%s1400_s0 + $0x1c0] sm:$0xf]  ;;  %v206_v32 = vsel %vm153_vm0, %v74_v19, 4286644096 }
   0xa   :  { %v137_v30 = vld [vmem:[%s1400_s0 + $0x200] sm:$0xf]  ;;  %v173_v31 = vmax.bf16 %v171_v20, %v169_v24  ;;  %v122_v33 = vld [vmem:[%s1400_s0 + $0x1c4] sm:$0xf]  ;;  %v179_v34 = vsel %vm153_vm0, %v105_v23, 4286644096 }
   0xb   :  { %v204_v35 = vmax.bf16 %v202_v25, %v200_v28  ;;  %v210_v36 = vsel %vm153_vm0, %v90_v22, 4286644096  ;;  %v138_v37 = vld [vmem:[%s1400_s0 + $0x204] sm:$0xf]  ;;  %v27_v40 = vld [vmem:[%s1400_s0 + $0x48] sm:$0xf] }
   0xc   :  { %v177_v38 = vmax.bf16 %v175_v27, %v173_v31  ;;  %v43_v41 = vld [vmem:[%s1400_s0 + $0x88] sm:$0xf]  ;;  %v183_v42 = vsel %vm153_vm0, %v121_v29, 4286644096  ;;  %v187_v43 = vsel %vm153_vm0, %v137_v30, 4286644096 }
   0xd   :  { %v208_v44 = vmax.bf16 %v206_v32, %v204_v35  ;;  %v214_v45 = vsel %vm153_vm0, %v106_v26, 4286644096  ;;  %v12_v47 = vld [vmem:[%s1400_s0 + $0xc] sm:$0xf]  ;;  %v59_v48 = vld [vmem:[%s1400_s0 + $0xc8] sm:$0xf] }
   0xe   :  { %v181_v46 = vmax.bf16 %v179_v34, %v177_v38  ;;  %v75_v49 = vld [vmem:[%s1400_s0 + $0x108] sm:$0xf]  ;;  %v226_v51 = vsel %vm153_vm0, %v11_v39, 4286644096  ;;  %v229_v52 = vsel %vm153_vm0, %v27_v40, 4286644096 }
   0xf   :  { %v212_v50 = vmax.bf16 %v210_v36, %v208_v44  ;;  %v233_v53 = vsel %vm153_vm0, %v43_v41, 4286644096  ;;  %v218_v55 = vsel %vm153_vm0, %v122_v33, 4286644096  ;;  %v28_v56 = vld [vmem:[%s1400_s0 + $0x4c] sm:$0xf]  ;;  %v231_v58 = vmax.bf16 %v229_v52, %v226_v51 }
  0x10   :  { %v185_v54 = vmax.bf16 %v183_v42, %v181_v46  ;;  %v44_v57 = vld [vmem:[%s1400_s0 + $0x8c] sm:$0xf]  ;;  %v222_v60 = vsel %vm153_vm0, %v138_v37, 4286644096  ;;  %v237_v62 = vsel %vm153_vm0, %v59_v48, 4286644096 }
  0x11   :  { %v216_v59 = vmax.bf16 %v214_v45, %v212_v50  ;;  %v60_v61 = vld [vmem:[%s1400_s0 + $0xcc] sm:$0xf]  ;;  %v91_v63 = vld [vmem:[%s1400_s0 + $0x148] sm:$0xf]  ;;  %v235_v0 = vmax.bf16 %v233_v53, %v231_v58  ;;  %v241_v1 = vsel %vm153_vm0, %v75_v49, 4286644096 }
  0x12   :  { %v261_v2 = vsel %vm153_vm0, %v12_v47, 4286644096  ;;  %v189_v3 = vmax.bf16 %v187_v43, %v185_v54  ;;  %v264_v5 = vsel %vm153_vm0, %v28_v56, 4286644096  ;;  %v268_v6 = vsel %vm153_vm0, %v44_v57, 4286644096 }
  0x13   :  { %v220_v4 = vmax.bf16 %v218_v55, %v216_v59  ;;  %v76_v7 = vld [vmem:[%s1400_s0 + $0x10c] sm:$0xf]  ;;  %v107_v8 = vld [vmem:[%s1400_s0 + $0x188] sm:$0xf]  ;;  %v239_v9 = vmax.bf16 %v237_v62, %v235_v0  ;;  %v266_v10 = vmax.bf16 %v264_v5, %v261_v2  ;;  %v245_v12 = vsel %vm153_vm0, %v91_v63, 4286644096 }
  0x14   :  { %v272_v13 = vsel %vm153_vm0, %v60_v61, 4286644096  ;;  %v92_v14 = vld [vmem:[%s1400_s0 + $0x14c] sm:$0xf]  ;;  %v123_v16 = vld [vmem:[%s1400_s0 + $0x1c8] sm:$0xf] }
  0x15   :  { %v224_v11 = vmax.bf16 %v222_v60, %v220_v4  ;;  %v108_v15 = vld [vmem:[%s1400_s0 + $0x18c] sm:$0xf]  ;;  %v243_v17 = vmax.bf16 %v241_v1, %v239_v9  ;;  %v270_v18 = vmax.bf16 %v268_v6, %v266_v10  ;;  %v139_v20 = vld [vmem:[%s1400_s0 + $0x208] sm:$0xf]  ;;  %v249_v21 = vsel %vm153_vm0, %v107_v8, 4286644096 }
  0x16   :  { %v276_v22 = vsel %vm153_vm0, %v76_v7, 4286644096  ;;  %v124_v23 = vld [vmem:[%s1400_s0 + $0x1cc] sm:$0xf]  ;;  %v13_v26 = vld [vmem:[%s1400_s0 + $0x10] sm:$0xf] }
  0x17   :  { %v775_v19 = vcombine.low %v189_v3, %v224_v11  ;;  %v247_v24 = vmax.bf16 %v245_v12, %v243_v17  ;;  %v274_v25 = vmax.bf16 %v272_v13, %v270_v18  ;;  %v29_v27 = vld [vmem:[%s1400_s0 + $0x50] sm:$0xf]  ;;  %v140_v29 = vld [vmem:[%s1400_s0 + $0x20c] sm:$0xf]  ;;  %v253_v30 = vsel %vm153_vm0, %v123_v16, 4286644096 }
  0x18   :  { %v45_v28 = vld [vmem:[%s1400_s0 + $0x90] sm:$0xf]  ;;  %v280_v31 = vsel %vm153_vm0, %v92_v14, 4286644096  ;;  %v257_v33 = vsel %vm153_vm0, %v139_v20, 4286644096 }
  0x19   :  { %739 = vst [vmem:[%s1401_s1] sm:$0xff] %v775_v19   ;;  %v251_v32 = vmax.bf16 %v249_v21, %v247_v24  ;;  %v278_v34 = vmax.bf16 %v276_v22, %v274_v25  ;;  %v284_v35 = vsel %vm153_vm0, %v108_v15, 4286644096  ;;  %v61_v36 = vld [vmem:[%s1400_s0 + $0xd0] sm:$0xf]  ;;  %v296_v37 = vsel %vm153_vm0, %v13_v26, 4286644096 }
  0x1a   :  { %v299_v38 = vsel %vm153_vm0, %v29_v27, 4286644096  ;;  %v303_v39 = vsel %vm153_vm0, %v45_v28, 4286644096  ;;  %v14_v42 = vld [vmem:[%s1400_s0 + $0x14] sm:$0xf] }
  0x1b   :  { %v255_v40 = vmax.bf16 %v253_v30, %v251_v32  ;;  %v282_v41 = vmax.bf16 %v280_v31, %v278_v34  ;;  %v30_v43 = vld [vmem:[%s1400_s0 + $0x54] sm:$0xf]  ;;  %v77_v44 = vld [vmem:[%s1400_s0 + $0x110] sm:$0xf]  ;;  %v301_v45 = vmax.bf16 %v299_v38, %v296_v37  ;;  %v288_v46 = vsel %vm153_vm0, %v124_v23, 4286644096 }
  0x1c   :  { %v46_v47 = vld [vmem:[%s1400_s0 + $0x94] sm:$0xf]  ;;  %v307_v48 = vsel %vm153_vm0, %v61_v36, 4286644096  ;;  %v292_v50 = vsel %vm153_vm0, %v140_v29, 4286644096 }
  0x1d   :  { %v286_v49 = vmax.bf16 %v284_v35, %v282_v41  ;;  %v62_v51 = vld [vmem:[%s1400_s0 + $0xd4] sm:$0xf]  ;;  %v93_v52 = vld [vmem:[%s1400_s0 + $0x150] sm:$0xf]  ;;  %v305_v53 = vmax.bf16 %v303_v39, %v301_v45  ;;  %v259_v54 = vmax.bf16 %v257_v33, %v255_v40  ;;  %v311_v55 = vsel %vm153_vm0, %v77_v44, 4286644096 }
  0x1e   :  { %v331_v56 = vsel %vm153_vm0, %v14_v42, 4286644096  ;;  %v334_v57 = vsel %vm153_vm0, %v30_v43, 4286644096  ;;  %v78_v59 = vld [vmem:[%s1400_s0 + $0x114] sm:$0xf] }
  0x1f   :  { %v290_v58 = vmax.bf16 %v288_v46, %v286_v49  ;;  %v109_v60 = vld [vmem:[%s1400_s0 + $0x190] sm:$0xf]  ;;  %v309_v61 = vmax.bf16 %v307_v48, %v305_v53  ;;  %v336_v62 = vmax.bf16 %v334_v57, %v331_v56  ;;  %v338_v63 = vsel %vm153_vm0, %v46_v47, 4286644096  ;;  %v94_v3 = vld [vmem:[%s1400_s0 + $0x154] sm:$0xf] }
  0x20   :  { %v315_v0 = vsel %vm153_vm0, %v93_v52, 4286644096  ;;  %v342_v1 = vsel %vm153_vm0, %v62_v51, 4286644096  ;;  %v110_v4 = vld [vmem:[%s1400_s0 + $0x194] sm:$0xf] }
  0x21   :  { %v294_v2 = vmax.bf16 %v292_v50, %v290_v58  ;;  %v125_v5 = vld [vmem:[%s1400_s0 + $0x1d0] sm:$0xf]  ;;  %v313_v6 = vmax.bf16 %v311_v55, %v309_v61  ;;  %v340_v7 = vmax.bf16 %v338_v63, %v336_v62  ;;  %v319_v9 = vsel %vm153_vm0, %v109_v60, 4286644096  ;;  %v126_v12 = vld [vmem:[%s1400_s0 + $0x1d4] sm:$0xf] }
  0x22   :  { %v141_v8 = vld [vmem:[%s1400_s0 + $0x210] sm:$0xf]  ;;  %v346_v10 = vsel %vm153_vm0, %v78_v59, 4286644096  ;;  %v15_v15 = vld [vmem:[%s1400_s0 + $0x18] sm:$0xf] }
  0x23   :  { %v776_v11 = vcombine.low %v259_v54, %v294_v2  ;;  %v317_v13 = vmax.bf16 %v315_v0, %v313_v6  ;;  %v344_v14 = vmax.bf16 %v342_v1, %v340_v7  ;;  %v31_v16 = vld [vmem:[%s1400_s0 + $0x58] sm:$0xf]  ;;  %v142_v18 = vld [vmem:[%s1400_s0 + $0x214] sm:$0xf]  ;;  %v323_v19 = vsel %vm153_vm0, %v125_v5, 4286644096 }
  0x24   :  { %v47_v17 = vld [vmem:[%s1400_s0 + $0x98] sm:$0xf]  ;;  %v350_v20 = vsel %vm153_vm0, %v94_v3, 4286644096  ;;  %v354_v23 = vsel %vm153_vm0, %v110_v4, 4286644096 }
  0x25   :  { %777 = vst [vmem:[%s1401_s1 + $0x8] sm:$0xff] %v776_v11   ;;  %v321_v21 = vmax.bf16 %v319_v9, %v317_v13  ;;  %v348_v22 = vmax.bf16 %v346_v10, %v344_v14  ;;  %v16_v24 = vld [vmem:[%s1400_s0 + $0x1c] sm:$0xf]  ;;  %v63_v25 = vld [vmem:[%s1400_s0 + $0xd8] sm:$0xf] }
  0x26   :  { %v366_v26 = vsel %vm153_vm0, %v15_v15, 4286644096  ;;  %v369_v27 = vsel %vm153_vm0, %v31_v16, 4286644096  ;;  %v373_v28 = vsel %vm153_vm0, %v47_v17, 4286644096 }
  0x27   :  { %v325_v29 = vmax.bf16 %v323_v19, %v321_v21  ;;  %v327_v30 = vsel %vm153_vm0, %v141_v8, 4286644096  ;;  %v352_v31 = vmax.bf16 %v350_v20, %v348_v22  ;;  %v32_v32 = vld [vmem:[%s1400_s0 + $0x5c] sm:$0xf]  ;;  %v79_v33 = vld [vmem:[%s1400_s0 + $0x118] sm:$0xf]  ;;  %v371_v34 = vmax.bf16 %v369_v27, %v366_v26 }
  0x28   :  { %v358_v35 = vsel %vm153_vm0, %v126_v12, 4286644096  ;;  %v48_v36 = vld [vmem:[%s1400_s0 + $0x9c] sm:$0xf]  ;;  %v377_v37 = vsel %vm153_vm0, %v63_v25, 4286644096 }
  0x29   :  { %v356_v38 = vmax.bf16 %v354_v23, %v352_v31  ;;  %v362_v39 = vsel %vm153_vm0, %v142_v18, 4286644096  ;;  %v64_v40 = vld [vmem:[%s1400_s0 + $0xdc] sm:$0xf]  ;;  %v95_v41 = vld [vmem:[%s1400_s0 + $0x158] sm:$0xf]  ;;  %v375_v42 = vmax.bf16 %v373_v28, %v371_v34  ;;  %v329_v43 = vmax.bf16 %v327_v30, %v325_v29 }
  0x2a   :  { %v381_v44 = vsel %vm153_vm0, %v79_v33, 4286644096  ;;  %v401_v45 = vsel %vm153_vm0, %v16_v24, 4286644096  ;;  %v404_v46 = vsel %vm153_vm0, %v32_v32, 4286644096 }
  0x2b   :  { %v360_v47 = vmax.bf16 %v358_v35, %v356_v38  ;;  %v80_v48 = vld [vmem:[%s1400_s0 + $0x11c] sm:$0xf]  ;;  %v111_v49 = vld [vmem:[%s1400_s0 + $0x198] sm:$0xf]  ;;  %v379_v50 = vmax.bf16 %v377_v37, %v375_v42  ;;  %v406_v51 = vmax.bf16 %v404_v46, %v401_v45  ;;  %v408_v52 = vsel %vm153_vm0, %v48_v36, 4286644096 }
  0x2c   :  { %v385_v53 = vsel %vm153_vm0, %v95_v41, 4286644096  ;;  %v412_v54 = vsel %vm153_vm0, %v64_v40, 4286644096  ;;  %v96_v56 = vld [vmem:[%s1400_s0 + $0x15c] sm:$0xf] }
  0x2d   :  { %v364_v55 = vmax.bf16 %v362_v39, %v360_v47  ;;  %v112_v57 = vld [vmem:[%s1400_s0 + $0x19c] sm:$0xf]  ;;  %v127_v58 = vld [vmem:[%s1400_s0 + $0x1d8] sm:$0xf]  ;;  %v383_v59 = vmax.bf16 %v381_v44, %v379_v50  ;;  %v410_v60 = vmax.bf16 %v408_v52, %v406_v51  ;;  %v389_v62 = vsel %vm153_vm0, %v111_v49, 4286644096 }
  0x2e   :  { %v143_v61 = vld [vmem:[%s1400_s0 + $0x218] sm:$0xf]  ;;  %v416_v63 = vsel %vm153_vm0, %v80_v48, 4286644096  ;;  %v128_v1 = vld [vmem:[%s1400_s0 + $0x1dc] sm:$0xf] }
  0x2f   :  { %v778_v0 = vcombine.low %v329_v43, %v364_v55  ;;  %v387_v2 = vmax.bf16 %v385_v53, %v383_v59  ;;  %v414_v3 = vmax.bf16 %v412_v54, %v410_v60  ;;  %v17_v4 = vld [vmem:[%s1400_s0 + $0x20] sm:$0xf]  ;;  %v144_v7 = vld [vmem:[%s1400_s0 + $0x21c] sm:$0xf]  ;;  %v393_v8 = vsel %vm153_vm0, %v127_v58, 4286644096 }
  0x30   :  { %v33_v5 = vld [vmem:[%s1400_s0 + $0x60] sm:$0xf]  ;;  %v420_v9 = vsel %vm153_vm0, %v96_v56, 4286644096  ;;  %v424_v12 = vsel %vm153_vm0, %v112_v57, 4286644096 }
  0x31   :  { %v49_v6 = vld [vmem:[%s1400_s0 + $0xa0] sm:$0xf]  ;;  %779 = vst [vmem:[%s1401_s1 + $0x10] sm:$0xff] %v778_v0   ;;  %v391_v10 = vmax.bf16 %v389_v62, %v387_v2  ;;  %v418_v11 = vmax.bf16 %v416_v63, %v414_v3  ;;  %v18_v13 = vld [vmem:[%s1400_s0 + $0x24] sm:$0xf] }
  0x32   :  { %v65_v14 = vld [vmem:[%s1400_s0 + $0xe0] sm:$0xf]  ;;  %v436_v15 = vsel %vm153_vm0, %v17_v4, 4286644096  ;;  %v439_v16 = vsel %vm153_vm0, %v33_v5, 4286644096 }
  0x33   :  { %v443_v17 = vsel %vm153_vm0, %v49_v6, 4286644096  ;;  %v395_v18 = vmax.bf16 %v393_v8, %v391_v10  ;;  %v397_v19 = vsel %vm153_vm0, %v143_v61, 4286644096  ;;  %v422_v20 = vmax.bf16 %v420_v9, %v418_v11  ;;  %v34_v21 = vld [vmem:[%s1400_s0 + $0x64] sm:$0xf] }
  0x34   :  { %v81_v22 = vld [vmem:[%s1400_s0 + $0x120] sm:$0xf]  ;;  %v441_v23 = vmax.bf16 %v439_v16, %v436_v15  ;;  %v428_v24 = vsel %vm153_vm0, %v128_v1, 4286644096  ;;  %v50_v25 = vld [vmem:[%s1400_s0 + $0xa4] sm:$0xf] }
  0x35   :  { %v447_v26 = vsel %vm153_vm0, %v65_v14, 4286644096  ;;  %v426_v27 = vmax.bf16 %v424_v12, %v422_v20  ;;  %v432_v28 = vsel %vm153_vm0, %v144_v7, 4286644096  ;;  %v66_v29 = vld [vmem:[%s1400_s0 + $0xe4] sm:$0xf]  ;;  %v399_v32 = vmax.bf16 %v397_v19, %v395_v18 }
  0x36   :  { %v97_v30 = vld [vmem:[%s1400_s0 + $0x160] sm:$0xf]  ;;  %v445_v31 = vmax.bf16 %v443_v17, %v441_v23  ;;  %v451_v33 = vsel %vm153_vm0, %v81_v22, 4286644096  ;;  %v471_v34 = vsel %vm153_vm0, %v18_v13, 4286644096 }
  0x37   :  { %v474_v35 = vsel %vm153_vm0, %v34_v21, 4286644096  ;;  %v430_v36 = vmax.bf16 %v428_v24, %v426_v27  ;;  %v82_v37 = vld [vmem:[%s1400_s0 + $0x124] sm:$0xf]  ;;  %v113_v38 = vld [vmem:[%s1400_s0 + $0x1a0] sm:$0xf] }
  0x38   :  { %v449_v39 = vmax.bf16 %v447_v26, %v445_v31  ;;  %v476_v40 = vmax.bf16 %v474_v35, %v471_v34  ;;  %v478_v41 = vsel %vm153_vm0, %v50_v25, 4286644096  ;;  %v455_v42 = vsel %vm153_vm0, %v97_v30, 4286644096  ;;  %v98_v45 = vld [vmem:[%s1400_s0 + $0x164] sm:$0xf] }
  0x39   :  { %v482_v43 = vsel %vm153_vm0, %v66_v29, 4286644096  ;;  %v434_v44 = vmax.bf16 %v432_v28, %v430_v36  ;;  %v114_v46 = vld [vmem:[%s1400_s0 + $0x1a4] sm:$0xf]  ;;  %v129_v47 = vld [vmem:[%s1400_s0 + $0x1e0] sm:$0xf] }
  0x3a   :  { %v453_v48 = vmax.bf16 %v451_v33, %v449_v39  ;;  %v480_v49 = vmax.bf16 %v478_v41, %v476_v40  ;;  %v145_v50 = vld [vmem:[%s1400_s0 + $0x220] sm:$0xf]  ;;  %v459_v51 = vsel %vm153_vm0, %v113_v38, 4286644096  ;;  %v486_v52 = vsel %vm153_vm0, %v82_v37, 4286644096 }
  0x3b   :  { %v780_v53 = vcombine.low %v399_v32, %v434_v44  ;;  %v130_v54 = vld [vmem:[%s1400_s0 + $0x1e4] sm:$0xf]  ;;  %v19_v57 = vld [vmem:[%s1400_s0 + $0x28] sm:$0xf]  ;;  %v463_v61 = vsel %vm153_vm0, %v129_v47, 4286644096 }
  0x3c   :  { %v457_v55 = vmax.bf16 %v455_v42, %v453_v48  ;;  %v484_v56 = vmax.bf16 %v482_v43, %v480_v49  ;;  %v35_v58 = vld [vmem:[%s1400_s0 + $0x68] sm:$0xf]  ;;  %v146_v60 = vld [vmem:[%s1400_s0 + $0x224] sm:$0xf]  ;;  %v490_v62 = vsel %vm153_vm0, %v98_v45, 4286644096 }
  0x3d   :  { %v51_v59 = vld [vmem:[%s1400_s0 + $0xa8] sm:$0xf]  ;;  %781 = vst [vmem:[%s1401_s1 + $0x18] sm:$0xff] %v780_v53   ;;  %v494_v1 = vsel %vm153_vm0, %v114_v46, 4286644096 }
  0x3e   :  { %v461_v63 = vmax.bf16 %v459_v51, %v457_v55  ;;  %v488_v0 = vmax.bf16 %v486_v52, %v484_v56  ;;  %v20_v2 = vld [vmem:[%s1400_s0 + $0x2c] sm:$0xf]  ;;  %v67_v3 = vld [vmem:[%s1400_s0 + $0xe8] sm:$0xf]  ;;  %v506_v4 = vsel %vm153_vm0, %v19_v57, 4286644096 }
  0x3f   :  { %v509_v5 = vsel %vm153_vm0, %v35_v58, 4286644096  ;;  %v513_v6 = vsel %vm153_vm0, %v51_v59, 4286644096  ;;  %v467_v8 = vsel %vm153_vm0, %v145_v50, 4286644096 }
  0x40   :  { %v465_v7 = vmax.bf16 %v463_v61, %v461_v63  ;;  %v492_v9 = vmax.bf16 %v490_v62, %v488_v0  ;;  %v36_v10 = vld [vmem:[%s1400_s0 + $0x6c] sm:$0xf]  ;;  %v83_v11 = vld [vmem:[%s1400_s0 + $0x128] sm:$0xf]  ;;  %v511_v12 = vmax.bf16 %v509_v5, %v506_v4  ;;  %v498_v13 = vsel %vm153_vm0, %v130_v54, 4286644096 }
  0x41   :  { %v52_v14 = vld [vmem:[%s1400_s0 + $0xac] sm:$0xf]  ;;  %v517_v15 = vsel %vm153_vm0, %v67_v3, 4286644096  ;;  %v502_v17 = vsel %vm153_vm0, %v146_v60, 4286644096 }
  0x42   :  { %v496_v16 = vmax.bf16 %v494_v1, %v492_v9  ;;  %v68_v18 = vld [vmem:[%s1400_s0 + $0xec] sm:$0xf]  ;;  %v99_v19 = vld [vmem:[%s1400_s0 + $0x168] sm:$0xf]  ;;  %v515_v20 = vmax.bf16 %v513_v6, %v511_v12  ;;  %v469_v21 = vmax.bf16 %v467_v8, %v465_v7  ;;  %v521_v22 = vsel %vm153_vm0, %v83_v11, 4286644096 }
  0x43   :  { %v541_v23 = vsel %vm153_vm0, %v20_v2, 4286644096  ;;  %v544_v24 = vsel %vm153_vm0, %v36_v10, 4286644096  ;;  %v84_v26 = vld [vmem:[%s1400_s0 + $0x12c] sm:$0xf] }
  0x44   :  { %v500_v25 = vmax.bf16 %v498_v13, %v496_v16  ;;  %v115_v27 = vld [vmem:[%s1400_s0 + $0x1a8] sm:$0xf]  ;;  %v519_v28 = vmax.bf16 %v517_v15, %v515_v20  ;;  %v546_v29 = vmax.bf16 %v544_v24, %v541_v23  ;;  %v548_v30 = vsel %vm153_vm0, %v52_v14, 4286644096  ;;  %v100_v34 = vld [vmem:[%s1400_s0 + $0x16c] sm:$0xf] }
  0x45   :  { %v525_v31 = vsel %vm153_vm0, %v99_v19, 4286644096  ;;  %v552_v32 = vsel %vm153_vm0, %v68_v18, 4286644096  ;;  %v116_v35 = vld [vmem:[%s1400_s0 + $0x1ac] sm:$0xf] }
  0x46   :  { %v504_v33 = vmax.bf16 %v502_v17, %v500_v25  ;;  %v131_v36 = vld [vmem:[%s1400_s0 + $0x1e8] sm:$0xf]  ;;  %v523_v37 = vmax.bf16 %v521_v22, %v519_v28  ;;  %v550_v38 = vmax.bf16 %v548_v30, %v546_v29  ;;  %v529_v40 = vsel %vm153_vm0, %v115_v27, 4286644096  ;;  %v132_v43 = vld [vmem:[%s1400_s0 + $0x1ec] sm:$0xf] }
  0x47   :  { %v147_v39 = vld [vmem:[%s1400_s0 + $0x228] sm:$0xf]  ;;  %v556_v41 = vsel %vm153_vm0, %v84_v26, 4286644096  ;;  %v21_v46 = vld [vmem:[%s1400_s0 + $0x30] sm:$0xf] }
  0x48   :  { %v782_v42 = vcombine.low %v469_v21, %v504_v33  ;;  %v527_v44 = vmax.bf16 %v525_v31, %v523_v37  ;;  %v554_v45 = vmax.bf16 %v552_v32, %v550_v38  ;;  %v37_v47 = vld [vmem:[%s1400_s0 + $0x70] sm:$0xf]  ;;  %v148_v49 = vld [vmem:[%s1400_s0 + $0x22c] sm:$0xf]  ;;  %v533_v50 = vsel %vm153_vm0, %v131_v36, 4286644096 }
  0x49   :  { %v53_v48 = vld [vmem:[%s1400_s0 + $0xb0] sm:$0xf]  ;;  %v560_v51 = vsel %vm153_vm0, %v100_v34, 4286644096  ;;  %v564_v54 = vsel %vm153_vm0, %v116_v35, 4286644096 }
  0x4a   :  { %783 = vst [vmem:[%s1401_s1 + $0x20] sm:$0xff] %v782_v42   ;;  %v531_v52 = vmax.bf16 %v529_v40, %v527_v44  ;;  %v558_v53 = vmax.bf16 %v556_v41, %v554_v45  ;;  %v22_v55 = vld [vmem:[%s1400_s0 + $0x34] sm:$0xf]  ;;  %v69_v56 = vld [vmem:[%s1400_s0 + $0xf0] sm:$0xf] }
  0x4b   :  { %v576_v57 = vsel %vm153_vm0, %v21_v46, 4286644096  ;;  %v579_v58 = vsel %vm153_vm0, %v37_v47, 4286644096  ;;  %v583_v59 = vsel %vm153_vm0, %v53_v48, 4286644096 }
  0x4c   :  { %v535_v60 = vmax.bf16 %v533_v50, %v531_v52  ;;  %v537_v61 = vsel %vm153_vm0, %v147_v39, 4286644096  ;;  %v562_v62 = vmax.bf16 %v560_v51, %v558_v53  ;;  %v38_v63 = vld [vmem:[%s1400_s0 + $0x74] sm:$0xf]  ;;  %v85_v0 = vld [vmem:[%s1400_s0 + $0x130] sm:$0xf]  ;;  %v581_v1 = vmax.bf16 %v579_v58, %v576_v57 }
  0x4d   :  { %v568_v2 = vsel %vm153_vm0, %v132_v43, 4286644096  ;;  %v54_v3 = vld [vmem:[%s1400_s0 + $0xb4] sm:$0xf]  ;;  %v587_v4 = vsel %vm153_vm0, %v69_v56, 4286644096 }
  0x4e   :  { %v566_v5 = vmax.bf16 %v564_v54, %v562_v62  ;;  %v572_v6 = vsel %vm153_vm0, %v148_v49, 4286644096  ;;  %v70_v7 = vld [vmem:[%s1400_s0 + $0xf4] sm:$0xf]  ;;  %v101_v8 = vld [vmem:[%s1400_s0 + $0x170] sm:$0xf]  ;;  %v585_v9 = vmax.bf16 %v583_v59, %v581_v1  ;;  %v539_v10 = vmax.bf16 %v537_v61, %v535_v60 }
  0x4f   :  { %v591_v11 = vsel %vm153_vm0, %v85_v0, 4286644096  ;;  %v611_v12 = vsel %vm153_vm0, %v22_v55, 4286644096  ;;  %v614_v13 = vsel %vm153_vm0, %v38_v63, 4286644096 }
  0x50   :  { %v570_v14 = vmax.bf16 %v568_v2, %v566_v5  ;;  %v86_v15 = vld [vmem:[%s1400_s0 + $0x134] sm:$0xf]  ;;  %v117_v16 = vld [vmem:[%s1400_s0 + $0x1b0] sm:$0xf]  ;;  %v589_v17 = vmax.bf16 %v587_v4, %v585_v9  ;;  %v616_v18 = vmax.bf16 %v614_v13, %v611_v12  ;;  %v618_v19 = vsel %vm153_vm0, %v54_v3, 4286644096 }
  0x51   :  { %v595_v20 = vsel %vm153_vm0, %v101_v8, 4286644096  ;;  %v622_v21 = vsel %vm153_vm0, %v70_v7, 4286644096  ;;  %v102_v23 = vld [vmem:[%s1400_s0 + $0x174] sm:$0xf] }
  0x52   :  { %v574_v22 = vmax.bf16 %v572_v6, %v570_v14  ;;  %v118_v24 = vld [vmem:[%s1400_s0 + $0x1b4] sm:$0xf]  ;;  %v133_v25 = vld [vmem:[%s1400_s0 + $0x1f0] sm:$0xf]  ;;  %v593_v26 = vmax.bf16 %v591_v11, %v589_v17  ;;  %v620_v27 = vmax.bf16 %v618_v19, %v616_v18  ;;  %v599_v29 = vsel %vm153_vm0, %v117_v16, 4286644096 }
  0x53   :  { %v149_v28 = vld [vmem:[%s1400_s0 + $0x230] sm:$0xf]  ;;  %v626_v30 = vsel %vm153_vm0, %v86_v15, 4286644096  ;;  %v134_v32 = vld [vmem:[%s1400_s0 + $0x1f4] sm:$0xf] }
  0x54   :  { %v784_v31 = vcombine.low %v539_v10, %v574_v22  ;;  %v597_v33 = vmax.bf16 %v595_v20, %v593_v26  ;;  %v624_v34 = vmax.bf16 %v622_v21, %v620_v27  ;;  %v23_v35 = vld [vmem:[%s1400_s0 + $0x38] sm:$0xf]  ;;  %v150_v38 = vld [vmem:[%s1400_s0 + $0x234] sm:$0xf]  ;;  %v603_v39 = vsel %vm153_vm0, %v133_v25, 4286644096 }
  0x55   :  { %v39_v36 = vld [vmem:[%s1400_s0 + $0x78] sm:$0xf]  ;;  %v630_v40 = vsel %vm153_vm0, %v102_v23, 4286644096  ;;  %v634_v43 = vsel %vm153_vm0, %v118_v24, 4286644096 }
  0x56   :  { %v55_v37 = vld [vmem:[%s1400_s0 + $0xb8] sm:$0xf]  ;;  %785 = vst [vmem:[%s1401_s1 + $0x28] sm:$0xff] %v784_v31   ;;  %v601_v41 = vmax.bf16 %v599_v29, %v597_v33  ;;  %v628_v42 = vmax.bf16 %v626_v30, %v624_v34  ;;  %v24_v44 = vld [vmem:[%s1400_s0 + $0x3c] sm:$0xf] }
  0x57   :  { %v71_v45 = vld [vmem:[%s1400_s0 + $0xf8] sm:$0xf]  ;;  %v646_v46 = vsel %vm153_vm0, %v23_v35, 4286644096  ;;  %v649_v47 = vsel %vm153_vm0, %v39_v36, 4286644096 }
  0x58   :  { %v653_v48 = vsel %vm153_vm0, %v55_v37, 4286644096  ;;  %v605_v49 = vmax.bf16 %v603_v39, %v601_v41  ;;  %v607_v50 = vsel %vm153_vm0, %v149_v28, 4286644096  ;;  %v632_v51 = vmax.bf16 %v630_v40, %v628_v42  ;;  %v40_v52 = vld [vmem:[%s1400_s0 + $0x7c] sm:$0xf] }
  0x59   :  { %v87_v53 = vld [vmem:[%s1400_s0 + $0x138] sm:$0xf]  ;;  %v651_v54 = vmax.bf16 %v649_v47, %v646_v46  ;;  %v638_v55 = vsel %vm153_vm0, %v134_v32, 4286644096  ;;  %v56_v56 = vld [vmem:[%s1400_s0 + $0xbc] sm:$0xf] }
  0x5a   :  { %v657_v57 = vsel %vm153_vm0, %v71_v45, 4286644096  ;;  %v636_v58 = vmax.bf16 %v634_v43, %v632_v51  ;;  %v642_v59 = vsel %vm153_vm0, %v150_v38, 4286644096  ;;  %v72_v60 = vld [vmem:[%s1400_s0 + $0xfc] sm:$0xf]  ;;  %v609_v63 = vmax.bf16 %v607_v50, %v605_v49 }
  0x5b   :  { %v103_v61 = vld [vmem:[%s1400_s0 + $0x178] sm:$0xf]  ;;  %v655_v62 = vmax.bf16 %v653_v48, %v651_v54  ;;  %v661_v0 = vsel %vm153_vm0, %v87_v53, 4286644096  ;;  %v681_v1 = vsel %vm153_vm0, %v24_v44, 4286644096 }
  0x5c   :  { %v684_v2 = vsel %vm153_vm0, %v40_v52, 4286644096  ;;  %v640_v3 = vmax.bf16 %v638_v55, %v636_v58  ;;  %v88_v4 = vld [vmem:[%s1400_s0 + $0x13c] sm:$0xf]  ;;  %v119_v5 = vld [vmem:[%s1400_s0 + $0x1b8] sm:$0xf] }
  0x5d   :  { %v659_v6 = vmax.bf16 %v657_v57, %v655_v62  ;;  %v686_v7 = vmax.bf16 %v684_v2, %v681_v1  ;;  %v688_v8 = vsel %vm153_vm0, %v56_v56, 4286644096  ;;  %v665_v9 = vsel %vm153_vm0, %v103_v61, 4286644096  ;;  %v104_v12 = vld [vmem:[%s1400_s0 + $0x17c] sm:$0xf] }
  0x5e   :  { %v692_v10 = vsel %vm153_vm0, %v72_v60, 4286644096  ;;  %v644_v11 = vmax.bf16 %v642_v59, %v640_v3  ;;  %v135_v13 = vld [vmem:[%s1400_s0 + $0x1f8] sm:$0xf]  ;;  %v669_v16 = vsel %vm153_vm0, %v119_v5, 4286644096 }
  0x5f   :  { %v663_v14 = vmax.bf16 %v661_v0, %v659_v6  ;;  %v690_v15 = vmax.bf16 %v688_v8, %v686_v7  ;;  %v696_v17 = vsel %vm153_vm0, %v88_v4, 4286644096  ;;  %v120_v19 = vld [vmem:[%s1400_s0 + $0x1bc] sm:$0xf]  ;;  %v673_v22 = vsel %vm153_vm0, %v135_v13, 4286644096 }
  0x60   :  { %v786_v18 = vcombine.low %v609_v63, %v644_v11  ;;  %v700_v23 = vsel %vm153_vm0, %v104_v12, 4286644096  ;;  %v136_v24 = vld [vmem:[%s1400_s0 + $0x1fc] sm:$0xf]  ;;  %v151_v25 = vld [vmem:[%s1400_s0 + $0x238] sm:$0xf] }
  0x61   :  { %v667_v20 = vmax.bf16 %v665_v9, %v663_v14  ;;  %v694_v21 = vmax.bf16 %v692_v10, %v690_v15  ;;  %v704_v28 = vsel %vm153_vm0, %v120_v19, 4286644096  ;;  %v152_v29 = vld [vmem:[%s1400_s0 + $0x23c] sm:$0xf]  ;;  %v677_v32 = vsel %vm153_vm0, %v151_v25, 4286644096 }
  0x62   :  { %787 = vst [vmem:[%s1401_s1 + $0x30] sm:$0xff] %v786_v18   ;;  %v708_v33 = vsel %vm153_vm0, %v136_v24, 4286644096  ;;  %v712_v35 = vsel %vm153_vm0, %v152_v29, 4286644096 }
  0x63   :  { %v671_v26 = vmax.bf16 %v669_v16, %v667_v20  ;;  %v698_v27 = vmax.bf16 %v696_v17, %v694_v21 }
  0x65   :  { %v675_v30 = vmax.bf16 %v673_v22, %v671_v26  ;;  %v702_v31 = vmax.bf16 %v700_v23, %v698_v27 }
  0x67   :  { %v706_v34 = vmax.bf16 %v704_v28, %v702_v31  ;;  %v679_v36 = vmax.bf16 %v677_v32, %v675_v30 }
  0x69   :  { %v710_v37 = vmax.bf16 %v708_v33, %v706_v34 }
  0x6b   :  { %v714_v38 = vmax.bf16 %v712_v35, %v710_v37 }
  0x6d   :  { %v788_v39 = vcombine.low %v679_v36, %v714_v38 }
  0x6f   :  { %789 = vst [vmem:[%s1401_s1 + $0x38] sm:$0xff] %v788_v39  }

// kernel: _lambda_.48
= control target key start
LH: loop header
LB: loop body
LE: loop exit
PB: predicated region body
PF: predicated region fallthrough
CT: control target
= control target key end

     0   :  { %s1659_s12 = smov 0   ;;  %s1661_s13 = smov 0   ;;  %s1873_s0 = inlined_call_operand.vmem [shape: bf16[128,1152], index: 0, kind: input, shape index: {}]   ;;  %s1874_s1 = inlined_call_operand.vmem [shape: bf16[1152,128], index: 1, kind: input, shape index: {}]   ;;  %s1875_s2 = inlined_call_operand.vmem [shape: f32[1,128], index: 2, kind: input, shape index: {}]   ;;  %s1876_s3 = inlined_call_operand.vmem [shape: bf16[128,128], index: 3, kind: output, shape index: {}]  }
   0x1   :  { %s1663_s14 = smov 0   ;;  %s1665_s15 = smov 0  }
   0x2   :  { %s1667_s16 = smov 0  }
   0x3 LB: > { %s25_s17 = sadd.s32 1, %s1632_s15  ;;  %p48_p1 = scmp.ne.s32.totalorder %s1624_s13, %s1620_s12  ;;  %s1636_s16 = sphi %s1667_s16, %s13_s16   ;;  %s1632_s15 = sphi %s1665_s15, %s1880_s15   ;;  %s1628_s14 = sphi %s1663_s14, %s1879_s14   ;;  %s1624_s13 = sphi %s1661_s13, %s1878_s13   ;;  %s1620_s12 = sphi %s1659_s12, %s1877_s12  }
   0x4   : > { %p26_p0 = scmp.ge.s32.totalorder %s25_s17, 3  ;;  %p49_p2 = scmp.eq.s32.totalorder %s1636_s16, 0 }
   0x5   : > { %s41_s19 = sadd.s32 1, %s1624_s13  ;;  %p1216_p5 = scmp.ge.s32.totalorder %s1636_s16, 3 }
   0x6   : > { %s1882_s17 = smov (%p26_p0, %s25_s17), 0  ;;  %p50_p3 = por %p49_p2, %p48_p1 }
   0x7   : > { %s37_s18 = ssub.s32 %s1632_s15, %s1882_s17  ;;  %162 = sbr.rel (%p1216_p5) target bundleno = 37 (0x25), region = 20 }
   0x8   : > { %p39_p4 = scmp.eq.s32.totalorder %s37_s18, 0 }
   0xa   : > { %s1694_s20 = scalar_select %p39_p4, %s1624_s13, %s41_s19  }
   0xe   : > { %165 = sbr.rel (!%p50_p3) target bundleno = 37 (0x25), region = 24  ;;  %s167_s21 = sand.u32 (%p50_p3), 1, %s1624_s13  }
   0xf   : > { %s1323_s22 = smul.u32 (%p50_p3), 12, %s1632_s15 }
  0x10   : > { %s1499_s23 = smul.u32 (%p50_p3), 192, %s167_s21 }
  0x11   : > { %s1702_s26 = scalar_lea.vmem (%p50_p3), %s1873_s0, %s1323_s22 }
  0x12   : > { %v190_v0 = vld [vmem:[%s1702_s26] sm:$0xff] (%p50_p3)  ;;  %v194_v2 = vld [vmem:[%s1702_s26 + $0x48] sm:$0xff] (%p50_p3)  ;;  %s1707_s27 = scalar_lea.vmem (%p50_p3), [#allocation3], %s1499_s23  ;;  %v198_v4 = vld [vmem:[%s1702_s26 + $0x90] sm:$0xff] (%p50_p3) }
  0x13   : > { %v192_v1 = vld [vmem:[%s1702_s26 + $0x24] sm:$0xff] (%p50_p3)  ;;  %191 = vst [vmem:[%s1707_s27] sm:$0xff] (%p50_p3), %v190_v0  ;;  %195 = vst [vmem:[%s1707_s27 + $0x18] sm:$0xff] (%p50_p3), %v194_v2  ;;  %v196_v3 = vld [vmem:[%s1702_s26 + $0x6c] sm:$0xff] (%p50_p3) }
  0x14   : > { %193 = vst [vmem:[%s1707_s27 + $0xc] sm:$0xff] (%p50_p3), %v192_v1  ;;  %v200_v5 = vld [vmem:[%s1702_s26 + $0xb4] sm:$0xff] (%p50_p3)  ;;  %197 = vst [vmem:[%s1707_s27 + $0x24] sm:$0xff] (%p50_p3), %v196_v3  ;;  %v204_v7 = vld [vmem:[%s1702_s26 + $0xfc] sm:$0xff] (%p50_p3) }
  0x15   : > { %199 = vst [vmem:[%s1707_s27 + $0x30] sm:$0xff] %v198_v4  ;;  %201 = vst [vmem:[%s1707_s27 + $0x3c] sm:$0xff] %v200_v5  ;;  %v202_v6 = vld [vmem:[%s1702_s26 + $0xd8] sm:$0xff]  ;;  %v206_v8 = vld [vmem:[%s1702_s26 + $0x120] sm:$0xff] }
  0x16   : > { %203 = vst [vmem:[%s1707_s27 + $0x48] sm:$0xff] %v202_v6  ;;  %205 = vst [vmem:[%s1707_s27 + $0x54] sm:$0xff] %v204_v7  ;;  %v208_v9 = vld [vmem:[%s1702_s26 + $0x144] sm:$0xff]  ;;  %v212_v11 = vld [vmem:[%s1702_s26 + $0x18c] sm:$0xff] }
  0x17   : > { %207 = vst [vmem:[%s1707_s27 + $0x60] sm:$0xff] %v206_v8  ;;  %v210_v10 = vld [vmem:[%s1702_s26 + $0x168] sm:$0xff]  ;;  %209 = vst [vmem:[%s1707_s27 + $0x6c] sm:$0xff] %v208_v9  ;;  %v214_v12 = vld [vmem:[%s1702_s26 + $0x1b0] sm:$0xff] }
  0x18   : > { %211 = vst [vmem:[%s1707_s27 + $0x78] sm:$0xff] %v210_v10  ;;  %213 = vst [vmem:[%s1707_s27 + $0x84] sm:$0xff] %v212_v11  ;;  %v216_v13 = vld [vmem:[%s1702_s26 + $0x1d4] sm:$0xff]  ;;  %v220_v15 = vld [vmem:[%s1702_s26 + $0x21c] sm:$0xff] }
  0x19   : > { %v218_v14 = vld [vmem:[%s1702_s26 + $0x1f8] sm:$0xff]  ;;  %215 = vst [vmem:[%s1707_s27 + $0x90] sm:$0xff] %v214_v12  ;;  %217 = vst [vmem:[%s1707_s27 + $0x9c] sm:$0xff] %v216_v13  ;;  %v1218_v16 = vld [vmem:[%s1702_s26 + $0x8] sm:$0xf] }
  0x1a   : > { %219 = vst [vmem:[%s1707_s27 + $0xa8] sm:$0xff] %v218_v14  ;;  %v1220_v17 = vld [vmem:[%s1702_s26 + $0x2c] sm:$0xf]  ;;  %221 = vst [vmem:[%s1707_s27 + $0xb4] sm:$0xff] %v220_v15  ;;  %v1222_v18 = vld [vmem:[%s1702_s26 + $0x50] sm:$0xf] }
  0x1b   : > { %1219 = vst [vmem:[%s1707_s27 + $0x8] sm:$0xf] %v1218_v16  ;;  %1221 = vst [vmem:[%s1707_s27 + $0x14] sm:$0xf] %v1220_v17  ;;  %v1224_v19 = vld [vmem:[%s1702_s26 + $0x74] sm:$0xf] }
  0x1c   : > { %v1226_v20 = vld [vmem:[%s1702_s26 + $0x98] sm:$0xf]  ;;  %1223 = vst [vmem:[%s1707_s27 + $0x20] sm:$0xf] %v1222_v18  ;;  %1225 = vst [vmem:[%s1707_s27 + $0x2c] sm:$0xf] %v1224_v19 }
  0x1d   : > { %1227 = vst [vmem:[%s1707_s27 + $0x38] sm:$0xf] %v1226_v20  ;;  %v1228_v21 = vld [vmem:[%s1702_s26 + $0xbc] sm:$0xf]  ;;  %v1230_v22 = vld [vmem:[%s1702_s26 + $0xe0] sm:$0xf] }
  0x1e   : > { %v1232_v23 = vld [vmem:[%s1702_s26 + $0x104] sm:$0xf]  ;;  %1229 = vst [vmem:[%s1707_s27 + $0x44] sm:$0xf] %v1228_v21  ;;  %1231 = vst [vmem:[%s1707_s27 + $0x50] sm:$0xf] %v1230_v22 }
  0x1f   : > { %1233 = vst [vmem:[%s1707_s27 + $0x5c] sm:$0xf] %v1232_v23  ;;  %v1234_v24 = vld [vmem:[%s1702_s26 + $0x128] sm:$0xf]  ;;  %v1236_v25 = vld [vmem:[%s1702_s26 + $0x14c] sm:$0xf] }
  0x20   : > { %v1238_v26 = vld [vmem:[%s1702_s26 + $0x170] sm:$0xf]  ;;  %1235 = vst [vmem:[%s1707_s27 + $0x68] sm:$0xf] %v1234_v24  ;;  %1237 = vst [vmem:[%s1707_s27 + $0x74] sm:$0xf] %v1236_v25 }
  0x21   : > { %1239 = vst [vmem:[%s1707_s27 + $0x80] sm:$0xf] %v1238_v26  ;;  %v1240_v27 = vld [vmem:[%s1702_s26 + $0x194] sm:$0xf]  ;;  %v1242_v28 = vld [vmem:[%s1702_s26 + $0x1b8] sm:$0xf] }
  0x22   : > { %v1244_v29 = vld [vmem:[%s1702_s26 + $0x1dc] sm:$0xf]  ;;  %1241 = vst [vmem:[%s1707_s27 + $0x8c] sm:$0xf] %v1240_v27  ;;  %1243 = vst [vmem:[%s1707_s27 + $0x98] sm:$0xf] %v1242_v28 }
  0x23   : > { %1245 = vst [vmem:[%s1707_s27 + $0xa4] sm:$0xf] %v1244_v29  ;;  %v1246_v30 = vld [vmem:[%s1702_s26 + $0x200] sm:$0xf]  ;;  %v1248_v31 = vld [vmem:[%s1702_s26 + $0x224] sm:$0xf] }
  0x24   : > { %1247 = vst [vmem:[%s1707_s27 + $0xb0] sm:$0xf] %v1246_v30  ;;  %1249 = vst [vmem:[%s1707_s27 + $0xbc] sm:$0xf] %v1248_v31 }
  0x25 PF: > { %p1250_p6 = scmp.ge.s32.totalorder %s1636_s16, 1  ;;  %p277_p7 = scmp.lt.s32.totalorder %s1636_s16, 4 }
  0x27   : > { %p278_p8 = pnand %p1250_p6, %p277_p7 }
  0x28   : > { %s284_s28 = sand.u32 (!%p278_p8), 1, %s1620_s12   ;;  %s323_s29 = smul.u32 (!%p278_p8), 48, %s1628_s14 }
  0x29   : > { %281 = sbr.rel (%p278_p8) target bundleno = 383 (0x17f), region = 54  ;;  %p1252_p10 = scmp.ne.s32.totalorder (!%p278_p8), %s1628_s14, 0 }
  0x2a   : > { %s1500_s30 = smul.u32 (!%p278_p8), 192, %s284_s28  ;;  %p324_p9 = scmp.lt.s32.totalorder (!%p278_p8), %s323_s29, 143 }
  0x2c   : > { %s1779_s8 = scalar_lea.vmem (!%p278_p8), [#allocation3], %s1500_s30 }
  0x30   : > { %s1884_s29 = smov (!%p324_p9, %s323_s29), 143  ;;  %348 = sbr.rel (%p1252_p10) target bundleno = 58 (0x3a), region = 62 }
  0x31   : > { %s1251_s4 = sshll.u32 %s1884_s29, 2  ;;  %v1638_v32 = vmov (!%p1252_p10), 0.0  }
  0x32   : > { %s1777_s7 = scalar_lea.vmem %s1874_s1, %s1251_s4  ;;  %349 = vst [vmem:[#allocation2] sm:$0xff] (!%p1252_p10), %v1638_v32  ;;  %350 = vst [vmem:[#allocation2 + $0x8] sm:$0xff] (!%p1252_p10), %v1638_v32 }
  0x33   : > { %351 = vst [vmem:[#allocation2 + $0x10] sm:$0xff] (!%p1252_p10), %v1638_v32  ;;  %352 = vst [vmem:[#allocation2 + $0x18] sm:$0xff] (!%p1252_p10), %v1638_v32 }
  0x34   : > { %353 = vst [vmem:[#allocation2 + $0x20] sm:$0xff] (!%p1252_p10), %v1638_v32  ;;  %354 = vst [vmem:[#allocation2 + $0x28] sm:$0xff] (!%p1252_p10), %v1638_v32 }
  0x35   : > { %355 = vst [vmem:[#allocation2 + $0x30] sm:$0xff] (!%p1252_p10), %v1638_v32  ;;  %356 = vst [vmem:[#allocation2 + $0x38] sm:$0xff] (!%p1252_p10), %v1638_v32 }
  0x36   : > { %357 = vst [vmem:[#allocation2 + $0x40] sm:$0xff] (!%p1252_p10), %v1638_v32  ;;  %358 = vst [vmem:[#allocation2 + $0x48] sm:$0xff] (!%p1252_p10), %v1638_v32 }
  0x37   : > { %359 = vst [vmem:[#allocation2 + $0x50] sm:$0xff] %v1638_v32  ;;  %360 = vst [vmem:[#allocation2 + $0x58] sm:$0xff] %v1638_v32 }
  0x38   : > { %361 = vst [vmem:[#allocation2 + $0x60] sm:$0xff] %v1638_v32  ;;  %362 = vst [vmem:[#allocation2 + $0x68] sm:$0xff] %v1638_v32 }
  0x39   : > { %363 = vst [vmem:[#allocation2 + $0x70] sm:$0xff] %v1638_v32  ;;  %364 = vst [vmem:[#allocation2 + $0x78] sm:$0xff] %v1638_v32 }
  0x3a PF: > { %v1542_v33 = vld [vmem:[%s1777_s7 + $0x40] sm:$0xff]   ;;  %v1545_v36 = vld [vmem:[%s1777_s7 + $0x48] sm:$0xff]   ;;  %v1548_v39 = vld [vmem:[%s1777_s7 + $0x50] sm:$0xff]   ;;  %p1301_p11 = scmp.ne.s32.totalorder %s1628_s14, 2 }
  0x3b   : > { %v1543_v34 = vld [vmem:[%s1777_s7] sm:$0xff]   ;;  %1387 = vmatprep.subr.bf16.mxu0 %v1542_v33  ;;  %v1546_v37 = vld [vmem:[%s1777_s7 + $0x8] sm:$0xff]   ;;  %v1549_v40 = vld [vmem:[%s1777_s7 + $0x10] sm:$0xff]  }
  0x3c   : > { %v1544_v35 = vld [vmem:[%s1777_s7 + $0x80] sm:$0xff]   ;;  %1388 = vmatpush3.bf16.msra.mxu0 %v1543_v34  ;;  %v1547_v38 = vld [vmem:[%s1777_s7 + $0x88] sm:$0xff]   ;;  %v1550_v41 = vld [vmem:[%s1777_s7 + $0x90] sm:$0xff]  }
  0x3d   : > { %1467 = vmatprep.subr.bf16.mxu1 %v1544_v35  ;;  %1389 = vmatprep.subr.bf16.mxu0 %v1545_v36  ;;  %v1551_v42 = vld [vmem:[%s1777_s7 + $0x58] sm:$0xff]   ;;  %v1554_v45 = vld [vmem:[%s1777_s7 + $0x60] sm:$0xff]   ;;  %v1557_v48 = vld [vmem:[%s1777_s7 + $0x68] sm:$0xff]  }
  0x3e   : > { %1468 = vmatpush3.bf16.msra.mxu1 %v1544_v35  ;;  %v1552_v43 = vld [vmem:[%s1777_s7 + $0x18] sm:$0xff]   ;;  %v1556_v46 = vld [vmem:[%s1777_s7 + $0xa0] sm:$0xff]   ;;  %v1559_v49 = vld [vmem:[%s1777_s7 + $0xa8] sm:$0xff]  }
  0x3f   : > { %1469 = vmatprep.subr.bf16.mxu1 %v1547_v38  ;;  %v1553_v44 = vld [vmem:[%s1777_s7 + $0x98] sm:$0xff]   ;;  %v1555_v47 = vld [vmem:[%s1777_s7 + $0x20] sm:$0xff]   ;;  %v1558_v50 = vld [vmem:[%s1777_s7 + $0x28] sm:$0xff]  }
  0x40   : > { %1390 = vmatpush3.bf16.msra.mxu0 %v1546_v37  ;;  %v1560_v51 = vld [vmem:[%s1777_s7 + $0x70] sm:$0xff]   ;;  %v1563_v54 = vld [vmem:[%s1777_s7 + $0x78] sm:$0xff]   ;;  %v1566_v59 = vld [vmem:[%s1779_s8] ss:$12 sps:$4 sm:$0xff]  }
  0x41   : > { %1391 = vmatprep.subr.bf16.mxu0 %v1548_v39  ;;  %v1561_v52 = vld [vmem:[%s1777_s7 + $0x30] sm:$0xff]   ;;  %v1565_v55 = vld [vmem:[%s1777_s7 + $0xb8] sm:$0xff]   ;;  %v1570_v61 = vld [vmem:[%s1779_s8 + $0x20] ss:$12 sps:$4 sm:$0xff]  }
  0x42   : > { %1470 = vmatpush3.bf16.msra.mxu1 %v1547_v38  ;;  %v1562_v53 = vld [vmem:[%s1777_s7 + $0xb0] sm:$0xff]   ;;  %v1564_v58 = vld [vmem:[%s1777_s7 + $0x38] sm:$0xff]   ;;  %v1586_v5 = vld [vmem:[%s1779_s8 + $0x80] ss:$12 sps:$4 sm:$0xff]  }
  0x43   : > { %1471 = vmatprep.subr.bf16.mxu1 %v1550_v41  ;;  %v1568_v56 = vld [vmem:[%s1779_s8 + $0x4] ss:$12 sps:$4 sm:$0xff]   ;;  %v1569_v57 = vld [vmem:[%s1779_s8 + $0x8] ss:$12 sps:$4 sm:$0xff]   ;;  %v1579_v4 = vld [vmem:[%s1779_s8 + $0x4c] ss:$12 sps:$4 sm:$0xff]  }
  0x44   : > { %1392 = vmatpush3.bf16.msra.mxu0 %v1549_v40  ;;  %765 = vmatprep.mubr.bf16.mxu0 %v1568_v56  ;;  %v1571_v60 = vld [vmem:[%s1779_s8 + $0x1c] ss:$12 sps:$4 sm:$0xff]   ;;  %v1577_v62 = vld [vmem:[%s1779_s8 + $0x38] ss:$12 sps:$4 sm:$0xff]   ;;  %v1574_v0 = vld [vmem:[%s1779_s8 + $0x34] ss:$12 sps:$4 sm:$0xff]  }
  0x45   : > { %1393 = vmatprep.subr.bf16.mxu0 %v1551_v42  ;;  %1483 = vmatprep.mubr.bf16.mxu1 %v1569_v57  ;;  %v1573_v63 = vld [vmem:[%s1779_s8 + $0x18] ss:$12 sps:$4 sm:$0xff]   ;;  %v1578_v1 = vld [vmem:[%s1779_s8 + $0x50] ss:$12 sps:$4 sm:$0xff]   ;;  %v1585_v2 = vld [vmem:[%s1779_s8 + $0x68] ss:$12 sps:$4 sm:$0xff]  }
  0x46   : > { %1472 = vmatpush3.bf16.msra.mxu1 %v1550_v41  ;;  %v1576_v3 = vld [vmem:[%s1779_s8 + $0x30] ss:$12 sps:$4 sm:$0xff]   ;;  %v1593_v6 = vld [vmem:[%s1779_s8 + $0x98] ss:$12 sps:$4 sm:$0xff]   ;;  %v1581_v7 = vld [vmem:[%s1779_s8 + $0x48] ss:$12 sps:$4 sm:$0xff]  }
  0x47   : > { %1473 = vmatprep.subr.bf16.mxu1 %v1553_v44  ;;  %v1582_v8 = vld [vmem:[%s1779_s8 + $0x64] ss:$12 sps:$4 sm:$0xff]   ;;  %v1584_v10 = vld [vmem:[%s1779_s8 + $0x60] ss:$12 sps:$4 sm:$0xff]   ;;  %v1587_v11 = vld [vmem:[%s1779_s8 + $0x7c] ss:$12 sps:$4 sm:$0xff]  }
  0x48   : > { %1394 = vmatpush3.bf16.msra.mxu0 %v1552_v43  ;;  %v1594_v9 = vld [vmem:[%s1779_s8 + $0xb0] ss:$12 sps:$4 sm:$0xff]   ;;  %v1589_v12 = vld [vmem:[%s1779_s8 + $0x78] ss:$12 sps:$4 sm:$0xff]   ;;  %v1590_v13 = vld [vmem:[%s1779_s8 + $0x94] ss:$12 sps:$4 sm:$0xff]  }
  0x49   : > { %1395 = vmatprep.subr.bf16.mxu0 %v1554_v45  ;;  %v1592_v14 = vld [vmem:[%s1779_s8 + $0x90] ss:$12 sps:$4 sm:$0xff]   ;;  %v1595_v15 = vld [vmem:[%s1779_s8 + $0xac] ss:$12 sps:$4 sm:$0xff]   ;;  %v1597_v16 = vld [vmem:[%s1779_s8 + $0xa8] ss:$12 sps:$4 sm:$0xff]  }
  0x4a   : > { %1474 = vmatpush3.bf16.msra.mxu1 %v1553_v44  ;;  %v365_v23 = vld [vmem:[#allocation2] sm:$0xff]  ;;  %v366_v28 = vld [vmem:[#allocation2 + $0x8] sm:$0xff]  ;;  %v367_v38 = vld [vmem:[#allocation2 + $0x10] sm:$0xff] }
  0x4b   : > { %1475 = vmatprep.subr.bf16.mxu1 %v1556_v46  ;;  %v368_v44 = vld [vmem:[#allocation2 + $0x18] sm:$0xff] }
  0x4c   : > { %1396 = vmatpush3.bf16.msra.mxu0 %v1555_v47 }
  0x4d   : > { %1397 = vmatprep.subr.bf16.mxu0 %v1557_v48 }
  0x4e   : > { %1476 = vmatpush3.bf16.msra.mxu1 %v1556_v46 }
  0x4f   : > { %1477 = vmatprep.subr.bf16.mxu1 %v1559_v49 }
  0x50   : > { %1398 = vmatpush3.bf16.msra.mxu0 %v1558_v50 }
  0x51   : > { %1399 = vmatprep.subr.bf16.mxu0 %v1560_v51 }
  0x52   : > { %1478 = vmatpush3.bf16.msra.mxu1 %v1559_v49 }
  0x53   : > { %1479 = vmatprep.subr.bf16.mxu1 %v1562_v53 }
  0x54   : > { %1400 = vmatpush3.bf16.msra.mxu0 %v1561_v52 }
  0x55   : > { %1401 = vmatprep.subr.bf16.mxu0 %v1563_v54 }
  0x56   : > { %1480 = vmatpush3.bf16.msra.mxu1 %v1562_v53 }
  0x57   : > { %1481 = vmatprep.subr.bf16.mxu1 %v1565_v55 }
  0x58   : > { %1402 = vmatpush3.bf16.msra.mxu0 %v1564_v58 }
  0x5a   : > { %1482 = vmatpush3.bf16.msra.mxu1 %v1565_v55  ;;  %v369_v55 = vld [vmem:[#allocation2 + $0x20] sm:$0xff] }
  0x5b   : > { %766 = vmatmul.mubr.bf16.vlgmr.msra.gmra.mrb[0].mxu0 %v1566_v59 }
  0x5c   : > { %773 = vmatprep.mubr.bf16.mxu0 %v1571_v60  ;;  %v370_v60 = vld [vmem:[#allocation2 + $0x28] sm:$0xff] }
  0x5d   : > { %1484 = vmatmul.mubr.bf16.vlgmr.msra.gmra.mrb[0].mxu1 %v1570_v61 }
  0x5e   : > { %1487 = vmatprep.mubr.bf16.mxu1 %v1577_v62 }
  0x63   : > { %774 = vmatmul.mubr.bf16.gmra.mrb[4].mxu0 %v1573_v63 }
  0x64   : > { %781 = vmatprep.mubr.bf16.mxu0 %v1574_v0 }
  0x65   : > { %1488 = vmatmul.mubr.bf16.gmra.mrb[4].mxu1 %v1578_v1 }
  0x66   : > { %1491 = vmatprep.mubr.bf16.mxu1 %v1585_v2 }
  0x6b   : > { %782 = vmatmul.mubr.bf16.gmra.mrb[8].mxu0 %v1576_v3 }
  0x6c   : > { %789 = vmatprep.mubr.bf16.mxu0 %v1579_v4 }
  0x6d   : > { %1492 = vmatmul.mubr.bf16.gmra.mrb[8].mxu1 %v1586_v5 }
  0x6e   : > { %1495 = vmatprep.mubr.bf16.mxu1 %v1593_v6  ;;  %v371_v6 = vld [vmem:[#allocation2 + $0x30] sm:$0xff] }
  0x73   : > { %790 = vmatmul.mubr.bf16.gmra.mrb[12].mxu0 %v1581_v7 }
  0x74   : > { %797 = vmatprep.mubr.bf16.mxu0 %v1582_v8 }
  0x75   : > { %1496 = vmatmul.mubr.bf16.gmra.mrb[12].mxu1 %v1594_v9 }
  0x7b   : > { %798 = vmatmul.mubr.bf16.gmra.mrb[16].mxu0 %v1584_v10 }
  0x7c   : > { %805 = vmatprep.mubr.bf16.mxu0 %v1587_v11 }
  0x83   : > { %806 = vmatmul.mubr.bf16.gmra.mrb[20].mxu0 %v1589_v12  ;;  %v372_v12 = vld [vmem:[#allocation2 + $0x38] sm:$0xff] }
  0x84   : > { %813 = vmatprep.mubr.bf16.mxu0 %v1590_v13 }
  0x8b   : > { %814 = vmatmul.mubr.bf16.gmra.mrb[24].mxu0 %v1592_v14 }
  0x8c   : > { %821 = vmatprep.mubr.bf16.mxu0 %v1595_v15 }
  0x93   : > { %822 = vmatmul.mubr.bf16.gmra.mrb[28].mxu0 %v1597_v16 }
 0x12e   : > { %v1403_v17 = vpop.f32.mrb[0].mxu0 }
 0x12f   : > { %v1404_v18 = vpop.f32.mrb[1].mxu0 }
 0x130   : > { %v1405_v19 = vadd.f32 %v1404_v18, %v1403_v17  ;;  %v1406_v20 = vpop.f32.mrb[2].mxu0  ;;  %v1485_v21 = vpop.f32.mrb[0].mxu1 }
 0x131   : > { %v1407_v22 = vpop.f32.mrb[3].mxu0  ;;  %v864_v24 = vpop.f32.mrb[1].mxu1 }
 0x132   : > { %v1408_v25 = vadd.f32 %v1407_v22, %v1406_v20  ;;  %v865_v26 = vadd.f32 %v1405_v19, %v864_v24  ;;  %v1486_v27 = vpop.f32.mrb[2].mxu1  ;;  %v373_v22 = vld [vmem:[#allocation2 + $0x40] sm:$0xff] }
 0x133   : > { %v867_v29 = vpop.f32.mrb[3].mxu1 }
 0x134   : > { %v927_v30 = vadd.f32 %v865_v26, %v365_v23  ;;  %v868_v31 = vadd.f32 %v1408_v25, %v867_v29  ;;  %v374_v25 = vld [vmem:[#allocation2 + $0x48] sm:$0xff] }
 0x136   : > { %943 = vst [vmem:[#allocation2] sm:$0xff] %v927_v30  ;;  %v928_v32 = vadd.f32 %v868_v31, %v366_v28  ;;  %v1409_v33 = vpop.f32.mrb[4].mxu0 }
 0x137   : > { %v1410_v34 = vpop.f32.mrb[5].mxu0 }
 0x138   : > { %944 = vst [vmem:[#allocation2 + $0x8] sm:$0xff] %v928_v32  ;;  %v1411_v35 = vadd.f32 %v1410_v34, %v1409_v33  ;;  %v1412_v36 = vpop.f32.mrb[6].mxu0  ;;  %v1489_v37 = vpop.f32.mrb[4].mxu1  ;;  %v375_v33 = vld [vmem:[#allocation2 + $0x50] sm:$0xff] }
 0x139   : > { %v1413_v39 = vpop.f32.mrb[7].mxu0  ;;  %v880_v40 = vpop.f32.mrb[5].mxu1 }
 0x13a   : > { %v873_v41 = vadd.f32 %v1485_v21, %v1411_v35  ;;  %v1414_v42 = vadd.f32 %v1413_v39, %v1412_v36  ;;  %v1490_v43 = vpop.f32.mrb[6].mxu1 }
 0x13b   : > { %v883_v45 = vpop.f32.mrb[7].mxu1 }
 0x13c   : > { %v929_v46 = vadd.f32 %v873_v41, %v367_v38  ;;  %v876_v47 = vadd.f32 %v1486_v27, %v1414_v42 }
 0x13e   : > { %945 = vst [vmem:[#allocation2 + $0x10] sm:$0xff] %v929_v46  ;;  %v930_v48 = vadd.f32 %v876_v47, %v368_v44  ;;  %v1415_v49 = vpop.f32.mrb[8].mxu0  ;;  %v377_v46 = vld [vmem:[#allocation2 + $0x60] sm:$0xff] }
 0x13f   : > { %v1416_v50 = vpop.f32.mrb[9].mxu0 }
 0x140   : > { %946 = vst [vmem:[#allocation2 + $0x18] sm:$0xff] %v930_v48  ;;  %v1417_v51 = vadd.f32 %v1416_v50, %v1415_v49  ;;  %v1418_v52 = vpop.f32.mrb[10].mxu0  ;;  %v1493_v53 = vpop.f32.mrb[8].mxu1  ;;  %v378_v49 = vld [vmem:[#allocation2 + $0x68] sm:$0xff] }
 0x141   : > { %v1419_v54 = vpop.f32.mrb[11].mxu0  ;;  %v896_v56 = vpop.f32.mrb[9].mxu1 }
 0x142   : > { %v1420_v57 = vadd.f32 %v1419_v54, %v1418_v52  ;;  %v881_v58 = vadd.f32 %v1417_v51, %v880_v40  ;;  %v1494_v59 = vpop.f32.mrb[10].mxu1 }
 0x143   : > { %v899_v61 = vpop.f32.mrb[11].mxu1 }
 0x144   : > { %v931_v62 = vadd.f32 %v881_v58, %v369_v55  ;;  %v884_v63 = vadd.f32 %v1420_v57, %v883_v45  ;;  %v379_v57 = vld [vmem:[#allocation2 + $0x70] sm:$0xff] }
 0x146   : > { %947 = vst [vmem:[#allocation2 + $0x20] sm:$0xff] %v931_v62  ;;  %v932_v0 = vadd.f32 %v884_v63, %v370_v60  ;;  %v1421_v1 = vpop.f32.mrb[12].mxu0 }
 0x147   : > { %v1422_v2 = vpop.f32.mrb[13].mxu0 }
 0x148   : > { %948 = vst [vmem:[#allocation2 + $0x28] sm:$0xff] %v932_v0  ;;  %v1423_v3 = vadd.f32 %v1422_v2, %v1421_v1  ;;  %v1424_v4 = vpop.f32.mrb[14].mxu0  ;;  %v1497_v5 = vpop.f32.mrb[12].mxu1  ;;  %v963_v1 = vld [vmem:[#allocation2] sm:$0xff] (!%p1301_p11)  ;;  %v964_v2 = vld [vmem:[#allocation2 + $0x8] sm:$0xff] (!%p1301_p11) }
 0x149   : > { %v1425_v7 = vpop.f32.mrb[15].mxu0  ;;  %v912_v8 = vpop.f32.mrb[13].mxu1 }
 0x14a   : > { %v889_v9 = vadd.f32 %v1489_v37, %v1423_v3  ;;  %v1426_v10 = vadd.f32 %v1425_v7, %v1424_v4  ;;  %v1498_v11 = vpop.f32.mrb[14].mxu1  ;;  %v376_v37 = vld [vmem:[#allocation2 + $0x58] sm:$0xff]  ;;  %v1302_v3 = vld [vmem:[%s1875_s2] ss:$0 sm:$0xff] (!%p1301_p11)  ;;  %v965_v7 = vld [vmem:[#allocation2 + $0x10] sm:$0xff] (!%p1301_p11) }
 0x14b   : > { %v915_v13 = vpop.f32.mrb[15].mxu1  ;;  %v986_v4 = vadd.f32 (!%p1301_p11), %v1302_v3, %v963_v1 }
 0x14c   : > { %v933_v14 = vadd.f32 %v889_v9, %v371_v6  ;;  %v892_v15 = vadd.f32 %v1490_v43, %v1426_v10  ;;  %v987_v6 = vadd.f32 (!%p1301_p11), %v1302_v3, %v964_v2  ;;  %v988_v9 = vadd.f32 (!%p1301_p11), %v1302_v3, %v965_v7 }
 0x14e   : > { %949 = vst [vmem:[#allocation2 + $0x30] sm:$0xff] %v933_v14  ;;  %v934_v16 = vadd.f32 %v892_v15, %v372_v12  ;;  %v1427_v17 = vpop.f32.mrb[16].mxu0  ;;  %v1002_v15 = vmax.f32 (!%p1301_p11), %v986_v4, 0.0 }
 0x14f   : > { %v1428_v18 = vpop.f32.mrb[17].mxu0 }
 0x150   : > { %950 = vst [vmem:[#allocation2 + $0x38] sm:$0xff] %v934_v16  ;;  %v1429_v19 = vadd.f32 %v1428_v18, %v1427_v17  ;;  %v1430_v20 = vpop.f32.mrb[18].mxu0  ;;  %v1003_v16 = vmax.f32 (!%p1301_p11), %v987_v6, 0.0 }
 0x151   : > { %v1431_v21 = vpop.f32.mrb[19].mxu0 }
 0x152   : > { %v1432_v23 = vadd.f32 %v1431_v21, %v1430_v20  ;;  %v897_v24 = vadd.f32 %v1429_v19, %v896_v56 }
 0x154   : > { %v935_v26 = vadd.f32 %v897_v24, %v373_v22  ;;  %v900_v27 = vadd.f32 %v1432_v23, %v899_v61  ;;  %v380_v61 = vld [vmem:[#allocation2 + $0x78] sm:$0xff]  ;;  %v1004_v22 = vmax.f32 (!%p1301_p11), %v988_v9, 0.0 }
 0x156   : > { %951 = vst [vmem:[#allocation2 + $0x40] sm:$0xff] %v935_v26  ;;  %v936_v28 = vadd.f32 %v900_v27, %v374_v25  ;;  %v1433_v29 = vpop.f32.mrb[20].mxu0 }
 0x157   : > { %v1434_v30 = vpop.f32.mrb[21].mxu0  ;;  %v970_v14 = vld [vmem:[#allocation2 + $0x38] sm:$0xff] (!%p1301_p11) }
 0x158   : > { %952 = vst [vmem:[#allocation2 + $0x48] sm:$0xff] %v936_v28  ;;  %v1435_v31 = vadd.f32 %v1434_v30, %v1433_v29  ;;  %v1436_v32 = vpop.f32.mrb[22].mxu0  ;;  %v993_v25 = vadd.f32 (!%p1301_p11), %v1302_v3, %v970_v14  ;;  %v1343_v28 = vpack.c.bf16 (!%p1301_p11), %v1003_v16, %v1002_v15 }
 0x159   : > { %v1437_v34 = vpop.f32.mrb[23].mxu0 }
 0x15a   : > { %v905_v35 = vadd.f32 %v1493_v53, %v1435_v31  ;;  %v1438_v36 = vadd.f32 %v1437_v34, %v1436_v32  ;;  %v1009_v34 = vmax.f32 (!%p1301_p11), %v993_v25, 0.0  ;;  %1344 = vst [vmem:[%s1876_s3] sm:$0xff] (!%p1301_p11), %v1343_v28  }
 0x15c   : > { %v937_v38 = vadd.f32 %v905_v35, %v375_v33  ;;  %v908_v39 = vadd.f32 %v1494_v59, %v1438_v36 }
 0x15d   : > { %v971_v19 = vld [vmem:[#allocation2 + $0x40] sm:$0xff] (!%p1301_p11) }
 0x15e   : > { %953 = vst [vmem:[#allocation2 + $0x50] sm:$0xff] %v937_v38  ;;  %v938_v40 = vadd.f32 %v908_v39, %v376_v37  ;;  %v1439_v41 = vpop.f32.mrb[24].mxu0  ;;  %v994_v31 = vadd.f32 (!%p1301_p11), %v1302_v3, %v971_v19 }
 0x15f   : > { %v1440_v42 = vpop.f32.mrb[25].mxu0  ;;  %v972_v20 = vld [vmem:[#allocation2 + $0x48] sm:$0xff] (!%p1301_p11) }
 0x160   : > { %954 = vst [vmem:[#allocation2 + $0x58] sm:$0xff] %v938_v40  ;;  %v1441_v43 = vadd.f32 %v1440_v42, %v1439_v41  ;;  %v1442_v44 = vpop.f32.mrb[26].mxu0  ;;  %v995_v35 = vadd.f32 (!%p1301_p11), %v1302_v3, %v972_v20  ;;  %v1010_v40 = vmax.f32 (!%p1301_p11), %v994_v31, 0.0 }
 0x161   : > { %v1443_v45 = vpop.f32.mrb[27].mxu0 }
 0x162   : > { %v1444_v47 = vadd.f32 %v1443_v45, %v1442_v44  ;;  %v913_v48 = vadd.f32 %v1441_v43, %v912_v8  ;;  %v967_v8 = vld [vmem:[#allocation2 + $0x20] sm:$0xff] (!%p1301_p11)  ;;  %v1011_v44 = vmax.f32 (!%p1301_p11), %v995_v35, 0.0 }
 0x163   : > { %v990_v12 = vadd.f32 (!%p1301_p11), %v1302_v3, %v967_v8 }
 0x164   : > { %v939_v50 = vadd.f32 %v913_v48, %v377_v46  ;;  %v916_v51 = vadd.f32 %v1444_v47, %v915_v13  ;;  %v969_v13 = vld [vmem:[#allocation2 + $0x30] sm:$0xff] (!%p1301_p11) }
 0x165   : > { %v992_v18 = vadd.f32 (!%p1301_p11), %v1302_v3, %v969_v13  ;;  %v973_v21 = vld [vmem:[#allocation2 + $0x50] sm:$0xff] (!%p1301_p11)  ;;  %v1006_v24 = vmax.f32 (!%p1301_p11), %v990_v12, 0.0 }
 0x166   : > { %955 = vst [vmem:[#allocation2 + $0x60] sm:$0xff] %v939_v50  ;;  %v940_v52 = vadd.f32 %v916_v51, %v378_v49  ;;  %v1445_v53 = vpop.f32.mrb[28].mxu0  ;;  %v996_v36 = vadd.f32 (!%p1301_p11), %v1302_v3, %v973_v21  ;;  %v1363_v51 = vpack.c.bf16 (!%p1301_p11), %v1011_v44, %v1010_v40 }
 0x167   : > { %v1446_v54 = vpop.f32.mrb[29].mxu0  ;;  %v974_v26 = vld [vmem:[#allocation2 + $0x58] sm:$0xff] (!%p1301_p11)  ;;  %v1008_v30 = vmax.f32 (!%p1301_p11), %v992_v18, 0.0 }
 0x168   : > { %956 = vst [vmem:[#allocation2 + $0x68] sm:$0xff] %v940_v52  ;;  %v1447_v55 = vadd.f32 %v1446_v54, %v1445_v53  ;;  %v1448_v56 = vpop.f32.mrb[30].mxu0  ;;  %v997_v41 = vadd.f32 (!%p1301_p11), %v1302_v3, %v974_v26  ;;  %v1012_v45 = vmax.f32 (!%p1301_p11), %v996_v36, 0.0  ;;  %1383 = vst [vmem:[%s1876_s3 + $0x20] sm:$0xff] (!%p1301_p11), %v1363_v51  }
 0x169   : > { %v1449_v58 = vpop.f32.mrb[31].mxu0  ;;  %v1358_v43 = vpack.c.bf16 (!%p1301_p11), %v1009_v34, %v1008_v30 }
 0x16a   : > { %v921_v59 = vadd.f32 %v1497_v5, %v1447_v55  ;;  %v1450_v60 = vadd.f32 %v1449_v58, %v1448_v56  ;;  %962 = sbr.rel (%p1301_p11) target bundleno = 383 (0x17f), region = 66  ;;  %v966_v5 = vld [vmem:[#allocation2 + $0x18] sm:$0xff] (!%p1301_p11)  ;;  %v1013_v47 = vmax.f32 (!%p1301_p11), %v997_v41, 0.0 }
 0x16b   : > { %v989_v10 = vadd.f32 (!%p1301_p11), %v1302_v3, %v966_v5  ;;  %1382 = vst [vmem:[%s1876_s3 + $0x18] sm:$0xff] (!%p1301_p11), %v1358_v43  }
 0x16c   : > { %v941_v62 = vadd.f32 %v921_v59, %v379_v57  ;;  %v924_v63 = vadd.f32 %v1498_v11, %v1450_v60  ;;  %v968_v11 = vld [vmem:[#allocation2 + $0x28] sm:$0xff] (!%p1301_p11)  ;;  %v1368_v53 = vpack.c.bf16 (!%p1301_p11), %v1013_v47, %v1012_v45 }
 0x16d   : > { %v991_v17 = vadd.f32 (!%p1301_p11), %v1302_v3, %v968_v11  ;;  %v1005_v23 = vmax.f32 (!%p1301_p11), %v989_v10, 0.0  ;;  %v975_v27 = vld [vmem:[#allocation2 + $0x60] sm:$0xff] (!%p1301_p11) }
 0x16e   : > { %957 = vst [vmem:[#allocation2 + $0x70] sm:$0xff] %v941_v62  ;;  %v942_v0 = vadd.f32 %v924_v63, %v380_v61  ;;  %v998_v42 = vadd.f32 (!%p1301_p11), %v1302_v3, %v975_v27  ;;  %1384 = vst [vmem:[%s1876_s3 + $0x28] sm:$0xff] (!%p1301_p11), %v1368_v53  }
 0x16f   : > { %v1007_v29 = vmax.f32 (!%p1301_p11), %v991_v17, 0.0  ;;  %v976_v32 = vld [vmem:[#allocation2 + $0x68] sm:$0xff] (!%p1301_p11)  ;;  %v1348_v33 = vpack.c.bf16 (!%p1301_p11), %v1005_v23, %v1004_v22 }
 0x170   : > { %958 = vst [vmem:[#allocation2 + $0x78] sm:$0xff] %v942_v0  ;;  %v999_v46 = vadd.f32 (!%p1301_p11), %v1302_v3, %v976_v32  ;;  %v1014_v48 = vmax.f32 (!%p1301_p11), %v998_v42, 0.0 }
 0x171   : > { %v1353_v39 = vpack.c.bf16 %v1007_v29, %v1006_v24  ;;  %1380 = vst [vmem:[%s1876_s3 + $0x8] sm:$0xff] %v1348_v33  }
 0x172   : > { %v1015_v52 = vmax.f32 %v999_v46, 0.0 }
 0x173   : > { %1381 = vst [vmem:[%s1876_s3 + $0x10] sm:$0xff] %v1353_v39  }
 0x174   : > { %v1373_v56 = vpack.c.bf16 %v1015_v52, %v1014_v48 }
 0x175   : > { %v977_v37 = vld [vmem:[#allocation2 + $0x70] sm:$0xff] }
 0x176   : > { %v1000_v49 = vadd.f32 %v1302_v3, %v977_v37  ;;  %1385 = vst [vmem:[%s1876_s3 + $0x30] sm:$0xff] %v1373_v56  }
 0x177   : > { %v978_v38 = vld [vmem:[#allocation2 + $0x78] sm:$0xff] }
 0x178   : > { %v1001_v50 = vadd.f32 %v1302_v3, %v978_v38  ;;  %v1016_v54 = vmax.f32 %v1000_v49, 0.0 }
 0x17a   : > { %v1017_v55 = vmax.f32 %v1001_v50, 0.0 }
 0x17c   : > { %v1378_v57 = vpack.c.bf16 %v1017_v55, %v1016_v54 }
 0x17e   : > { %1386 = vst [vmem:[%s1876_s3 + $0x38] sm:$0xff] %v1378_v57  }
 0x17f PF: > { %s13_s16 = sadd.s32 1, %s1636_s16   ;;  %s1877_s12 = smov %s1624_s13 }
 0x180   : > { %p10_p12 = scmp.ge.s32.totalorder %s13_s16, 5   ;;  %s1878_s13 = smov %s1694_s20 }
 0x181   : > { %s1879_s14 = smov %s1632_s15  ;;  %s1880_s15 = smov %s1882_s17 }
 0x182   :  { %12 = sbr.rel (!%p10_p12) target bundleno = 3 (0x3), region = 113 }

// kernel: _lambda_.46
= control target key start
LH: loop header
LB: loop body
LE: loop exit
PB: predicated region body
PF: predicated region fallthrough
CT: control target
= control target key end

     0   :  { %v720_v1 = vmov 0   ;;  %v457_v25 = vlaneseq  ;;  %s908_s1 = inlined_call_operand.vmem [shape: bf16[128,256], index: 1, kind: input, shape index: {}]   ;;  %s909_s0 = inlined_call_operand.vmem [shape: bf16[128,128], index: 0, kind: input, shape index: {}]   ;;  %s910_s2 = inlined_call_operand.vmem [shape: f32[1,256], index: 2, kind: input, shape index: {}]   ;;  %s911_s3 = inlined_call_operand.vmem [shape: bf16[128,256], index: 3, kind: output, shape index: {}]  }
   0x1   :  { %v688_v0 = vld [vmem:[%s908_s1 + $0x4] ss:$8 sps:$4 sm:$0xff]   ;;  %275 = vmatprep.mubr.bf16.mxu0 %v720_v1  ;;  %315 = vmatprep.mubr.bf16.mxu1 %v720_v1  ;;  %v690_v2 = vld [vmem:[%s908_s1] ss:$8 sps:$4 sm:$0xff]   ;;  %v691_v3 = vld [vmem:[%s908_s1 + $0x14] ss:$8 sps:$4 sm:$0xff]  }
   0x2   :  { %243 = vmatprep.subr.bf16.mxu0 %v688_v0  ;;  %671 = vmatprep.subr.bf16.mxu1 %v688_v0  ;;  %v693_v4 = vld [vmem:[%s908_s1 + $0x10] ss:$8 sps:$4 sm:$0xff]   ;;  %v694_v5 = vld [vmem:[%s908_s1 + $0x24] ss:$8 sps:$4 sm:$0xff]   ;;  %v696_v6 = vld [vmem:[%s908_s1 + $0x20] ss:$8 sps:$4 sm:$0xff]  }
   0x3   :  { %244 = vmatpush1.bf16.msra.mxu0 %v690_v2  ;;  %679 = vmatpush1.bf16.msra.mxu1 %v690_v2  ;;  %v697_v7 = vld [vmem:[%s908_s1 + $0x34] ss:$8 sps:$4 sm:$0xff]   ;;  %v699_v8 = vld [vmem:[%s908_s1 + $0x30] ss:$8 sps:$4 sm:$0xff]   ;;  %v700_v9 = vld [vmem:[%s908_s1 + $0x44] ss:$8 sps:$4 sm:$0xff]  }
   0x4   :  { %245 = vmatprep.subr.bf16.mxu0 %v691_v3  ;;  %672 = vmatprep.subr.bf16.mxu1 %v691_v3  ;;  %v702_v10 = vld [vmem:[%s908_s1 + $0x40] ss:$8 sps:$4 sm:$0xff]   ;;  %v703_v11 = vld [vmem:[%s908_s1 + $0x54] ss:$8 sps:$4 sm:$0xff]   ;;  %v705_v12 = vld [vmem:[%s908_s1 + $0x50] ss:$8 sps:$4 sm:$0xff]  }
   0x5   :  { %v706_v13 = vld [vmem:[%s908_s1 + $0x64] ss:$8 sps:$4 sm:$0xff]   ;;  %v708_v14 = vld [vmem:[%s908_s1 + $0x60] ss:$8 sps:$4 sm:$0xff]   ;;  %v709_v15 = vld [vmem:[%s908_s1 + $0x74] ss:$8 sps:$4 sm:$0xff]  }
   0x6   :  { %v711_v16 = vld [vmem:[%s908_s1 + $0x70] ss:$8 sps:$4 sm:$0xff]   ;;  %v712_v17 = vld [vmem:[%s909_s0] sm:$0xff]   ;;  %v714_v19 = vld [vmem:[%s909_s0 + $0x8] sm:$0xff]   ;;  %v458_v26 = vshrl.u32 %v457_v25, 7 }
   0x7   :  { %246 = vmatpush1.bf16.msra.mxu0 %v693_v4  ;;  %680 = vmatpush1.bf16.msra.mxu1 %v693_v4  ;;  %v713_v18 = vld [vmem:[%s909_s0 + $0x20] sm:$0xff]   ;;  %v715_v20 = vld [vmem:[%s909_s0 + $0x28] sm:$0xff]   ;;  %v716_v21 = vld [vmem:[%s909_s0 + $0x10] sm:$0xff]  }
   0x8   :  { %247 = vmatprep.subr.bf16.mxu0 %v694_v5  ;;  %673 = vmatprep.subr.bf16.mxu1 %v694_v5  ;;  %v717_v22 = vld [vmem:[%s909_s0 + $0x30] sm:$0xff]   ;;  %v718_v23 = vld [vmem:[%s909_s0 + $0x18] sm:$0xff]   ;;  %v459_v27 = vsub.s32 0, %v458_v26  ;;  %v455_v28 = vld [vmem:[%s910_s2] sm:$0x3]  ;;  %v463_v29 = vsub.s32 1, %v458_v26 }
   0x9   :  { %v719_v24 = vld [vmem:[%s909_s0 + $0x38] sm:$0xff]  }
   0xa   :  { %v824_v30 = vrot.slane %v455_v28, %v459_v27  ;;  %v826_v31 = vrot.slane %v455_v28, %v463_v29 }
   0xb   :  { %248 = vmatpush1.bf16.msra.mxu0 %v696_v6  ;;  %681 = vmatpush1.bf16.msra.mxu1 %v696_v6 }
   0xc   :  { %249 = vmatprep.subr.bf16.mxu0 %v697_v7  ;;  %674 = vmatprep.subr.bf16.mxu1 %v697_v7 }
   0xf   :  { %250 = vmatpush1.bf16.msra.mxu0 %v699_v8  ;;  %682 = vmatpush1.bf16.msra.mxu1 %v699_v8 }
  0x10   :  { %251 = vmatprep.subr.bf16.mxu0 %v700_v9  ;;  %675 = vmatprep.subr.bf16.mxu1 %v700_v9 }
  0x13   :  { %252 = vmatpush1.bf16.msra.mxu0 %v702_v10  ;;  %683 = vmatpush1.bf16.msra.mxu1 %v702_v10 }
  0x14   :  { %253 = vmatprep.subr.bf16.mxu0 %v703_v11  ;;  %676 = vmatprep.subr.bf16.mxu1 %v703_v11 }
  0x17   :  { %254 = vmatpush1.bf16.msra.mxu0 %v705_v12  ;;  %684 = vmatpush1.bf16.msra.mxu1 %v705_v12 }
  0x18   :  { %255 = vmatprep.subr.bf16.mxu0 %v706_v13  ;;  %677 = vmatprep.subr.bf16.mxu1 %v706_v13 }
  0x1b   :  { %256 = vmatpush1.bf16.msra.mxu0 %v708_v14  ;;  %685 = vmatpush1.bf16.msra.mxu1 %v708_v14 }
  0x1c   :  { %257 = vmatprep.subr.bf16.mxu0 %v709_v15  ;;  %678 = vmatprep.subr.bf16.mxu1 %v709_v15 }
  0x1f   :  { %258 = vmatpush1.bf16.msra.mxu0 %v711_v16  ;;  %686 = vmatpush1.bf16.msra.mxu1 %v711_v16 }
  0x22   :  { %276 = vmatmul.mubr.bf16.vlgmr.msra.gmra.mrb[0].mxu0 %v712_v17  ;;  %316 = vmatmul.mubr.bf16.vlgmr.msra.gmra.mrb[0].mxu1 %v713_v18 }
  0x23   :  { %285 = vmatprep.mubr.bf16.mxu0 %v720_v1  ;;  %325 = vmatprep.mubr.bf16.mxu1 %v720_v1 }
  0x2a   :  { %286 = vmatmul.mubr.bf16.gmra.mrb[4].mxu0 %v714_v19  ;;  %326 = vmatmul.mubr.bf16.gmra.mrb[4].mxu1 %v715_v20 }
  0x2b   :  { %295 = vmatprep.mubr.bf16.mxu0 %v720_v1  ;;  %335 = vmatprep.mubr.bf16.mxu1 %v720_v1 }
  0x32   :  { %296 = vmatmul.mubr.bf16.gmra.mrb[8].mxu0 %v716_v21  ;;  %336 = vmatmul.mubr.bf16.gmra.mrb[8].mxu1 %v717_v22 }
  0x33   :  { %305 = vmatprep.mubr.bf16.mxu0 %v720_v1  ;;  %345 = vmatprep.mubr.bf16.mxu1 %v720_v1 }
  0x3a   :  { %306 = vmatmul.mubr.bf16.gmra.mrb[12].mxu0 %v718_v23  ;;  %346 = vmatmul.mubr.bf16.gmra.mrb[12].mxu1 %v719_v24 }
  0xf5   :  { %v277_v32 = vpop.f32.mrb[0].mxu0  ;;  %v317_v33 = vpop.f32.mrb[0].mxu1 }
  0xf6   :  { %v467_v34 = vadd.f32 %v824_v30, %v277_v32  ;;  %v483_v35 = vadd.f32 %v824_v30, %v317_v33  ;;  %v279_v36 = vpop.f32.mrb[1].mxu0  ;;  %v319_v37 = vpop.f32.mrb[1].mxu1 }
  0xf7   :  { %v468_v38 = vadd.f32 %v826_v31, %v279_v36  ;;  %v484_v39 = vadd.f32 %v826_v31, %v319_v37  ;;  %v281_v40 = vpop.f32.mrb[2].mxu0  ;;  %v321_v41 = vpop.f32.mrb[2].mxu1 }
  0xf8   :  { %v469_v42 = vadd.f32 %v824_v30, %v281_v40  ;;  %v485_v43 = vadd.f32 %v824_v30, %v321_v41  ;;  %v283_v44 = vpop.f32.mrb[3].mxu0  ;;  %v323_v45 = vpop.f32.mrb[3].mxu1 }
  0xf9   :  { %v655_v46 = vpack.c.bf16 %v468_v38, %v467_v34  ;;  %v663_v47 = vpack.c.bf16 %v484_v39, %v483_v35  ;;  %v470_v48 = vadd.f32 %v826_v31, %v283_v44  ;;  %v486_v49 = vadd.f32 %v826_v31, %v323_v45 }
  0xfb   :  { %595 = vst [vmem:[%s911_s3] sm:$0xff] %v655_v46  ;;  %603 = vst [vmem:[%s911_s3 + $0x40] sm:$0xff] %v663_v47  ;;  %v656_v50 = vpack.c.bf16 %v470_v48, %v469_v42  ;;  %v664_v51 = vpack.c.bf16 %v486_v49, %v485_v43 }
  0xfd   :  { %596 = vst [vmem:[%s911_s3 + $0x8] sm:$0xff] %v656_v50  ;;  %604 = vst [vmem:[%s911_s3 + $0x48] sm:$0xff] %v664_v51  ;;  %v287_v52 = vpop.f32.mrb[4].mxu0  ;;  %v327_v53 = vpop.f32.mrb[4].mxu1 }
  0xfe   :  { %v471_v54 = vadd.f32 %v824_v30, %v287_v52  ;;  %v487_v55 = vadd.f32 %v824_v30, %v327_v53  ;;  %v289_v56 = vpop.f32.mrb[5].mxu0  ;;  %v329_v57 = vpop.f32.mrb[5].mxu1 }
  0xff   :  { %v472_v58 = vadd.f32 %v826_v31, %v289_v56  ;;  %v488_v59 = vadd.f32 %v826_v31, %v329_v57  ;;  %v291_v60 = vpop.f32.mrb[6].mxu0  ;;  %v331_v61 = vpop.f32.mrb[6].mxu1 }
 0x100   :  { %v473_v62 = vadd.f32 %v824_v30, %v291_v60  ;;  %v489_v63 = vadd.f32 %v824_v30, %v331_v61  ;;  %v293_v0 = vpop.f32.mrb[7].mxu0  ;;  %v333_v1 = vpop.f32.mrb[7].mxu1 }
 0x101   :  { %v657_v2 = vpack.c.bf16 %v472_v58, %v471_v54  ;;  %v665_v3 = vpack.c.bf16 %v488_v59, %v487_v55  ;;  %v474_v4 = vadd.f32 %v826_v31, %v293_v0  ;;  %v490_v5 = vadd.f32 %v826_v31, %v333_v1 }
 0x103   :  { %597 = vst [vmem:[%s911_s3 + $0x10] sm:$0xff] %v657_v2  ;;  %605 = vst [vmem:[%s911_s3 + $0x50] sm:$0xff] %v665_v3  ;;  %v658_v6 = vpack.c.bf16 %v474_v4, %v473_v62  ;;  %v666_v7 = vpack.c.bf16 %v490_v5, %v489_v63 }
 0x105   :  { %598 = vst [vmem:[%s911_s3 + $0x18] sm:$0xff] %v658_v6  ;;  %606 = vst [vmem:[%s911_s3 + $0x58] sm:$0xff] %v666_v7  ;;  %v297_v8 = vpop.f32.mrb[8].mxu0  ;;  %v337_v9 = vpop.f32.mrb[8].mxu1 }
 0x106   :  { %v475_v10 = vadd.f32 %v824_v30, %v297_v8  ;;  %v491_v11 = vadd.f32 %v824_v30, %v337_v9  ;;  %v299_v12 = vpop.f32.mrb[9].mxu0  ;;  %v339_v13 = vpop.f32.mrb[9].mxu1 }
 0x107   :  { %v476_v14 = vadd.f32 %v826_v31, %v299_v12  ;;  %v492_v15 = vadd.f32 %v826_v31, %v339_v13  ;;  %v301_v16 = vpop.f32.mrb[10].mxu0  ;;  %v341_v17 = vpop.f32.mrb[10].mxu1 }
 0x108   :  { %v477_v18 = vadd.f32 %v824_v30, %v301_v16  ;;  %v493_v19 = vadd.f32 %v824_v30, %v341_v17  ;;  %v303_v20 = vpop.f32.mrb[11].mxu0  ;;  %v343_v21 = vpop.f32.mrb[11].mxu1 }
 0x109   :  { %v659_v22 = vpack.c.bf16 %v476_v14, %v475_v10  ;;  %v667_v23 = vpack.c.bf16 %v492_v15, %v491_v11  ;;  %v478_v24 = vadd.f32 %v826_v31, %v303_v20  ;;  %v494_v25 = vadd.f32 %v826_v31, %v343_v21 }
 0x10b   :  { %599 = vst [vmem:[%s911_s3 + $0x20] sm:$0xff] %v659_v22  ;;  %607 = vst [vmem:[%s911_s3 + $0x60] sm:$0xff] %v667_v23  ;;  %v660_v26 = vpack.c.bf16 %v478_v24, %v477_v18  ;;  %v668_v27 = vpack.c.bf16 %v494_v25, %v493_v19 }
 0x10d   :  { %600 = vst [vmem:[%s911_s3 + $0x28] sm:$0xff] %v660_v26  ;;  %608 = vst [vmem:[%s911_s3 + $0x68] sm:$0xff] %v668_v27  ;;  %v307_v28 = vpop.f32.mrb[12].mxu0  ;;  %v347_v29 = vpop.f32.mrb[12].mxu1 }
 0x10e   :  { %v479_v32 = vadd.f32 %v824_v30, %v307_v28  ;;  %v495_v33 = vadd.f32 %v824_v30, %v347_v29  ;;  %v309_v34 = vpop.f32.mrb[13].mxu0  ;;  %v349_v35 = vpop.f32.mrb[13].mxu1 }
 0x10f   :  { %v480_v36 = vadd.f32 %v826_v31, %v309_v34  ;;  %v496_v37 = vadd.f32 %v826_v31, %v349_v35  ;;  %v311_v38 = vpop.f32.mrb[14].mxu0  ;;  %v351_v39 = vpop.f32.mrb[14].mxu1 }
 0x110   :  { %v481_v40 = vadd.f32 %v824_v30, %v311_v38  ;;  %v497_v41 = vadd.f32 %v824_v30, %v351_v39  ;;  %v313_v42 = vpop.f32.mrb[15].mxu0  ;;  %v353_v43 = vpop.f32.mrb[15].mxu1 }
 0x111   :  { %v661_v44 = vpack.c.bf16 %v480_v36, %v479_v32  ;;  %v669_v45 = vpack.c.bf16 %v496_v37, %v495_v33  ;;  %v482_v46 = vadd.f32 %v826_v31, %v313_v42  ;;  %v498_v47 = vadd.f32 %v826_v31, %v353_v43 }
 0x113   :  { %601 = vst [vmem:[%s911_s3 + $0x30] sm:$0xff] %v661_v44  ;;  %609 = vst [vmem:[%s911_s3 + $0x70] sm:$0xff] %v669_v45  ;;  %v662_v48 = vpack.c.bf16 %v482_v46, %v481_v40  ;;  %v670_v49 = vpack.c.bf16 %v498_v47, %v497_v41 }
 0x115   :  { %602 = vst [vmem:[%s911_s3 + $0x38] sm:$0xff] %v662_v48  ;;  %610 = vst [vmem:[%s911_s3 + $0x78] sm:$0xff] %v670_v49 }

// kernel: _lambda_.49
= control target key start
LH: loop header
LB: loop body
LE: loop exit
PB: predicated region body
PF: predicated region fallthrough
CT: control target
= control target key end

     0   :  { %v835_v1 = vmov 0   ;;  %v460_v25 = vlaneseq  ;;  %s1156_s1 = inlined_call_operand.vmem [shape: bf16[128,256], index: 1, kind: input, shape index: {}]   ;;  %s1157_s0 = inlined_call_operand.vmem [shape: bf16[128,128], index: 0, kind: input, shape index: {}]   ;;  %s1158_s2 = inlined_call_operand.vmem [shape: f32[1,256], index: 2, kind: input, shape index: {}]   ;;  %s1159_s3 = inlined_call_operand.vmem [shape: bf16[128,256], index: 3, kind: input, shape index: {}]   ;;  %s1160_s4 = inlined_call_operand.vmem [shape: bf16[128,256], index: 4, kind: output, shape index: {}]  }
   0x1   :  { %v803_v0 = vld [vmem:[%s1156_s1 + $0x4] ss:$8 sps:$4 sm:$0xff]   ;;  %278 = vmatprep.mubr.bf16.mxu0 %v835_v1  ;;  %318 = vmatprep.mubr.bf16.mxu1 %v835_v1  ;;  %v805_v2 = vld [vmem:[%s1156_s1] ss:$8 sps:$4 sm:$0xff]   ;;  %v806_v3 = vld [vmem:[%s1156_s1 + $0x14] ss:$8 sps:$4 sm:$0xff]  }
   0x2   :  { %246 = vmatprep.subr.bf16.mxu0 %v803_v0  ;;  %786 = vmatprep.subr.bf16.mxu1 %v803_v0  ;;  %v808_v4 = vld [vmem:[%s1156_s1 + $0x10] ss:$8 sps:$4 sm:$0xff]   ;;  %v809_v5 = vld [vmem:[%s1156_s1 + $0x24] ss:$8 sps:$4 sm:$0xff]   ;;  %v811_v6 = vld [vmem:[%s1156_s1 + $0x20] ss:$8 sps:$4 sm:$0xff]  }
   0x3   :  { %247 = vmatpush1.bf16.msra.mxu0 %v805_v2  ;;  %794 = vmatpush1.bf16.msra.mxu1 %v805_v2  ;;  %v812_v7 = vld [vmem:[%s1156_s1 + $0x34] ss:$8 sps:$4 sm:$0xff]   ;;  %v814_v8 = vld [vmem:[%s1156_s1 + $0x30] ss:$8 sps:$4 sm:$0xff]   ;;  %v815_v9 = vld [vmem:[%s1156_s1 + $0x44] ss:$8 sps:$4 sm:$0xff]  }
   0x4   :  { %248 = vmatprep.subr.bf16.mxu0 %v806_v3  ;;  %787 = vmatprep.subr.bf16.mxu1 %v806_v3  ;;  %v817_v10 = vld [vmem:[%s1156_s1 + $0x40] ss:$8 sps:$4 sm:$0xff]   ;;  %v818_v11 = vld [vmem:[%s1156_s1 + $0x54] ss:$8 sps:$4 sm:$0xff]   ;;  %v820_v12 = vld [vmem:[%s1156_s1 + $0x50] ss:$8 sps:$4 sm:$0xff]  }
   0x5   :  { %v821_v13 = vld [vmem:[%s1156_s1 + $0x64] ss:$8 sps:$4 sm:$0xff]   ;;  %v823_v14 = vld [vmem:[%s1156_s1 + $0x60] ss:$8 sps:$4 sm:$0xff]   ;;  %v824_v15 = vld [vmem:[%s1156_s1 + $0x74] ss:$8 sps:$4 sm:$0xff]  }
   0x6   :  { %v826_v16 = vld [vmem:[%s1156_s1 + $0x70] ss:$8 sps:$4 sm:$0xff]   ;;  %v827_v17 = vld [vmem:[%s1157_s0] sm:$0xff]   ;;  %v829_v19 = vld [vmem:[%s1157_s0 + $0x8] sm:$0xff]   ;;  %v461_v26 = vshrl.u32 %v460_v25, 7 }
   0x7   :  { %249 = vmatpush1.bf16.msra.mxu0 %v808_v4  ;;  %795 = vmatpush1.bf16.msra.mxu1 %v808_v4  ;;  %v828_v18 = vld [vmem:[%s1157_s0 + $0x20] sm:$0xff]   ;;  %v830_v20 = vld [vmem:[%s1157_s0 + $0x28] sm:$0xff]   ;;  %v831_v21 = vld [vmem:[%s1157_s0 + $0x10] sm:$0xff]  }
   0x8   :  { %250 = vmatprep.subr.bf16.mxu0 %v809_v5  ;;  %788 = vmatprep.subr.bf16.mxu1 %v809_v5  ;;  %v832_v22 = vld [vmem:[%s1157_s0 + $0x30] sm:$0xff]   ;;  %v833_v23 = vld [vmem:[%s1157_s0 + $0x18] sm:$0xff]   ;;  %v462_v27 = vsub.s32 0, %v461_v26  ;;  %v466_v28 = vsub.s32 1, %v461_v26  ;;  %v458_v29 = vld [vmem:[%s1158_s2] sm:$0x3] }
   0x9   :  { %v834_v24 = vld [vmem:[%s1157_s0 + $0x38] sm:$0xff]   ;;  %v502_v30 = vld [vmem:[%s1159_s3] sm:$0xff]  ;;  %v503_v32 = vld [vmem:[%s1159_s3 + $0x8] sm:$0xff] }
   0xa   :  { %v510_v31 = vld [vmem:[%s1159_s3 + $0x40] sm:$0xff]  ;;  %v511_v33 = vld [vmem:[%s1159_s3 + $0x48] sm:$0xff]  ;;  %v956_v34 = vrot.slane %v458_v29, %v462_v27  ;;  %v958_v35 = vrot.slane %v458_v29, %v466_v28  ;;  %v963_v36 = vld [vmem:[%s1159_s3 + $0x10] sm:$0xff]  ;;  %v518_v38 = vunpack.c.l.bf16 %v502_v30  ;;  %v519_v40 = vunpack.c.h.bf16 %v502_v30 }
   0xb   :  { %251 = vmatpush1.bf16.msra.mxu0 %v811_v6  ;;  %796 = vmatpush1.bf16.msra.mxu1 %v811_v6  ;;  %v968_v37 = vld [vmem:[%s1159_s3 + $0x50] sm:$0xff]  ;;  %v534_v39 = vunpack.c.l.bf16 %v510_v31  ;;  %v535_v41 = vunpack.c.h.bf16 %v510_v31  ;;  %v973_v42 = vld [vmem:[%s1159_s3 + $0x18] sm:$0xff]  ;;  %v520_v44 = vunpack.c.l.bf16 %v503_v32  ;;  %v536_v45 = vunpack.c.l.bf16 %v511_v33  ;;  %v983_v48 = vld [vmem:[%s1159_s3 + $0x20] sm:$0xff] }
   0xc   :  { %252 = vmatprep.subr.bf16.mxu0 %v812_v7  ;;  %789 = vmatprep.subr.bf16.mxu1 %v812_v7  ;;  %v978_v43 = vld [vmem:[%s1159_s3 + $0x58] sm:$0xff]  ;;  %v521_v46 = vunpack.c.h.bf16 %v503_v32  ;;  %v537_v47 = vunpack.c.h.bf16 %v511_v33  ;;  %v988_v49 = vld [vmem:[%s1159_s3 + $0x60] sm:$0xff]  ;;  %v522_v50 = vunpack.c.l.bf16 %v963_v36  ;;  %v538_v51 = vunpack.c.l.bf16 %v968_v37 }
   0xd   :  { %v523_v52 = vunpack.c.h.bf16 %v963_v36  ;;  %v539_v53 = vunpack.c.h.bf16 %v968_v37  ;;  %v524_v56 = vunpack.c.l.bf16 %v973_v42  ;;  %v540_v57 = vunpack.c.l.bf16 %v978_v43 }
   0xe   :  { %v525_v58 = vunpack.c.h.bf16 %v973_v42  ;;  %v541_v59 = vunpack.c.h.bf16 %v978_v43  ;;  %v526_v0 = vunpack.c.l.bf16 %v983_v48  ;;  %v527_v6 = vunpack.c.h.bf16 %v983_v48 }
   0xf   :  { %253 = vmatpush1.bf16.msra.mxu0 %v814_v8  ;;  %797 = vmatpush1.bf16.msra.mxu1 %v814_v8  ;;  %v543_v7 = vunpack.c.h.bf16 %v988_v49 }
  0x10   :  { %254 = vmatprep.subr.bf16.mxu0 %v815_v9  ;;  %790 = vmatprep.subr.bf16.mxu1 %v815_v9 }
  0x13   :  { %255 = vmatpush1.bf16.msra.mxu0 %v817_v10  ;;  %798 = vmatpush1.bf16.msra.mxu1 %v817_v10 }
  0x14   :  { %256 = vmatprep.subr.bf16.mxu0 %v818_v11  ;;  %791 = vmatprep.subr.bf16.mxu1 %v818_v11 }
  0x17   :  { %257 = vmatpush1.bf16.msra.mxu0 %v820_v12  ;;  %799 = vmatpush1.bf16.msra.mxu1 %v820_v12 }
  0x18   :  { %258 = vmatprep.subr.bf16.mxu0 %v821_v13  ;;  %792 = vmatprep.subr.bf16.mxu1 %v821_v13 }
  0x1b   :  { %259 = vmatpush1.bf16.msra.mxu0 %v823_v14  ;;  %800 = vmatpush1.bf16.msra.mxu1 %v823_v14 }
  0x1c   :  { %260 = vmatprep.subr.bf16.mxu0 %v824_v15  ;;  %793 = vmatprep.subr.bf16.mxu1 %v824_v15 }
  0x1f   :  { %261 = vmatpush1.bf16.msra.mxu0 %v826_v16  ;;  %801 = vmatpush1.bf16.msra.mxu1 %v826_v16 }
  0x22   :  { %279 = vmatmul.mubr.bf16.vlgmr.msra.gmra.mrb[0].mxu0 %v827_v17  ;;  %319 = vmatmul.mubr.bf16.vlgmr.msra.gmra.mrb[0].mxu1 %v828_v18  ;;  %v1013_v18 = vld [vmem:[%s1159_s3 + $0x28] sm:$0xff] }
  0x23   :  { %288 = vmatprep.mubr.bf16.mxu0 %v835_v1  ;;  %328 = vmatprep.mubr.bf16.mxu1 %v835_v1  ;;  %v528_v30 = vunpack.c.l.bf16 %v1013_v18 }
  0x2a   :  { %289 = vmatmul.mubr.bf16.gmra.mrb[4].mxu0 %v829_v19  ;;  %329 = vmatmul.mubr.bf16.gmra.mrb[4].mxu1 %v830_v20  ;;  %v1018_v19 = vld [vmem:[%s1159_s3 + $0x68] sm:$0xff] }
  0x2b   :  { %298 = vmatprep.mubr.bf16.mxu0 %v835_v1  ;;  %338 = vmatprep.mubr.bf16.mxu1 %v835_v1  ;;  %v544_v31 = vunpack.c.l.bf16 %v1018_v19 }
  0x32   :  { %299 = vmatmul.mubr.bf16.gmra.mrb[8].mxu0 %v831_v21  ;;  %339 = vmatmul.mubr.bf16.gmra.mrb[8].mxu1 %v832_v22 }
  0x33   :  { %308 = vmatprep.mubr.bf16.mxu0 %v835_v1  ;;  %348 = vmatprep.mubr.bf16.mxu1 %v835_v1  ;;  %v542_v1 = vunpack.c.l.bf16 %v988_v49 }
  0x3a   :  { %309 = vmatmul.mubr.bf16.gmra.mrb[12].mxu0 %v833_v23  ;;  %349 = vmatmul.mubr.bf16.gmra.mrb[12].mxu1 %v834_v24 }
  0xf5   :  { %v280_v54 = vpop.f32.mrb[0].mxu0  ;;  %v320_v55 = vpop.f32.mrb[0].mxu1 }
  0xf6   :  { %v470_v60 = vadd.f32 %v956_v34, %v280_v54  ;;  %v486_v61 = vadd.f32 %v956_v34, %v320_v55  ;;  %v282_v62 = vpop.f32.mrb[1].mxu0  ;;  %v322_v63 = vpop.f32.mrb[1].mxu1 }
  0xf7   :  { %v471_v2 = vadd.f32 %v958_v35, %v282_v62  ;;  %v487_v3 = vadd.f32 %v958_v35, %v322_v63  ;;  %v284_v4 = vpop.f32.mrb[2].mxu0  ;;  %v324_v5 = vpop.f32.mrb[2].mxu1 }
  0xf8   :  { %v550_v8 = vadd.f32 %v518_v38, %v470_v60  ;;  %v566_v9 = vadd.f32 %v534_v39, %v486_v61  ;;  %v472_v10 = vadd.f32 %v956_v34, %v284_v4  ;;  %v488_v11 = vadd.f32 %v956_v34, %v324_v5  ;;  %v286_v12 = vpop.f32.mrb[3].mxu0  ;;  %v326_v13 = vpop.f32.mrb[3].mxu1 }
  0xf9   :  { %v551_v14 = vadd.f32 %v519_v40, %v471_v2  ;;  %v567_v15 = vadd.f32 %v535_v41, %v487_v3  ;;  %v473_v16 = vadd.f32 %v958_v35, %v286_v12  ;;  %v489_v17 = vadd.f32 %v958_v35, %v326_v13 }
  0xfa   :  { %v582_v20 = vmax.f32 %v550_v8, 0.0  ;;  %v598_v21 = vmax.f32 %v566_v9, 0.0  ;;  %v552_v22 = vadd.f32 %v520_v44, %v472_v10  ;;  %v568_v23 = vadd.f32 %v536_v45, %v488_v11 }
  0xfb   :  { %v583_v24 = vmax.f32 %v551_v14, 0.0  ;;  %v599_v25 = vmax.f32 %v567_v15, 0.0  ;;  %v553_v26 = vadd.f32 %v521_v46, %v473_v16  ;;  %v569_v27 = vadd.f32 %v537_v47, %v489_v17  ;;  %v1055_v14 = vld [vmem:[%s1159_s3 + $0x30] sm:$0xff] }
  0xfc   :  { %v584_v28 = vmax.f32 %v552_v22, 0.0  ;;  %v600_v29 = vmax.f32 %v568_v23, 0.0  ;;  %v529_v46 = vunpack.c.h.bf16 %v1013_v18  ;;  %v545_v47 = vunpack.c.h.bf16 %v1018_v19  ;;  %v1060_v15 = vld [vmem:[%s1159_s3 + $0x70] sm:$0xff] }
  0xfd   :  { %v770_v32 = vpack.c.bf16 %v583_v24, %v582_v20  ;;  %v778_v33 = vpack.c.bf16 %v599_v25, %v598_v21  ;;  %v585_v38 = vmax.f32 %v553_v26, 0.0  ;;  %v601_v39 = vmax.f32 %v569_v27, 0.0  ;;  %v290_v40 = vpop.f32.mrb[4].mxu0  ;;  %v330_v41 = vpop.f32.mrb[4].mxu1 }
  0xfe   :  { %v474_v54 = vadd.f32 %v956_v34, %v290_v40  ;;  %v490_v44 = vadd.f32 %v956_v34, %v330_v41  ;;  %v292_v45 = vpop.f32.mrb[5].mxu0  ;;  %v332_v55 = vpop.f32.mrb[5].mxu1  ;;  %v530_v24 = vunpack.c.l.bf16 %v1055_v14  ;;  %v546_v25 = vunpack.c.l.bf16 %v1060_v15 }
  0xff   :  { %710 = vst [vmem:[%s1160_s4] sm:$0xff] %v770_v32  ;;  %718 = vst [vmem:[%s1160_s4 + $0x40] sm:$0xff] %v778_v33  ;;  %v771_v60 = vpack.c.bf16 %v585_v38, %v584_v28  ;;  %v779_v61 = vpack.c.bf16 %v601_v39, %v600_v29  ;;  %v475_v62 = vadd.f32 %v958_v35, %v292_v45  ;;  %v294_v2 = vpop.f32.mrb[6].mxu0  ;;  %v334_v3 = vpop.f32.mrb[6].mxu1  ;;  %v531_v43 = vunpack.c.h.bf16 %v1055_v14 }
 0x100   :  { %v491_v63 = vadd.f32 %v958_v35, %v332_v55  ;;  %v554_v4 = vadd.f32 %v522_v50, %v474_v54  ;;  %v570_v5 = vadd.f32 %v538_v51, %v490_v44  ;;  %v476_v8 = vadd.f32 %v956_v34, %v294_v2  ;;  %v296_v10 = vpop.f32.mrb[7].mxu0  ;;  %v336_v11 = vpop.f32.mrb[7].mxu1 }
 0x101   :  { %v492_v9 = vadd.f32 %v956_v34, %v334_v3  ;;  %711 = vst [vmem:[%s1160_s4 + $0x8] sm:$0xff] %v771_v60  ;;  %719 = vst [vmem:[%s1160_s4 + $0x48] sm:$0xff] %v779_v61  ;;  %v555_v50 = vadd.f32 %v523_v52, %v475_v62  ;;  %v477_v12 = vadd.f32 %v958_v35, %v296_v10 }
 0x102   :  { %v571_v51 = vadd.f32 %v539_v53, %v491_v63  ;;  %v493_v13 = vadd.f32 %v958_v35, %v336_v11  ;;  %v586_v16 = vmax.f32 %v554_v4, 0.0  ;;  %v602_v36 = vmax.f32 %v570_v5, 0.0  ;;  %v509_v4 = vld [vmem:[%s1159_s3 + $0x38] sm:$0xff] }
 0x103   :  { %v556_v37 = vadd.f32 %v524_v56, %v476_v8  ;;  %v572_v52 = vadd.f32 %v540_v57, %v492_v9  ;;  %v587_v53 = vmax.f32 %v555_v50, 0.0  ;;  %v557_v20 = vadd.f32 %v525_v58, %v477_v12  ;;  %v517_v5 = vld [vmem:[%s1159_s3 + $0x78] sm:$0xff] }
 0x104   :  { %v603_v17 = vmax.f32 %v571_v51, 0.0  ;;  %v573_v21 = vadd.f32 %v541_v59, %v493_v13  ;;  %v547_v59 = vunpack.c.h.bf16 %v1060_v15  ;;  %v532_v12 = vunpack.c.l.bf16 %v509_v4 }
 0x105   :  { %v588_v22 = vmax.f32 %v556_v37, 0.0  ;;  %v604_v23 = vmax.f32 %v572_v52, 0.0  ;;  %v772_v26 = vpack.c.bf16 %v587_v53, %v586_v16  ;;  %v589_v56 = vmax.f32 %v557_v20, 0.0  ;;  %v300_v29 = vpop.f32.mrb[8].mxu0  ;;  %v340_v57 = vpop.f32.mrb[8].mxu1 }
 0x106   :  { %v780_v27 = vpack.c.bf16 %v603_v17, %v602_v36  ;;  %v605_v28 = vmax.f32 %v573_v21, 0.0  ;;  %v478_v32 = vadd.f32 %v956_v34, %v300_v29  ;;  %v494_v42 = vadd.f32 %v956_v34, %v340_v57  ;;  %v302_v58 = vpop.f32.mrb[9].mxu0  ;;  %v342_v33 = vpop.f32.mrb[9].mxu1 }
 0x107   :  { %712 = vst [vmem:[%s1160_s4 + $0x10] sm:$0xff] %v772_v26  ;;  %v773_v38 = vpack.c.bf16 %v589_v56, %v588_v22  ;;  %v479_v40 = vadd.f32 %v958_v35, %v302_v58  ;;  %v495_v41 = vadd.f32 %v958_v35, %v342_v33  ;;  %v304_v54 = vpop.f32.mrb[10].mxu0  ;;  %v344_v44 = vpop.f32.mrb[10].mxu1  ;;  %v548_v13 = vunpack.c.l.bf16 %v517_v5 }
 0x108   :  { %720 = vst [vmem:[%s1160_s4 + $0x50] sm:$0xff] %v780_v27  ;;  %v781_v39 = vpack.c.bf16 %v605_v28, %v604_v23  ;;  %v558_v45 = vadd.f32 %v526_v0, %v478_v32  ;;  %v574_v55 = vadd.f32 %v542_v1, %v494_v42  ;;  %v480_v60 = vadd.f32 %v956_v34, %v304_v54  ;;  %v306_v62 = vpop.f32.mrb[11].mxu0  ;;  %v346_v63 = vpop.f32.mrb[11].mxu1 }
 0x109   :  { %v496_v61 = vadd.f32 %v956_v34, %v344_v44  ;;  %713 = vst [vmem:[%s1160_s4 + $0x18] sm:$0xff] %v773_v38  ;;  %v559_v0 = vadd.f32 %v527_v6, %v479_v40  ;;  %v575_v1 = vadd.f32 %v543_v7, %v495_v41  ;;  %v481_v2 = vadd.f32 %v958_v35, %v306_v62 }
 0x10a   :  { %721 = vst [vmem:[%s1160_s4 + $0x58] sm:$0xff] %v781_v39  ;;  %v497_v3 = vadd.f32 %v958_v35, %v346_v63  ;;  %v590_v8 = vmax.f32 %v558_v45, 0.0  ;;  %v606_v9 = vmax.f32 %v574_v55, 0.0  ;;  %v560_v48 = vadd.f32 %v528_v30, %v480_v60 }
 0x10b   :  { %v576_v49 = vadd.f32 %v544_v31, %v496_v61  ;;  %v591_v6 = vmax.f32 %v559_v0, 0.0  ;;  %v607_v7 = vmax.f32 %v575_v1, 0.0  ;;  %v561_v10 = vadd.f32 %v529_v46, %v481_v2 }
 0x10c   :  { %v577_v11 = vadd.f32 %v545_v47, %v497_v3  ;;  %v592_v50 = vmax.f32 %v560_v48, 0.0  ;;  %v533_v46 = vunpack.c.h.bf16 %v509_v4  ;;  %v549_v21 = vunpack.c.h.bf16 %v517_v5 }
 0x10d   :  { %v608_v51 = vmax.f32 %v576_v49, 0.0  ;;  %v774_v16 = vpack.c.bf16 %v591_v6, %v590_v8  ;;  %v782_v36 = vpack.c.bf16 %v607_v7, %v606_v9  ;;  %v593_v37 = vmax.f32 %v561_v10, 0.0  ;;  %v310_v30 = vpop.f32.mrb[12].mxu0  ;;  %v350_v53 = vpop.f32.mrb[12].mxu1 }
 0x10e   :  { %v609_v52 = vmax.f32 %v577_v11, 0.0  ;;  %v482_v31 = vadd.f32 %v956_v34, %v310_v30  ;;  %v498_v17 = vadd.f32 %v956_v34, %v350_v53  ;;  %v312_v20 = vpop.f32.mrb[13].mxu0  ;;  %v352_v18 = vpop.f32.mrb[13].mxu1 }
 0x10f   :  { %714 = vst [vmem:[%s1160_s4 + $0x20] sm:$0xff] %v774_v16  ;;  %722 = vst [vmem:[%s1160_s4 + $0x60] sm:$0xff] %v782_v36  ;;  %v775_v19 = vpack.c.bf16 %v593_v37, %v592_v50  ;;  %v483_v22 = vadd.f32 %v958_v35, %v312_v20  ;;  %v499_v23 = vadd.f32 %v958_v35, %v352_v18  ;;  %v314_v26 = vpop.f32.mrb[14].mxu0  ;;  %v354_v27 = vpop.f32.mrb[14].mxu1 }
 0x110   :  { %v783_v47 = vpack.c.bf16 %v609_v52, %v608_v51  ;;  %v562_v56 = vadd.f32 %v530_v24, %v482_v31  ;;  %v578_v28 = vadd.f32 %v546_v25, %v498_v17  ;;  %v484_v29 = vadd.f32 %v956_v34, %v314_v26  ;;  %v316_v32 = vpop.f32.mrb[15].mxu0  ;;  %v356_v42 = vpop.f32.mrb[15].mxu1 }
 0x111   :  { %v500_v57 = vadd.f32 %v956_v34, %v354_v27  ;;  %715 = vst [vmem:[%s1160_s4 + $0x28] sm:$0xff] %v775_v19  ;;  %v563_v24 = vadd.f32 %v531_v43, %v483_v22  ;;  %v579_v25 = vadd.f32 %v547_v59, %v499_v23  ;;  %v485_v58 = vadd.f32 %v958_v35, %v316_v32 }
 0x112   :  { %723 = vst [vmem:[%s1160_s4 + $0x68] sm:$0xff] %v783_v47  ;;  %v501_v34 = vadd.f32 %v958_v35, %v356_v42  ;;  %v594_v33 = vmax.f32 %v562_v56, 0.0  ;;  %v610_v38 = vmax.f32 %v578_v28, 0.0  ;;  %v564_v39 = vadd.f32 %v532_v12, %v484_v29 }
 0x113   :  { %v580_v40 = vadd.f32 %v548_v13, %v500_v57  ;;  %v595_v41 = vmax.f32 %v563_v24, 0.0  ;;  %v611_v54 = vmax.f32 %v579_v25, 0.0  ;;  %v565_v44 = vadd.f32 %v533_v46, %v485_v58 }
 0x114   :  { %v581_v45 = vadd.f32 %v549_v21, %v501_v34  ;;  %v596_v55 = vmax.f32 %v564_v39, 0.0 }
 0x115   :  { %v612_v60 = vmax.f32 %v580_v40, 0.0  ;;  %v776_v61 = vpack.c.bf16 %v595_v41, %v594_v33  ;;  %v784_v14 = vpack.c.bf16 %v611_v54, %v610_v38  ;;  %v597_v43 = vmax.f32 %v565_v44, 0.0 }
 0x116   :  { %v613_v62 = vmax.f32 %v581_v45, 0.0 }
 0x117   :  { %716 = vst [vmem:[%s1160_s4 + $0x30] sm:$0xff] %v776_v61  ;;  %724 = vst [vmem:[%s1160_s4 + $0x70] sm:$0xff] %v784_v14  ;;  %v777_v35 = vpack.c.bf16 %v597_v43, %v596_v55 }
 0x118   :  { %v785_v15 = vpack.c.bf16 %v613_v62, %v612_v60 }
 0x119   :  { %717 = vst [vmem:[%s1160_s4 + $0x38] sm:$0xff] %v777_v35 }
 0x11a   :  { %725 = vst [vmem:[%s1160_s4 + $0x78] sm:$0xff] %v785_v15 }

// kernel: _lambda_.50
= control target key start
LH: loop header
LB: loop body
LE: loop exit
PB: predicated region body
PF: predicated region fallthrough
CT: control target
= control target key end

     0   :  { %s939_s1 = inlined_call_operand.vmem [shape: bf16[256,128], index: 1, kind: input, shape index: {}]   ;;  %s940_s0 = inlined_call_operand.vmem [shape: bf16[128,256], index: 0, kind: input, shape index: {}]   ;;  %s941_s2 = inlined_call_operand.vmem [shape: f32[1,128], index: 2, kind: input, shape index: {}]   ;;  %s942_s3 = inlined_call_operand.vmem [shape: bf16[128,128], index: 3, kind: output, shape index: {}]  }
   0x1   :  { %v738_v0 = vld [vmem:[%s939_s1 + $0x40] sm:$0xff]   ;;  %v740_v2 = vld [vmem:[%s939_s1 + $0x48] sm:$0xff]   ;;  %v742_v4 = vld [vmem:[%s939_s1 + $0x50] sm:$0xff]  }
   0x2   :  { %v739_v1 = vld [vmem:[%s939_s1] sm:$0xff]   ;;  %658 = vmatprep.subr.bf16.mxu0 %v738_v0  ;;  %722 = vmatprep.subr.bf16.mxu1 %v738_v0  ;;  %v741_v3 = vld [vmem:[%s939_s1 + $0x8] sm:$0xff]   ;;  %v743_v5 = vld [vmem:[%s939_s1 + $0x10] sm:$0xff]  }
   0x3   :  { %659 = vmatpush3.bf16.msra.mxu0 %v739_v1  ;;  %730 = vmatpush3.bf16.msra.mxu1 %v739_v1  ;;  %v744_v6 = vld [vmem:[%s939_s1 + $0x58] sm:$0xff]   ;;  %v746_v8 = vld [vmem:[%s939_s1 + $0x60] sm:$0xff]   ;;  %v748_v10 = vld [vmem:[%s939_s1 + $0x68] sm:$0xff]  }
   0x4   :  { %660 = vmatprep.subr.bf16.mxu0 %v740_v2  ;;  %723 = vmatprep.subr.bf16.mxu1 %v740_v2  ;;  %v745_v7 = vld [vmem:[%s939_s1 + $0x18] sm:$0xff]   ;;  %v747_v9 = vld [vmem:[%s939_s1 + $0x20] sm:$0xff]   ;;  %v749_v13 = vld [vmem:[%s939_s1 + $0x28] sm:$0xff]  }
   0x5   :  { %v756_v11 = vld [vmem:[%s940_s0 + $0x4] ss:$8 sps:$4 sm:$0xff]   ;;  %v750_v14 = vld [vmem:[%s939_s1 + $0x70] sm:$0xff]   ;;  %v752_v16 = vld [vmem:[%s939_s1 + $0x78] sm:$0xff]  }
   0x6   :  { %v759_v12 = vld [vmem:[%s940_s0 + $0x44] ss:$8 sps:$4 sm:$0xff]   ;;  %307 = vmatprep.mubr.bf16.mxu0 %v756_v11  ;;  %v751_v15 = vld [vmem:[%s939_s1 + $0x30] sm:$0xff]   ;;  %v753_v17 = vld [vmem:[%s939_s1 + $0x38] sm:$0xff]  }
   0x7   :  { %661 = vmatpush3.bf16.msra.mxu0 %v741_v3  ;;  %731 = vmatpush3.bf16.msra.mxu1 %v741_v3  ;;  %v754_v18 = vld [vmem:[%s940_s0] ss:$8 sps:$4 sm:$0xff]   ;;  %v760_v20 = vld [vmem:[%s940_s0 + $0x14] ss:$8 sps:$4 sm:$0xff]   ;;  %v764_v22 = vld [vmem:[%s940_s0 + $0x10] ss:$8 sps:$4 sm:$0xff]  }
   0x8   :  { %662 = vmatprep.subr.bf16.mxu0 %v742_v4  ;;  %724 = vmatprep.subr.bf16.mxu1 %v742_v4  ;;  %v757_v19 = vld [vmem:[%s940_s0 + $0x40] ss:$8 sps:$4 sm:$0xff]   ;;  %v762_v21 = vld [vmem:[%s940_s0 + $0x54] ss:$8 sps:$4 sm:$0xff]   ;;  %v765_v23 = vld [vmem:[%s940_s0 + $0x50] ss:$8 sps:$4 sm:$0xff]  }
   0x9   :  { %339 = vmatprep.mubr.bf16.mxu1 %v759_v12  ;;  %v766_v24 = vld [vmem:[%s940_s0 + $0x24] ss:$8 sps:$4 sm:$0xff]   ;;  %v770_v26 = vld [vmem:[%s940_s0 + $0x20] ss:$8 sps:$4 sm:$0xff]   ;;  %v772_v28 = vld [vmem:[%s940_s0 + $0x34] ss:$8 sps:$4 sm:$0xff]  }
   0xa   :  { %v768_v25 = vld [vmem:[%s940_s0 + $0x64] ss:$8 sps:$4 sm:$0xff]   ;;  %v771_v27 = vld [vmem:[%s940_s0 + $0x60] ss:$8 sps:$4 sm:$0xff]   ;;  %v774_v29 = vld [vmem:[%s940_s0 + $0x74] ss:$8 sps:$4 sm:$0xff]  }
   0xb   :  { %663 = vmatpush3.bf16.msra.mxu0 %v743_v5  ;;  %732 = vmatpush3.bf16.msra.mxu1 %v743_v5  ;;  %v776_v30 = vld [vmem:[%s940_s0 + $0x30] ss:$8 sps:$4 sm:$0xff]   ;;  %v897_v35 = vld [vmem:[%s941_s2] ss:$0 sm:$0xff] }
   0xc   :  { %664 = vmatprep.subr.bf16.mxu0 %v744_v6  ;;  %725 = vmatprep.subr.bf16.mxu1 %v744_v6  ;;  %v777_v31 = vld [vmem:[%s940_s0 + $0x70] ss:$8 sps:$4 sm:$0xff]  }
   0xf   :  { %665 = vmatpush3.bf16.msra.mxu0 %v745_v7  ;;  %733 = vmatpush3.bf16.msra.mxu1 %v745_v7 }
  0x10   :  { %666 = vmatprep.subr.bf16.mxu0 %v746_v8  ;;  %726 = vmatprep.subr.bf16.mxu1 %v746_v8 }
  0x13   :  { %667 = vmatpush3.bf16.msra.mxu0 %v747_v9  ;;  %734 = vmatpush3.bf16.msra.mxu1 %v747_v9 }
  0x14   :  { %668 = vmatprep.subr.bf16.mxu0 %v748_v10  ;;  %727 = vmatprep.subr.bf16.mxu1 %v748_v10 }
  0x17   :  { %669 = vmatpush3.bf16.msra.mxu0 %v749_v13  ;;  %735 = vmatpush3.bf16.msra.mxu1 %v749_v13 }
  0x18   :  { %670 = vmatprep.subr.bf16.mxu0 %v750_v14  ;;  %728 = vmatprep.subr.bf16.mxu1 %v750_v14 }
  0x1b   :  { %671 = vmatpush3.bf16.msra.mxu0 %v751_v15  ;;  %736 = vmatpush3.bf16.msra.mxu1 %v751_v15 }
  0x1c   :  { %672 = vmatprep.subr.bf16.mxu0 %v752_v16  ;;  %729 = vmatprep.subr.bf16.mxu1 %v752_v16 }
  0x1f   :  { %673 = vmatpush3.bf16.msra.mxu0 %v753_v17  ;;  %737 = vmatpush3.bf16.msra.mxu1 %v753_v17 }
  0x22   :  { %308 = vmatmul.mubr.bf16.vlgmr.msra.gmra.mrb[0].mxu0 %v754_v18  ;;  %340 = vmatmul.mubr.bf16.vlgmr.msra.gmra.mrb[0].mxu1 %v757_v19 }
  0x23   :  { %315 = vmatprep.mubr.bf16.mxu0 %v760_v20  ;;  %347 = vmatprep.mubr.bf16.mxu1 %v762_v21 }
  0x2a   :  { %316 = vmatmul.mubr.bf16.gmra.mrb[4].mxu0 %v764_v22  ;;  %348 = vmatmul.mubr.bf16.gmra.mrb[4].mxu1 %v765_v23 }
  0x2b   :  { %323 = vmatprep.mubr.bf16.mxu0 %v766_v24  ;;  %355 = vmatprep.mubr.bf16.mxu1 %v768_v25 }
  0x32   :  { %324 = vmatmul.mubr.bf16.gmra.mrb[8].mxu0 %v770_v26  ;;  %356 = vmatmul.mubr.bf16.gmra.mrb[8].mxu1 %v771_v27 }
  0x33   :  { %331 = vmatprep.mubr.bf16.mxu0 %v772_v28  ;;  %363 = vmatprep.mubr.bf16.mxu1 %v774_v29 }
  0x3a   :  { %332 = vmatmul.mubr.bf16.gmra.mrb[12].mxu0 %v776_v30  ;;  %364 = vmatmul.mubr.bf16.gmra.mrb[12].mxu1 %v777_v31 }
  0xf5   :  { %v674_v32 = vpop.f32.mrb[0].mxu0  ;;  %v698_v33 = vpop.f32.mrb[0].mxu1 }
  0xf6   :  { %v675_v34 = vpop.f32.mrb[1].mxu0  ;;  %v699_v36 = vpop.f32.mrb[1].mxu1 }
  0xf7   :  { %v676_v37 = vadd.f32 %v675_v34, %v674_v32  ;;  %v700_v38 = vadd.f32 %v699_v36, %v698_v33  ;;  %v677_v39 = vpop.f32.mrb[2].mxu0  ;;  %v701_v40 = vpop.f32.mrb[2].mxu1 }
  0xf8   :  { %v678_v41 = vpop.f32.mrb[3].mxu0  ;;  %v702_v42 = vpop.f32.mrb[3].mxu1 }
  0xf9   :  { %v430_v43 = vadd.f32 %v676_v37, %v897_v35  ;;  %v438_v44 = vadd.f32 %v700_v38, %v897_v35  ;;  %v679_v45 = vadd.f32 %v678_v41, %v677_v39  ;;  %v703_v46 = vadd.f32 %v702_v42, %v701_v40 }
  0xfb   :  { %v431_v47 = vadd.f32 %v679_v45, %v897_v35  ;;  %v439_v48 = vadd.f32 %v703_v46, %v897_v35  ;;  %v446_v49 = vmax.f32 %v430_v43, 0.0  ;;  %v454_v50 = vmax.f32 %v438_v44, 0.0 }
  0xfd   :  { %v447_v51 = vmax.f32 %v431_v47, 0.0  ;;  %v455_v52 = vmax.f32 %v439_v48, 0.0  ;;  %v680_v53 = vpop.f32.mrb[4].mxu0  ;;  %v704_v54 = vpop.f32.mrb[4].mxu1 }
  0xfe   :  { %v681_v55 = vpop.f32.mrb[5].mxu0  ;;  %v705_v56 = vpop.f32.mrb[5].mxu1 }
  0xff   :  { %v614_v57 = vpack.c.bf16 %v447_v51, %v446_v49  ;;  %v634_v58 = vpack.c.bf16 %v455_v52, %v454_v50  ;;  %v682_v59 = vadd.f32 %v681_v55, %v680_v53  ;;  %v706_v60 = vadd.f32 %v705_v56, %v704_v54  ;;  %v683_v61 = vpop.f32.mrb[6].mxu0  ;;  %v707_v62 = vpop.f32.mrb[6].mxu1 }
 0x100   :  { %v684_v63 = vpop.f32.mrb[7].mxu0  ;;  %v708_v0 = vpop.f32.mrb[7].mxu1 }
 0x101   :  { %615 = vst [vmem:[%s942_s3] sm:$0xff] %v614_v57   ;;  %654 = vst [vmem:[%s942_s3 + $0x20] sm:$0xff] %v634_v58   ;;  %v432_v1 = vadd.f32 %v682_v59, %v897_v35  ;;  %v440_v2 = vadd.f32 %v706_v60, %v897_v35  ;;  %v685_v3 = vadd.f32 %v684_v63, %v683_v61 }
 0x102   :  { %v709_v4 = vadd.f32 %v708_v0, %v707_v62 }
 0x103   :  { %v433_v5 = vadd.f32 %v685_v3, %v897_v35  ;;  %v448_v7 = vmax.f32 %v432_v1, 0.0  ;;  %v456_v8 = vmax.f32 %v440_v2, 0.0 }
 0x104   :  { %v441_v6 = vadd.f32 %v709_v4, %v897_v35 }
 0x105   :  { %v449_v9 = vmax.f32 %v433_v5, 0.0  ;;  %v686_v11 = vpop.f32.mrb[8].mxu0  ;;  %v710_v12 = vpop.f32.mrb[8].mxu1 }
 0x106   :  { %v457_v10 = vmax.f32 %v441_v6, 0.0  ;;  %v687_v13 = vpop.f32.mrb[9].mxu0  ;;  %v711_v14 = vpop.f32.mrb[9].mxu1 }
 0x107   :  { %v619_v15 = vpack.c.bf16 %v449_v9, %v448_v7  ;;  %v688_v17 = vadd.f32 %v687_v13, %v686_v11  ;;  %v712_v18 = vadd.f32 %v711_v14, %v710_v12  ;;  %v689_v19 = vpop.f32.mrb[10].mxu0  ;;  %v713_v20 = vpop.f32.mrb[10].mxu1 }
 0x108   :  { %v639_v16 = vpack.c.bf16 %v457_v10, %v456_v8  ;;  %v690_v21 = vpop.f32.mrb[11].mxu0  ;;  %v714_v22 = vpop.f32.mrb[11].mxu1 }
 0x109   :  { %651 = vst [vmem:[%s942_s3 + $0x8] sm:$0xff] %v619_v15   ;;  %v434_v23 = vadd.f32 %v688_v17, %v897_v35  ;;  %v442_v24 = vadd.f32 %v712_v18, %v897_v35  ;;  %v691_v25 = vadd.f32 %v690_v21, %v689_v19  ;;  %v715_v26 = vadd.f32 %v714_v22, %v713_v20 }
 0x10a   :  { %655 = vst [vmem:[%s942_s3 + $0x28] sm:$0xff] %v639_v16  }
 0x10b   :  { %v435_v27 = vadd.f32 %v691_v25, %v897_v35  ;;  %v443_v28 = vadd.f32 %v715_v26, %v897_v35  ;;  %v450_v29 = vmax.f32 %v434_v23, 0.0  ;;  %v458_v30 = vmax.f32 %v442_v24, 0.0 }
 0x10d   :  { %v451_v31 = vmax.f32 %v435_v27, 0.0  ;;  %v459_v32 = vmax.f32 %v443_v28, 0.0  ;;  %v692_v33 = vpop.f32.mrb[12].mxu0  ;;  %v716_v34 = vpop.f32.mrb[12].mxu1 }
 0x10e   :  { %v693_v36 = vpop.f32.mrb[13].mxu0  ;;  %v717_v37 = vpop.f32.mrb[13].mxu1 }
 0x10f   :  { %v624_v38 = vpack.c.bf16 %v451_v31, %v450_v29  ;;  %v644_v39 = vpack.c.bf16 %v459_v32, %v458_v30  ;;  %v694_v40 = vadd.f32 %v693_v36, %v692_v33  ;;  %v718_v41 = vadd.f32 %v717_v37, %v716_v34  ;;  %v695_v42 = vpop.f32.mrb[14].mxu0  ;;  %v719_v43 = vpop.f32.mrb[14].mxu1 }
 0x110   :  { %v696_v44 = vpop.f32.mrb[15].mxu0  ;;  %v720_v45 = vpop.f32.mrb[15].mxu1 }
 0x111   :  { %652 = vst [vmem:[%s942_s3 + $0x10] sm:$0xff] %v624_v38   ;;  %656 = vst [vmem:[%s942_s3 + $0x30] sm:$0xff] %v644_v39   ;;  %v436_v46 = vadd.f32 %v694_v40, %v897_v35  ;;  %v444_v47 = vadd.f32 %v718_v41, %v897_v35  ;;  %v697_v48 = vadd.f32 %v696_v44, %v695_v42 }
 0x112   :  { %v721_v49 = vadd.f32 %v720_v45, %v719_v43 }
 0x113   :  { %v437_v50 = vadd.f32 %v697_v48, %v897_v35  ;;  %v452_v52 = vmax.f32 %v436_v46, 0.0  ;;  %v460_v53 = vmax.f32 %v444_v47, 0.0 }
 0x114   :  { %v445_v51 = vadd.f32 %v721_v49, %v897_v35 }
 0x115   :  { %v453_v54 = vmax.f32 %v437_v50, 0.0 }
 0x116   :  { %v461_v55 = vmax.f32 %v445_v51, 0.0 }
 0x117   :  { %v629_v56 = vpack.c.bf16 %v453_v54, %v452_v52 }
 0x118   :  { %v649_v57 = vpack.c.bf16 %v461_v55, %v460_v53 }
 0x119   :  { %653 = vst [vmem:[%s942_s3 + $0x18] sm:$0xff] %v629_v56  }
 0x11a   :  { %657 = vst [vmem:[%s942_s3 + $0x38] sm:$0xff] %v649_v57  }

// kernel: _lambda_.58
= control target key start
LH: loop header
LB: loop body
LE: loop exit
PB: predicated region body
PF: predicated region fallthrough
CT: control target
= control target key end

     0   :  { %s1071_s12 = smov 0   ;;  %s1073_s13 = smov 0   ;;  %s1181_s0 = inlined_call_operand.vmem [shape: bf16[32,1152], index: 0, kind: input, shape index: {}]   ;;  %s1182_s1 = inlined_call_operand.vmem [shape: bf16[1152,128], index: 1, kind: input, shape index: {}]   ;;  %s1183_s2 = inlined_call_operand.vmem [shape: f32[1,128], index: 2, kind: input, shape index: {}]   ;;  %s1184_s3 = inlined_call_operand.vmem [shape: bf16[32,128], index: 3, kind: output, shape index: {}]  }
   0x1   :  { %s1075_s14 = smov 0   ;;  %s1077_s15 = smov 0  }
   0x2   :  { %s1079_s16 = smov 0  }
   0x3 LB: > { %s25_s17 = sadd.s32 1, %s1044_s15  ;;  %p48_p1 = scmp.ne.s32.totalorder %s1036_s13, %s1032_s12  ;;  %s1048_s16 = sphi %s1079_s16, %s13_s16   ;;  %s1044_s15 = sphi %s1077_s15, %s1188_s15   ;;  %s1040_s14 = sphi %s1075_s14, %s1187_s14   ;;  %s1036_s13 = sphi %s1073_s13, %s1186_s13   ;;  %s1032_s12 = sphi %s1071_s12, %s1185_s12  }
   0x4   : > { %p26_p0 = scmp.ge.s32.totalorder %s25_s17, 3  ;;  %p49_p2 = scmp.eq.s32.totalorder %s1048_s16, 0 }
   0x5   : > { %s41_s19 = sadd.s32 1, %s1036_s13  ;;  %p808_p5 = scmp.ge.s32.totalorder %s1048_s16, 3 }
   0x6   : > { %s1190_s17 = smov (%p26_p0, %s25_s17), 0  ;;  %p50_p3 = por %p49_p2, %p48_p1 }
   0x7   : > { %s37_s18 = ssub.s32 %s1044_s15, %s1190_s17  ;;  %162 = sbr.rel (%p808_p5) target bundleno = 23 (0x17), region = 20 }
   0x8   : > { %p39_p4 = scmp.eq.s32.totalorder %s37_s18, 0 }
   0xa   : > { %s1106_s20 = scalar_select %p39_p4, %s1036_s13, %s41_s19  }
   0xe   : > { %165 = sbr.rel (!%p50_p3) target bundleno = 23 (0x17), region = 24  ;;  %s167_s21 = sand.u32 (%p50_p3), 1, %s1036_s13  }
   0xf   : > { %s861_s22 = smul.u32 (%p50_p3), 12, %s1044_s15 }
  0x10   : > { %s935_s23 = smul.u32 (%p50_p3), 48, %s167_s21 }
  0x11   : > { %s175_s26 = scalar_lea.vmem (%p50_p3), %s1181_s0, %s861_s22 }
  0x12   : > { %v190_v0 = vld [vmem:[%s175_s26] sm:$0xff] (%p50_p3)  ;;  %v194_v2 = vld [vmem:[%s175_s26 + $0x48] sm:$0xff] (%p50_p3)  ;;  %s169_s27 = scalar_lea.vmem (%p50_p3), [#allocation3], %s935_s23  ;;  %v814_v6 = vld [vmem:[%s175_s26 + $0x50] sm:$0xf] (%p50_p3) }
  0x13   : > { %v192_v1 = vld [vmem:[%s175_s26 + $0x24] sm:$0xff] (%p50_p3)  ;;  %191 = vst [vmem:[%s169_s27] sm:$0xff] (%p50_p3), %v190_v0  ;;  %195 = vst [vmem:[%s169_s27 + $0x18] sm:$0xff] (%p50_p3), %v194_v2  ;;  %v196_v3 = vld [vmem:[%s175_s26 + $0x6c] sm:$0xff] (%p50_p3) }
  0x14   : > { %193 = vst [vmem:[%s169_s27 + $0xc] sm:$0xff] (%p50_p3), %v192_v1  ;;  %v810_v4 = vld [vmem:[%s175_s26 + $0x8] sm:$0xf] (%p50_p3)  ;;  %v812_v5 = vld [vmem:[%s175_s26 + $0x2c] sm:$0xf] (%p50_p3)  ;;  %197 = vst [vmem:[%s169_s27 + $0x24] sm:$0xff] (%p50_p3), %v196_v3 }
  0x15   : > { %811 = vst [vmem:[%s169_s27 + $0x8] sm:$0xf] %v810_v4  ;;  %813 = vst [vmem:[%s169_s27 + $0x14] sm:$0xf] %v812_v5  ;;  %v816_v7 = vld [vmem:[%s175_s26 + $0x74] sm:$0xf] }
  0x16   : > { %815 = vst [vmem:[%s169_s27 + $0x20] sm:$0xf] %v814_v6  ;;  %817 = vst [vmem:[%s169_s27 + $0x2c] sm:$0xf] %v816_v7 }
  0x17 PF: > { %p818_p6 = scmp.ge.s32.totalorder %s1048_s16, 1  ;;  %p229_p7 = scmp.lt.s32.totalorder %s1048_s16, 4 }
  0x19   : > { %p230_p8 = pnand %p818_p6, %p229_p7 }
  0x1a   : > { %s236_s28 = sand.u32 (!%p230_p8), 1, %s1032_s12   ;;  %s275_s29 = smul.u32 (!%p230_p8), 48, %s1040_s14 }
  0x1b   : > { %233 = sbr.rel (%p230_p8) target bundleno = 318 (0x13e), region = 54  ;;  %p820_p10 = scmp.ne.s32.totalorder (!%p230_p8), %s1040_s14, 0 }
  0x1c   : > { %s936_s30 = smul.u32 (!%p230_p8), 48, %s236_s28  ;;  %p276_p9 = scmp.lt.s32.totalorder (!%p230_p8), %s275_s29, 143 }
  0x1e   : > { %s1123_s8 = scalar_lea.vmem (!%p230_p8), [#allocation3], %s936_s30 }
  0x22   : > { %s1192_s29 = smov (!%p276_p9, %s275_s29), 143  ;;  %300 = sbr.rel (%p820_p10) target bundleno = 41 (0x29), region = 62 }
  0x23   : > { %s819_s4 = sshll.u32 %s1192_s29, 2  ;;  %v1050_v8 = vmov (!%p820_p10), 0.0  }
  0x24   : > { %s1121_s7 = scalar_lea.vmem %s1182_s1, %s819_s4  ;;  %301 = vst [vmem:[#allocation2] sm:$0xff] (!%p820_p10), %v1050_v8  ;;  %302 = vst [vmem:[#allocation2 + $0x8] sm:$0xff] (!%p820_p10), %v1050_v8 }
  0x25   : > { %303 = vst [vmem:[#allocation2 + $0x10] sm:$0xff] (!%p820_p10), %v1050_v8  ;;  %304 = vst [vmem:[#allocation2 + $0x18] sm:$0xff] (!%p820_p10), %v1050_v8 }
  0x29 PF: > { %v978_v9 = vld [vmem:[%s1121_s7 + $0x40] sm:$0xff]   ;;  %v981_v12 = vld [vmem:[%s1121_s7 + $0x48] sm:$0xff]   ;;  %v984_v15 = vld [vmem:[%s1121_s7 + $0x50] sm:$0xff]   ;;  %p851_p11 = scmp.ne.s32.totalorder %s1040_s14, 2 }
  0x2a   : > { %v979_v10 = vld [vmem:[%s1121_s7] sm:$0xff]   ;;  %877 = vmatprep.subr.bf16.mxu0 %v978_v9  ;;  %v982_v13 = vld [vmem:[%s1121_s7 + $0x8] sm:$0xff]   ;;  %v985_v16 = vld [vmem:[%s1121_s7 + $0x10] sm:$0xff]  }
  0x2b   : > { %v980_v11 = vld [vmem:[%s1121_s7 + $0x80] sm:$0xff]   ;;  %878 = vmatpush3.bf16.msra.mxu0 %v979_v10  ;;  %v983_v14 = vld [vmem:[%s1121_s7 + $0x88] sm:$0xff]   ;;  %v986_v17 = vld [vmem:[%s1121_s7 + $0x90] sm:$0xff]  }
  0x2c   : > { %915 = vmatprep.subr.bf16.mxu1 %v980_v11  ;;  %879 = vmatprep.subr.bf16.mxu0 %v981_v12  ;;  %v987_v18 = vld [vmem:[%s1121_s7 + $0x58] sm:$0xff]   ;;  %v990_v21 = vld [vmem:[%s1121_s7 + $0x60] sm:$0xff]   ;;  %v993_v24 = vld [vmem:[%s1121_s7 + $0x68] sm:$0xff]  }
  0x2d   : > { %916 = vmatpush3.bf16.msra.mxu1 %v980_v11  ;;  %v988_v19 = vld [vmem:[%s1121_s7 + $0x18] sm:$0xff]   ;;  %v992_v22 = vld [vmem:[%s1121_s7 + $0xa0] sm:$0xff]   ;;  %v995_v25 = vld [vmem:[%s1121_s7 + $0xa8] sm:$0xff]  }
  0x2e   : > { %917 = vmatprep.subr.bf16.mxu1 %v983_v14  ;;  %v989_v20 = vld [vmem:[%s1121_s7 + $0x98] sm:$0xff]   ;;  %v991_v23 = vld [vmem:[%s1121_s7 + $0x20] sm:$0xff]   ;;  %v994_v26 = vld [vmem:[%s1121_s7 + $0x28] sm:$0xff]  }
  0x2f   : > { %880 = vmatpush3.bf16.msra.mxu0 %v982_v13  ;;  %v996_v27 = vld [vmem:[%s1121_s7 + $0x70] sm:$0xff]   ;;  %v999_v30 = vld [vmem:[%s1121_s7 + $0x78] sm:$0xff]   ;;  %v305_v45 = vld [vmem:[#allocation2] sm:$0xff] }
  0x30   : > { %881 = vmatprep.subr.bf16.mxu0 %v984_v15  ;;  %v997_v28 = vld [vmem:[%s1121_s7 + $0x30] sm:$0xff]   ;;  %v1001_v31 = vld [vmem:[%s1121_s7 + $0xb8] sm:$0xff]   ;;  %v306_v50 = vld [vmem:[#allocation2 + $0x8] sm:$0xff] }
  0x31   : > { %918 = vmatpush3.bf16.msra.mxu1 %v983_v14  ;;  %v998_v29 = vld [vmem:[%s1121_s7 + $0xb0] sm:$0xff]   ;;  %v1000_v34 = vld [vmem:[%s1121_s7 + $0x38] sm:$0xff]   ;;  %v852_v5 = vld [vmem:[%s1183_s2] ss:$0 sm:$0xff] (!%p851_p11) }
  0x32   : > { %919 = vmatprep.subr.bf16.mxu1 %v986_v17  ;;  %v1004_v32 = vld [vmem:[%s1123_s8 + $0x4] ss:$12 sps:$4 sm:$0xff]   ;;  %v1005_v33 = vld [vmem:[%s1123_s8 + $0x8] ss:$12 sps:$4 sm:$0xff]   ;;  %v1002_v35 = vld [vmem:[%s1123_s8] ss:$12 sps:$4 sm:$0xff]  }
  0x33   : > { %882 = vmatpush3.bf16.msra.mxu0 %v985_v16  ;;  %573 = vmatprep.mubr.bf16.mxu0 %v1004_v32  ;;  %v1007_v36 = vld [vmem:[%s1123_s8 + $0x1c] ss:$12 sps:$4 sm:$0xff]   ;;  %v1006_v37 = vld [vmem:[%s1123_s8 + $0x20] ss:$12 sps:$4 sm:$0xff]   ;;  %v1009_v38 = vld [vmem:[%s1123_s8 + $0x18] ss:$12 sps:$4 sm:$0xff]  }
  0x34   : > { %883 = vmatprep.subr.bf16.mxu0 %v987_v18  ;;  %931 = vmatprep.mubr.bf16.mxu1 %v1005_v33  ;;  %v307_v59 = vld [vmem:[#allocation2 + $0x10] sm:$0xff]  ;;  %v308_v63 = vld [vmem:[#allocation2 + $0x18] sm:$0xff] }
  0x35   : > { %920 = vmatpush3.bf16.msra.mxu1 %v986_v17 }
  0x36   : > { %921 = vmatprep.subr.bf16.mxu1 %v989_v20 }
  0x37   : > { %884 = vmatpush3.bf16.msra.mxu0 %v988_v19 }
  0x38   : > { %885 = vmatprep.subr.bf16.mxu0 %v990_v21 }
  0x39   : > { %922 = vmatpush3.bf16.msra.mxu1 %v989_v20 }
  0x3a   : > { %923 = vmatprep.subr.bf16.mxu1 %v992_v22 }
  0x3b   : > { %886 = vmatpush3.bf16.msra.mxu0 %v991_v23 }
  0x3c   : > { %887 = vmatprep.subr.bf16.mxu0 %v993_v24 }
  0x3d   : > { %924 = vmatpush3.bf16.msra.mxu1 %v992_v22 }
  0x3e   : > { %925 = vmatprep.subr.bf16.mxu1 %v995_v25 }
  0x3f   : > { %888 = vmatpush3.bf16.msra.mxu0 %v994_v26 }
  0x40   : > { %889 = vmatprep.subr.bf16.mxu0 %v996_v27 }
  0x41   : > { %926 = vmatpush3.bf16.msra.mxu1 %v995_v25 }
  0x42   : > { %927 = vmatprep.subr.bf16.mxu1 %v998_v29 }
  0x43   : > { %890 = vmatpush3.bf16.msra.mxu0 %v997_v28 }
  0x44   : > { %891 = vmatprep.subr.bf16.mxu0 %v999_v30 }
  0x45   : > { %928 = vmatpush3.bf16.msra.mxu1 %v998_v29 }
  0x46   : > { %929 = vmatprep.subr.bf16.mxu1 %v1001_v31 }
  0x47   : > { %892 = vmatpush3.bf16.msra.mxu0 %v1000_v34 }
  0x49   : > { %930 = vmatpush3.bf16.msra.mxu1 %v1001_v31 }
  0x4a   : > { %574 = vmatmul.mubr.bf16.vlgmr.msra.gmra.mrb[0].mxu0 %v1002_v35 }
  0x4b   : > { %581 = vmatprep.mubr.bf16.mxu0 %v1007_v36 }
  0x4c   : > { %932 = vmatmul.mubr.bf16.vlgmr.msra.gmra.mrb[0].mxu1 %v1006_v37 }
  0x52   : > { %582 = vmatmul.mubr.bf16.gmra.mrb[4].mxu0 %v1009_v38 }
 0x11d   : > { %v893_v39 = vpop.f32.mrb[0].mxu0 }
 0x11e   : > { %v894_v40 = vpop.f32.mrb[1].mxu0 }
 0x11f   : > { %v895_v41 = vadd.f32 %v894_v40, %v893_v39  ;;  %v896_v42 = vpop.f32.mrb[2].mxu0  ;;  %v933_v43 = vpop.f32.mrb[0].mxu1 }
 0x120   : > { %v897_v44 = vpop.f32.mrb[3].mxu0  ;;  %v624_v46 = vpop.f32.mrb[1].mxu1 }
 0x121   : > { %v898_v47 = vadd.f32 %v897_v44, %v896_v42  ;;  %v625_v48 = vadd.f32 %v895_v41, %v624_v46  ;;  %v934_v49 = vpop.f32.mrb[2].mxu1 }
 0x122   : > { %v627_v51 = vpop.f32.mrb[3].mxu1 }
 0x123   : > { %v639_v52 = vadd.f32 %v625_v48, %v305_v45  ;;  %v628_v53 = vadd.f32 %v898_v47, %v627_v51 }
 0x125   : > { %643 = vst [vmem:[#allocation2] sm:$0xff] %v639_v52  ;;  %v640_v54 = vadd.f32 %v628_v53, %v306_v50  ;;  %v899_v55 = vpop.f32.mrb[4].mxu0 }
 0x126   : > { %v900_v56 = vpop.f32.mrb[5].mxu0 }
 0x127   : > { %644 = vst [vmem:[#allocation2 + $0x8] sm:$0xff] %v640_v54  ;;  %v901_v57 = vadd.f32 %v900_v56, %v899_v55  ;;  %v902_v58 = vpop.f32.mrb[6].mxu0 }
 0x128   : > { %v903_v60 = vpop.f32.mrb[7].mxu0 }
 0x129   : > { %v633_v61 = vadd.f32 %v933_v43, %v901_v57  ;;  %v904_v62 = vadd.f32 %v903_v60, %v902_v58  ;;  %650 = sbr.rel (%p851_p11) target bundleno = 318 (0x13e), region = 66 }
 0x12b   : > { %v641_v0 = vadd.f32 %v633_v61, %v307_v59  ;;  %v636_v1 = vadd.f32 %v934_v49, %v904_v62 }
 0x12c   : > { %v651_v3 = vld [vmem:[#allocation2] sm:$0xff] (!%p851_p11) }
 0x12d   : > { %645 = vst [vmem:[#allocation2 + $0x10] sm:$0xff] %v641_v0  ;;  %v642_v2 = vadd.f32 %v636_v1, %v308_v63  ;;  %v662_v6 = vadd.f32 (!%p851_p11), %v852_v5, %v651_v3 }
 0x12e   : > { %v652_v4 = vld [vmem:[#allocation2 + $0x8] sm:$0xff] (!%p851_p11) }
 0x12f   : > { %646 = vst [vmem:[#allocation2 + $0x18] sm:$0xff] %v642_v2  ;;  %v663_v7 = vadd.f32 (!%p851_p11), %v852_v5, %v652_v4  ;;  %v666_v12 = vmax.f32 (!%p851_p11), %v662_v6, 0.0 }
 0x131   : > { %v667_v13 = vmax.f32 %v663_v7, 0.0 }
 0x133   : > { %v869_v16 = vpack.c.bf16 %v667_v13, %v666_v12 }
 0x134   : > { %v653_v8 = vld [vmem:[#allocation2 + $0x10] sm:$0xff] }
 0x135   : > { %v664_v10 = vadd.f32 %v852_v5, %v653_v8  ;;  %870 = vst [vmem:[%s1184_s3] sm:$0xff] %v869_v16  }
 0x136   : > { %v654_v9 = vld [vmem:[#allocation2 + $0x18] sm:$0xff] }
 0x137   : > { %v665_v11 = vadd.f32 %v852_v5, %v654_v9  ;;  %v668_v14 = vmax.f32 %v664_v10, 0.0 }
 0x139   : > { %v669_v15 = vmax.f32 %v665_v11, 0.0 }
 0x13b   : > { %v874_v17 = vpack.c.bf16 %v669_v15, %v668_v14 }
 0x13d   : > { %876 = vst [vmem:[%s1184_s3 + $0x8] sm:$0xff] %v874_v17  }
 0x13e PF: > { %s13_s16 = sadd.s32 1, %s1048_s16   ;;  %s1185_s12 = smov %s1036_s13 }
 0x13f   : > { %p10_p12 = scmp.ge.s32.totalorder %s13_s16, 5   ;;  %s1186_s13 = smov %s1106_s20 }
 0x140   : > { %s1187_s14 = smov %s1044_s15  ;;  %s1188_s15 = smov %s1190_s17 }
 0x141   :  { %12 = sbr.rel (!%p10_p12) target bundleno = 3 (0x3), region = 113 }

// kernel: _lambda_.56
= control target key start
LH: loop header
LB: loop body
LE: loop exit
PB: predicated region body
PF: predicated region fallthrough
CT: control target
= control target key end

     0   :  { %s1150_s1 = inlined_call_operand.vmem [shape: bf16[256,512], index: 1, kind: input, shape index: {}]   ;;  %s1151_s0 = inlined_call_operand.vmem [shape: bf16[32,256], index: 0, kind: input, shape index: {}]   ;;  %s1152_s2 = inlined_call_operand.vmem [shape: f32[1,512], index: 2, kind: input, shape index: {}]   ;;  %s1153_s3 = inlined_call_operand.vmem [shape: bf16[32,512], index: 3, kind: output, shape index: {}]  }
   0x1   :  { %v797_v0 = vld [vmem:[%s1150_s1 + $0x4] ss:$16 sps:$4 sm:$0xff]   ;;  %v799_v1 = vld [vmem:[%s1150_s1 + $0xc] ss:$16 sps:$4 sm:$0xff]   ;;  %v801_v2 = vld [vmem:[%s1150_s1] ss:$16 sps:$4 sm:$0xff]  }
   0x2   :  { %458 = vmatprep.subr.bf16.mxu0 %v797_v0  ;;  %v802_v3 = vld [vmem:[%s1150_s1 + $0x8] ss:$16 sps:$4 sm:$0xff]   ;;  %511 = vmatprep.subr.bf16.mxu1 %v799_v1  ;;  %v803_v4 = vld [vmem:[%s1150_s1 + $0x24] ss:$16 sps:$4 sm:$0xff]   ;;  %v805_v5 = vld [vmem:[%s1150_s1 + $0x2c] ss:$16 sps:$4 sm:$0xff]  }
   0x3   :  { %459 = vmatpush1.bf16.msra.mxu0 %v801_v2  ;;  %512 = vmatpush1.bf16.msra.mxu1 %v802_v3  ;;  %v807_v6 = vld [vmem:[%s1150_s1 + $0x20] ss:$16 sps:$4 sm:$0xff]   ;;  %v808_v7 = vld [vmem:[%s1150_s1 + $0x28] ss:$16 sps:$4 sm:$0xff]   ;;  %v809_v8 = vld [vmem:[%s1150_s1 + $0x44] ss:$16 sps:$4 sm:$0xff]  }
   0x4   :  { %460 = vmatprep.subr.bf16.mxu0 %v803_v4  ;;  %513 = vmatprep.subr.bf16.mxu1 %v805_v5  ;;  %v811_v9 = vld [vmem:[%s1150_s1 + $0x4c] ss:$16 sps:$4 sm:$0xff]   ;;  %v813_v10 = vld [vmem:[%s1150_s1 + $0x40] ss:$16 sps:$4 sm:$0xff]   ;;  %v814_v11 = vld [vmem:[%s1150_s1 + $0x48] ss:$16 sps:$4 sm:$0xff]   ;;  %v617_v4 = vlaneseq }
   0x5   :  { %v815_v12 = vld [vmem:[%s1150_s1 + $0x64] ss:$16 sps:$4 sm:$0xff]   ;;  %v817_v13 = vld [vmem:[%s1150_s1 + $0x6c] ss:$16 sps:$4 sm:$0xff]   ;;  %v819_v14 = vld [vmem:[%s1150_s1 + $0x60] ss:$16 sps:$4 sm:$0xff]  }
   0x6   :  { %v820_v15 = vld [vmem:[%s1150_s1 + $0x68] ss:$16 sps:$4 sm:$0xff]   ;;  %v821_v16 = vld [vmem:[%s1150_s1 + $0x84] ss:$16 sps:$4 sm:$0xff]   ;;  %v823_v17 = vld [vmem:[%s1150_s1 + $0x8c] ss:$16 sps:$4 sm:$0xff]  }
   0x7   :  { %461 = vmatpush1.bf16.msra.mxu0 %v807_v6  ;;  %514 = vmatpush1.bf16.msra.mxu1 %v808_v7  ;;  %v825_v18 = vld [vmem:[%s1150_s1 + $0x80] ss:$16 sps:$4 sm:$0xff]   ;;  %v826_v19 = vld [vmem:[%s1150_s1 + $0x88] ss:$16 sps:$4 sm:$0xff]   ;;  %v827_v20 = vld [vmem:[%s1150_s1 + $0xa4] ss:$16 sps:$4 sm:$0xff]  }
   0x8   :  { %462 = vmatprep.subr.bf16.mxu0 %v809_v8  ;;  %515 = vmatprep.subr.bf16.mxu1 %v811_v9  ;;  %v829_v21 = vld [vmem:[%s1150_s1 + $0xac] ss:$16 sps:$4 sm:$0xff]   ;;  %v831_v22 = vld [vmem:[%s1150_s1 + $0xa0] ss:$16 sps:$4 sm:$0xff]   ;;  %v832_v23 = vld [vmem:[%s1150_s1 + $0xa8] ss:$16 sps:$4 sm:$0xff]  }
   0x9   :  { %v833_v24 = vld [vmem:[%s1150_s1 + $0xc4] ss:$16 sps:$4 sm:$0xff]   ;;  %v835_v25 = vld [vmem:[%s1150_s1 + $0xcc] ss:$16 sps:$4 sm:$0xff]   ;;  %v837_v26 = vld [vmem:[%s1150_s1 + $0xc0] ss:$16 sps:$4 sm:$0xff]  }
   0xa   :  { %v838_v27 = vld [vmem:[%s1150_s1 + $0xc8] ss:$16 sps:$4 sm:$0xff]   ;;  %v839_v28 = vld [vmem:[%s1150_s1 + $0xe4] ss:$16 sps:$4 sm:$0xff]   ;;  %v841_v29 = vld [vmem:[%s1150_s1 + $0xec] ss:$16 sps:$4 sm:$0xff]  }
   0xb   :  { %463 = vmatpush1.bf16.msra.mxu0 %v813_v10  ;;  %516 = vmatpush1.bf16.msra.mxu1 %v814_v11  ;;  %v843_v30 = vld [vmem:[%s1150_s1 + $0xe0] ss:$16 sps:$4 sm:$0xff]   ;;  %v844_v31 = vld [vmem:[%s1150_s1 + $0xe8] ss:$16 sps:$4 sm:$0xff]   ;;  %v845_v32 = vld [vmem:[%s1150_s1 + $0x104] ss:$16 sps:$4 sm:$0xff]  }
   0xc   :  { %464 = vmatprep.subr.bf16.mxu0 %v815_v12  ;;  %517 = vmatprep.subr.bf16.mxu1 %v817_v13  ;;  %v847_v33 = vld [vmem:[%s1150_s1 + $0x10c] ss:$16 sps:$4 sm:$0xff]   ;;  %v849_v34 = vld [vmem:[%s1150_s1 + $0x100] ss:$16 sps:$4 sm:$0xff]   ;;  %v850_v35 = vld [vmem:[%s1150_s1 + $0x108] ss:$16 sps:$4 sm:$0xff]  }
   0xd   :  { %v851_v36 = vld [vmem:[%s1150_s1 + $0x124] ss:$16 sps:$4 sm:$0xff]   ;;  %v853_v37 = vld [vmem:[%s1150_s1 + $0x12c] ss:$16 sps:$4 sm:$0xff]   ;;  %v855_v38 = vld [vmem:[%s1150_s1 + $0x120] ss:$16 sps:$4 sm:$0xff]  }
   0xe   :  { %v856_v39 = vld [vmem:[%s1150_s1 + $0x128] ss:$16 sps:$4 sm:$0xff]   ;;  %v857_v40 = vld [vmem:[%s1150_s1 + $0x144] ss:$16 sps:$4 sm:$0xff]   ;;  %v859_v41 = vld [vmem:[%s1150_s1 + $0x14c] ss:$16 sps:$4 sm:$0xff]  }
   0xf   :  { %465 = vmatpush1.bf16.msra.mxu0 %v819_v14  ;;  %518 = vmatpush1.bf16.msra.mxu1 %v820_v15  ;;  %v861_v42 = vld [vmem:[%s1150_s1 + $0x140] ss:$16 sps:$4 sm:$0xff]   ;;  %v862_v43 = vld [vmem:[%s1150_s1 + $0x148] ss:$16 sps:$4 sm:$0xff]   ;;  %v863_v44 = vld [vmem:[%s1150_s1 + $0x164] ss:$16 sps:$4 sm:$0xff]  }
  0x10   :  { %466 = vmatprep.subr.bf16.mxu0 %v821_v16  ;;  %519 = vmatprep.subr.bf16.mxu1 %v823_v17  ;;  %v865_v45 = vld [vmem:[%s1150_s1 + $0x16c] ss:$16 sps:$4 sm:$0xff]   ;;  %v867_v46 = vld [vmem:[%s1150_s1 + $0x160] ss:$16 sps:$4 sm:$0xff]   ;;  %v868_v48 = vld [vmem:[%s1150_s1 + $0x168] ss:$16 sps:$4 sm:$0xff]  }
  0x11   :  { %v895_v47 = vld [vmem:[%s1151_s0 + $0x4] ss:$8 sps:$4 sm:$0xff]   ;;  %v873_v51 = vld [vmem:[%s1150_s1 + $0x180] ss:$16 sps:$4 sm:$0xff]   ;;  %v874_v52 = vld [vmem:[%s1150_s1 + $0x188] ss:$16 sps:$4 sm:$0xff]  }
  0x12   :  { %v869_v49 = vld [vmem:[%s1150_s1 + $0x184] ss:$16 sps:$4 sm:$0xff]   ;;  %v871_v50 = vld [vmem:[%s1150_s1 + $0x18c] ss:$16 sps:$4 sm:$0xff]   ;;  %490 = vmatprep.mubr.bf16.mxu0 %v895_v47  ;;  %543 = vmatprep.mubr.bf16.mxu1 %v895_v47  ;;  %v879_v55 = vld [vmem:[%s1150_s1 + $0x1a0] ss:$16 sps:$4 sm:$0xff]  }
  0x13   :  { %467 = vmatpush1.bf16.msra.mxu0 %v825_v18  ;;  %520 = vmatpush1.bf16.msra.mxu1 %v826_v19  ;;  %v875_v53 = vld [vmem:[%s1150_s1 + $0x1a4] ss:$16 sps:$4 sm:$0xff]   ;;  %v877_v54 = vld [vmem:[%s1150_s1 + $0x1ac] ss:$16 sps:$4 sm:$0xff]   ;;  %v880_v56 = vld [vmem:[%s1150_s1 + $0x1a8] ss:$16 sps:$4 sm:$0xff]  }
  0x14   :  { %468 = vmatprep.subr.bf16.mxu0 %v827_v20  ;;  %521 = vmatprep.subr.bf16.mxu1 %v829_v21  ;;  %v881_v57 = vld [vmem:[%s1150_s1 + $0x1c4] ss:$16 sps:$4 sm:$0xff]   ;;  %v883_v58 = vld [vmem:[%s1150_s1 + $0x1cc] ss:$16 sps:$4 sm:$0xff]   ;;  %v885_v59 = vld [vmem:[%s1150_s1 + $0x1c0] ss:$16 sps:$4 sm:$0xff]  }
  0x15   :  { %v886_v60 = vld [vmem:[%s1150_s1 + $0x1c8] ss:$16 sps:$4 sm:$0xff]   ;;  %v887_v61 = vld [vmem:[%s1150_s1 + $0x1e4] ss:$16 sps:$4 sm:$0xff]   ;;  %v889_v62 = vld [vmem:[%s1150_s1 + $0x1ec] ss:$16 sps:$4 sm:$0xff]  }
  0x16   :  { %v891_v63 = vld [vmem:[%s1150_s1 + $0x1e0] ss:$16 sps:$4 sm:$0xff]   ;;  %v892_v0 = vld [vmem:[%s1150_s1 + $0x1e8] ss:$16 sps:$4 sm:$0xff]   ;;  %v896_v2 = vld [vmem:[%s1151_s0 + $0x14] ss:$8 sps:$4 sm:$0xff]  }
  0x17   :  { %469 = vmatpush1.bf16.msra.mxu0 %v831_v22  ;;  %522 = vmatpush1.bf16.msra.mxu1 %v832_v23  ;;  %v893_v1 = vld [vmem:[%s1151_s0] ss:$8 sps:$4 sm:$0xff]   ;;  %v898_v3 = vld [vmem:[%s1151_s0 + $0x10] ss:$8 sps:$4 sm:$0xff]   ;;  %v618_v5 = vshrl.u32 %v617_v4, 7 }
  0x18   :  { %470 = vmatprep.subr.bf16.mxu0 %v833_v24  ;;  %523 = vmatprep.subr.bf16.mxu1 %v835_v25  ;;  %v615_v8 = vld [vmem:[%s1152_s2] sm:$0xf] }
  0x19   :  { %v619_v6 = vsub.s32 0, %v618_v5  ;;  %v627_v7 = vsub.s32 2, %v618_v5  ;;  %v623_v9 = vsub.s32 1, %v618_v5  ;;  %v631_v10 = vsub.s32 3, %v618_v5 }
  0x1b   :  { %471 = vmatpush1.bf16.msra.mxu0 %v837_v26  ;;  %524 = vmatpush1.bf16.msra.mxu1 %v838_v27  ;;  %v620_v11 = vrot.slane %v615_v8, %v619_v6  ;;  %v628_v12 = vrot.slane %v615_v8, %v627_v7  ;;  %v624_v13 = vrot.slane %v615_v8, %v623_v9 }
  0x1c   :  { %472 = vmatprep.subr.bf16.mxu0 %v839_v28  ;;  %525 = vmatprep.subr.bf16.mxu1 %v841_v29  ;;  %v632_v14 = vrot.slane %v615_v8, %v631_v10 }
  0x1f   :  { %473 = vmatpush1.bf16.msra.mxu0 %v843_v30  ;;  %526 = vmatpush1.bf16.msra.mxu1 %v844_v31 }
  0x20   :  { %474 = vmatprep.subr.bf16.mxu0 %v845_v32  ;;  %527 = vmatprep.subr.bf16.mxu1 %v847_v33 }
  0x23   :  { %475 = vmatpush1.bf16.msra.mxu0 %v849_v34  ;;  %528 = vmatpush1.bf16.msra.mxu1 %v850_v35 }
  0x24   :  { %476 = vmatprep.subr.bf16.mxu0 %v851_v36  ;;  %529 = vmatprep.subr.bf16.mxu1 %v853_v37 }
  0x27   :  { %477 = vmatpush1.bf16.msra.mxu0 %v855_v38  ;;  %530 = vmatpush1.bf16.msra.mxu1 %v856_v39 }
  0x28   :  { %478 = vmatprep.subr.bf16.mxu0 %v857_v40  ;;  %531 = vmatprep.subr.bf16.mxu1 %v859_v41 }
  0x2b   :  { %479 = vmatpush1.bf16.msra.mxu0 %v861_v42  ;;  %532 = vmatpush1.bf16.msra.mxu1 %v862_v43 }
  0x2c   :  { %480 = vmatprep.subr.bf16.mxu0 %v863_v44  ;;  %533 = vmatprep.subr.bf16.mxu1 %v865_v45 }
  0x2f   :  { %481 = vmatpush1.bf16.msra.mxu0 %v867_v46  ;;  %534 = vmatpush1.bf16.msra.mxu1 %v868_v48 }
  0x30   :  { %482 = vmatprep.subr.bf16.mxu0 %v869_v49  ;;  %535 = vmatprep.subr.bf16.mxu1 %v871_v50 }
  0x33   :  { %483 = vmatpush1.bf16.msra.mxu0 %v873_v51  ;;  %536 = vmatpush1.bf16.msra.mxu1 %v874_v52 }
  0x34   :  { %484 = vmatprep.subr.bf16.mxu0 %v875_v53  ;;  %537 = vmatprep.subr.bf16.mxu1 %v877_v54 }
  0x37   :  { %485 = vmatpush1.bf16.msra.mxu0 %v879_v55  ;;  %538 = vmatpush1.bf16.msra.mxu1 %v880_v56 }
  0x38   :  { %486 = vmatprep.subr.bf16.mxu0 %v881_v57  ;;  %539 = vmatprep.subr.bf16.mxu1 %v883_v58 }
  0x3b   :  { %487 = vmatpush1.bf16.msra.mxu0 %v885_v59  ;;  %540 = vmatpush1.bf16.msra.mxu1 %v886_v60 }
  0x3c   :  { %488 = vmatprep.subr.bf16.mxu0 %v887_v61  ;;  %541 = vmatprep.subr.bf16.mxu1 %v889_v62 }
  0x3f   :  { %489 = vmatpush1.bf16.msra.mxu0 %v891_v63  ;;  %542 = vmatpush1.bf16.msra.mxu1 %v892_v0 }
  0x42   :  { %491 = vmatmul.mubr.bf16.vlgmr.msra.gmra.mrb[0].mxu0 %v893_v1  ;;  %544 = vmatmul.mubr.bf16.vlgmr.msra.gmra.mrb[0].mxu1 %v893_v1 }
  0x43   :  { %500 = vmatprep.mubr.bf16.mxu0 %v896_v2  ;;  %553 = vmatprep.mubr.bf16.mxu1 %v896_v2 }
  0x4a   :  { %501 = vmatmul.mubr.bf16.gmra.mrb[4].mxu0 %v898_v3  ;;  %554 = vmatmul.mubr.bf16.gmra.mrb[4].mxu1 %v898_v3 }
 0x115   :  { %v492_v15 = vpop.f32.mrb[0].mxu0  ;;  %v545_v16 = vpop.f32.mrb[0].mxu1 }
 0x116   :  { %v637_v17 = vadd.f32 %v620_v11, %v492_v15  ;;  %v639_v18 = vadd.f32 %v628_v12, %v545_v16  ;;  %v494_v19 = vpop.f32.mrb[1].mxu0  ;;  %v547_v20 = vpop.f32.mrb[1].mxu1 }
 0x117   :  { %v638_v21 = vadd.f32 %v624_v13, %v494_v19  ;;  %v640_v22 = vadd.f32 %v632_v14, %v547_v20  ;;  %v496_v23 = vpop.f32.mrb[2].mxu0  ;;  %v549_v24 = vpop.f32.mrb[2].mxu1 }
 0x118   :  { %v641_v25 = vadd.f32 %v620_v11, %v496_v23  ;;  %v643_v26 = vadd.f32 %v628_v12, %v549_v24  ;;  %v498_v27 = vpop.f32.mrb[3].mxu0  ;;  %v551_v28 = vpop.f32.mrb[3].mxu1 }
 0x119   :  { %v789_v29 = vpack.c.bf16 %v638_v21, %v637_v17  ;;  %v790_v30 = vpack.c.bf16 %v640_v22, %v639_v18  ;;  %v642_v31 = vadd.f32 %v624_v13, %v498_v27  ;;  %v644_v32 = vadd.f32 %v632_v14, %v551_v28 }
 0x11b   :  { %701 = vst [vmem:[%s1153_s3] sm:$0xff] %v789_v29  ;;  %702 = vst [vmem:[%s1153_s3 + $0x8] sm:$0xff] %v790_v30  ;;  %v791_v33 = vpack.c.bf16 %v642_v31, %v641_v25  ;;  %v792_v34 = vpack.c.bf16 %v644_v32, %v643_v26 }
 0x11d   :  { %703 = vst [vmem:[%s1153_s3 + $0x10] sm:$0xff] %v791_v33  ;;  %704 = vst [vmem:[%s1153_s3 + $0x18] sm:$0xff] %v792_v34  ;;  %v502_v35 = vpop.f32.mrb[4].mxu0  ;;  %v555_v36 = vpop.f32.mrb[4].mxu1 }
 0x11e   :  { %v645_v37 = vadd.f32 %v620_v11, %v502_v35  ;;  %v647_v38 = vadd.f32 %v628_v12, %v555_v36  ;;  %v504_v39 = vpop.f32.mrb[5].mxu0  ;;  %v557_v40 = vpop.f32.mrb[5].mxu1 }
 0x11f   :  { %v646_v41 = vadd.f32 %v624_v13, %v504_v39  ;;  %v648_v42 = vadd.f32 %v632_v14, %v557_v40  ;;  %v506_v43 = vpop.f32.mrb[6].mxu0  ;;  %v559_v44 = vpop.f32.mrb[6].mxu1 }
 0x120   :  { %v649_v45 = vadd.f32 %v620_v11, %v506_v43  ;;  %v651_v46 = vadd.f32 %v628_v12, %v559_v44  ;;  %v508_v47 = vpop.f32.mrb[7].mxu0  ;;  %v561_v48 = vpop.f32.mrb[7].mxu1 }
 0x121   :  { %v793_v49 = vpack.c.bf16 %v646_v41, %v645_v37  ;;  %v794_v50 = vpack.c.bf16 %v648_v42, %v647_v38  ;;  %v650_v51 = vadd.f32 %v624_v13, %v508_v47  ;;  %v652_v52 = vadd.f32 %v632_v14, %v561_v48 }
 0x123   :  { %705 = vst [vmem:[%s1153_s3 + $0x20] sm:$0xff] %v793_v49  ;;  %706 = vst [vmem:[%s1153_s3 + $0x28] sm:$0xff] %v794_v50  ;;  %v795_v53 = vpack.c.bf16 %v650_v51, %v649_v45  ;;  %v796_v54 = vpack.c.bf16 %v652_v52, %v651_v46 }
 0x125   :  { %707 = vst [vmem:[%s1153_s3 + $0x30] sm:$0xff] %v795_v53  ;;  %708 = vst [vmem:[%s1153_s3 + $0x38] sm:$0xff] %v796_v54 }

// kernel: _lambda_.59
= control target key start
LH: loop header
LB: loop body
LE: loop exit
PB: predicated region body
PF: predicated region fallthrough
CT: control target
= control target key end

     0   :  { %v674_v1 = vmov 0   ;;  %v421_v35 = vlaneseq  ;;  %s889_s1 = inlined_call_operand.vmem [shape: bf16[128,512], index: 1, kind: input, shape index: {}]   ;;  %s890_s0 = inlined_call_operand.vmem [shape: bf16[32,128], index: 0, kind: input, shape index: {}]   ;;  %s891_s2 = inlined_call_operand.vmem [shape: f32[1,512], index: 2, kind: input, shape index: {}]   ;;  %s892_s3 = inlined_call_operand.vmem [shape: bf16[32,512], index: 3, kind: input, shape index: {}]   ;;  %s893_s4 = inlined_call_operand.vmem [shape: bf16[32,512], index: 4, kind: output, shape index: {}]  }
   0x1   :  { %v624_v0 = vld [vmem:[%s889_s1 + $0x4] ss:$16 sps:$4 sm:$0xff]   ;;  %294 = vmatprep.mubr.bf16.mxu0 %v674_v1  ;;  %347 = vmatprep.mubr.bf16.mxu1 %v674_v1  ;;  %v626_v2 = vld [vmem:[%s889_s1 + $0xc] ss:$16 sps:$4 sm:$0xff]   ;;  %v628_v3 = vld [vmem:[%s889_s1] ss:$16 sps:$4 sm:$0xff]  }
   0x2   :  { %262 = vmatprep.subr.bf16.mxu0 %v624_v0  ;;  %v629_v4 = vld [vmem:[%s889_s1 + $0x8] ss:$16 sps:$4 sm:$0xff]   ;;  %315 = vmatprep.subr.bf16.mxu1 %v626_v2  ;;  %v630_v5 = vld [vmem:[%s889_s1 + $0x24] ss:$16 sps:$4 sm:$0xff]   ;;  %v632_v6 = vld [vmem:[%s889_s1 + $0x2c] ss:$16 sps:$4 sm:$0xff]  }
   0x3   :  { %263 = vmatpush1.bf16.msra.mxu0 %v628_v3  ;;  %316 = vmatpush1.bf16.msra.mxu1 %v629_v4  ;;  %v634_v7 = vld [vmem:[%s889_s1 + $0x20] ss:$16 sps:$4 sm:$0xff]   ;;  %v635_v8 = vld [vmem:[%s889_s1 + $0x28] ss:$16 sps:$4 sm:$0xff]   ;;  %v636_v9 = vld [vmem:[%s889_s1 + $0x44] ss:$16 sps:$4 sm:$0xff]  }
   0x4   :  { %264 = vmatprep.subr.bf16.mxu0 %v630_v5  ;;  %317 = vmatprep.subr.bf16.mxu1 %v632_v6  ;;  %v638_v10 = vld [vmem:[%s889_s1 + $0x4c] ss:$16 sps:$4 sm:$0xff]   ;;  %v640_v11 = vld [vmem:[%s889_s1 + $0x40] ss:$16 sps:$4 sm:$0xff]   ;;  %v641_v12 = vld [vmem:[%s889_s1 + $0x48] ss:$16 sps:$4 sm:$0xff]  }
   0x5   :  { %v642_v13 = vld [vmem:[%s889_s1 + $0x64] ss:$16 sps:$4 sm:$0xff]   ;;  %v644_v14 = vld [vmem:[%s889_s1 + $0x6c] ss:$16 sps:$4 sm:$0xff]   ;;  %v646_v15 = vld [vmem:[%s889_s1 + $0x60] ss:$16 sps:$4 sm:$0xff]  }
   0x6   :  { %v647_v16 = vld [vmem:[%s889_s1 + $0x68] ss:$16 sps:$4 sm:$0xff]   ;;  %v648_v17 = vld [vmem:[%s889_s1 + $0x84] ss:$16 sps:$4 sm:$0xff]   ;;  %v650_v18 = vld [vmem:[%s889_s1 + $0x8c] ss:$16 sps:$4 sm:$0xff]  }
   0x7   :  { %265 = vmatpush1.bf16.msra.mxu0 %v634_v7  ;;  %318 = vmatpush1.bf16.msra.mxu1 %v635_v8  ;;  %v652_v19 = vld [vmem:[%s889_s1 + $0x80] ss:$16 sps:$4 sm:$0xff]   ;;  %v653_v20 = vld [vmem:[%s889_s1 + $0x88] ss:$16 sps:$4 sm:$0xff]   ;;  %v654_v21 = vld [vmem:[%s889_s1 + $0xa4] ss:$16 sps:$4 sm:$0xff]  }
   0x8   :  { %266 = vmatprep.subr.bf16.mxu0 %v636_v9  ;;  %319 = vmatprep.subr.bf16.mxu1 %v638_v10  ;;  %v656_v22 = vld [vmem:[%s889_s1 + $0xac] ss:$16 sps:$4 sm:$0xff]   ;;  %v658_v23 = vld [vmem:[%s889_s1 + $0xa0] ss:$16 sps:$4 sm:$0xff]   ;;  %v659_v24 = vld [vmem:[%s889_s1 + $0xa8] ss:$16 sps:$4 sm:$0xff]  }
   0x9   :  { %v660_v25 = vld [vmem:[%s889_s1 + $0xc4] ss:$16 sps:$4 sm:$0xff]   ;;  %v662_v26 = vld [vmem:[%s889_s1 + $0xcc] ss:$16 sps:$4 sm:$0xff]   ;;  %v664_v27 = vld [vmem:[%s889_s1 + $0xc0] ss:$16 sps:$4 sm:$0xff]  }
   0xa   :  { %v665_v28 = vld [vmem:[%s889_s1 + $0xc8] ss:$16 sps:$4 sm:$0xff]   ;;  %v666_v29 = vld [vmem:[%s889_s1 + $0xe4] ss:$16 sps:$4 sm:$0xff]   ;;  %v668_v30 = vld [vmem:[%s889_s1 + $0xec] ss:$16 sps:$4 sm:$0xff]  }
   0xb   :  { %267 = vmatpush1.bf16.msra.mxu0 %v640_v11  ;;  %320 = vmatpush1.bf16.msra.mxu1 %v641_v12  ;;  %v670_v31 = vld [vmem:[%s889_s1 + $0xe0] ss:$16 sps:$4 sm:$0xff]   ;;  %v671_v32 = vld [vmem:[%s889_s1 + $0xe8] ss:$16 sps:$4 sm:$0xff]   ;;  %v422_v36 = vshrl.u32 %v421_v35, 7 }
   0xc   :  { %268 = vmatprep.subr.bf16.mxu0 %v642_v13  ;;  %321 = vmatprep.subr.bf16.mxu1 %v644_v14  ;;  %v672_v33 = vld [vmem:[%s890_s0] sm:$0xff]   ;;  %v673_v34 = vld [vmem:[%s890_s0 + $0x8] sm:$0xff]   ;;  %v459_v46 = vld [vmem:[%s892_s3 + $0x10] sm:$0xff] }
   0xd   :  { %v423_v37 = vsub.s32 0, %v422_v36  ;;  %v431_v38 = vsub.s32 2, %v422_v36  ;;  %v419_v39 = vld [vmem:[%s891_s2] sm:$0xf]  ;;  %v427_v40 = vsub.s32 1, %v422_v36  ;;  %v435_v41 = vsub.s32 3, %v422_v36 }
   0xe   :  { %v457_v42 = vld [vmem:[%s892_s3] sm:$0xff]  ;;  %v458_v43 = vld [vmem:[%s892_s3 + $0x8] sm:$0xff]  ;;  %v460_v47 = vld [vmem:[%s892_s3 + $0x18] sm:$0xff]  ;;  %v469_v58 = vunpack.c.l.bf16 %v459_v46  ;;  %v470_v60 = vunpack.c.h.bf16 %v459_v46 }
   0xf   :  { %269 = vmatpush1.bf16.msra.mxu0 %v646_v15  ;;  %322 = vmatpush1.bf16.msra.mxu1 %v647_v16  ;;  %v815_v44 = vrot.slane %v419_v39, %v423_v37  ;;  %v817_v45 = vrot.slane %v419_v39, %v431_v38  ;;  %v825_v48 = vrot.slane %v419_v39, %v427_v40  ;;  %v832_v50 = vld [vmem:[%s892_s3 + $0x20] sm:$0xff]  ;;  %v837_v51 = vld [vmem:[%s892_s3 + $0x28] sm:$0xff]  ;;  %v465_v52 = vunpack.c.l.bf16 %v457_v42 }
  0x10   :  { %270 = vmatprep.subr.bf16.mxu0 %v648_v17  ;;  %323 = vmatprep.subr.bf16.mxu1 %v650_v18  ;;  %v827_v49 = vrot.slane %v419_v39, %v435_v41  ;;  %v467_v53 = vunpack.c.l.bf16 %v458_v43  ;;  %v466_v54 = vunpack.c.h.bf16 %v457_v42  ;;  %v468_v55 = vunpack.c.h.bf16 %v458_v43 }
  0x11   :  { %v471_v59 = vunpack.c.l.bf16 %v460_v47  ;;  %v472_v61 = vunpack.c.h.bf16 %v460_v47  ;;  %v473_v2 = vunpack.c.l.bf16 %v832_v50  ;;  %v475_v3 = vunpack.c.l.bf16 %v837_v51 }
  0x12   :  { %v474_v8 = vunpack.c.h.bf16 %v832_v50  ;;  %v476_v9 = vunpack.c.h.bf16 %v837_v51 }
  0x13   :  { %271 = vmatpush1.bf16.msra.mxu0 %v652_v19  ;;  %324 = vmatpush1.bf16.msra.mxu1 %v653_v20  ;;  %v463_v20 = vld [vmem:[%s892_s3 + $0x30] sm:$0xff] }
  0x14   :  { %272 = vmatprep.subr.bf16.mxu0 %v654_v21  ;;  %325 = vmatprep.subr.bf16.mxu1 %v656_v22  ;;  %v464_v21 = vld [vmem:[%s892_s3 + $0x38] sm:$0xff]  ;;  %v478_v46 = vunpack.c.h.bf16 %v463_v20 }
  0x15   :  { %v480_v47 = vunpack.c.h.bf16 %v464_v21 }
  0x17   :  { %273 = vmatpush1.bf16.msra.mxu0 %v658_v23  ;;  %326 = vmatpush1.bf16.msra.mxu1 %v659_v24 }
  0x18   :  { %274 = vmatprep.subr.bf16.mxu0 %v660_v25  ;;  %327 = vmatprep.subr.bf16.mxu1 %v662_v26 }
  0x1b   :  { %275 = vmatpush1.bf16.msra.mxu0 %v664_v27  ;;  %328 = vmatpush1.bf16.msra.mxu1 %v665_v28 }
  0x1c   :  { %276 = vmatprep.subr.bf16.mxu0 %v666_v29  ;;  %329 = vmatprep.subr.bf16.mxu1 %v668_v30 }
  0x1f   :  { %277 = vmatpush1.bf16.msra.mxu0 %v670_v31  ;;  %330 = vmatpush1.bf16.msra.mxu1 %v671_v32  ;;  %v477_v32 = vunpack.c.l.bf16 %v463_v20 }
  0x22   :  { %295 = vmatmul.mubr.bf16.vlgmr.msra.gmra.mrb[0].mxu0 %v672_v33  ;;  %348 = vmatmul.mubr.bf16.vlgmr.msra.gmra.mrb[0].mxu1 %v672_v33  ;;  %v479_v33 = vunpack.c.l.bf16 %v464_v21 }
  0x23   :  { %304 = vmatprep.mubr.bf16.mxu0 %v674_v1  ;;  %357 = vmatprep.mubr.bf16.mxu1 %v674_v1 }
  0x2a   :  { %305 = vmatmul.mubr.bf16.gmra.mrb[4].mxu0 %v673_v34  ;;  %358 = vmatmul.mubr.bf16.gmra.mrb[4].mxu1 %v673_v34 }
  0xf5   :  { %v296_v56 = vpop.f32.mrb[0].mxu0  ;;  %v349_v57 = vpop.f32.mrb[0].mxu1 }
  0xf6   :  { %v441_v62 = vadd.f32 %v815_v44, %v296_v56  ;;  %v443_v63 = vadd.f32 %v817_v45, %v349_v57  ;;  %v298_v0 = vpop.f32.mrb[1].mxu0  ;;  %v351_v1 = vpop.f32.mrb[1].mxu1 }
  0xf7   :  { %v442_v4 = vadd.f32 %v825_v48, %v298_v0  ;;  %v444_v5 = vadd.f32 %v827_v49, %v351_v1  ;;  %v300_v6 = vpop.f32.mrb[2].mxu0  ;;  %v353_v7 = vpop.f32.mrb[2].mxu1 }
  0xf8   :  { %v481_v10 = vadd.f32 %v465_v52, %v441_v62  ;;  %v483_v11 = vadd.f32 %v467_v53, %v443_v63  ;;  %v445_v12 = vadd.f32 %v815_v44, %v300_v6  ;;  %v447_v13 = vadd.f32 %v817_v45, %v353_v7  ;;  %v302_v14 = vpop.f32.mrb[3].mxu0  ;;  %v355_v15 = vpop.f32.mrb[3].mxu1 }
  0xf9   :  { %v482_v16 = vadd.f32 %v466_v54, %v442_v4  ;;  %v484_v17 = vadd.f32 %v468_v55, %v444_v5  ;;  %v446_v18 = vadd.f32 %v825_v48, %v302_v14  ;;  %v448_v19 = vadd.f32 %v827_v49, %v355_v15 }
  0xfa   :  { %v497_v22 = vmax.f32 %v481_v10, 0.0  ;;  %v499_v23 = vmax.f32 %v483_v11, 0.0  ;;  %v485_v24 = vadd.f32 %v469_v58, %v445_v12  ;;  %v487_v25 = vadd.f32 %v471_v59, %v447_v13 }
  0xfb   :  { %v498_v26 = vmax.f32 %v482_v16, 0.0  ;;  %v500_v27 = vmax.f32 %v484_v17, 0.0  ;;  %v486_v28 = vadd.f32 %v470_v60, %v446_v18  ;;  %v488_v29 = vadd.f32 %v472_v61, %v448_v19 }
  0xfc   :  { %v501_v30 = vmax.f32 %v485_v24, 0.0  ;;  %v503_v31 = vmax.f32 %v487_v25, 0.0 }
  0xfd   :  { %v615_v34 = vpack.c.bf16 %v498_v26, %v497_v22  ;;  %v616_v35 = vpack.c.bf16 %v500_v27, %v499_v23  ;;  %v502_v36 = vmax.f32 %v486_v28, 0.0  ;;  %v504_v37 = vmax.f32 %v488_v29, 0.0  ;;  %v306_v38 = vpop.f32.mrb[4].mxu0  ;;  %v359_v39 = vpop.f32.mrb[4].mxu1 }
  0xfe   :  { %v449_v40 = vadd.f32 %v815_v44, %v306_v38  ;;  %v451_v41 = vadd.f32 %v817_v45, %v359_v39  ;;  %v308_v42 = vpop.f32.mrb[5].mxu0  ;;  %v361_v43 = vpop.f32.mrb[5].mxu1 }
  0xff   :  { %561 = vst [vmem:[%s893_s4] sm:$0xff] %v615_v34  ;;  %562 = vst [vmem:[%s893_s4 + $0x8] sm:$0xff] %v616_v35  ;;  %v617_v50 = vpack.c.bf16 %v502_v36, %v501_v30  ;;  %v618_v51 = vpack.c.bf16 %v504_v37, %v503_v31  ;;  %v450_v52 = vadd.f32 %v825_v48, %v308_v42  ;;  %v310_v54 = vpop.f32.mrb[6].mxu0  ;;  %v363_v55 = vpop.f32.mrb[6].mxu1 }
 0x100   :  { %v452_v53 = vadd.f32 %v827_v49, %v361_v43  ;;  %v489_v56 = vadd.f32 %v473_v2, %v449_v40  ;;  %v491_v57 = vadd.f32 %v475_v3, %v451_v41  ;;  %v453_v58 = vadd.f32 %v815_v44, %v310_v54  ;;  %v312_v60 = vpop.f32.mrb[7].mxu0  ;;  %v365_v61 = vpop.f32.mrb[7].mxu1 }
 0x101   :  { %v455_v59 = vadd.f32 %v817_v45, %v363_v55  ;;  %563 = vst [vmem:[%s893_s4 + $0x10] sm:$0xff] %v617_v50  ;;  %564 = vst [vmem:[%s893_s4 + $0x18] sm:$0xff] %v618_v51  ;;  %v490_v62 = vadd.f32 %v474_v8, %v450_v52  ;;  %v454_v0 = vadd.f32 %v825_v48, %v312_v60 }
 0x102   :  { %v492_v63 = vadd.f32 %v476_v9, %v452_v53  ;;  %v456_v1 = vadd.f32 %v827_v49, %v365_v61  ;;  %v505_v2 = vmax.f32 %v489_v56, 0.0  ;;  %v507_v44 = vmax.f32 %v491_v57, 0.0 }
 0x103   :  { %v493_v3 = vadd.f32 %v477_v32, %v453_v58  ;;  %v495_v45 = vadd.f32 %v479_v33, %v455_v59  ;;  %v506_v4 = vmax.f32 %v490_v62, 0.0  ;;  %v494_v6 = vadd.f32 %v478_v46, %v454_v0 }
 0x104   :  { %v508_v5 = vmax.f32 %v492_v63, 0.0  ;;  %v496_v7 = vadd.f32 %v480_v47, %v456_v1 }
 0x105   :  { %v509_v10 = vmax.f32 %v493_v3, 0.0  ;;  %v511_v11 = vmax.f32 %v495_v45, 0.0  ;;  %v619_v12 = vpack.c.bf16 %v506_v4, %v505_v2  ;;  %v510_v14 = vmax.f32 %v494_v6, 0.0 }
 0x106   :  { %v620_v13 = vpack.c.bf16 %v508_v5, %v507_v44  ;;  %v512_v15 = vmax.f32 %v496_v7, 0.0 }
 0x107   :  { %565 = vst [vmem:[%s893_s4 + $0x20] sm:$0xff] %v619_v12  ;;  %v621_v48 = vpack.c.bf16 %v510_v14, %v509_v10 }
 0x108   :  { %566 = vst [vmem:[%s893_s4 + $0x28] sm:$0xff] %v620_v13  ;;  %v622_v49 = vpack.c.bf16 %v512_v15, %v511_v11 }
 0x109   :  { %567 = vst [vmem:[%s893_s4 + $0x30] sm:$0xff] %v621_v48 }
 0x10a   :  { %568 = vst [vmem:[%s893_s4 + $0x38] sm:$0xff] %v622_v49 }

// kernel: _lambda_.60
= control target key start
LH: loop header
LB: loop body
LE: loop exit
PB: predicated region body
PF: predicated region fallthrough
CT: control target
= control target key end

     0   :  { %s792_s1 = inlined_call_operand.vmem [shape: bf16[512,128], index: 1, kind: input, shape index: {}]   ;;  %s793_s0 = inlined_call_operand.vmem [shape: bf16[32,512], index: 0, kind: input, shape index: {}]   ;;  %s794_s2 = inlined_call_operand.vmem [shape: f32[1,128], index: 2, kind: input, shape index: {}]   ;;  %s795_s3 = inlined_call_operand.vmem [shape: bf16[32,128], index: 3, kind: output, shape index: {}]  }
   0x1   :  { %v599_v0 = vld [vmem:[%s792_s1 + $0x40] sm:$0xff]   ;;  %v603_v4 = vld [vmem:[%s792_s1 + $0x48] sm:$0xff]   ;;  %v607_v8 = vld [vmem:[%s792_s1 + $0x50] sm:$0xff]  }
   0x2   :  { %v600_v1 = vld [vmem:[%s792_s1 + $0xc0] sm:$0xff]   ;;  %543 = vmatprep.subr.bf16.mxu0 %v599_v0  ;;  %v604_v5 = vld [vmem:[%s792_s1 + $0xc8] sm:$0xff]   ;;  %v608_v9 = vld [vmem:[%s792_s1 + $0xd0] sm:$0xff]  }
   0x3   :  { %v601_v2 = vld [vmem:[%s792_s1] sm:$0xff]   ;;  %571 = vmatprep.subr.bf16.mxu1 %v600_v1  ;;  %v605_v6 = vld [vmem:[%s792_s1 + $0x8] sm:$0xff]   ;;  %v609_v10 = vld [vmem:[%s792_s1 + $0x10] sm:$0xff]  }
   0x4   :  { %v602_v3 = vld [vmem:[%s792_s1 + $0x80] sm:$0xff]   ;;  %544 = vmatpush3.bf16.msra.mxu0 %v601_v2  ;;  %v606_v7 = vld [vmem:[%s792_s1 + $0x88] sm:$0xff]   ;;  %v610_v11 = vld [vmem:[%s792_s1 + $0x90] sm:$0xff]  }
   0x5   :  { %572 = vmatpush3.bf16.msra.mxu1 %v602_v3  ;;  %545 = vmatprep.subr.bf16.mxu0 %v603_v4  ;;  %v611_v12 = vld [vmem:[%s792_s1 + $0x58] sm:$0xff]   ;;  %v615_v16 = vld [vmem:[%s792_s1 + $0x60] sm:$0xff]   ;;  %v619_v20 = vld [vmem:[%s792_s1 + $0x68] sm:$0xff]  }
   0x6   :  { %573 = vmatprep.subr.bf16.mxu1 %v604_v5  ;;  %v612_v13 = vld [vmem:[%s792_s1 + $0xd8] sm:$0xff]   ;;  %v616_v17 = vld [vmem:[%s792_s1 + $0xe0] sm:$0xff]   ;;  %v620_v21 = vld [vmem:[%s792_s1 + $0xe8] sm:$0xff]  }
   0x7   :  { %v613_v14 = vld [vmem:[%s792_s1 + $0x18] sm:$0xff]   ;;  %v617_v18 = vld [vmem:[%s792_s1 + $0x20] sm:$0xff]   ;;  %v621_v22 = vld [vmem:[%s792_s1 + $0x28] sm:$0xff]  }
   0x8   :  { %546 = vmatpush3.bf16.msra.mxu0 %v605_v6  ;;  %v614_v15 = vld [vmem:[%s792_s1 + $0x98] sm:$0xff]   ;;  %v618_v19 = vld [vmem:[%s792_s1 + $0xa0] sm:$0xff]   ;;  %v622_v23 = vld [vmem:[%s792_s1 + $0xa8] sm:$0xff]  }
   0x9   :  { %574 = vmatpush3.bf16.msra.mxu1 %v606_v7  ;;  %547 = vmatprep.subr.bf16.mxu0 %v607_v8  ;;  %v623_v24 = vld [vmem:[%s792_s1 + $0x70] sm:$0xff]   ;;  %v627_v28 = vld [vmem:[%s792_s1 + $0x78] sm:$0xff]   ;;  %v523_v49 = vld [vmem:[%s794_s2] ss:$0 sm:$0xff] }
   0xa   :  { %575 = vmatprep.subr.bf16.mxu1 %v608_v9  ;;  %v624_v25 = vld [vmem:[%s792_s1 + $0xf0] sm:$0xff]   ;;  %v628_v29 = vld [vmem:[%s792_s1 + $0xf8] sm:$0xff]  }
   0xb   :  { %v625_v26 = vld [vmem:[%s792_s1 + $0x30] sm:$0xff]   ;;  %v629_v30 = vld [vmem:[%s792_s1 + $0x38] sm:$0xff]  }
   0xc   :  { %548 = vmatpush3.bf16.msra.mxu0 %v609_v10  ;;  %v626_v27 = vld [vmem:[%s792_s1 + $0xb0] sm:$0xff]   ;;  %v630_v31 = vld [vmem:[%s792_s1 + $0xb8] sm:$0xff]  }
   0xd   :  { %576 = vmatpush3.bf16.msra.mxu1 %v610_v11  ;;  %549 = vmatprep.subr.bf16.mxu0 %v611_v12  ;;  %v631_v32 = vld [vmem:[%s793_s0] ss:$16 sps:$4 sm:$0xff]   ;;  %v633_v33 = vld [vmem:[%s793_s0 + $0x4] ss:$16 sps:$4 sm:$0xff]   ;;  %v634_v34 = vld [vmem:[%s793_s0 + $0x8] ss:$16 sps:$4 sm:$0xff]  }
   0xe   :  { %577 = vmatprep.subr.bf16.mxu1 %v612_v13  ;;  %v636_v35 = vld [vmem:[%s793_s0 + $0xc] ss:$16 sps:$4 sm:$0xff]   ;;  %363 = vmatprep.mubr.bf16.mxu0 %v633_v33  ;;  %v637_v36 = vld [vmem:[%s793_s0 + $0x24] ss:$16 sps:$4 sm:$0xff]   ;;  %v641_v38 = vld [vmem:[%s793_s0 + $0x20] ss:$16 sps:$4 sm:$0xff]  }
   0xf   :  { %412 = vmatprep.mubr.bf16.mxu1 %v636_v35  ;;  %v639_v37 = vld [vmem:[%s793_s0 + $0x2c] ss:$16 sps:$4 sm:$0xff]   ;;  %v642_v39 = vld [vmem:[%s793_s0 + $0x28] ss:$16 sps:$4 sm:$0xff]  }
  0x10   :  { %550 = vmatpush3.bf16.msra.mxu0 %v613_v14 }
  0x11   :  { %578 = vmatpush3.bf16.msra.mxu1 %v614_v15  ;;  %551 = vmatprep.subr.bf16.mxu0 %v615_v16 }
  0x12   :  { %579 = vmatprep.subr.bf16.mxu1 %v616_v17 }
  0x14   :  { %552 = vmatpush3.bf16.msra.mxu0 %v617_v18 }
  0x15   :  { %580 = vmatpush3.bf16.msra.mxu1 %v618_v19  ;;  %553 = vmatprep.subr.bf16.mxu0 %v619_v20 }
  0x16   :  { %581 = vmatprep.subr.bf16.mxu1 %v620_v21 }
  0x18   :  { %554 = vmatpush3.bf16.msra.mxu0 %v621_v22 }
  0x19   :  { %582 = vmatpush3.bf16.msra.mxu1 %v622_v23  ;;  %555 = vmatprep.subr.bf16.mxu0 %v623_v24 }
  0x1a   :  { %583 = vmatprep.subr.bf16.mxu1 %v624_v25 }
  0x1c   :  { %556 = vmatpush3.bf16.msra.mxu0 %v625_v26 }
  0x1d   :  { %584 = vmatpush3.bf16.msra.mxu1 %v626_v27  ;;  %557 = vmatprep.subr.bf16.mxu0 %v627_v28 }
  0x1e   :  { %585 = vmatprep.subr.bf16.mxu1 %v628_v29 }
  0x20   :  { %558 = vmatpush3.bf16.msra.mxu0 %v629_v30 }
  0x21   :  { %586 = vmatpush3.bf16.msra.mxu1 %v630_v31 }
  0x23   :  { %364 = vmatmul.mubr.bf16.vlgmr.msra.gmra.mrb[0].mxu0 %v631_v32 }
  0x24   :  { %413 = vmatmul.mubr.bf16.vlgmr.msra.gmra.mrb[0].mxu1 %v634_v34  ;;  %371 = vmatprep.mubr.bf16.mxu0 %v637_v36 }
  0x25   :  { %420 = vmatprep.mubr.bf16.mxu1 %v639_v37 }
  0x2b   :  { %372 = vmatmul.mubr.bf16.gmra.mrb[4].mxu0 %v641_v38 }
  0x2c   :  { %421 = vmatmul.mubr.bf16.gmra.mrb[4].mxu1 %v642_v39 }
  0xf6   :  { %v559_v40 = vpop.f32.mrb[0].mxu0 }
  0xf7   :  { %v587_v41 = vpop.f32.mrb[0].mxu1  ;;  %v560_v42 = vpop.f32.mrb[1].mxu0 }
  0xf8   :  { %v561_v43 = vadd.f32 %v560_v42, %v559_v40  ;;  %v588_v44 = vpop.f32.mrb[1].mxu1  ;;  %v562_v45 = vpop.f32.mrb[2].mxu0 }
  0xf9   :  { %v589_v46 = vadd.f32 %v588_v44, %v587_v41  ;;  %v590_v47 = vpop.f32.mrb[2].mxu1  ;;  %v563_v48 = vpop.f32.mrb[3].mxu0 }
  0xfa   :  { %v564_v50 = vadd.f32 %v563_v48, %v562_v45  ;;  %v591_v51 = vpop.f32.mrb[3].mxu1 }
  0xfb   :  { %v415_v52 = vadd.f32 %v589_v46, %v561_v43  ;;  %v592_v53 = vadd.f32 %v591_v51, %v590_v47 }
  0xfd   :  { %v451_v54 = vadd.f32 %v523_v49, %v415_v52  ;;  %v418_v55 = vadd.f32 %v592_v53, %v564_v50 }
  0xfe   :  { %v565_v56 = vpop.f32.mrb[4].mxu0 }
  0xff   :  { %v452_v57 = vadd.f32 %v523_v49, %v418_v55  ;;  %v593_v58 = vpop.f32.mrb[4].mxu1  ;;  %v566_v59 = vpop.f32.mrb[5].mxu0  ;;  %v455_v63 = vmax.f32 %v451_v54, 0.0 }
 0x100   :  { %v567_v60 = vadd.f32 %v566_v59, %v565_v56  ;;  %v594_v61 = vpop.f32.mrb[5].mxu1  ;;  %v568_v62 = vpop.f32.mrb[6].mxu0 }
 0x101   :  { %v456_v0 = vmax.f32 %v452_v57, 0.0  ;;  %v595_v1 = vadd.f32 %v594_v61, %v593_v58  ;;  %v596_v2 = vpop.f32.mrb[6].mxu1  ;;  %v569_v3 = vpop.f32.mrb[7].mxu0 }
 0x102   :  { %v570_v4 = vadd.f32 %v569_v3, %v568_v62  ;;  %v597_v5 = vpop.f32.mrb[7].mxu1 }
 0x103   :  { %v535_v6 = vpack.c.bf16 %v456_v0, %v455_v63  ;;  %v423_v7 = vadd.f32 %v595_v1, %v567_v60  ;;  %v598_v8 = vadd.f32 %v597_v5, %v596_v2 }
 0x105   :  { %536 = vst [vmem:[%s795_s3] sm:$0xff] %v535_v6   ;;  %v453_v9 = vadd.f32 %v523_v49, %v423_v7  ;;  %v426_v10 = vadd.f32 %v598_v8, %v570_v4 }
 0x107   :  { %v454_v11 = vadd.f32 %v523_v49, %v426_v10  ;;  %v457_v12 = vmax.f32 %v453_v9, 0.0 }
 0x109   :  { %v458_v13 = vmax.f32 %v454_v11, 0.0 }
 0x10b   :  { %v540_v14 = vpack.c.bf16 %v458_v13, %v457_v12 }
 0x10d   :  { %542 = vst [vmem:[%s795_s3 + $0x8] sm:$0xff] %v540_v14  }

// kernel: _lambda_.70
= control target key start
LH: loop header
LB: loop body
LE: loop exit
PB: predicated region body
PF: predicated region fallthrough
CT: control target
= control target key end

     0   :  { %s1106_s1 = inlined_call_operand.vmem [shape: bf16[512,256], index: 1, kind: input, shape index: {}]   ;;  %s1107_s0 = inlined_call_operand.vmem [shape: bf16[32,512], index: 0, kind: input, shape index: {}]   ;;  %s1108_s2 = inlined_call_operand.vmem [shape: f32[1,256], index: 2, kind: input, shape index: {}]   ;;  %s1109_s3 = inlined_call_operand.vmem [shape: bf16[32,256], index: 3, kind: output, shape index: {}]  }
   0x1   :  { %v747_v0 = vld [vmem:[%s1106_s1 + $0x4] ss:$8 sps:$4 sm:$0xff]   ;;  %v751_v2 = vld [vmem:[%s1106_s1] ss:$8 sps:$4 sm:$0xff]   ;;  %v753_v4 = vld [vmem:[%s1106_s1 + $0x14] ss:$8 sps:$4 sm:$0xff]  }
   0x2   :  { %v749_v1 = vld [vmem:[%s1106_s1 + $0x104] ss:$8 sps:$4 sm:$0xff]   ;;  %466 = vmatprep.subr.bf16.mxu1 %v747_v0  ;;  %v752_v3 = vld [vmem:[%s1106_s1 + $0x100] ss:$8 sps:$4 sm:$0xff]   ;;  %v755_v5 = vld [vmem:[%s1106_s1 + $0x114] ss:$8 sps:$4 sm:$0xff]  }
   0x3   :  { %519 = vmatprep.subr.bf16.mxu0 %v749_v1  ;;  %467 = vmatpush1.bf16.msra.mxu1 %v751_v2  ;;  %v757_v6 = vld [vmem:[%s1106_s1 + $0x10] ss:$8 sps:$4 sm:$0xff]   ;;  %v759_v8 = vld [vmem:[%s1106_s1 + $0x24] ss:$8 sps:$4 sm:$0xff]   ;;  %v763_v10 = vld [vmem:[%s1106_s1 + $0x20] ss:$8 sps:$4 sm:$0xff]  }
   0x4   :  { %520 = vmatpush1.bf16.msra.mxu0 %v752_v3  ;;  %468 = vmatprep.subr.bf16.mxu1 %v753_v4  ;;  %v758_v7 = vld [vmem:[%s1106_s1 + $0x110] ss:$8 sps:$4 sm:$0xff]   ;;  %v761_v9 = vld [vmem:[%s1106_s1 + $0x124] ss:$8 sps:$4 sm:$0xff]   ;;  %v764_v11 = vld [vmem:[%s1106_s1 + $0x120] ss:$8 sps:$4 sm:$0xff]  }
   0x5   :  { %521 = vmatprep.subr.bf16.mxu0 %v755_v5  ;;  %v765_v12 = vld [vmem:[%s1106_s1 + $0x34] ss:$8 sps:$4 sm:$0xff]   ;;  %v769_v14 = vld [vmem:[%s1106_s1 + $0x30] ss:$8 sps:$4 sm:$0xff]   ;;  %v771_v16 = vld [vmem:[%s1106_s1 + $0x44] ss:$8 sps:$4 sm:$0xff]  }
   0x6   :  { %v767_v13 = vld [vmem:[%s1106_s1 + $0x134] ss:$8 sps:$4 sm:$0xff]   ;;  %v770_v15 = vld [vmem:[%s1106_s1 + $0x130] ss:$8 sps:$4 sm:$0xff]   ;;  %v773_v17 = vld [vmem:[%s1106_s1 + $0x144] ss:$8 sps:$4 sm:$0xff]  }
   0x7   :  { %469 = vmatpush1.bf16.msra.mxu1 %v757_v6  ;;  %v775_v18 = vld [vmem:[%s1106_s1 + $0x40] ss:$8 sps:$4 sm:$0xff]   ;;  %v777_v20 = vld [vmem:[%s1106_s1 + $0x54] ss:$8 sps:$4 sm:$0xff]   ;;  %v781_v22 = vld [vmem:[%s1106_s1 + $0x50] ss:$8 sps:$4 sm:$0xff]  }
   0x8   :  { %522 = vmatpush1.bf16.msra.mxu0 %v758_v7  ;;  %470 = vmatprep.subr.bf16.mxu1 %v759_v8  ;;  %v776_v19 = vld [vmem:[%s1106_s1 + $0x140] ss:$8 sps:$4 sm:$0xff]   ;;  %v779_v21 = vld [vmem:[%s1106_s1 + $0x154] ss:$8 sps:$4 sm:$0xff]   ;;  %v782_v23 = vld [vmem:[%s1106_s1 + $0x150] ss:$8 sps:$4 sm:$0xff]   ;;  %v601_v8 = vlaneseq }
   0x9   :  { %523 = vmatprep.subr.bf16.mxu0 %v761_v9  ;;  %v783_v24 = vld [vmem:[%s1106_s1 + $0x64] ss:$8 sps:$4 sm:$0xff]   ;;  %v787_v26 = vld [vmem:[%s1106_s1 + $0x60] ss:$8 sps:$4 sm:$0xff]   ;;  %v789_v28 = vld [vmem:[%s1106_s1 + $0x74] ss:$8 sps:$4 sm:$0xff]  }
   0xa   :  { %v785_v25 = vld [vmem:[%s1106_s1 + $0x164] ss:$8 sps:$4 sm:$0xff]   ;;  %v788_v27 = vld [vmem:[%s1106_s1 + $0x160] ss:$8 sps:$4 sm:$0xff]   ;;  %v791_v29 = vld [vmem:[%s1106_s1 + $0x174] ss:$8 sps:$4 sm:$0xff]  }
   0xb   :  { %471 = vmatpush1.bf16.msra.mxu1 %v763_v10  ;;  %v793_v30 = vld [vmem:[%s1106_s1 + $0x70] ss:$8 sps:$4 sm:$0xff]   ;;  %v795_v32 = vld [vmem:[%s1106_s1 + $0x84] ss:$8 sps:$4 sm:$0xff]   ;;  %v799_v34 = vld [vmem:[%s1106_s1 + $0x80] ss:$8 sps:$4 sm:$0xff]  }
   0xc   :  { %524 = vmatpush1.bf16.msra.mxu0 %v764_v11  ;;  %472 = vmatprep.subr.bf16.mxu1 %v765_v12  ;;  %v794_v31 = vld [vmem:[%s1106_s1 + $0x170] ss:$8 sps:$4 sm:$0xff]   ;;  %v797_v33 = vld [vmem:[%s1106_s1 + $0x184] ss:$8 sps:$4 sm:$0xff]   ;;  %v800_v35 = vld [vmem:[%s1106_s1 + $0x180] ss:$8 sps:$4 sm:$0xff]  }
   0xd   :  { %525 = vmatprep.subr.bf16.mxu0 %v767_v13  ;;  %v801_v36 = vld [vmem:[%s1106_s1 + $0x94] ss:$8 sps:$4 sm:$0xff]   ;;  %v805_v38 = vld [vmem:[%s1106_s1 + $0x90] ss:$8 sps:$4 sm:$0xff]   ;;  %v807_v40 = vld [vmem:[%s1106_s1 + $0xa4] ss:$8 sps:$4 sm:$0xff]  }
   0xe   :  { %v803_v37 = vld [vmem:[%s1106_s1 + $0x194] ss:$8 sps:$4 sm:$0xff]   ;;  %v806_v39 = vld [vmem:[%s1106_s1 + $0x190] ss:$8 sps:$4 sm:$0xff]   ;;  %v809_v41 = vld [vmem:[%s1106_s1 + $0x1a4] ss:$8 sps:$4 sm:$0xff]  }
   0xf   :  { %473 = vmatpush1.bf16.msra.mxu1 %v769_v14  ;;  %v811_v42 = vld [vmem:[%s1106_s1 + $0xa0] ss:$8 sps:$4 sm:$0xff]   ;;  %v813_v44 = vld [vmem:[%s1106_s1 + $0xb4] ss:$8 sps:$4 sm:$0xff]   ;;  %v817_v46 = vld [vmem:[%s1106_s1 + $0xb0] ss:$8 sps:$4 sm:$0xff]  }
  0x10   :  { %526 = vmatpush1.bf16.msra.mxu0 %v770_v15  ;;  %474 = vmatprep.subr.bf16.mxu1 %v771_v16  ;;  %v812_v43 = vld [vmem:[%s1106_s1 + $0x1a0] ss:$8 sps:$4 sm:$0xff]   ;;  %v815_v45 = vld [vmem:[%s1106_s1 + $0x1b4] ss:$8 sps:$4 sm:$0xff]   ;;  %v818_v47 = vld [vmem:[%s1106_s1 + $0x1b0] ss:$8 sps:$4 sm:$0xff]  }
  0x11   :  { %527 = vmatprep.subr.bf16.mxu0 %v773_v17  ;;  %v819_v48 = vld [vmem:[%s1106_s1 + $0xc4] ss:$8 sps:$4 sm:$0xff]   ;;  %v823_v52 = vld [vmem:[%s1106_s1 + $0xc0] ss:$8 sps:$4 sm:$0xff]   ;;  %v825_v54 = vld [vmem:[%s1106_s1 + $0xd4] ss:$8 sps:$4 sm:$0xff]  }
  0x12   :  { %v845_v49 = vld [vmem:[%s1107_s0 + $0x4] ss:$16 sps:$4 sm:$0xff]   ;;  %v848_v51 = vld [vmem:[%s1107_s0 + $0xc] ss:$16 sps:$4 sm:$0xff]   ;;  %v824_v53 = vld [vmem:[%s1106_s1 + $0x1c0] ss:$8 sps:$4 sm:$0xff]  }
  0x13   :  { %475 = vmatpush1.bf16.msra.mxu1 %v775_v18  ;;  %v821_v50 = vld [vmem:[%s1106_s1 + $0x1c4] ss:$8 sps:$4 sm:$0xff]   ;;  %498 = vmatprep.mubr.bf16.mxu1 %v845_v49  ;;  %v827_v55 = vld [vmem:[%s1106_s1 + $0x1d4] ss:$8 sps:$4 sm:$0xff]   ;;  %v829_v56 = vld [vmem:[%s1106_s1 + $0xd0] ss:$8 sps:$4 sm:$0xff]  }
  0x14   :  { %528 = vmatpush1.bf16.msra.mxu0 %v776_v19  ;;  %476 = vmatprep.subr.bf16.mxu1 %v777_v20  ;;  %v830_v57 = vld [vmem:[%s1106_s1 + $0x1d0] ss:$8 sps:$4 sm:$0xff]   ;;  %v831_v58 = vld [vmem:[%s1106_s1 + $0xe4] ss:$8 sps:$4 sm:$0xff]   ;;  %v835_v60 = vld [vmem:[%s1106_s1 + $0xe0] ss:$8 sps:$4 sm:$0xff]  }
  0x15   :  { %529 = vmatprep.subr.bf16.mxu0 %v779_v21  ;;  %551 = vmatprep.mubr.bf16.mxu0 %v848_v51  ;;  %v833_v59 = vld [vmem:[%s1106_s1 + $0x1e4] ss:$8 sps:$4 sm:$0xff]   ;;  %v836_v61 = vld [vmem:[%s1106_s1 + $0x1e0] ss:$8 sps:$4 sm:$0xff]   ;;  %v837_v62 = vld [vmem:[%s1106_s1 + $0xf4] ss:$8 sps:$4 sm:$0xff]  }
  0x16   :  { %v839_v63 = vld [vmem:[%s1106_s1 + $0x1f4] ss:$8 sps:$4 sm:$0xff]   ;;  %v841_v0 = vld [vmem:[%s1106_s1 + $0xf0] ss:$8 sps:$4 sm:$0xff]   ;;  %v602_v9 = vshrl.u32 %v601_v8, 7 }
  0x17   :  { %477 = vmatpush1.bf16.msra.mxu1 %v781_v22  ;;  %v842_v1 = vld [vmem:[%s1106_s1 + $0x1f0] ss:$8 sps:$4 sm:$0xff]   ;;  %v849_v4 = vld [vmem:[%s1107_s0 + $0x24] ss:$16 sps:$4 sm:$0xff]   ;;  %v851_v5 = vld [vmem:[%s1107_s0 + $0x2c] ss:$16 sps:$4 sm:$0xff]  }
  0x18   :  { %530 = vmatpush1.bf16.msra.mxu0 %v782_v23  ;;  %478 = vmatprep.subr.bf16.mxu1 %v783_v24  ;;  %v843_v2 = vld [vmem:[%s1107_s0] ss:$16 sps:$4 sm:$0xff]   ;;  %v846_v3 = vld [vmem:[%s1107_s0 + $0x8] ss:$16 sps:$4 sm:$0xff]   ;;  %v603_v10 = vsub.s32 0, %v602_v9  ;;  %v607_v12 = vsub.s32 1, %v602_v9 }
  0x19   :  { %531 = vmatprep.subr.bf16.mxu0 %v785_v25  ;;  %v853_v6 = vld [vmem:[%s1107_s0 + $0x20] ss:$16 sps:$4 sm:$0xff]   ;;  %v854_v7 = vld [vmem:[%s1107_s0 + $0x28] ss:$16 sps:$4 sm:$0xff]  }
  0x1a   :  { %v599_v11 = vld [vmem:[%s1108_s2] sm:$0x3] }
  0x1b   :  { %479 = vmatpush1.bf16.msra.mxu1 %v787_v26  ;;  %v604_v13 = vrot.slane %v599_v11, %v603_v10  ;;  %v608_v16 = vrot.slane %v599_v11, %v607_v12 }
  0x1c   :  { %532 = vmatpush1.bf16.msra.mxu0 %v788_v27  ;;  %480 = vmatprep.subr.bf16.mxu1 %v789_v28 }
  0x1d   :  { %533 = vmatprep.subr.bf16.mxu0 %v791_v29 }
  0x1f   :  { %481 = vmatpush1.bf16.msra.mxu1 %v793_v30 }
  0x20   :  { %534 = vmatpush1.bf16.msra.mxu0 %v794_v31  ;;  %482 = vmatprep.subr.bf16.mxu1 %v795_v32 }
  0x21   :  { %535 = vmatprep.subr.bf16.mxu0 %v797_v33 }
  0x23   :  { %483 = vmatpush1.bf16.msra.mxu1 %v799_v34 }
  0x24   :  { %536 = vmatpush1.bf16.msra.mxu0 %v800_v35  ;;  %484 = vmatprep.subr.bf16.mxu1 %v801_v36 }
  0x25   :  { %537 = vmatprep.subr.bf16.mxu0 %v803_v37 }
  0x27   :  { %485 = vmatpush1.bf16.msra.mxu1 %v805_v38 }
  0x28   :  { %538 = vmatpush1.bf16.msra.mxu0 %v806_v39  ;;  %486 = vmatprep.subr.bf16.mxu1 %v807_v40 }
  0x29   :  { %539 = vmatprep.subr.bf16.mxu0 %v809_v41 }
  0x2b   :  { %487 = vmatpush1.bf16.msra.mxu1 %v811_v42 }
  0x2c   :  { %540 = vmatpush1.bf16.msra.mxu0 %v812_v43  ;;  %488 = vmatprep.subr.bf16.mxu1 %v813_v44 }
  0x2d   :  { %541 = vmatprep.subr.bf16.mxu0 %v815_v45 }
  0x2f   :  { %489 = vmatpush1.bf16.msra.mxu1 %v817_v46 }
  0x30   :  { %542 = vmatpush1.bf16.msra.mxu0 %v818_v47  ;;  %490 = vmatprep.subr.bf16.mxu1 %v819_v48 }
  0x31   :  { %543 = vmatprep.subr.bf16.mxu0 %v821_v50 }
  0x33   :  { %491 = vmatpush1.bf16.msra.mxu1 %v823_v52 }
  0x34   :  { %544 = vmatpush1.bf16.msra.mxu0 %v824_v53  ;;  %492 = vmatprep.subr.bf16.mxu1 %v825_v54 }
  0x35   :  { %545 = vmatprep.subr.bf16.mxu0 %v827_v55 }
  0x37   :  { %493 = vmatpush1.bf16.msra.mxu1 %v829_v56 }
  0x38   :  { %546 = vmatpush1.bf16.msra.mxu0 %v830_v57  ;;  %494 = vmatprep.subr.bf16.mxu1 %v831_v58 }
  0x39   :  { %547 = vmatprep.subr.bf16.mxu0 %v833_v59 }
  0x3b   :  { %495 = vmatpush1.bf16.msra.mxu1 %v835_v60 }
  0x3c   :  { %548 = vmatpush1.bf16.msra.mxu0 %v836_v61  ;;  %496 = vmatprep.subr.bf16.mxu1 %v837_v62 }
  0x3d   :  { %549 = vmatprep.subr.bf16.mxu0 %v839_v63 }
  0x3f   :  { %497 = vmatpush1.bf16.msra.mxu1 %v841_v0 }
  0x40   :  { %550 = vmatpush1.bf16.msra.mxu0 %v842_v1 }
  0x42   :  { %499 = vmatmul.mubr.bf16.vlgmr.msra.gmra.mrb[0].mxu1 %v843_v2 }
  0x43   :  { %552 = vmatmul.mubr.bf16.vlgmr.msra.gmra.mrb[0].mxu0 %v846_v3  ;;  %508 = vmatprep.mubr.bf16.mxu1 %v849_v4 }
  0x44   :  { %561 = vmatprep.mubr.bf16.mxu0 %v851_v5 }
  0x4a   :  { %509 = vmatmul.mubr.bf16.gmra.mrb[4].mxu1 %v853_v6 }
  0x4b   :  { %562 = vmatmul.mubr.bf16.gmra.mrb[4].mxu0 %v854_v7 }
 0x115   :  { %v500_v14 = vpop.f32.mrb[0].mxu1 }
 0x116   :  { %v553_v15 = vpop.f32.mrb[0].mxu0  ;;  %v502_v18 = vpop.f32.mrb[1].mxu1 }
 0x117   :  { %v554_v17 = vadd.f32 %v553_v15, %v500_v14  ;;  %v555_v19 = vpop.f32.mrb[1].mxu0  ;;  %v504_v21 = vpop.f32.mrb[2].mxu1 }
 0x118   :  { %v556_v20 = vadd.f32 %v555_v19, %v502_v18  ;;  %v557_v22 = vpop.f32.mrb[2].mxu0  ;;  %v506_v25 = vpop.f32.mrb[3].mxu1 }
 0x119   :  { %v611_v23 = vadd.f32 %v604_v13, %v554_v17  ;;  %v558_v24 = vadd.f32 %v557_v22, %v504_v21  ;;  %v559_v26 = vpop.f32.mrb[3].mxu0 }
 0x11a   :  { %v612_v27 = vadd.f32 %v608_v16, %v556_v20  ;;  %v560_v28 = vadd.f32 %v559_v26, %v506_v25 }
 0x11b   :  { %v619_v29 = vmax.f32 %v611_v23, 0.0  ;;  %v613_v30 = vadd.f32 %v604_v13, %v558_v24 }
 0x11c   :  { %v620_v31 = vmax.f32 %v612_v27, 0.0  ;;  %v614_v32 = vadd.f32 %v608_v16, %v560_v28 }
 0x11d   :  { %v621_v33 = vmax.f32 %v613_v30, 0.0  ;;  %v510_v36 = vpop.f32.mrb[4].mxu1 }
 0x11e   :  { %v735_v34 = vpack.c.bf16 %v620_v31, %v619_v29  ;;  %v622_v35 = vmax.f32 %v614_v32, 0.0  ;;  %v563_v37 = vpop.f32.mrb[4].mxu0  ;;  %v512_v39 = vpop.f32.mrb[5].mxu1 }
 0x11f   :  { %v564_v38 = vadd.f32 %v563_v37, %v510_v36  ;;  %v565_v40 = vpop.f32.mrb[5].mxu0  ;;  %v514_v43 = vpop.f32.mrb[6].mxu1 }
 0x120   :  { %651 = vst [vmem:[%s1109_s3] sm:$0xff] %v735_v34  ;;  %v736_v41 = vpack.c.bf16 %v622_v35, %v621_v33  ;;  %v566_v42 = vadd.f32 %v565_v40, %v512_v39  ;;  %v567_v44 = vpop.f32.mrb[6].mxu0  ;;  %v516_v47 = vpop.f32.mrb[7].mxu1 }
 0x121   :  { %v615_v45 = vadd.f32 %v604_v13, %v564_v38  ;;  %v568_v46 = vadd.f32 %v567_v44, %v514_v43  ;;  %v569_v48 = vpop.f32.mrb[7].mxu0 }
 0x122   :  { %652 = vst [vmem:[%s1109_s3 + $0x8] sm:$0xff] %v736_v41  ;;  %v616_v49 = vadd.f32 %v608_v16, %v566_v42  ;;  %v570_v50 = vadd.f32 %v569_v48, %v516_v47 }
 0x123   :  { %v623_v51 = vmax.f32 %v615_v45, 0.0  ;;  %v617_v52 = vadd.f32 %v604_v13, %v568_v46 }
 0x124   :  { %v624_v53 = vmax.f32 %v616_v49, 0.0  ;;  %v618_v54 = vadd.f32 %v608_v16, %v570_v50 }
 0x125   :  { %v625_v55 = vmax.f32 %v617_v52, 0.0 }
 0x126   :  { %v737_v56 = vpack.c.bf16 %v624_v53, %v623_v51  ;;  %v626_v57 = vmax.f32 %v618_v54, 0.0 }
 0x128   :  { %653 = vst [vmem:[%s1109_s3 + $0x10] sm:$0xff] %v737_v56  ;;  %v738_v58 = vpack.c.bf16 %v626_v57, %v625_v55 }
 0x12a   :  { %654 = vst [vmem:[%s1109_s3 + $0x18] sm:$0xff] %v738_v58 }

// kernel: _lambda_.71
= control target key start
LH: loop header
LB: loop body
LE: loop exit
PB: predicated region body
PF: predicated region fallthrough
CT: control target
= control target key end

     0   :  { %s1036_s12 = smov 0   ;;  %s1038_s13 = smov 0   ;;  %s1135_s0 = inlined_call_operand.vmem [shape: bf16[8,2304], index: 0, kind: input, shape index: {}]   ;;  %s1136_s1 = inlined_call_operand.vmem [shape: bf16[2304,256], index: 1, kind: input, shape index: {}]   ;;  %s1137_s2 = inlined_call_operand.vmem [shape: f32[1,256], index: 2, kind: input, shape index: {}]   ;;  %s1138_s3 = inlined_call_operand.vmem [shape: bf16[8,256], index: 3, kind: output, shape index: {}]  }
   0x1   :  { %s1040_s14 = smov 0  }
   0x2 LB: > { %s25_s15 = sadd.s32 1, %s1008_s13  ;;  %p825_p0 = scmp.ge.s32.totalorder %s1012_s14, 1  ;;  %s1012_s14 = sphi %s1040_s14, %s13_s14   ;;  %s1008_s13 = sphi %s1038_s13, %s1140_s13   ;;  %s1004_s12 = sphi %s1036_s12, %s1139_s12  }
   0x3   : > { %p26_p1 = scmp.ge.s32.totalorder %s25_s15, 6  ;;  %p194_p2 = scmp.lt.s32.totalorder %s1012_s14, 7 }
   0x5   : > { %s1142_s15 = smov (%p26_p1, %s25_s15), 0  ;;  %p195_p3 = pnand %p825_p0, %p194_p2 }
   0x6   : > { %s240_s16 = smul.u32 (!%p195_p3), 3, %s1004_s12  ;;  %p829_p6 = scmp.ne.s32.totalorder (!%p195_p3), %s1004_s12, 0 }
   0x7   : > { %198 = sbr.rel (%p195_p3) target bundleno = 321 (0x141), region = 32 }
   0x8   : > { %s250_s17 = smul.u32 (!%p195_p3), 48, %s1004_s12  ;;  %p243_p4 = scmp.lt.s32.totalorder (!%p195_p3), %s240_s16, 17 }
   0xa   : > { %p252_p5 = scmp.lt.s32.totalorder (!%p195_p3), %s250_s17, 287 }
   0xe   : > { %s1144_s16 = smov (!%p243_p4, %s240_s16), 17  ;;  %s1146_s17 = smov (!%p252_p5, %s250_s17), 287 }
   0xf   : > { %s826_s18 = sshll.u32 %s1144_s16, 2  ;;  %s887_s22 = sshll.u32 %s1146_s17, 3  ;;  %v1014_v0 = vmov (!%p829_p6), 0.0  }
  0x10   : > { %s1061_s21 = scalar_lea.vmem %s1135_s0, %s826_s18  ;;  %s1066_s25 = scalar_lea.vmem %s1136_s1, %s887_s22  ;;  %282 = vst [vmem:[#allocation2] sm:$0xff] (!%p829_p6), %v1014_v0  ;;  %283 = vst [vmem:[#allocation2 + $0x8] sm:$0xff] (!%p829_p6), %v1014_v0 }
  0x11   : > { %281 = sbr.rel (%p829_p6) target bundleno = 24 (0x18), region = 36 }
  0x18 PF: > { %v915_v1 = vld [vmem:[%s1066_s25 + $0x4] ss:$8 sps:$4 sm:$0xff]   ;;  %v917_v2 = vld [vmem:[%s1066_s25] ss:$8 sps:$4 sm:$0xff]   ;;  %v1015_v3 = vmov 0   ;;  %p881_p7 = scmp.ne.s32.totalorder %s1004_s12, 5 }
  0x19   : > { %660 = vmatprep.mubr.bf16.mxu1 %v1015_v3  ;;  %587 = vmatprep.subr.bf16.mxu0 %v915_v1  ;;  %v918_v4 = vld [vmem:[%s1066_s25 + $0x14] ss:$8 sps:$4 sm:$0xff]   ;;  %v920_v5 = vld [vmem:[%s1066_s25 + $0x10] ss:$8 sps:$4 sm:$0xff]   ;;  %v921_v6 = vld [vmem:[%s1066_s25 + $0x24] ss:$8 sps:$4 sm:$0xff]  }
  0x1a   : > { %588 = vmatpush1.bf16.msra.mxu0 %v917_v2  ;;  %v923_v7 = vld [vmem:[%s1066_s25 + $0x20] ss:$8 sps:$4 sm:$0xff]   ;;  %v924_v8 = vld [vmem:[%s1066_s25 + $0x34] ss:$8 sps:$4 sm:$0xff]   ;;  %v926_v9 = vld [vmem:[%s1066_s25 + $0x30] ss:$8 sps:$4 sm:$0xff]  }
  0x1b   : > { %589 = vmatprep.subr.bf16.mxu0 %v918_v4  ;;  %v939_v10 = vld [vmem:[%s1066_s25 + $0x104] ss:$8 sps:$4 sm:$0xff]   ;;  %v941_v11 = vld [vmem:[%s1066_s25 + $0x100] ss:$8 sps:$4 sm:$0xff]   ;;  %v945_v13 = vld [vmem:[%s1066_s25 + $0x114] ss:$8 sps:$4 sm:$0xff]   ;;  %v681_v4 = vlaneseq (!%p881_p7) }
  0x1c   : > { %v927_v12 = vld [vmem:[%s1066_s25 + $0x44] ss:$8 sps:$4 sm:$0xff]   ;;  %628 = vmatprep.subr.bf16.mxu1 %v939_v10  ;;  %v947_v14 = vld [vmem:[%s1066_s25 + $0x110] ss:$8 sps:$4 sm:$0xff]   ;;  %v929_v15 = vld [vmem:[%s1066_s25 + $0x40] ss:$8 sps:$4 sm:$0xff]  }
  0x1d   : > { %629 = vmatpush1.bf16.msra.mxu1 %v941_v11  ;;  %v930_v16 = vld [vmem:[%s1066_s25 + $0x54] ss:$8 sps:$4 sm:$0xff]   ;;  %v951_v17 = vld [vmem:[%s1066_s25 + $0x124] ss:$8 sps:$4 sm:$0xff]   ;;  %v953_v18 = vld [vmem:[%s1066_s25 + $0x120] ss:$8 sps:$4 sm:$0xff]  }
  0x1e   : > { %590 = vmatpush1.bf16.msra.mxu0 %v920_v5  ;;  %630 = vmatprep.subr.bf16.mxu1 %v945_v13  ;;  %v932_v19 = vld [vmem:[%s1066_s25 + $0x50] ss:$8 sps:$4 sm:$0xff]   ;;  %v957_v20 = vld [vmem:[%s1066_s25 + $0x134] ss:$8 sps:$4 sm:$0xff]   ;;  %v933_v21 = vld [vmem:[%s1066_s25 + $0x64] ss:$8 sps:$4 sm:$0xff]  }
  0x1f   : > { %591 = vmatprep.subr.bf16.mxu0 %v921_v6  ;;  %v959_v22 = vld [vmem:[%s1066_s25 + $0x130] ss:$8 sps:$4 sm:$0xff]   ;;  %v935_v23 = vld [vmem:[%s1066_s25 + $0x60] ss:$8 sps:$4 sm:$0xff]   ;;  %v963_v24 = vld [vmem:[%s1066_s25 + $0x144] ss:$8 sps:$4 sm:$0xff]  }
  0x20   : > { %v936_v25 = vld [vmem:[%s1066_s25 + $0x74] ss:$8 sps:$4 sm:$0xff]   ;;  %v965_v26 = vld [vmem:[%s1066_s25 + $0x140] ss:$8 sps:$4 sm:$0xff]   ;;  %v938_v27 = vld [vmem:[%s1066_s25 + $0x70] ss:$8 sps:$4 sm:$0xff]  }
  0x21   : > { %631 = vmatpush1.bf16.msra.mxu1 %v947_v14  ;;  %v969_v28 = vld [vmem:[%s1066_s25 + $0x154] ss:$8 sps:$4 sm:$0xff]   ;;  %v942_v29 = vld [vmem:[%s1066_s25 + $0x84] ss:$8 sps:$4 sm:$0xff]   ;;  %v971_v30 = vld [vmem:[%s1066_s25 + $0x150] ss:$8 sps:$4 sm:$0xff]  }
  0x22   : > { %592 = vmatpush1.bf16.msra.mxu0 %v923_v7  ;;  %632 = vmatprep.subr.bf16.mxu1 %v951_v17  ;;  %v944_v31 = vld [vmem:[%s1066_s25 + $0x80] ss:$8 sps:$4 sm:$0xff]   ;;  %v975_v32 = vld [vmem:[%s1066_s25 + $0x164] ss:$8 sps:$4 sm:$0xff]   ;;  %v948_v33 = vld [vmem:[%s1066_s25 + $0x94] ss:$8 sps:$4 sm:$0xff]  }
  0x23   : > { %593 = vmatprep.subr.bf16.mxu0 %v924_v8  ;;  %v286_v34 = vld [vmem:[%s1061_s21] sm:$0xff]  ;;  %v950_v37 = vld [vmem:[%s1066_s25 + $0x90] ss:$8 sps:$4 sm:$0xff]   ;;  %v981_v38 = vld [vmem:[%s1066_s25 + $0x174] ss:$8 sps:$4 sm:$0xff]   ;;  %v682_v5 = vshrl.u32 (!%p881_p7), %v681_v4, 7 }
  0x24   : > { %v831_v35 = vcombine.high %v286_v34, %v286_v34  ;;  %v977_v36 = vld [vmem:[%s1066_s25 + $0x160] ss:$8 sps:$4 sm:$0xff]   ;;  %v954_v39 = vld [vmem:[%s1066_s25 + $0xa4] ss:$8 sps:$4 sm:$0xff]   ;;  %v983_v40 = vld [vmem:[%s1066_s25 + $0x170] ss:$8 sps:$4 sm:$0xff]   ;;  %v830_v53 = vcombine.low %v286_v34, %v286_v34 }
  0x25   : > { %633 = vmatpush1.bf16.msra.mxu1 %v953_v18  ;;  %v956_v41 = vld [vmem:[%s1066_s25 + $0xa0] ss:$8 sps:$4 sm:$0xff]   ;;  %v960_v42 = vld [vmem:[%s1066_s25 + $0xb4] ss:$8 sps:$4 sm:$0xff]   ;;  %v962_v44 = vld [vmem:[%s1066_s25 + $0xb0] ss:$8 sps:$4 sm:$0xff]  }
  0x26   : > { %594 = vmatpush1.bf16.msra.mxu0 %v926_v9  ;;  %634 = vmatprep.subr.bf16.mxu1 %v957_v20  ;;  %v987_v43 = vld [vmem:[%s1061_s21 + $0x8] ss:$0 sps:$4 sm:$0xff]   ;;  %v966_v45 = vld [vmem:[%s1066_s25 + $0xc4] ss:$8 sps:$4 sm:$0xff]   ;;  %v972_v47 = vld [vmem:[%s1066_s25 + $0xd4] ss:$8 sps:$4 sm:$0xff]  }
  0x27   : > { %595 = vmatprep.subr.bf16.mxu0 %v927_v12  ;;  %619 = vmatprep.mubr.bf16.mxu0 %v831_v35  ;;  %v968_v46 = vld [vmem:[%s1066_s25 + $0xc0] ss:$8 sps:$4 sm:$0xff]   ;;  %v974_v48 = vld [vmem:[%s1066_s25 + $0xd0] ss:$8 sps:$4 sm:$0xff]   ;;  %v978_v49 = vld [vmem:[%s1066_s25 + $0xe4] ss:$8 sps:$4 sm:$0xff]  }
  0x28   : > { %v980_v50 = vld [vmem:[%s1066_s25 + $0xe0] ss:$8 sps:$4 sm:$0xff]   ;;  %v984_v51 = vld [vmem:[%s1066_s25 + $0xf4] ss:$8 sps:$4 sm:$0xff]   ;;  %v986_v52 = vld [vmem:[%s1066_s25 + $0xf0] ss:$8 sps:$4 sm:$0xff]  }
  0x29   : > { %635 = vmatpush1.bf16.msra.mxu1 %v959_v22  ;;  %v284_v58 = vld [vmem:[#allocation2] sm:$0xff]  ;;  %v285_v61 = vld [vmem:[#allocation2 + $0x8] sm:$0xff]  ;;  %v683_v7 = vsub.s32 (!%p881_p7), 0, %v682_v5  ;;  %v687_v8 = vsub.s32 (!%p881_p7), 1, %v682_v5 }
  0x2a   : > { %596 = vmatpush1.bf16.msra.mxu0 %v929_v15  ;;  %636 = vmatprep.subr.bf16.mxu1 %v963_v24  ;;  %v679_v6 = vld [vmem:[%s1137_s2] sm:$0x3] (!%p881_p7) }
  0x2b   : > { %597 = vmatprep.subr.bf16.mxu0 %v930_v16  ;;  %v684_v11 = vrot.slane (!%p881_p7), %v679_v6, %v683_v7  ;;  %v688_v12 = vrot.slane (!%p881_p7), %v679_v6, %v687_v8 }
  0x2d   : > { %637 = vmatpush1.bf16.msra.mxu1 %v965_v26 }
  0x2e   : > { %598 = vmatpush1.bf16.msra.mxu0 %v932_v19  ;;  %638 = vmatprep.subr.bf16.mxu1 %v969_v28 }
  0x2f   : > { %599 = vmatprep.subr.bf16.mxu0 %v933_v21 }
  0x31   : > { %639 = vmatpush1.bf16.msra.mxu1 %v971_v30 }
  0x32   : > { %600 = vmatpush1.bf16.msra.mxu0 %v935_v23  ;;  %640 = vmatprep.subr.bf16.mxu1 %v975_v32 }
  0x33   : > { %601 = vmatprep.subr.bf16.mxu0 %v936_v25 }
  0x35   : > { %641 = vmatpush1.bf16.msra.mxu1 %v977_v36 }
  0x36   : > { %602 = vmatpush1.bf16.msra.mxu0 %v938_v27  ;;  %642 = vmatprep.subr.bf16.mxu1 %v981_v38 }
  0x37   : > { %603 = vmatprep.subr.bf16.mxu0 %v942_v29 }
  0x39   : > { %643 = vmatpush1.bf16.msra.mxu1 %v983_v40 }
  0x3a   : > { %604 = vmatpush1.bf16.msra.mxu0 %v944_v31 }
  0x3b   : > { %605 = vmatprep.subr.bf16.mxu0 %v948_v33 }
  0x3c   : > { %661 = vmatmul.mubr.bf16.vlgmr.msra.gmra.mrb[0].mxu1 %v987_v43 }
  0x3e   : > { %606 = vmatpush1.bf16.msra.mxu0 %v950_v37 }
  0x3f   : > { %607 = vmatprep.subr.bf16.mxu0 %v954_v39 }
  0x42   : > { %608 = vmatpush1.bf16.msra.mxu0 %v956_v41 }
  0x43   : > { %609 = vmatprep.subr.bf16.mxu0 %v960_v42 }
  0x46   : > { %610 = vmatpush1.bf16.msra.mxu0 %v962_v44 }
  0x47   : > { %611 = vmatprep.subr.bf16.mxu0 %v966_v45 }
  0x4a   : > { %612 = vmatpush1.bf16.msra.mxu0 %v968_v46 }
  0x4b   : > { %613 = vmatprep.subr.bf16.mxu0 %v972_v47 }
  0x4e   : > { %614 = vmatpush1.bf16.msra.mxu0 %v974_v48 }
  0x4f   : > { %615 = vmatprep.subr.bf16.mxu0 %v978_v49 }
  0x52   : > { %616 = vmatpush1.bf16.msra.mxu0 %v980_v50 }
  0x53   : > { %617 = vmatprep.subr.bf16.mxu0 %v984_v51 }
  0x56   : > { %618 = vmatpush1.bf16.msra.mxu0 %v986_v52 }
  0x59   : > { %620 = vmatmul.mubr.bf16.vlgmr.msra.gmra.mrb[0].mxu0 %v830_v53 }
 0x10f   : > { %v662_v54 = vpop.f32.mrb[0].mxu1 }
 0x110   : > { %v664_v55 = vpop.f32.mrb[1].mxu1 }
 0x111   : > { %v666_v56 = vpop.f32.mrb[2].mxu1 }
 0x112   : > { %v667_v57 = vpop.f32.mrb[3].mxu1 }
 0x12c   : > { %v621_v59 = vpop.f32.mrb[0].mxu0  ;;  %676 = sbr.rel (%p881_p7) target bundleno = 321 (0x141), region = 40 }
 0x12d   : > { %v663_v60 = vadd.f32 %v662_v54, %v621_v59  ;;  %v623_v62 = vpop.f32.mrb[1].mxu0 }
 0x12e   : > { %v665_v63 = vadd.f32 %v664_v55, %v623_v62  ;;  %v625_v0 = vpop.f32.mrb[2].mxu0 }
 0x12f   : > { %v669_v1 = vadd.f32 %v663_v60, %v284_v58  ;;  %v626_v2 = vpop.f32.mrb[3].mxu0 }
 0x130   : > { %v670_v3 = vadd.f32 %v665_v63, %v285_v61 }
 0x131   : > { %671 = vst [vmem:[#allocation2] sm:$0xff] %v669_v1 }
 0x132   : > { %672 = vst [vmem:[#allocation2 + $0x8] sm:$0xff] %v670_v3 }
 0x138   : > { %v677_v9 = vld [vmem:[#allocation2] sm:$0xff] }
 0x139   : > { %v678_v10 = vld [vmem:[#allocation2 + $0x8] sm:$0xff]  ;;  %v691_v13 = vadd.f32 %v684_v11, %v677_v9 }
 0x13a   : > { %v692_v14 = vadd.f32 %v688_v12, %v678_v10 }
 0x13b   : > { %v693_v15 = vmax.f32 %v691_v13, 0.0 }
 0x13c   : > { %v694_v16 = vmax.f32 %v692_v14, 0.0 }
 0x13e   : > { %v888_v17 = vpack.c.bf16 %v694_v16, %v693_v15 }
 0x140   : > { %703 = vst [vmem:[%s1138_s3] sm:$0xff] %v888_v17 }
 0x141 PF: > { %s13_s14 = sadd.s32 1, %s1012_s14   ;;  %s1139_s12 = smov %s1008_s13 }
 0x142   : > { %p10_p8 = scmp.ge.s32.totalorder %s13_s14, 8   ;;  %s1140_s13 = smov %s1142_s15 }
 0x144   :  { %12 = sbr.rel (!%p10_p8) target bundleno = 2 (0x2), region = 76 }

// kernel: _lambda_.69
= control target key start
LH: loop header
LB: loop body
LE: loop exit
PB: predicated region body
PF: predicated region fallthrough
CT: control target
= control target key end

     0   :  { %s2127_s12 = smov 0   ;;  %s2129_s13 = smov 0   ;;  %s2619_s0 = inlined_call_operand.vmem [shape: bf16[8,512], index: 0, kind: input, shape index: {}]   ;;  %s2620_s1 = inlined_call_operand.vmem [shape: bf16[512,1024], index: 1, kind: input, shape index: {}]   ;;  %s2621_s2 = inlined_call_operand.vmem [shape: f32[1,1024], index: 2, kind: input, shape index: {}]   ;;  %s2622_s3 = inlined_call_operand.vmem [shape: bf16[8,1024], index: 3, kind: output, shape index: {}]  }
   0x1   :  { %s2131_s14 = smov 0   ;;  %s2133_s15 = smov 0  }
   0x2   :  { %s2135_s16 = smov 0  }
   0x3 LB: > { %s28_s17 = sadd.s32 1, %s2101_s15  ;;  %p76_p1 = scmp.ne.s32.totalorder %s2093_s13, %s2089_s12  ;;  %s2105_s16 = sphi %s2135_s16, %s13_s16   ;;  %s2101_s15 = sphi %s2133_s15, %s2626_s15   ;;  %s2097_s14 = sphi %s2131_s14, %s2625_s14   ;;  %s2093_s13 = sphi %s2129_s13, %s2624_s13   ;;  %s2089_s12 = sphi %s2127_s12, %s2623_s12  }
   0x4   : > { %p30_p0 = scmp.ge.s32.totalorder %s28_s17, 2  ;;  %p77_p2 = scmp.eq.s32.totalorder %s2105_s16, 0 }
   0x5   : > { %s69_s19 = sadd.s32 1, %s2093_s13  ;;  %p1683_p5 = scmp.ge.s32.totalorder %s2105_s16, 2 }
   0x6   : > { %s2628_s17 = smov (%p30_p0, %s28_s17), 0  ;;  %p78_p3 = por %p77_p2, %p76_p1 }
   0x7   : > { %s65_s18 = ssub.s32 %s2101_s15, %s2628_s17  ;;  %169 = sbr.rel (%p1683_p5) target bundleno = 82 (0x52), region = 20 }
   0x8   : > { %p67_p4 = scmp.eq.s32.totalorder %s65_s18, 0 }
   0xa   : > { %s2162_s20 = scalar_select %p67_p4, %s2093_s13, %s69_s19  }
   0xe   : > { %172 = sbr.rel (!%p78_p3) target bundleno = 82 (0x52), region = 24  ;;  %s174_s21 = sand.u32 (%p78_p3), 1, %s2093_s13  }
   0xf   : > { %s1828_s22 = sshll.u32 (%p78_p3), %s2101_s15, 4  ;;  %s1684_s23 = sshll.u32 (%p78_p3), %s174_s21, 10 }
  0x10   : > { %s2170_s26 = scalar_lea.vmem (%p78_p3), %s2620_s1, %s1828_s22  ;;  %s2175_s27 = scalar_lea.vmem (%p78_p3), [#allocation3], %s1684_s23 }
  0x11   : > { %v195_v0 = vld [vmem:[%s2170_s26] sm:$0xff] (%p78_p3)  ;;  %v197_v1 = vld [vmem:[%s2170_s26 + $0x8] sm:$0xff] (%p78_p3) }
  0x12   : > { %v199_v2 = vld [vmem:[%s2170_s26 + $0x20] sm:$0xff] (%p78_p3)  ;;  %196 = vst [vmem:[%s2175_s27] sm:$0xff] (%p78_p3), %v195_v0  ;;  %198 = vst [vmem:[%s2175_s27 + $0x8] sm:$0xff] (%p78_p3), %v197_v1  ;;  %v201_v3 = vld [vmem:[%s2170_s26 + $0x28] sm:$0xff] (%p78_p3) }
  0x13   : > { %200 = vst [vmem:[%s2175_s27 + $0x10] sm:$0xff] (%p78_p3), %v199_v2  ;;  %v203_v4 = vld [vmem:[%s2170_s26 + $0x40] sm:$0xff] (%p78_p3)  ;;  %v205_v5 = vld [vmem:[%s2170_s26 + $0x48] sm:$0xff] (%p78_p3)  ;;  %202 = vst [vmem:[%s2175_s27 + $0x18] sm:$0xff] (%p78_p3), %v201_v3 }
  0x14   : > { %204 = vst [vmem:[%s2175_s27 + $0x20] sm:$0xff] (%p78_p3), %v203_v4  ;;  %206 = vst [vmem:[%s2175_s27 + $0x28] sm:$0xff] (%p78_p3), %v205_v5  ;;  %v207_v6 = vld [vmem:[%s2170_s26 + $0x60] sm:$0xff] (%p78_p3)  ;;  %v209_v7 = vld [vmem:[%s2170_s26 + $0x68] sm:$0xff] (%p78_p3) }
  0x15   : > { %v211_v8 = vld [vmem:[%s2170_s26 + $0x80] sm:$0xff]  ;;  %208 = vst [vmem:[%s2175_s27 + $0x30] sm:$0xff] %v207_v6  ;;  %210 = vst [vmem:[%s2175_s27 + $0x38] sm:$0xff] %v209_v7  ;;  %v213_v9 = vld [vmem:[%s2170_s26 + $0x88] sm:$0xff] }
  0x16   : > { %212 = vst [vmem:[%s2175_s27 + $0x40] sm:$0xff] %v211_v8  ;;  %v215_v10 = vld [vmem:[%s2170_s26 + $0xa0] sm:$0xff]  ;;  %v217_v11 = vld [vmem:[%s2170_s26 + $0xa8] sm:$0xff]  ;;  %214 = vst [vmem:[%s2175_s27 + $0x48] sm:$0xff] %v213_v9 }
  0x17   : > { %216 = vst [vmem:[%s2175_s27 + $0x50] sm:$0xff] %v215_v10  ;;  %218 = vst [vmem:[%s2175_s27 + $0x58] sm:$0xff] %v217_v11  ;;  %v219_v12 = vld [vmem:[%s2170_s26 + $0xc0] sm:$0xff]  ;;  %v221_v13 = vld [vmem:[%s2170_s26 + $0xc8] sm:$0xff] }
  0x18   : > { %v223_v14 = vld [vmem:[%s2170_s26 + $0xe0] sm:$0xff]  ;;  %220 = vst [vmem:[%s2175_s27 + $0x60] sm:$0xff] %v219_v12  ;;  %222 = vst [vmem:[%s2175_s27 + $0x68] sm:$0xff] %v221_v13  ;;  %v225_v15 = vld [vmem:[%s2170_s26 + $0xe8] sm:$0xff] }
  0x19   : > { %224 = vst [vmem:[%s2175_s27 + $0x70] sm:$0xff] %v223_v14  ;;  %v227_v16 = vld [vmem:[%s2170_s26 + $0x100] sm:$0xff]  ;;  %v229_v17 = vld [vmem:[%s2170_s26 + $0x108] sm:$0xff]  ;;  %226 = vst [vmem:[%s2175_s27 + $0x78] sm:$0xff] %v225_v15 }
  0x1a   : > { %228 = vst [vmem:[%s2175_s27 + $0x80] sm:$0xff] %v227_v16  ;;  %230 = vst [vmem:[%s2175_s27 + $0x88] sm:$0xff] %v229_v17  ;;  %v231_v18 = vld [vmem:[%s2170_s26 + $0x120] sm:$0xff]  ;;  %v233_v19 = vld [vmem:[%s2170_s26 + $0x128] sm:$0xff] }
  0x1b   : > { %v235_v20 = vld [vmem:[%s2170_s26 + $0x140] sm:$0xff]  ;;  %232 = vst [vmem:[%s2175_s27 + $0x90] sm:$0xff] %v231_v18  ;;  %234 = vst [vmem:[%s2175_s27 + $0x98] sm:$0xff] %v233_v19  ;;  %v237_v21 = vld [vmem:[%s2170_s26 + $0x148] sm:$0xff] }
  0x1c   : > { %236 = vst [vmem:[%s2175_s27 + $0xa0] sm:$0xff] %v235_v20  ;;  %v239_v22 = vld [vmem:[%s2170_s26 + $0x160] sm:$0xff]  ;;  %v241_v23 = vld [vmem:[%s2170_s26 + $0x168] sm:$0xff]  ;;  %238 = vst [vmem:[%s2175_s27 + $0xa8] sm:$0xff] %v237_v21 }
  0x1d   : > { %240 = vst [vmem:[%s2175_s27 + $0xb0] sm:$0xff] %v239_v22  ;;  %242 = vst [vmem:[%s2175_s27 + $0xb8] sm:$0xff] %v241_v23  ;;  %v243_v24 = vld [vmem:[%s2170_s26 + $0x180] sm:$0xff]  ;;  %v245_v25 = vld [vmem:[%s2170_s26 + $0x188] sm:$0xff] }
  0x1e   : > { %v247_v26 = vld [vmem:[%s2170_s26 + $0x1a0] sm:$0xff]  ;;  %244 = vst [vmem:[%s2175_s27 + $0xc0] sm:$0xff] %v243_v24  ;;  %246 = vst [vmem:[%s2175_s27 + $0xc8] sm:$0xff] %v245_v25  ;;  %v249_v27 = vld [vmem:[%s2170_s26 + $0x1a8] sm:$0xff] }
  0x1f   : > { %248 = vst [vmem:[%s2175_s27 + $0xd0] sm:$0xff] %v247_v26  ;;  %v251_v28 = vld [vmem:[%s2170_s26 + $0x1c0] sm:$0xff]  ;;  %v253_v29 = vld [vmem:[%s2170_s26 + $0x1c8] sm:$0xff]  ;;  %250 = vst [vmem:[%s2175_s27 + $0xd8] sm:$0xff] %v249_v27 }
  0x20   : > { %252 = vst [vmem:[%s2175_s27 + $0xe0] sm:$0xff] %v251_v28  ;;  %254 = vst [vmem:[%s2175_s27 + $0xe8] sm:$0xff] %v253_v29  ;;  %v255_v30 = vld [vmem:[%s2170_s26 + $0x1e0] sm:$0xff]  ;;  %v257_v31 = vld [vmem:[%s2170_s26 + $0x1e8] sm:$0xff] }
  0x21   : > { %v259_v32 = vld [vmem:[%s2170_s26 + $0x200] sm:$0xff]  ;;  %256 = vst [vmem:[%s2175_s27 + $0xf0] sm:$0xff] %v255_v30  ;;  %258 = vst [vmem:[%s2175_s27 + $0xf8] sm:$0xff] %v257_v31  ;;  %v261_v33 = vld [vmem:[%s2170_s26 + $0x208] sm:$0xff] }
  0x22   : > { %260 = vst [vmem:[%s2175_s27 + $0x100] sm:$0xff] %v259_v32  ;;  %v263_v34 = vld [vmem:[%s2170_s26 + $0x220] sm:$0xff]  ;;  %v265_v35 = vld [vmem:[%s2170_s26 + $0x228] sm:$0xff]  ;;  %262 = vst [vmem:[%s2175_s27 + $0x108] sm:$0xff] %v261_v33 }
  0x23   : > { %264 = vst [vmem:[%s2175_s27 + $0x110] sm:$0xff] %v263_v34  ;;  %266 = vst [vmem:[%s2175_s27 + $0x118] sm:$0xff] %v265_v35  ;;  %v267_v36 = vld [vmem:[%s2170_s26 + $0x240] sm:$0xff]  ;;  %v269_v37 = vld [vmem:[%s2170_s26 + $0x248] sm:$0xff] }
  0x24   : > { %v271_v38 = vld [vmem:[%s2170_s26 + $0x260] sm:$0xff]  ;;  %268 = vst [vmem:[%s2175_s27 + $0x120] sm:$0xff] %v267_v36  ;;  %270 = vst [vmem:[%s2175_s27 + $0x128] sm:$0xff] %v269_v37  ;;  %v273_v39 = vld [vmem:[%s2170_s26 + $0x268] sm:$0xff] }
  0x25   : > { %272 = vst [vmem:[%s2175_s27 + $0x130] sm:$0xff] %v271_v38  ;;  %v275_v40 = vld [vmem:[%s2170_s26 + $0x280] sm:$0xff]  ;;  %v277_v41 = vld [vmem:[%s2170_s26 + $0x288] sm:$0xff]  ;;  %274 = vst [vmem:[%s2175_s27 + $0x138] sm:$0xff] %v273_v39 }
  0x26   : > { %276 = vst [vmem:[%s2175_s27 + $0x140] sm:$0xff] %v275_v40  ;;  %278 = vst [vmem:[%s2175_s27 + $0x148] sm:$0xff] %v277_v41  ;;  %v279_v42 = vld [vmem:[%s2170_s26 + $0x2a0] sm:$0xff]  ;;  %v281_v43 = vld [vmem:[%s2170_s26 + $0x2a8] sm:$0xff] }
  0x27   : > { %v283_v44 = vld [vmem:[%s2170_s26 + $0x2c0] sm:$0xff]  ;;  %280 = vst [vmem:[%s2175_s27 + $0x150] sm:$0xff] %v279_v42  ;;  %282 = vst [vmem:[%s2175_s27 + $0x158] sm:$0xff] %v281_v43  ;;  %v285_v45 = vld [vmem:[%s2170_s26 + $0x2c8] sm:$0xff] }
  0x28   : > { %284 = vst [vmem:[%s2175_s27 + $0x160] sm:$0xff] %v283_v44  ;;  %v287_v46 = vld [vmem:[%s2170_s26 + $0x2e0] sm:$0xff]  ;;  %v289_v47 = vld [vmem:[%s2170_s26 + $0x2e8] sm:$0xff]  ;;  %286 = vst [vmem:[%s2175_s27 + $0x168] sm:$0xff] %v285_v45 }
  0x29   : > { %288 = vst [vmem:[%s2175_s27 + $0x170] sm:$0xff] %v287_v46  ;;  %290 = vst [vmem:[%s2175_s27 + $0x178] sm:$0xff] %v289_v47  ;;  %v291_v48 = vld [vmem:[%s2170_s26 + $0x300] sm:$0xff]  ;;  %v293_v49 = vld [vmem:[%s2170_s26 + $0x308] sm:$0xff] }
  0x2a   : > { %v295_v50 = vld [vmem:[%s2170_s26 + $0x320] sm:$0xff]  ;;  %292 = vst [vmem:[%s2175_s27 + $0x180] sm:$0xff] %v291_v48  ;;  %294 = vst [vmem:[%s2175_s27 + $0x188] sm:$0xff] %v293_v49  ;;  %v297_v51 = vld [vmem:[%s2170_s26 + $0x328] sm:$0xff] }
  0x2b   : > { %296 = vst [vmem:[%s2175_s27 + $0x190] sm:$0xff] %v295_v50  ;;  %v299_v52 = vld [vmem:[%s2170_s26 + $0x340] sm:$0xff]  ;;  %v301_v53 = vld [vmem:[%s2170_s26 + $0x348] sm:$0xff]  ;;  %298 = vst [vmem:[%s2175_s27 + $0x198] sm:$0xff] %v297_v51 }
  0x2c   : > { %300 = vst [vmem:[%s2175_s27 + $0x1a0] sm:$0xff] %v299_v52  ;;  %302 = vst [vmem:[%s2175_s27 + $0x1a8] sm:$0xff] %v301_v53  ;;  %v303_v54 = vld [vmem:[%s2170_s26 + $0x360] sm:$0xff]  ;;  %v305_v55 = vld [vmem:[%s2170_s26 + $0x368] sm:$0xff] }
  0x2d   : > { %v307_v56 = vld [vmem:[%s2170_s26 + $0x380] sm:$0xff]  ;;  %304 = vst [vmem:[%s2175_s27 + $0x1b0] sm:$0xff] %v303_v54  ;;  %306 = vst [vmem:[%s2175_s27 + $0x1b8] sm:$0xff] %v305_v55  ;;  %v309_v57 = vld [vmem:[%s2170_s26 + $0x388] sm:$0xff] }
  0x2e   : > { %308 = vst [vmem:[%s2175_s27 + $0x1c0] sm:$0xff] %v307_v56  ;;  %v311_v58 = vld [vmem:[%s2170_s26 + $0x3a0] sm:$0xff]  ;;  %v313_v59 = vld [vmem:[%s2170_s26 + $0x3a8] sm:$0xff]  ;;  %310 = vst [vmem:[%s2175_s27 + $0x1c8] sm:$0xff] %v309_v57 }
  0x2f   : > { %312 = vst [vmem:[%s2175_s27 + $0x1d0] sm:$0xff] %v311_v58  ;;  %314 = vst [vmem:[%s2175_s27 + $0x1d8] sm:$0xff] %v313_v59  ;;  %v315_v60 = vld [vmem:[%s2170_s26 + $0x3c0] sm:$0xff]  ;;  %v317_v61 = vld [vmem:[%s2170_s26 + $0x3c8] sm:$0xff] }
  0x30   : > { %v319_v62 = vld [vmem:[%s2170_s26 + $0x3e0] sm:$0xff]  ;;  %316 = vst [vmem:[%s2175_s27 + $0x1e0] sm:$0xff] %v315_v60  ;;  %318 = vst [vmem:[%s2175_s27 + $0x1e8] sm:$0xff] %v317_v61  ;;  %v321_v63 = vld [vmem:[%s2170_s26 + $0x3e8] sm:$0xff] }
  0x31   : > { %320 = vst [vmem:[%s2175_s27 + $0x1f0] sm:$0xff] %v319_v62  ;;  %v323_v0 = vld [vmem:[%s2170_s26 + $0x400] sm:$0xff]  ;;  %v325_v1 = vld [vmem:[%s2170_s26 + $0x408] sm:$0xff]  ;;  %322 = vst [vmem:[%s2175_s27 + $0x1f8] sm:$0xff] %v321_v63 }
  0x32   : > { %324 = vst [vmem:[%s2175_s27 + $0x200] sm:$0xff] %v323_v0  ;;  %326 = vst [vmem:[%s2175_s27 + $0x208] sm:$0xff] %v325_v1  ;;  %v327_v2 = vld [vmem:[%s2170_s26 + $0x420] sm:$0xff]  ;;  %v329_v3 = vld [vmem:[%s2170_s26 + $0x428] sm:$0xff] }
  0x33   : > { %v331_v4 = vld [vmem:[%s2170_s26 + $0x440] sm:$0xff]  ;;  %328 = vst [vmem:[%s2175_s27 + $0x210] sm:$0xff] %v327_v2  ;;  %330 = vst [vmem:[%s2175_s27 + $0x218] sm:$0xff] %v329_v3  ;;  %v333_v5 = vld [vmem:[%s2170_s26 + $0x448] sm:$0xff] }
  0x34   : > { %332 = vst [vmem:[%s2175_s27 + $0x220] sm:$0xff] %v331_v4  ;;  %v335_v6 = vld [vmem:[%s2170_s26 + $0x460] sm:$0xff]  ;;  %v337_v7 = vld [vmem:[%s2170_s26 + $0x468] sm:$0xff]  ;;  %334 = vst [vmem:[%s2175_s27 + $0x228] sm:$0xff] %v333_v5 }
  0x35   : > { %336 = vst [vmem:[%s2175_s27 + $0x230] sm:$0xff] %v335_v6  ;;  %338 = vst [vmem:[%s2175_s27 + $0x238] sm:$0xff] %v337_v7  ;;  %v339_v8 = vld [vmem:[%s2170_s26 + $0x480] sm:$0xff]  ;;  %v341_v9 = vld [vmem:[%s2170_s26 + $0x488] sm:$0xff] }
  0x36   : > { %v343_v10 = vld [vmem:[%s2170_s26 + $0x4a0] sm:$0xff]  ;;  %340 = vst [vmem:[%s2175_s27 + $0x240] sm:$0xff] %v339_v8  ;;  %342 = vst [vmem:[%s2175_s27 + $0x248] sm:$0xff] %v341_v9  ;;  %v345_v11 = vld [vmem:[%s2170_s26 + $0x4a8] sm:$0xff] }
  0x37   : > { %344 = vst [vmem:[%s2175_s27 + $0x250] sm:$0xff] %v343_v10  ;;  %v347_v12 = vld [vmem:[%s2170_s26 + $0x4c0] sm:$0xff]  ;;  %v349_v13 = vld [vmem:[%s2170_s26 + $0x4c8] sm:$0xff]  ;;  %346 = vst [vmem:[%s2175_s27 + $0x258] sm:$0xff] %v345_v11 }
  0x38   : > { %348 = vst [vmem:[%s2175_s27 + $0x260] sm:$0xff] %v347_v12  ;;  %350 = vst [vmem:[%s2175_s27 + $0x268] sm:$0xff] %v349_v13  ;;  %v351_v14 = vld [vmem:[%s2170_s26 + $0x4e0] sm:$0xff]  ;;  %v353_v15 = vld [vmem:[%s2170_s26 + $0x4e8] sm:$0xff] }
  0x39   : > { %v355_v16 = vld [vmem:[%s2170_s26 + $0x500] sm:$0xff]  ;;  %352 = vst [vmem:[%s2175_s27 + $0x270] sm:$0xff] %v351_v14  ;;  %354 = vst [vmem:[%s2175_s27 + $0x278] sm:$0xff] %v353_v15  ;;  %v357_v17 = vld [vmem:[%s2170_s26 + $0x508] sm:$0xff] }
  0x3a   : > { %356 = vst [vmem:[%s2175_s27 + $0x280] sm:$0xff] %v355_v16  ;;  %v359_v18 = vld [vmem:[%s2170_s26 + $0x520] sm:$0xff]  ;;  %v361_v19 = vld [vmem:[%s2170_s26 + $0x528] sm:$0xff]  ;;  %358 = vst [vmem:[%s2175_s27 + $0x288] sm:$0xff] %v357_v17 }
  0x3b   : > { %360 = vst [vmem:[%s2175_s27 + $0x290] sm:$0xff] %v359_v18  ;;  %362 = vst [vmem:[%s2175_s27 + $0x298] sm:$0xff] %v361_v19  ;;  %v363_v20 = vld [vmem:[%s2170_s26 + $0x540] sm:$0xff]  ;;  %v365_v21 = vld [vmem:[%s2170_s26 + $0x548] sm:$0xff] }
  0x3c   : > { %v367_v22 = vld [vmem:[%s2170_s26 + $0x560] sm:$0xff]  ;;  %364 = vst [vmem:[%s2175_s27 + $0x2a0] sm:$0xff] %v363_v20  ;;  %366 = vst [vmem:[%s2175_s27 + $0x2a8] sm:$0xff] %v365_v21  ;;  %v369_v23 = vld [vmem:[%s2170_s26 + $0x568] sm:$0xff] }
  0x3d   : > { %368 = vst [vmem:[%s2175_s27 + $0x2b0] sm:$0xff] %v367_v22  ;;  %v371_v24 = vld [vmem:[%s2170_s26 + $0x580] sm:$0xff]  ;;  %v373_v25 = vld [vmem:[%s2170_s26 + $0x588] sm:$0xff]  ;;  %370 = vst [vmem:[%s2175_s27 + $0x2b8] sm:$0xff] %v369_v23 }
  0x3e   : > { %372 = vst [vmem:[%s2175_s27 + $0x2c0] sm:$0xff] %v371_v24  ;;  %374 = vst [vmem:[%s2175_s27 + $0x2c8] sm:$0xff] %v373_v25  ;;  %v375_v26 = vld [vmem:[%s2170_s26 + $0x5a0] sm:$0xff]  ;;  %v377_v27 = vld [vmem:[%s2170_s26 + $0x5a8] sm:$0xff] }
  0x3f   : > { %v379_v28 = vld [vmem:[%s2170_s26 + $0x5c0] sm:$0xff]  ;;  %376 = vst [vmem:[%s2175_s27 + $0x2d0] sm:$0xff] %v375_v26  ;;  %378 = vst [vmem:[%s2175_s27 + $0x2d8] sm:$0xff] %v377_v27  ;;  %v381_v29 = vld [vmem:[%s2170_s26 + $0x5c8] sm:$0xff] }
  0x40   : > { %380 = vst [vmem:[%s2175_s27 + $0x2e0] sm:$0xff] %v379_v28  ;;  %v383_v30 = vld [vmem:[%s2170_s26 + $0x5e0] sm:$0xff]  ;;  %v385_v31 = vld [vmem:[%s2170_s26 + $0x5e8] sm:$0xff]  ;;  %382 = vst [vmem:[%s2175_s27 + $0x2e8] sm:$0xff] %v381_v29 }
  0x41   : > { %384 = vst [vmem:[%s2175_s27 + $0x2f0] sm:$0xff] %v383_v30  ;;  %386 = vst [vmem:[%s2175_s27 + $0x2f8] sm:$0xff] %v385_v31  ;;  %v387_v32 = vld [vmem:[%s2170_s26 + $0x600] sm:$0xff]  ;;  %v389_v33 = vld [vmem:[%s2170_s26 + $0x608] sm:$0xff] }
  0x42   : > { %v391_v34 = vld [vmem:[%s2170_s26 + $0x620] sm:$0xff]  ;;  %388 = vst [vmem:[%s2175_s27 + $0x300] sm:$0xff] %v387_v32  ;;  %390 = vst [vmem:[%s2175_s27 + $0x308] sm:$0xff] %v389_v33  ;;  %v393_v35 = vld [vmem:[%s2170_s26 + $0x628] sm:$0xff] }
  0x43   : > { %392 = vst [vmem:[%s2175_s27 + $0x310] sm:$0xff] %v391_v34  ;;  %v395_v36 = vld [vmem:[%s2170_s26 + $0x640] sm:$0xff]  ;;  %v397_v37 = vld [vmem:[%s2170_s26 + $0x648] sm:$0xff]  ;;  %394 = vst [vmem:[%s2175_s27 + $0x318] sm:$0xff] %v393_v35 }
  0x44   : > { %396 = vst [vmem:[%s2175_s27 + $0x320] sm:$0xff] %v395_v36  ;;  %398 = vst [vmem:[%s2175_s27 + $0x328] sm:$0xff] %v397_v37  ;;  %v399_v38 = vld [vmem:[%s2170_s26 + $0x660] sm:$0xff]  ;;  %v401_v39 = vld [vmem:[%s2170_s26 + $0x668] sm:$0xff] }
  0x45   : > { %v403_v40 = vld [vmem:[%s2170_s26 + $0x680] sm:$0xff]  ;;  %400 = vst [vmem:[%s2175_s27 + $0x330] sm:$0xff] %v399_v38  ;;  %402 = vst [vmem:[%s2175_s27 + $0x338] sm:$0xff] %v401_v39  ;;  %v405_v41 = vld [vmem:[%s2170_s26 + $0x688] sm:$0xff] }
  0x46   : > { %404 = vst [vmem:[%s2175_s27 + $0x340] sm:$0xff] %v403_v40  ;;  %v407_v42 = vld [vmem:[%s2170_s26 + $0x6a0] sm:$0xff]  ;;  %v409_v43 = vld [vmem:[%s2170_s26 + $0x6a8] sm:$0xff]  ;;  %406 = vst [vmem:[%s2175_s27 + $0x348] sm:$0xff] %v405_v41 }
  0x47   : > { %408 = vst [vmem:[%s2175_s27 + $0x350] sm:$0xff] %v407_v42  ;;  %410 = vst [vmem:[%s2175_s27 + $0x358] sm:$0xff] %v409_v43  ;;  %v411_v44 = vld [vmem:[%s2170_s26 + $0x6c0] sm:$0xff]  ;;  %v413_v45 = vld [vmem:[%s2170_s26 + $0x6c8] sm:$0xff] }
  0x48   : > { %v415_v46 = vld [vmem:[%s2170_s26 + $0x6e0] sm:$0xff]  ;;  %412 = vst [vmem:[%s2175_s27 + $0x360] sm:$0xff] %v411_v44  ;;  %414 = vst [vmem:[%s2175_s27 + $0x368] sm:$0xff] %v413_v45  ;;  %v417_v47 = vld [vmem:[%s2170_s26 + $0x6e8] sm:$0xff] }
  0x49   : > { %416 = vst [vmem:[%s2175_s27 + $0x370] sm:$0xff] %v415_v46  ;;  %v419_v48 = vld [vmem:[%s2170_s26 + $0x700] sm:$0xff]  ;;  %v421_v49 = vld [vmem:[%s2170_s26 + $0x708] sm:$0xff]  ;;  %418 = vst [vmem:[%s2175_s27 + $0x378] sm:$0xff] %v417_v47 }
  0x4a   : > { %420 = vst [vmem:[%s2175_s27 + $0x380] sm:$0xff] %v419_v48  ;;  %422 = vst [vmem:[%s2175_s27 + $0x388] sm:$0xff] %v421_v49  ;;  %v423_v50 = vld [vmem:[%s2170_s26 + $0x720] sm:$0xff]  ;;  %v425_v51 = vld [vmem:[%s2170_s26 + $0x728] sm:$0xff] }
  0x4b   : > { %v427_v52 = vld [vmem:[%s2170_s26 + $0x740] sm:$0xff]  ;;  %424 = vst [vmem:[%s2175_s27 + $0x390] sm:$0xff] %v423_v50  ;;  %426 = vst [vmem:[%s2175_s27 + $0x398] sm:$0xff] %v425_v51  ;;  %v429_v53 = vld [vmem:[%s2170_s26 + $0x748] sm:$0xff] }
  0x4c   : > { %428 = vst [vmem:[%s2175_s27 + $0x3a0] sm:$0xff] %v427_v52  ;;  %v431_v54 = vld [vmem:[%s2170_s26 + $0x760] sm:$0xff]  ;;  %v433_v55 = vld [vmem:[%s2170_s26 + $0x768] sm:$0xff]  ;;  %430 = vst [vmem:[%s2175_s27 + $0x3a8] sm:$0xff] %v429_v53 }
  0x4d   : > { %432 = vst [vmem:[%s2175_s27 + $0x3b0] sm:$0xff] %v431_v54  ;;  %434 = vst [vmem:[%s2175_s27 + $0x3b8] sm:$0xff] %v433_v55  ;;  %v435_v56 = vld [vmem:[%s2170_s26 + $0x780] sm:$0xff]  ;;  %v437_v57 = vld [vmem:[%s2170_s26 + $0x788] sm:$0xff] }
  0x4e   : > { %v439_v58 = vld [vmem:[%s2170_s26 + $0x7a0] sm:$0xff]  ;;  %436 = vst [vmem:[%s2175_s27 + $0x3c0] sm:$0xff] %v435_v56  ;;  %438 = vst [vmem:[%s2175_s27 + $0x3c8] sm:$0xff] %v437_v57  ;;  %v441_v59 = vld [vmem:[%s2170_s26 + $0x7a8] sm:$0xff] }
  0x4f   : > { %440 = vst [vmem:[%s2175_s27 + $0x3d0] sm:$0xff] %v439_v58  ;;  %v443_v60 = vld [vmem:[%s2170_s26 + $0x7c0] sm:$0xff]  ;;  %v445_v61 = vld [vmem:[%s2170_s26 + $0x7c8] sm:$0xff]  ;;  %442 = vst [vmem:[%s2175_s27 + $0x3d8] sm:$0xff] %v441_v59 }
  0x50   : > { %444 = vst [vmem:[%s2175_s27 + $0x3e0] sm:$0xff] %v443_v60  ;;  %446 = vst [vmem:[%s2175_s27 + $0x3e8] sm:$0xff] %v445_v61  ;;  %v447_v62 = vld [vmem:[%s2170_s26 + $0x7e0] sm:$0xff]  ;;  %v449_v63 = vld [vmem:[%s2170_s26 + $0x7e8] sm:$0xff] }
  0x51   : > { %448 = vst [vmem:[%s2175_s27 + $0x3f0] sm:$0xff] %v447_v62  ;;  %450 = vst [vmem:[%s2175_s27 + $0x3f8] sm:$0xff] %v449_v63 }
  0x52 PF: > { %p1687_p6 = scmp.ge.s32.totalorder %s2105_s16, 1  ;;  %p463_p7 = scmp.lt.s32.totalorder %s2105_s16, 3 }
  0x54   : > { %p464_p8 = pnand %p1687_p6, %p463_p7 }
  0x55   : > { %s470_s28 = sand.u32 (!%p464_p8), 1, %s2089_s12   ;;  %v2436_v0 = vld [vmem:[%s2619_s0] sm:$0xff] (!%p464_p8)  ;;  %v2441_v1 = vld [vmem:[%s2619_s0 + $0x8] sm:$0xff] (!%p464_p8)  ;;  %s1689_s8 = sshll.u32 (!%p464_p8), %s2097_s14, 2 }
  0x56   : > { %467 = sbr.rel (%p464_p8) target bundleno = 438 (0x1b6), region = 51  ;;  %s1688_s6 = sshll.u32 (!%p464_p8), %s470_s28, 10  ;;  %v2445_v2 = vcombine.high (!%p464_p8), %v2436_v0, %v2436_v0  ;;  %v2449_v3 = vcombine.high (!%p464_p8), %v2441_v1, %v2441_v1 }
  0x57   : > { %s2451_s7 = scalar_lea.vmem (!%p464_p8), [#allocation3], %s1688_s6  ;;  %p523_p9 = scmp.lt.s32.totalorder (!%p464_p8), %s1689_s8, 7 }
  0x58   : > { %v1871_v4 = vld [vmem:[%s2451_s7 + $0x4] ss:$16 sps:$4 sm:$0xff] (!%p464_p8)   ;;  %1365 = vmatprep.mubr.bf16.mxu0 (!%p464_p8), %v2445_v2  ;;  %1406 = vmatprep.mubr.bf16.mxu1 (!%p464_p8), %v2449_v3  ;;  %v1875_v6 = vld [vmem:[%s2451_s7] ss:$16 sps:$4 sm:$0xff] (!%p464_p8)  }
  0x59   : > { %v1873_v5 = vld [vmem:[%s2451_s7 + $0x204] ss:$16 sps:$4 sm:$0xff] (!%p464_p8)   ;;  %1333 = vmatprep.subr.bf16.mxu0 (!%p464_p8), %v1871_v4  ;;  %v1876_v7 = vld [vmem:[%s2451_s7 + $0x200] ss:$16 sps:$4 sm:$0xff] (!%p464_p8)  }
  0x5a   : > { %1374 = vmatprep.subr.bf16.mxu1 (!%p464_p8), %v1873_v5  ;;  %v1877_v8 = vld [vmem:[%s2451_s7 + $0x24] ss:$16 sps:$4 sm:$0xff] (!%p464_p8)   ;;  %1334 = vmatpush1.bf16.msra.mxu0 (!%p464_p8), %v1875_v6  ;;  %v1881_v10 = vld [vmem:[%s2451_s7 + $0x20] ss:$16 sps:$4 sm:$0xff] (!%p464_p8)  }
  0x5b   : > { %1375 = vmatpush1.bf16.msra.mxu1 (!%p464_p8), %v1876_v7  ;;  %v1879_v9 = vld [vmem:[%s2451_s7 + $0x224] ss:$16 sps:$4 sm:$0xff] (!%p464_p8)   ;;  %1335 = vmatprep.subr.bf16.mxu0 (!%p464_p8), %v1877_v8  ;;  %v1882_v11 = vld [vmem:[%s2451_s7 + $0x220] ss:$16 sps:$4 sm:$0xff] (!%p464_p8)   ;;  %v1973_v8 = vld [vmem:[%s2451_s7 + $0xc] ss:$16 sps:$4 sm:$0xff] (!%p464_p8)  }
  0x5c   : > { %1376 = vmatprep.subr.bf16.mxu1 (!%p464_p8), %v1879_v9  ;;  %v1883_v12 = vld [vmem:[%s2451_s7 + $0x44] ss:$16 sps:$4 sm:$0xff] (!%p464_p8)   ;;  %v1887_v14 = vld [vmem:[%s2451_s7 + $0x40] ss:$16 sps:$4 sm:$0xff] (!%p464_p8)   ;;  %v1976_v9 = vld [vmem:[%s2451_s7 + $0x20c] ss:$16 sps:$4 sm:$0xff] (!%p464_p8)  }
  0x5d   : > { %v1885_v13 = vld [vmem:[%s2451_s7 + $0x244] ss:$16 sps:$4 sm:$0xff]   ;;  %v1888_v15 = vld [vmem:[%s2451_s7 + $0x240] ss:$16 sps:$4 sm:$0xff]   ;;  %s2630_s8 = smov (!%p523_p9, %s1689_s8), 7 }
  0x5e   : > { %1336 = vmatpush1.bf16.msra.mxu0 %v1881_v10  ;;  %v1889_v16 = vld [vmem:[%s2451_s7 + $0x64] ss:$16 sps:$4 sm:$0xff]   ;;  %v1893_v18 = vld [vmem:[%s2451_s7 + $0x60] ss:$16 sps:$4 sm:$0xff]   ;;  %v2523_v10 = vcombine.low %v2436_v0, %v2436_v0  ;;  %v1977_v0 = vld [vmem:[%s2451_s7 + $0x28] ss:$16 sps:$4 sm:$0xff]   ;;  %s525_s11 = scalar_lea.vmem %s2621_s2, %s2630_s8 }
  0x5f   : > { %1377 = vmatpush1.bf16.msra.mxu1 %v1882_v11  ;;  %1337 = vmatprep.subr.bf16.mxu0 %v1883_v12  ;;  %v1891_v17 = vld [vmem:[%s2451_s7 + $0x264] ss:$16 sps:$4 sm:$0xff]   ;;  %v1894_v19 = vld [vmem:[%s2451_s7 + $0x260] ss:$16 sps:$4 sm:$0xff]   ;;  %v2527_v11 = vcombine.low %v2441_v1, %v2441_v1  ;;  %v1971_v12 = vld [vmem:[%s2451_s7 + $0x8] ss:$16 sps:$4 sm:$0xff]  }
  0x60   : > { %1378 = vmatprep.subr.bf16.mxu1 %v1885_v13  ;;  %v1895_v20 = vld [vmem:[%s2451_s7 + $0x84] ss:$16 sps:$4 sm:$0xff]   ;;  %v1899_v22 = vld [vmem:[%s2451_s7 + $0x80] ss:$16 sps:$4 sm:$0xff]   ;;  %v1974_v13 = vld [vmem:[%s2451_s7 + $0x208] ss:$16 sps:$4 sm:$0xff]  }
  0x61   : > { %v1897_v21 = vld [vmem:[%s2451_s7 + $0x284] ss:$16 sps:$4 sm:$0xff]   ;;  %v1900_v23 = vld [vmem:[%s2451_s7 + $0x280] ss:$16 sps:$4 sm:$0xff]   ;;  %v1985_v1 = vld [vmem:[%s2451_s7 + $0x4c] ss:$16 sps:$4 sm:$0xff]  }
  0x62   : > { %1338 = vmatpush1.bf16.msra.mxu0 %v1887_v14  ;;  %v1901_v24 = vld [vmem:[%s2451_s7 + $0xa4] ss:$16 sps:$4 sm:$0xff]   ;;  %v1905_v26 = vld [vmem:[%s2451_s7 + $0xa0] ss:$16 sps:$4 sm:$0xff]   ;;  %v1979_v14 = vld [vmem:[%s2451_s7 + $0x2c] ss:$16 sps:$4 sm:$0xff]  }
  0x63   : > { %1379 = vmatpush1.bf16.msra.mxu1 %v1888_v15  ;;  %1339 = vmatprep.subr.bf16.mxu0 %v1889_v16  ;;  %v1903_v25 = vld [vmem:[%s2451_s7 + $0x2a4] ss:$16 sps:$4 sm:$0xff]   ;;  %v1906_v27 = vld [vmem:[%s2451_s7 + $0x2a0] ss:$16 sps:$4 sm:$0xff]   ;;  %v1982_v15 = vld [vmem:[%s2451_s7 + $0x22c] ss:$16 sps:$4 sm:$0xff]  }
  0x64   : > { %1380 = vmatprep.subr.bf16.mxu1 %v1891_v17  ;;  %v1907_v28 = vld [vmem:[%s2451_s7 + $0xc4] ss:$16 sps:$4 sm:$0xff]   ;;  %v1911_v30 = vld [vmem:[%s2451_s7 + $0xc0] ss:$16 sps:$4 sm:$0xff]   ;;  %v1980_v16 = vld [vmem:[%s2451_s7 + $0x228] ss:$16 sps:$4 sm:$0xff]  }
  0x65   : > { %v1909_v29 = vld [vmem:[%s2451_s7 + $0x2c4] ss:$16 sps:$4 sm:$0xff]   ;;  %v1912_v31 = vld [vmem:[%s2451_s7 + $0x2c0] ss:$16 sps:$4 sm:$0xff]   ;;  %v1988_v17 = vld [vmem:[%s2451_s7 + $0x24c] ss:$16 sps:$4 sm:$0xff]  }
  0x66   : > { %1340 = vmatpush1.bf16.msra.mxu0 %v1893_v18  ;;  %v1913_v32 = vld [vmem:[%s2451_s7 + $0xe4] ss:$16 sps:$4 sm:$0xff]   ;;  %v1917_v34 = vld [vmem:[%s2451_s7 + $0xe0] ss:$16 sps:$4 sm:$0xff]   ;;  %v1983_v18 = vld [vmem:[%s2451_s7 + $0x48] ss:$16 sps:$4 sm:$0xff]  }
  0x67   : > { %1381 = vmatpush1.bf16.msra.mxu1 %v1894_v19  ;;  %1341 = vmatprep.subr.bf16.mxu0 %v1895_v20  ;;  %v1915_v33 = vld [vmem:[%s2451_s7 + $0x2e4] ss:$16 sps:$4 sm:$0xff]   ;;  %v1918_v35 = vld [vmem:[%s2451_s7 + $0x2e0] ss:$16 sps:$4 sm:$0xff]   ;;  %v1986_v19 = vld [vmem:[%s2451_s7 + $0x248] ss:$16 sps:$4 sm:$0xff]  }
  0x68   : > { %1382 = vmatprep.subr.bf16.mxu1 %v1897_v21  ;;  %v1919_v36 = vld [vmem:[%s2451_s7 + $0x104] ss:$16 sps:$4 sm:$0xff]   ;;  %v1923_v38 = vld [vmem:[%s2451_s7 + $0x100] ss:$16 sps:$4 sm:$0xff]   ;;  %v1991_v20 = vld [vmem:[%s2451_s7 + $0x6c] ss:$16 sps:$4 sm:$0xff]  }
  0x69   : > { %v1921_v37 = vld [vmem:[%s2451_s7 + $0x304] ss:$16 sps:$4 sm:$0xff]   ;;  %v1924_v39 = vld [vmem:[%s2451_s7 + $0x300] ss:$16 sps:$4 sm:$0xff]   ;;  %v1994_v21 = vld [vmem:[%s2451_s7 + $0x26c] ss:$16 sps:$4 sm:$0xff]  }
  0x6a   : > { %1342 = vmatpush1.bf16.msra.mxu0 %v1899_v22  ;;  %v1925_v40 = vld [vmem:[%s2451_s7 + $0x124] ss:$16 sps:$4 sm:$0xff]   ;;  %v1929_v42 = vld [vmem:[%s2451_s7 + $0x120] ss:$16 sps:$4 sm:$0xff]   ;;  %v1989_v22 = vld [vmem:[%s2451_s7 + $0x68] ss:$16 sps:$4 sm:$0xff]  }
  0x6b   : > { %1383 = vmatpush1.bf16.msra.mxu1 %v1900_v23  ;;  %1343 = vmatprep.subr.bf16.mxu0 %v1901_v24  ;;  %v1927_v41 = vld [vmem:[%s2451_s7 + $0x324] ss:$16 sps:$4 sm:$0xff]   ;;  %v1930_v43 = vld [vmem:[%s2451_s7 + $0x320] ss:$16 sps:$4 sm:$0xff]   ;;  %v1992_v23 = vld [vmem:[%s2451_s7 + $0x268] ss:$16 sps:$4 sm:$0xff]  }
  0x6c   : > { %1384 = vmatprep.subr.bf16.mxu1 %v1903_v25  ;;  %v1931_v44 = vld [vmem:[%s2451_s7 + $0x144] ss:$16 sps:$4 sm:$0xff]   ;;  %v1935_v46 = vld [vmem:[%s2451_s7 + $0x140] ss:$16 sps:$4 sm:$0xff]   ;;  %v1995_v24 = vld [vmem:[%s2451_s7 + $0x88] ss:$16 sps:$4 sm:$0xff]  }
  0x6d   : > { %v1933_v45 = vld [vmem:[%s2451_s7 + $0x344] ss:$16 sps:$4 sm:$0xff]   ;;  %v1936_v47 = vld [vmem:[%s2451_s7 + $0x340] ss:$16 sps:$4 sm:$0xff]   ;;  %v1998_v25 = vld [vmem:[%s2451_s7 + $0x288] ss:$16 sps:$4 sm:$0xff]  }
  0x6e   : > { %1344 = vmatpush1.bf16.msra.mxu0 %v1905_v26  ;;  %v1937_v48 = vld [vmem:[%s2451_s7 + $0x164] ss:$16 sps:$4 sm:$0xff]   ;;  %v1941_v50 = vld [vmem:[%s2451_s7 + $0x160] ss:$16 sps:$4 sm:$0xff]   ;;  %v2003_v26 = vld [vmem:[%s2451_s7 + $0xac] ss:$16 sps:$4 sm:$0xff]  }
  0x6f   : > { %1385 = vmatpush1.bf16.msra.mxu1 %v1906_v27  ;;  %1345 = vmatprep.subr.bf16.mxu0 %v1907_v28  ;;  %v1939_v49 = vld [vmem:[%s2451_s7 + $0x364] ss:$16 sps:$4 sm:$0xff]   ;;  %v1942_v51 = vld [vmem:[%s2451_s7 + $0x360] ss:$16 sps:$4 sm:$0xff]   ;;  %v2006_v27 = vld [vmem:[%s2451_s7 + $0x2ac] ss:$16 sps:$4 sm:$0xff]  }
  0x70   : > { %1386 = vmatprep.subr.bf16.mxu1 %v1909_v29  ;;  %v1943_v52 = vld [vmem:[%s2451_s7 + $0x184] ss:$16 sps:$4 sm:$0xff]   ;;  %v1947_v54 = vld [vmem:[%s2451_s7 + $0x180] ss:$16 sps:$4 sm:$0xff]   ;;  %v2001_v28 = vld [vmem:[%s2451_s7 + $0xa8] ss:$16 sps:$4 sm:$0xff]  }
  0x71   : > { %v1945_v53 = vld [vmem:[%s2451_s7 + $0x384] ss:$16 sps:$4 sm:$0xff]   ;;  %v1948_v55 = vld [vmem:[%s2451_s7 + $0x380] ss:$16 sps:$4 sm:$0xff]   ;;  %v2004_v29 = vld [vmem:[%s2451_s7 + $0x2a8] ss:$16 sps:$4 sm:$0xff]  }
  0x72   : > { %1346 = vmatpush1.bf16.msra.mxu0 %v1911_v30  ;;  %v1949_v56 = vld [vmem:[%s2451_s7 + $0x1a4] ss:$16 sps:$4 sm:$0xff]   ;;  %v1953_v58 = vld [vmem:[%s2451_s7 + $0x1a0] ss:$16 sps:$4 sm:$0xff]   ;;  %v2009_v30 = vld [vmem:[%s2451_s7 + $0xcc] ss:$16 sps:$4 sm:$0xff]  }
  0x73   : > { %1387 = vmatpush1.bf16.msra.mxu1 %v1912_v31  ;;  %1347 = vmatprep.subr.bf16.mxu0 %v1913_v32  ;;  %v1951_v57 = vld [vmem:[%s2451_s7 + $0x3a4] ss:$16 sps:$4 sm:$0xff]   ;;  %v1954_v59 = vld [vmem:[%s2451_s7 + $0x3a0] ss:$16 sps:$4 sm:$0xff]   ;;  %v2012_v31 = vld [vmem:[%s2451_s7 + $0x2cc] ss:$16 sps:$4 sm:$0xff]  }
  0x74   : > { %1388 = vmatprep.subr.bf16.mxu1 %v1915_v33  ;;  %v1955_v60 = vld [vmem:[%s2451_s7 + $0x1c4] ss:$16 sps:$4 sm:$0xff]   ;;  %v1959_v62 = vld [vmem:[%s2451_s7 + $0x1c0] ss:$16 sps:$4 sm:$0xff]   ;;  %v2007_v32 = vld [vmem:[%s2451_s7 + $0xc8] ss:$16 sps:$4 sm:$0xff]  }
  0x75   : > { %v1957_v61 = vld [vmem:[%s2451_s7 + $0x3c4] ss:$16 sps:$4 sm:$0xff]   ;;  %v1960_v63 = vld [vmem:[%s2451_s7 + $0x3c0] ss:$16 sps:$4 sm:$0xff]   ;;  %v2010_v33 = vld [vmem:[%s2451_s7 + $0x2c8] ss:$16 sps:$4 sm:$0xff]  }
  0x76   : > { %1348 = vmatpush1.bf16.msra.mxu0 %v1917_v34  ;;  %v1961_v4 = vld [vmem:[%s2451_s7 + $0x1e4] ss:$16 sps:$4 sm:$0xff]   ;;  %v1965_v6 = vld [vmem:[%s2451_s7 + $0x1e0] ss:$16 sps:$4 sm:$0xff]   ;;  %v2015_v34 = vld [vmem:[%s2451_s7 + $0xec] ss:$16 sps:$4 sm:$0xff]  }
  0x77   : > { %1389 = vmatpush1.bf16.msra.mxu1 %v1918_v35  ;;  %1349 = vmatprep.subr.bf16.mxu0 %v1919_v36  ;;  %v1963_v5 = vld [vmem:[%s2451_s7 + $0x3e4] ss:$16 sps:$4 sm:$0xff]   ;;  %v1966_v7 = vld [vmem:[%s2451_s7 + $0x3e0] ss:$16 sps:$4 sm:$0xff]   ;;  %v2018_v35 = vld [vmem:[%s2451_s7 + $0x2ec] ss:$16 sps:$4 sm:$0xff]  }
  0x78   : > { %1390 = vmatprep.subr.bf16.mxu1 %v1921_v37  ;;  %v2013_v36 = vld [vmem:[%s2451_s7 + $0xe8] ss:$16 sps:$4 sm:$0xff]   ;;  %s1691_s12 = sshll.u32 %s2630_s8, 2 }
  0x79   : > { %v2016_v37 = vld [vmem:[%s2451_s7 + $0x2e8] ss:$16 sps:$4 sm:$0xff]   ;;  %s535_s19 = scalar_lea.vmem %s2622_s3, %s1691_s12 }
  0x7a   : > { %1350 = vmatpush1.bf16.msra.mxu0 %v1923_v38  ;;  %v2021_v38 = vld [vmem:[%s2451_s7 + $0x10c] ss:$16 sps:$4 sm:$0xff]  }
  0x7b   : > { %1391 = vmatpush1.bf16.msra.mxu1 %v1924_v39  ;;  %1351 = vmatprep.subr.bf16.mxu0 %v1925_v40  ;;  %v2024_v39 = vld [vmem:[%s2451_s7 + $0x30c] ss:$16 sps:$4 sm:$0xff]   ;;  %v2019_v40 = vld [vmem:[%s2451_s7 + $0x108] ss:$16 sps:$4 sm:$0xff]  }
  0x7c   : > { %1392 = vmatprep.subr.bf16.mxu1 %v1927_v41  ;;  %v2022_v41 = vld [vmem:[%s2451_s7 + $0x308] ss:$16 sps:$4 sm:$0xff]  }
  0x7e   : > { %1352 = vmatpush1.bf16.msra.mxu0 %v1929_v42  ;;  %v2027_v42 = vld [vmem:[%s2451_s7 + $0x12c] ss:$16 sps:$4 sm:$0xff]  }
  0x7f   : > { %1393 = vmatpush1.bf16.msra.mxu1 %v1930_v43  ;;  %1353 = vmatprep.subr.bf16.mxu0 %v1931_v44  ;;  %v2030_v43 = vld [vmem:[%s2451_s7 + $0x32c] ss:$16 sps:$4 sm:$0xff]   ;;  %v2025_v44 = vld [vmem:[%s2451_s7 + $0x128] ss:$16 sps:$4 sm:$0xff]  }
  0x80   : > { %1394 = vmatprep.subr.bf16.mxu1 %v1933_v45  ;;  %v2028_v45 = vld [vmem:[%s2451_s7 + $0x328] ss:$16 sps:$4 sm:$0xff]  }
  0x82   : > { %1354 = vmatpush1.bf16.msra.mxu0 %v1935_v46  ;;  %v2033_v46 = vld [vmem:[%s2451_s7 + $0x14c] ss:$16 sps:$4 sm:$0xff]  }
  0x83   : > { %1395 = vmatpush1.bf16.msra.mxu1 %v1936_v47  ;;  %1355 = vmatprep.subr.bf16.mxu0 %v1937_v48  ;;  %v2036_v47 = vld [vmem:[%s2451_s7 + $0x34c] ss:$16 sps:$4 sm:$0xff]   ;;  %v2031_v48 = vld [vmem:[%s2451_s7 + $0x148] ss:$16 sps:$4 sm:$0xff]  }
  0x84   : > { %1396 = vmatprep.subr.bf16.mxu1 %v1939_v49  ;;  %v2034_v49 = vld [vmem:[%s2451_s7 + $0x348] ss:$16 sps:$4 sm:$0xff]  }
  0x86   : > { %1356 = vmatpush1.bf16.msra.mxu0 %v1941_v50  ;;  %v2039_v50 = vld [vmem:[%s2451_s7 + $0x16c] ss:$16 sps:$4 sm:$0xff]  }
  0x87   : > { %1397 = vmatpush1.bf16.msra.mxu1 %v1942_v51  ;;  %1357 = vmatprep.subr.bf16.mxu0 %v1943_v52  ;;  %v2042_v51 = vld [vmem:[%s2451_s7 + $0x36c] ss:$16 sps:$4 sm:$0xff]   ;;  %v2037_v52 = vld [vmem:[%s2451_s7 + $0x168] ss:$16 sps:$4 sm:$0xff]  }
  0x88   : > { %1398 = vmatprep.subr.bf16.mxu1 %v1945_v53  ;;  %v2040_v53 = vld [vmem:[%s2451_s7 + $0x368] ss:$16 sps:$4 sm:$0xff]  }
  0x8a   : > { %1358 = vmatpush1.bf16.msra.mxu0 %v1947_v54  ;;  %v2045_v54 = vld [vmem:[%s2451_s7 + $0x18c] ss:$16 sps:$4 sm:$0xff]  }
  0x8b   : > { %1399 = vmatpush1.bf16.msra.mxu1 %v1948_v55  ;;  %1359 = vmatprep.subr.bf16.mxu0 %v1949_v56  ;;  %v2048_v55 = vld [vmem:[%s2451_s7 + $0x38c] ss:$16 sps:$4 sm:$0xff]   ;;  %v2043_v56 = vld [vmem:[%s2451_s7 + $0x188] ss:$16 sps:$4 sm:$0xff]  }
  0x8c   : > { %1400 = vmatprep.subr.bf16.mxu1 %v1951_v57  ;;  %v2046_v57 = vld [vmem:[%s2451_s7 + $0x388] ss:$16 sps:$4 sm:$0xff]  }
  0x8e   : > { %1360 = vmatpush1.bf16.msra.mxu0 %v1953_v58  ;;  %v2051_v58 = vld [vmem:[%s2451_s7 + $0x1ac] ss:$16 sps:$4 sm:$0xff]  }
  0x8f   : > { %1401 = vmatpush1.bf16.msra.mxu1 %v1954_v59  ;;  %1361 = vmatprep.subr.bf16.mxu0 %v1955_v60  ;;  %v2054_v59 = vld [vmem:[%s2451_s7 + $0x3ac] ss:$16 sps:$4 sm:$0xff]   ;;  %v2049_v60 = vld [vmem:[%s2451_s7 + $0x1a8] ss:$16 sps:$4 sm:$0xff]  }
  0x90   : > { %1402 = vmatprep.subr.bf16.mxu1 %v1957_v61  ;;  %v2052_v61 = vld [vmem:[%s2451_s7 + $0x3a8] ss:$16 sps:$4 sm:$0xff]  }
  0x92   : > { %1362 = vmatpush1.bf16.msra.mxu0 %v1959_v62  ;;  %v2057_v62 = vld [vmem:[%s2451_s7 + $0x1cc] ss:$16 sps:$4 sm:$0xff]  }
  0x93   : > { %1403 = vmatpush1.bf16.msra.mxu1 %v1960_v63  ;;  %1363 = vmatprep.subr.bf16.mxu0 %v1961_v4  ;;  %v2060_v63 = vld [vmem:[%s2451_s7 + $0x3cc] ss:$16 sps:$4 sm:$0xff]   ;;  %v2055_v4 = vld [vmem:[%s2451_s7 + $0x1c8] ss:$16 sps:$4 sm:$0xff]  }
  0x94   : > { %1404 = vmatprep.subr.bf16.mxu1 %v1963_v5  ;;  %v2058_v5 = vld [vmem:[%s2451_s7 + $0x3c8] ss:$16 sps:$4 sm:$0xff]  }
  0x96   : > { %1364 = vmatpush1.bf16.msra.mxu0 %v1965_v6  ;;  %v2063_v6 = vld [vmem:[%s2451_s7 + $0x1ec] ss:$16 sps:$4 sm:$0xff]  }
  0x97   : > { %1405 = vmatpush1.bf16.msra.mxu1 %v1966_v7  ;;  %1415 = vmatprep.subr.bf16.mxu0 %v1973_v8  ;;  %v2066_v7 = vld [vmem:[%s2451_s7 + $0x3ec] ss:$16 sps:$4 sm:$0xff]   ;;  %v2061_v8 = vld [vmem:[%s2451_s7 + $0x1e8] ss:$16 sps:$4 sm:$0xff]  }
  0x98   : > { %1456 = vmatprep.subr.bf16.mxu1 %v1976_v9  ;;  %v2064_v9 = vld [vmem:[%s2451_s7 + $0x3e8] ss:$16 sps:$4 sm:$0xff]  }
  0x99   : > { %1366 = vmatmul.mubr.bf16.vlgmr.msra.gmra.mrb[0].mxu0 %v2523_v10 }
  0x9a   : > { %1407 = vmatmul.mubr.bf16.vlgmr.msra.gmra.mrb[0].mxu1 %v2527_v11  ;;  %1416 = vmatpush1.bf16.msra.mxu0 %v1971_v12  ;;  %v1514_v12 = vlaneseq }
  0x9b   : > { %1457 = vmatpush1.bf16.msra.mxu1 %v1974_v13  ;;  %1417 = vmatprep.subr.bf16.mxu0 %v1979_v14 }
  0x9c   : > { %1458 = vmatprep.subr.bf16.mxu1 %v1982_v15  ;;  %1447 = vmatprep.mubr.bf16.mxu0 %v2445_v2  ;;  %v1997_v2 = vld [vmem:[%s2451_s7 + $0x8c] ss:$16 sps:$4 sm:$0xff]   ;;  %v1515_v13 = vshrl.u32 %v1514_v12, 7  ;;  %v1512_v15 = vld [vmem:[%s525_s11] sm:$0xf] }
  0x9d   : > { %1488 = vmatprep.mubr.bf16.mxu1 %v2449_v3  ;;  %v2000_v3 = vld [vmem:[%s2451_s7 + $0x28c] ss:$16 sps:$4 sm:$0xff]  }
  0x9e   : > { %1418 = vmatpush1.bf16.msra.mxu0 %v1977_v0  ;;  %v1524_v14 = vsub.s32 2, %v1515_v13  ;;  %v1528_v0 = vsub.s32 3, %v1515_v13 }
  0x9f   : > { %1459 = vmatpush1.bf16.msra.mxu1 %v1980_v16  ;;  %1419 = vmatprep.subr.bf16.mxu0 %v1985_v1 }
  0xa0   : > { %1460 = vmatprep.subr.bf16.mxu1 %v1988_v17  ;;  %v1525_v16 = vrot.slane %v1512_v15, %v1524_v14  ;;  %v1529_v1 = vrot.slane %v1512_v15, %v1528_v0  ;;  %v1516_v17 = vsub.s32 0, %v1515_v13 }
  0xa2   : > { %1420 = vmatpush1.bf16.msra.mxu0 %v1983_v18  ;;  %v1520_v18 = vsub.s32 1, %v1515_v13 }
  0xa3   : > { %1461 = vmatpush1.bf16.msra.mxu1 %v1986_v19  ;;  %1421 = vmatprep.subr.bf16.mxu0 %v1991_v20  ;;  %v1517_v19 = vrot.slane %v1512_v15, %v1516_v17 }
  0xa4   : > { %1462 = vmatprep.subr.bf16.mxu1 %v1994_v21 }
  0xa6   : > { %1422 = vmatpush1.bf16.msra.mxu0 %v1989_v22 }
  0xa7   : > { %1463 = vmatpush1.bf16.msra.mxu1 %v1992_v23  ;;  %1423 = vmatprep.subr.bf16.mxu0 %v1997_v2 }
  0xa8   : > { %1464 = vmatprep.subr.bf16.mxu1 %v2000_v3 }
  0xaa   : > { %1424 = vmatpush1.bf16.msra.mxu0 %v1995_v24 }
  0xab   : > { %1465 = vmatpush1.bf16.msra.mxu1 %v1998_v25  ;;  %1425 = vmatprep.subr.bf16.mxu0 %v2003_v26 }
  0xac   : > { %1466 = vmatprep.subr.bf16.mxu1 %v2006_v27 }
  0xae   : > { %1426 = vmatpush1.bf16.msra.mxu0 %v2001_v28 }
  0xaf   : > { %1467 = vmatpush1.bf16.msra.mxu1 %v2004_v29  ;;  %1427 = vmatprep.subr.bf16.mxu0 %v2009_v30 }
  0xb0   : > { %1468 = vmatprep.subr.bf16.mxu1 %v2012_v31 }
  0xb2   : > { %1428 = vmatpush1.bf16.msra.mxu0 %v2007_v32 }
  0xb3   : > { %1469 = vmatpush1.bf16.msra.mxu1 %v2010_v33  ;;  %1429 = vmatprep.subr.bf16.mxu0 %v2015_v34 }
  0xb4   : > { %1470 = vmatprep.subr.bf16.mxu1 %v2018_v35 }
  0xb6   : > { %1430 = vmatpush1.bf16.msra.mxu0 %v2013_v36 }
  0xb7   : > { %1471 = vmatpush1.bf16.msra.mxu1 %v2016_v37  ;;  %1431 = vmatprep.subr.bf16.mxu0 %v2021_v38 }
  0xb8   : > { %1472 = vmatprep.subr.bf16.mxu1 %v2024_v39 }
  0xba   : > { %1432 = vmatpush1.bf16.msra.mxu0 %v2019_v40 }
  0xbb   : > { %1473 = vmatpush1.bf16.msra.mxu1 %v2022_v41  ;;  %1433 = vmatprep.subr.bf16.mxu0 %v2027_v42 }
  0xbc   : > { %1474 = vmatprep.subr.bf16.mxu1 %v2030_v43 }
  0xbe   : > { %1434 = vmatpush1.bf16.msra.mxu0 %v2025_v44 }
  0xbf   : > { %1475 = vmatpush1.bf16.msra.mxu1 %v2028_v45  ;;  %1435 = vmatprep.subr.bf16.mxu0 %v2033_v46 }
  0xc0   : > { %1476 = vmatprep.subr.bf16.mxu1 %v2036_v47 }
  0xc2   : > { %1436 = vmatpush1.bf16.msra.mxu0 %v2031_v48 }
  0xc3   : > { %1477 = vmatpush1.bf16.msra.mxu1 %v2034_v49  ;;  %1437 = vmatprep.subr.bf16.mxu0 %v2039_v50 }
  0xc4   : > { %1478 = vmatprep.subr.bf16.mxu1 %v2042_v51 }
  0xc6   : > { %1438 = vmatpush1.bf16.msra.mxu0 %v2037_v52 }
  0xc7   : > { %1479 = vmatpush1.bf16.msra.mxu1 %v2040_v53  ;;  %1439 = vmatprep.subr.bf16.mxu0 %v2045_v54 }
  0xc8   : > { %1480 = vmatprep.subr.bf16.mxu1 %v2048_v55 }
  0xca   : > { %1440 = vmatpush1.bf16.msra.mxu0 %v2043_v56 }
  0xcb   : > { %1481 = vmatpush1.bf16.msra.mxu1 %v2046_v57  ;;  %1441 = vmatprep.subr.bf16.mxu0 %v2051_v58 }
  0xcc   : > { %1482 = vmatprep.subr.bf16.mxu1 %v2054_v59 }
  0xce   : > { %1442 = vmatpush1.bf16.msra.mxu0 %v2049_v60 }
  0xcf   : > { %1483 = vmatpush1.bf16.msra.mxu1 %v2052_v61  ;;  %1443 = vmatprep.subr.bf16.mxu0 %v2057_v62 }
  0xd0   : > { %1484 = vmatprep.subr.bf16.mxu1 %v2060_v63 }
  0xd2   : > { %1444 = vmatpush1.bf16.msra.mxu0 %v2055_v4 }
  0xd3   : > { %1485 = vmatpush1.bf16.msra.mxu1 %v2058_v5  ;;  %1445 = vmatprep.subr.bf16.mxu0 %v2063_v6 }
  0xd4   : > { %1486 = vmatprep.subr.bf16.mxu1 %v2066_v7 }
  0xd6   : > { %1446 = vmatpush1.bf16.msra.mxu0 %v2061_v8 }
  0xd7   : > { %1487 = vmatpush1.bf16.msra.mxu1 %v2064_v9 }
  0xd9   : > { %1448 = vmatmul.mubr.bf16.vlgmr.msra.gmra.mrb[4].mxu0 %v2523_v10 }
  0xda   : > { %1489 = vmatmul.mubr.bf16.vlgmr.msra.gmra.mrb[4].mxu1 %v2527_v11  ;;  %v1521_v11 = vrot.slane %v1512_v15, %v1520_v18 }
 0x16c   : > { %v1367_v10 = vpop.f32.mrb[0].mxu0 }
 0x16d   : > { %v1408_v20 = vpop.f32.mrb[0].mxu1  ;;  %v1369_v22 = vpop.f32.mrb[1].mxu0 }
 0x16e   : > { %v1409_v21 = vadd.f32 %v1408_v20, %v1367_v10  ;;  %v1410_v23 = vpop.f32.mrb[1].mxu1  ;;  %v1371_v3 = vpop.f32.mrb[2].mxu0 }
 0x16f   : > { %v1411_v2 = vadd.f32 %v1410_v23, %v1369_v22  ;;  %v1412_v24 = vpop.f32.mrb[2].mxu1  ;;  %v1372_v26 = vpop.f32.mrb[3].mxu0 }
 0x170   : > { %v1534_v25 = vadd.f32 %v1517_v19, %v1409_v21  ;;  %v1413_v27 = vpop.f32.mrb[3].mxu1 }
 0x171   : > { %v1535_v28 = vadd.f32 %v1521_v11, %v1411_v2 }
 0x173   : > { %v1829_v29 = vpack.c.bf16 %v1535_v28, %v1534_v25 }
 0x175   : > { %1554 = vst [vmem:[%s535_s19] sm:$0xff] %v1829_v29 }
 0x1ac   : > { %v1449_v30 = vpop.f32.mrb[4].mxu0 }
 0x1ad   : > { %v1490_v31 = vpop.f32.mrb[4].mxu1  ;;  %v1451_v33 = vpop.f32.mrb[5].mxu0 }
 0x1ae   : > { %v1491_v32 = vadd.f32 %v1490_v31, %v1449_v30  ;;  %v1492_v34 = vpop.f32.mrb[5].mxu1  ;;  %v1453_v36 = vpop.f32.mrb[6].mxu0 }
 0x1af   : > { %v1493_v35 = vadd.f32 %v1492_v34, %v1451_v33  ;;  %v1494_v37 = vpop.f32.mrb[6].mxu1  ;;  %v1454_v39 = vpop.f32.mrb[7].mxu0 }
 0x1b0   : > { %v1536_v38 = vadd.f32 %v1525_v16, %v1491_v32  ;;  %v1495_v40 = vpop.f32.mrb[7].mxu1 }
 0x1b1   : > { %v1537_v41 = vadd.f32 %v1529_v1, %v1493_v35 }
 0x1b3   : > { %v1830_v42 = vpack.c.bf16 %v1537_v41, %v1536_v38 }
 0x1b5   : > { %1555 = vst [vmem:[%s535_s19 + $0x8] sm:$0xff] %v1830_v42 }
 0x1b6 PF: > { %s13_s16 = sadd.s32 1, %s2105_s16   ;;  %s2623_s12 = smov %s2093_s13 }
 0x1b7   : > { %p10_p10 = scmp.ge.s32.totalorder %s13_s16, 4   ;;  %s2624_s13 = smov %s2162_s20 }
 0x1b8   : > { %s2625_s14 = smov %s2101_s15  ;;  %s2626_s15 = smov %s2628_s17 }
 0x1b9   :  { %12 = sbr.rel (!%p10_p10) target bundleno = 3 (0x3), region = 104 }

// kernel: _lambda_.72
= control target key start
LH: loop header
LB: loop body
LE: loop exit
PB: predicated region body
PF: predicated region fallthrough
CT: control target
= control target key end

     0   :  { %s1463_s15 = smov 0   ;;  %s1465_s16 = smov 0   ;;  %s1749_s0 = inlined_call_operand.vmem [shape: bf16[8,256], index: 0, kind: input, shape index: {}]   ;;  %s1750_s1 = inlined_call_operand.vmem [shape: bf16[256,1024], index: 1, kind: input, shape index: {}]   ;;  %s1751_s2 = inlined_call_operand.vmem [shape: f32[1,1024], index: 2, kind: input, shape index: {}]   ;;  %s1752_s3 = inlined_call_operand.vmem [shape: bf16[8,1024], index: 3, kind: input, shape index: {}]   ;;  %s1753_s4 = inlined_call_operand.vmem [shape: bf16[8,1024], index: 4, kind: output, shape index: {}]  }
   0x1   :  { %s1467_s17 = smov 0   ;;  %s1469_s18 = smov 0  }
   0x2   :  { %s1471_s19 = smov 0  }
   0x3 LB: > { %s29_s20 = sadd.s32 1, %s1432_s18  ;;  %p77_p1 = scmp.ne.s32.totalorder %s1424_s16, %s1420_s15  ;;  %s1436_s19 = sphi %s1471_s19, %s14_s19   ;;  %s1432_s18 = sphi %s1469_s18, %s1757_s18   ;;  %s1428_s17 = sphi %s1467_s17, %s1756_s17   ;;  %s1424_s16 = sphi %s1465_s16, %s1755_s16   ;;  %s1420_s15 = sphi %s1463_s15, %s1754_s15  }
   0x4   : > { %p31_p0 = scmp.ge.s32.totalorder %s29_s20, 2  ;;  %p78_p2 = scmp.eq.s32.totalorder %s1436_s19, 0 }
   0x5   : > { %s70_s22 = sadd.s32 1, %s1424_s16  ;;  %p1176_p5 = scmp.ge.s32.totalorder %s1436_s19, 2 }
   0x6   : > { %s1759_s20 = smov (%p31_p0, %s29_s20), 0  ;;  %p79_p3 = por %p78_p2, %p77_p1 }
   0x7   : > { %s66_s21 = ssub.s32 %s1432_s18, %s1759_s20  ;;  %198 = sbr.rel (%p1176_p5) target bundleno = 50 (0x32), region = 20 }
   0x8   : > { %p68_p4 = scmp.eq.s32.totalorder %s66_s21, 0 }
   0xa   : > { %s1498_s23 = scalar_select %p68_p4, %s1424_s16, %s70_s22  }
   0xe   : > { %201 = sbr.rel (!%p79_p3) target bundleno = 50 (0x32), region = 24  ;;  %s203_s24 = sand.u32 (%p79_p3), 1, %s1424_s16  }
   0xf   : > { %s1257_s25 = sshll.u32 (%p79_p3), %s1432_s18, 4  ;;  %s1177_s26 = sshll.u32 (%p79_p3), %s203_s24, 9 }
  0x10   : > { %s1506_s29 = scalar_lea.vmem (%p79_p3), %s1750_s1, %s1257_s25  ;;  %s1511_s30 = scalar_lea.vmem (%p79_p3), [#allocation3], %s1177_s26 }
  0x11   : > { %v224_v0 = vld [vmem:[%s1506_s29] sm:$0xff] (%p79_p3)  ;;  %v226_v1 = vld [vmem:[%s1506_s29 + $0x8] sm:$0xff] (%p79_p3) }
  0x12   : > { %v228_v2 = vld [vmem:[%s1506_s29 + $0x20] sm:$0xff] (%p79_p3)  ;;  %225 = vst [vmem:[%s1511_s30] sm:$0xff] (%p79_p3), %v224_v0  ;;  %227 = vst [vmem:[%s1511_s30 + $0x8] sm:$0xff] (%p79_p3), %v226_v1  ;;  %v230_v3 = vld [vmem:[%s1506_s29 + $0x28] sm:$0xff] (%p79_p3) }
  0x13   : > { %229 = vst [vmem:[%s1511_s30 + $0x10] sm:$0xff] (%p79_p3), %v228_v2  ;;  %v232_v4 = vld [vmem:[%s1506_s29 + $0x40] sm:$0xff] (%p79_p3)  ;;  %v234_v5 = vld [vmem:[%s1506_s29 + $0x48] sm:$0xff] (%p79_p3)  ;;  %231 = vst [vmem:[%s1511_s30 + $0x18] sm:$0xff] (%p79_p3), %v230_v3 }
  0x14   : > { %233 = vst [vmem:[%s1511_s30 + $0x20] sm:$0xff] (%p79_p3), %v232_v4  ;;  %235 = vst [vmem:[%s1511_s30 + $0x28] sm:$0xff] (%p79_p3), %v234_v5  ;;  %v236_v6 = vld [vmem:[%s1506_s29 + $0x60] sm:$0xff] (%p79_p3)  ;;  %v238_v7 = vld [vmem:[%s1506_s29 + $0x68] sm:$0xff] (%p79_p3) }
  0x15   : > { %v240_v8 = vld [vmem:[%s1506_s29 + $0x80] sm:$0xff]  ;;  %237 = vst [vmem:[%s1511_s30 + $0x30] sm:$0xff] %v236_v6  ;;  %239 = vst [vmem:[%s1511_s30 + $0x38] sm:$0xff] %v238_v7  ;;  %v242_v9 = vld [vmem:[%s1506_s29 + $0x88] sm:$0xff] }
  0x16   : > { %241 = vst [vmem:[%s1511_s30 + $0x40] sm:$0xff] %v240_v8  ;;  %v244_v10 = vld [vmem:[%s1506_s29 + $0xa0] sm:$0xff]  ;;  %v246_v11 = vld [vmem:[%s1506_s29 + $0xa8] sm:$0xff]  ;;  %243 = vst [vmem:[%s1511_s30 + $0x48] sm:$0xff] %v242_v9 }
  0x17   : > { %245 = vst [vmem:[%s1511_s30 + $0x50] sm:$0xff] %v244_v10  ;;  %247 = vst [vmem:[%s1511_s30 + $0x58] sm:$0xff] %v246_v11  ;;  %v248_v12 = vld [vmem:[%s1506_s29 + $0xc0] sm:$0xff]  ;;  %v250_v13 = vld [vmem:[%s1506_s29 + $0xc8] sm:$0xff] }
  0x18   : > { %v252_v14 = vld [vmem:[%s1506_s29 + $0xe0] sm:$0xff]  ;;  %249 = vst [vmem:[%s1511_s30 + $0x60] sm:$0xff] %v248_v12  ;;  %251 = vst [vmem:[%s1511_s30 + $0x68] sm:$0xff] %v250_v13  ;;  %v254_v15 = vld [vmem:[%s1506_s29 + $0xe8] sm:$0xff] }
  0x19   : > { %253 = vst [vmem:[%s1511_s30 + $0x70] sm:$0xff] %v252_v14  ;;  %v256_v16 = vld [vmem:[%s1506_s29 + $0x100] sm:$0xff]  ;;  %v258_v17 = vld [vmem:[%s1506_s29 + $0x108] sm:$0xff]  ;;  %255 = vst [vmem:[%s1511_s30 + $0x78] sm:$0xff] %v254_v15 }
  0x1a   : > { %257 = vst [vmem:[%s1511_s30 + $0x80] sm:$0xff] %v256_v16  ;;  %259 = vst [vmem:[%s1511_s30 + $0x88] sm:$0xff] %v258_v17  ;;  %v260_v18 = vld [vmem:[%s1506_s29 + $0x120] sm:$0xff]  ;;  %v262_v19 = vld [vmem:[%s1506_s29 + $0x128] sm:$0xff] }
  0x1b   : > { %v264_v20 = vld [vmem:[%s1506_s29 + $0x140] sm:$0xff]  ;;  %261 = vst [vmem:[%s1511_s30 + $0x90] sm:$0xff] %v260_v18  ;;  %263 = vst [vmem:[%s1511_s30 + $0x98] sm:$0xff] %v262_v19  ;;  %v266_v21 = vld [vmem:[%s1506_s29 + $0x148] sm:$0xff] }
  0x1c   : > { %265 = vst [vmem:[%s1511_s30 + $0xa0] sm:$0xff] %v264_v20  ;;  %v268_v22 = vld [vmem:[%s1506_s29 + $0x160] sm:$0xff]  ;;  %v270_v23 = vld [vmem:[%s1506_s29 + $0x168] sm:$0xff]  ;;  %267 = vst [vmem:[%s1511_s30 + $0xa8] sm:$0xff] %v266_v21 }
  0x1d   : > { %269 = vst [vmem:[%s1511_s30 + $0xb0] sm:$0xff] %v268_v22  ;;  %271 = vst [vmem:[%s1511_s30 + $0xb8] sm:$0xff] %v270_v23  ;;  %v272_v24 = vld [vmem:[%s1506_s29 + $0x180] sm:$0xff]  ;;  %v274_v25 = vld [vmem:[%s1506_s29 + $0x188] sm:$0xff] }
  0x1e   : > { %v276_v26 = vld [vmem:[%s1506_s29 + $0x1a0] sm:$0xff]  ;;  %273 = vst [vmem:[%s1511_s30 + $0xc0] sm:$0xff] %v272_v24  ;;  %275 = vst [vmem:[%s1511_s30 + $0xc8] sm:$0xff] %v274_v25  ;;  %v278_v27 = vld [vmem:[%s1506_s29 + $0x1a8] sm:$0xff] }
  0x1f   : > { %277 = vst [vmem:[%s1511_s30 + $0xd0] sm:$0xff] %v276_v26  ;;  %v280_v28 = vld [vmem:[%s1506_s29 + $0x1c0] sm:$0xff]  ;;  %v282_v29 = vld [vmem:[%s1506_s29 + $0x1c8] sm:$0xff]  ;;  %279 = vst [vmem:[%s1511_s30 + $0xd8] sm:$0xff] %v278_v27 }
  0x20   : > { %281 = vst [vmem:[%s1511_s30 + $0xe0] sm:$0xff] %v280_v28  ;;  %283 = vst [vmem:[%s1511_s30 + $0xe8] sm:$0xff] %v282_v29  ;;  %v284_v30 = vld [vmem:[%s1506_s29 + $0x1e0] sm:$0xff]  ;;  %v286_v31 = vld [vmem:[%s1506_s29 + $0x1e8] sm:$0xff] }
  0x21   : > { %v288_v32 = vld [vmem:[%s1506_s29 + $0x200] sm:$0xff]  ;;  %285 = vst [vmem:[%s1511_s30 + $0xf0] sm:$0xff] %v284_v30  ;;  %287 = vst [vmem:[%s1511_s30 + $0xf8] sm:$0xff] %v286_v31  ;;  %v290_v33 = vld [vmem:[%s1506_s29 + $0x208] sm:$0xff] }
  0x22   : > { %289 = vst [vmem:[%s1511_s30 + $0x100] sm:$0xff] %v288_v32  ;;  %v292_v34 = vld [vmem:[%s1506_s29 + $0x220] sm:$0xff]  ;;  %v294_v35 = vld [vmem:[%s1506_s29 + $0x228] sm:$0xff]  ;;  %291 = vst [vmem:[%s1511_s30 + $0x108] sm:$0xff] %v290_v33 }
  0x23   : > { %293 = vst [vmem:[%s1511_s30 + $0x110] sm:$0xff] %v292_v34  ;;  %295 = vst [vmem:[%s1511_s30 + $0x118] sm:$0xff] %v294_v35  ;;  %v296_v36 = vld [vmem:[%s1506_s29 + $0x240] sm:$0xff]  ;;  %v298_v37 = vld [vmem:[%s1506_s29 + $0x248] sm:$0xff] }
  0x24   : > { %v300_v38 = vld [vmem:[%s1506_s29 + $0x260] sm:$0xff]  ;;  %297 = vst [vmem:[%s1511_s30 + $0x120] sm:$0xff] %v296_v36  ;;  %299 = vst [vmem:[%s1511_s30 + $0x128] sm:$0xff] %v298_v37  ;;  %v302_v39 = vld [vmem:[%s1506_s29 + $0x268] sm:$0xff] }
  0x25   : > { %301 = vst [vmem:[%s1511_s30 + $0x130] sm:$0xff] %v300_v38  ;;  %v304_v40 = vld [vmem:[%s1506_s29 + $0x280] sm:$0xff]  ;;  %v306_v41 = vld [vmem:[%s1506_s29 + $0x288] sm:$0xff]  ;;  %303 = vst [vmem:[%s1511_s30 + $0x138] sm:$0xff] %v302_v39 }
  0x26   : > { %305 = vst [vmem:[%s1511_s30 + $0x140] sm:$0xff] %v304_v40  ;;  %307 = vst [vmem:[%s1511_s30 + $0x148] sm:$0xff] %v306_v41  ;;  %v308_v42 = vld [vmem:[%s1506_s29 + $0x2a0] sm:$0xff]  ;;  %v310_v43 = vld [vmem:[%s1506_s29 + $0x2a8] sm:$0xff] }
  0x27   : > { %v312_v44 = vld [vmem:[%s1506_s29 + $0x2c0] sm:$0xff]  ;;  %309 = vst [vmem:[%s1511_s30 + $0x150] sm:$0xff] %v308_v42  ;;  %311 = vst [vmem:[%s1511_s30 + $0x158] sm:$0xff] %v310_v43  ;;  %v314_v45 = vld [vmem:[%s1506_s29 + $0x2c8] sm:$0xff] }
  0x28   : > { %313 = vst [vmem:[%s1511_s30 + $0x160] sm:$0xff] %v312_v44  ;;  %v316_v46 = vld [vmem:[%s1506_s29 + $0x2e0] sm:$0xff]  ;;  %v318_v47 = vld [vmem:[%s1506_s29 + $0x2e8] sm:$0xff]  ;;  %315 = vst [vmem:[%s1511_s30 + $0x168] sm:$0xff] %v314_v45 }
  0x29   : > { %317 = vst [vmem:[%s1511_s30 + $0x170] sm:$0xff] %v316_v46  ;;  %319 = vst [vmem:[%s1511_s30 + $0x178] sm:$0xff] %v318_v47  ;;  %v320_v48 = vld [vmem:[%s1506_s29 + $0x300] sm:$0xff]  ;;  %v322_v49 = vld [vmem:[%s1506_s29 + $0x308] sm:$0xff] }
  0x2a   : > { %v324_v50 = vld [vmem:[%s1506_s29 + $0x320] sm:$0xff]  ;;  %321 = vst [vmem:[%s1511_s30 + $0x180] sm:$0xff] %v320_v48  ;;  %323 = vst [vmem:[%s1511_s30 + $0x188] sm:$0xff] %v322_v49  ;;  %v326_v51 = vld [vmem:[%s1506_s29 + $0x328] sm:$0xff] }
  0x2b   : > { %325 = vst [vmem:[%s1511_s30 + $0x190] sm:$0xff] %v324_v50  ;;  %v328_v52 = vld [vmem:[%s1506_s29 + $0x340] sm:$0xff]  ;;  %v330_v53 = vld [vmem:[%s1506_s29 + $0x348] sm:$0xff]  ;;  %327 = vst [vmem:[%s1511_s30 + $0x198] sm:$0xff] %v326_v51 }
  0x2c   : > { %329 = vst [vmem:[%s1511_s30 + $0x1a0] sm:$0xff] %v328_v52  ;;  %331 = vst [vmem:[%s1511_s30 + $0x1a8] sm:$0xff] %v330_v53  ;;  %v332_v54 = vld [vmem:[%s1506_s29 + $0x360] sm:$0xff]  ;;  %v334_v55 = vld [vmem:[%s1506_s29 + $0x368] sm:$0xff] }
  0x2d   : > { %v336_v56 = vld [vmem:[%s1506_s29 + $0x380] sm:$0xff]  ;;  %333 = vst [vmem:[%s1511_s30 + $0x1b0] sm:$0xff] %v332_v54  ;;  %335 = vst [vmem:[%s1511_s30 + $0x1b8] sm:$0xff] %v334_v55  ;;  %v338_v57 = vld [vmem:[%s1506_s29 + $0x388] sm:$0xff] }
  0x2e   : > { %337 = vst [vmem:[%s1511_s30 + $0x1c0] sm:$0xff] %v336_v56  ;;  %v340_v58 = vld [vmem:[%s1506_s29 + $0x3a0] sm:$0xff]  ;;  %v342_v59 = vld [vmem:[%s1506_s29 + $0x3a8] sm:$0xff]  ;;  %339 = vst [vmem:[%s1511_s30 + $0x1c8] sm:$0xff] %v338_v57 }
  0x2f   : > { %341 = vst [vmem:[%s1511_s30 + $0x1d0] sm:$0xff] %v340_v58  ;;  %343 = vst [vmem:[%s1511_s30 + $0x1d8] sm:$0xff] %v342_v59  ;;  %v344_v60 = vld [vmem:[%s1506_s29 + $0x3c0] sm:$0xff]  ;;  %v346_v61 = vld [vmem:[%s1506_s29 + $0x3c8] sm:$0xff] }
  0x30   : > { %v348_v62 = vld [vmem:[%s1506_s29 + $0x3e0] sm:$0xff]  ;;  %345 = vst [vmem:[%s1511_s30 + $0x1e0] sm:$0xff] %v344_v60  ;;  %347 = vst [vmem:[%s1511_s30 + $0x1e8] sm:$0xff] %v346_v61  ;;  %v350_v63 = vld [vmem:[%s1506_s29 + $0x3e8] sm:$0xff] }
  0x31   : > { %349 = vst [vmem:[%s1511_s30 + $0x1f0] sm:$0xff] %v348_v62  ;;  %351 = vst [vmem:[%s1511_s30 + $0x1f8] sm:$0xff] %v350_v63 }
  0x32 PF: > { %p1180_p6 = scmp.ge.s32.totalorder %s1436_s19, 1  ;;  %p377_p7 = scmp.lt.s32.totalorder %s1436_s19, 3 }
  0x34   : > { %p378_p8 = pnand %p1180_p6, %p377_p7 }
  0x35   : > { %s384_s5 = sand.u32 (!%p378_p8), 1, %s1420_s15   ;;  %v1644_v0 = vld [vmem:[%s1749_s0] sm:$0xff] (!%p378_p8)  ;;  %s1182_s10 = sshll.u32 (!%p378_p8), %s1428_s17, 2 }
  0x36   : > { %381 = sbr.rel (%p378_p8) target bundleno = 343 (0x157), region = 55  ;;  %s1181_s8 = sshll.u32 (!%p378_p8), %s384_s5, 9  ;;  %v1188_v1 = vcombine.high (!%p378_p8), %v1644_v0, %v1644_v0 }
  0x37   : > { %s1648_s9 = scalar_lea.vmem (!%p378_p8), [#allocation3], %s1181_s8  ;;  %p448_p9 = scmp.lt.s32.totalorder (!%p378_p8), %s1182_s10, 7 }
  0x38   : > { %v1300_v2 = vld [vmem:[%s1648_s9 + $0x4] ss:$16 sps:$4 sm:$0xff] (!%p378_p8)   ;;  %908 = vmatprep.mubr.bf16.mxu0 (!%p378_p8), %v1188_v1  ;;  %949 = vmatprep.mubr.bf16.mxu1 (!%p378_p8), %v1188_v1  ;;  %v1302_v3 = vld [vmem:[%s1648_s9 + $0xc] ss:$16 sps:$4 sm:$0xff] (!%p378_p8)   ;;  %v1304_v4 = vld [vmem:[%s1648_s9] ss:$16 sps:$4 sm:$0xff] (!%p378_p8)  }
  0x39   : > { %876 = vmatprep.subr.bf16.mxu0 (!%p378_p8), %v1300_v2  ;;  %v1305_v5 = vld [vmem:[%s1648_s9 + $0x8] ss:$16 sps:$4 sm:$0xff] (!%p378_p8)   ;;  %917 = vmatprep.subr.bf16.mxu1 (!%p378_p8), %v1302_v3  ;;  %v1306_v6 = vld [vmem:[%s1648_s9 + $0x24] ss:$16 sps:$4 sm:$0xff] (!%p378_p8)   ;;  %v1308_v7 = vld [vmem:[%s1648_s9 + $0x2c] ss:$16 sps:$4 sm:$0xff] (!%p378_p8)   ;;  %v1187_v3 = vcombine.low (!%p378_p8), %v1644_v0, %v1644_v0 }
  0x3a   : > { %877 = vmatpush1.bf16.msra.mxu0 (!%p378_p8), %v1304_v4  ;;  %918 = vmatpush1.bf16.msra.mxu1 (!%p378_p8), %v1305_v5  ;;  %v1310_v8 = vld [vmem:[%s1648_s9 + $0x20] ss:$16 sps:$4 sm:$0xff] (!%p378_p8)   ;;  %v1311_v9 = vld [vmem:[%s1648_s9 + $0x28] ss:$16 sps:$4 sm:$0xff] (!%p378_p8)   ;;  %v1312_v10 = vld [vmem:[%s1648_s9 + $0x44] ss:$16 sps:$4 sm:$0xff] (!%p378_p8)   ;;  %v975_v4 = vlaneseq (!%p378_p8) }
  0x3b   : > { %878 = vmatprep.subr.bf16.mxu0 (!%p378_p8), %v1306_v6  ;;  %919 = vmatprep.subr.bf16.mxu1 (!%p378_p8), %v1308_v7  ;;  %v1314_v11 = vld [vmem:[%s1648_s9 + $0x4c] ss:$16 sps:$4 sm:$0xff] (!%p378_p8)   ;;  %v1316_v12 = vld [vmem:[%s1648_s9 + $0x40] ss:$16 sps:$4 sm:$0xff] (!%p378_p8)   ;;  %v1317_v13 = vld [vmem:[%s1648_s9 + $0x48] ss:$16 sps:$4 sm:$0xff] (!%p378_p8)  }
  0x3c   : > { %v1318_v14 = vld [vmem:[%s1648_s9 + $0x64] ss:$16 sps:$4 sm:$0xff] (!%p378_p8)   ;;  %v1320_v15 = vld [vmem:[%s1648_s9 + $0x6c] ss:$16 sps:$4 sm:$0xff] (!%p378_p8)   ;;  %v1322_v16 = vld [vmem:[%s1648_s9 + $0x60] ss:$16 sps:$4 sm:$0xff] (!%p378_p8)  }
  0x3d   : > { %v1323_v17 = vld [vmem:[%s1648_s9 + $0x68] ss:$16 sps:$4 sm:$0xff]   ;;  %v1324_v18 = vld [vmem:[%s1648_s9 + $0x84] ss:$16 sps:$4 sm:$0xff]   ;;  %v1326_v19 = vld [vmem:[%s1648_s9 + $0x8c] ss:$16 sps:$4 sm:$0xff]  }
  0x3e   : > { %879 = vmatpush1.bf16.msra.mxu0 %v1310_v8  ;;  %920 = vmatpush1.bf16.msra.mxu1 %v1311_v9  ;;  %v1328_v20 = vld [vmem:[%s1648_s9 + $0x80] ss:$16 sps:$4 sm:$0xff]   ;;  %v1329_v21 = vld [vmem:[%s1648_s9 + $0x88] ss:$16 sps:$4 sm:$0xff]   ;;  %v1330_v22 = vld [vmem:[%s1648_s9 + $0xa4] ss:$16 sps:$4 sm:$0xff]  }
  0x3f   : > { %880 = vmatprep.subr.bf16.mxu0 %v1312_v10  ;;  %921 = vmatprep.subr.bf16.mxu1 %v1314_v11  ;;  %v1332_v23 = vld [vmem:[%s1648_s9 + $0xac] ss:$16 sps:$4 sm:$0xff]   ;;  %v1334_v24 = vld [vmem:[%s1648_s9 + $0xa0] ss:$16 sps:$4 sm:$0xff]   ;;  %v1335_v25 = vld [vmem:[%s1648_s9 + $0xa8] ss:$16 sps:$4 sm:$0xff]  }
  0x40   : > { %v1336_v26 = vld [vmem:[%s1648_s9 + $0xc4] ss:$16 sps:$4 sm:$0xff]   ;;  %v1338_v27 = vld [vmem:[%s1648_s9 + $0xcc] ss:$16 sps:$4 sm:$0xff]   ;;  %v1340_v28 = vld [vmem:[%s1648_s9 + $0xc0] ss:$16 sps:$4 sm:$0xff]  }
  0x41   : > { %v1341_v29 = vld [vmem:[%s1648_s9 + $0xc8] ss:$16 sps:$4 sm:$0xff]   ;;  %v1342_v30 = vld [vmem:[%s1648_s9 + $0xe4] ss:$16 sps:$4 sm:$0xff]   ;;  %v1344_v31 = vld [vmem:[%s1648_s9 + $0xec] ss:$16 sps:$4 sm:$0xff]  }
  0x42   : > { %881 = vmatpush1.bf16.msra.mxu0 %v1316_v12  ;;  %922 = vmatpush1.bf16.msra.mxu1 %v1317_v13  ;;  %v1346_v32 = vld [vmem:[%s1648_s9 + $0xe0] ss:$16 sps:$4 sm:$0xff]   ;;  %v1347_v33 = vld [vmem:[%s1648_s9 + $0xe8] ss:$16 sps:$4 sm:$0xff]   ;;  %v1348_v34 = vld [vmem:[%s1648_s9 + $0x104] ss:$16 sps:$4 sm:$0xff]  }
  0x43   : > { %882 = vmatprep.subr.bf16.mxu0 %v1318_v14  ;;  %923 = vmatprep.subr.bf16.mxu1 %v1320_v15  ;;  %v1350_v35 = vld [vmem:[%s1648_s9 + $0x10c] ss:$16 sps:$4 sm:$0xff]   ;;  %v1352_v36 = vld [vmem:[%s1648_s9 + $0x100] ss:$16 sps:$4 sm:$0xff]   ;;  %v1353_v37 = vld [vmem:[%s1648_s9 + $0x108] ss:$16 sps:$4 sm:$0xff]  }
  0x44   : > { %v1354_v38 = vld [vmem:[%s1648_s9 + $0x124] ss:$16 sps:$4 sm:$0xff]   ;;  %v1356_v39 = vld [vmem:[%s1648_s9 + $0x12c] ss:$16 sps:$4 sm:$0xff]   ;;  %v1358_v40 = vld [vmem:[%s1648_s9 + $0x120] ss:$16 sps:$4 sm:$0xff]  }
  0x45   : > { %v1359_v41 = vld [vmem:[%s1648_s9 + $0x128] ss:$16 sps:$4 sm:$0xff]   ;;  %v1360_v42 = vld [vmem:[%s1648_s9 + $0x144] ss:$16 sps:$4 sm:$0xff]   ;;  %v1362_v43 = vld [vmem:[%s1648_s9 + $0x14c] ss:$16 sps:$4 sm:$0xff]  }
  0x46   : > { %883 = vmatpush1.bf16.msra.mxu0 %v1322_v16  ;;  %924 = vmatpush1.bf16.msra.mxu1 %v1323_v17  ;;  %v1364_v44 = vld [vmem:[%s1648_s9 + $0x140] ss:$16 sps:$4 sm:$0xff]   ;;  %v1365_v45 = vld [vmem:[%s1648_s9 + $0x148] ss:$16 sps:$4 sm:$0xff]   ;;  %v1366_v46 = vld [vmem:[%s1648_s9 + $0x164] ss:$16 sps:$4 sm:$0xff]  }
  0x47   : > { %884 = vmatprep.subr.bf16.mxu0 %v1324_v18  ;;  %925 = vmatprep.subr.bf16.mxu1 %v1326_v19  ;;  %v1368_v47 = vld [vmem:[%s1648_s9 + $0x16c] ss:$16 sps:$4 sm:$0xff]   ;;  %v1370_v48 = vld [vmem:[%s1648_s9 + $0x160] ss:$16 sps:$4 sm:$0xff]   ;;  %v1371_v49 = vld [vmem:[%s1648_s9 + $0x168] ss:$16 sps:$4 sm:$0xff]  }
  0x48   : > { %v1372_v50 = vld [vmem:[%s1648_s9 + $0x184] ss:$16 sps:$4 sm:$0xff]   ;;  %v1374_v51 = vld [vmem:[%s1648_s9 + $0x18c] ss:$16 sps:$4 sm:$0xff]   ;;  %v1376_v52 = vld [vmem:[%s1648_s9 + $0x180] ss:$16 sps:$4 sm:$0xff]  }
  0x49   : > { %v1377_v53 = vld [vmem:[%s1648_s9 + $0x188] ss:$16 sps:$4 sm:$0xff]   ;;  %v1378_v54 = vld [vmem:[%s1648_s9 + $0x1a4] ss:$16 sps:$4 sm:$0xff]   ;;  %v1380_v55 = vld [vmem:[%s1648_s9 + $0x1ac] ss:$16 sps:$4 sm:$0xff]  }
  0x4a   : > { %885 = vmatpush1.bf16.msra.mxu0 %v1328_v20  ;;  %926 = vmatpush1.bf16.msra.mxu1 %v1329_v21  ;;  %v1382_v56 = vld [vmem:[%s1648_s9 + $0x1a0] ss:$16 sps:$4 sm:$0xff]   ;;  %v1383_v57 = vld [vmem:[%s1648_s9 + $0x1a8] ss:$16 sps:$4 sm:$0xff]   ;;  %v1384_v58 = vld [vmem:[%s1648_s9 + $0x1c4] ss:$16 sps:$4 sm:$0xff]  }
  0x4b   : > { %886 = vmatprep.subr.bf16.mxu0 %v1330_v22  ;;  %927 = vmatprep.subr.bf16.mxu1 %v1332_v23  ;;  %v1386_v59 = vld [vmem:[%s1648_s9 + $0x1cc] ss:$16 sps:$4 sm:$0xff]   ;;  %v1388_v60 = vld [vmem:[%s1648_s9 + $0x1c0] ss:$16 sps:$4 sm:$0xff]   ;;  %v1389_v61 = vld [vmem:[%s1648_s9 + $0x1c8] ss:$16 sps:$4 sm:$0xff]  }
  0x4c   : > { %v1390_v62 = vld [vmem:[%s1648_s9 + $0x1e4] ss:$16 sps:$4 sm:$0xff]   ;;  %v1392_v63 = vld [vmem:[%s1648_s9 + $0x1ec] ss:$16 sps:$4 sm:$0xff]   ;;  %v1394_v1 = vld [vmem:[%s1648_s9 + $0x1e0] ss:$16 sps:$4 sm:$0xff]  }
  0x4d   : > { %v1395_v2 = vld [vmem:[%s1648_s9 + $0x1e8] ss:$16 sps:$4 sm:$0xff]   ;;  %s1761_s10 = smov (!%p448_p9, %s1182_s10), 7  ;;  %v976_v5 = vshrl.u32 %v975_v4, 7 }
  0x4e   : > { %887 = vmatpush1.bf16.msra.mxu0 %v1334_v24  ;;  %928 = vmatpush1.bf16.msra.mxu1 %v1335_v25  ;;  %s1184_s11 = sshll.u32 %s1761_s10, 2  ;;  %s450_s14 = scalar_lea.vmem %s1751_s2, %s1761_s10 }
  0x4f   : > { %888 = vmatprep.subr.bf16.mxu0 %v1336_v26  ;;  %929 = vmatprep.subr.bf16.mxu1 %v1338_v27  ;;  %s460_s22 = scalar_lea.vmem %s1752_s3, %s1184_s11  ;;  %v977_v0 = vsub.s32 0, %v976_v5  ;;  %v985_v6 = vsub.s32 2, %v976_v5  ;;  %v973_v7 = vld [vmem:[%s450_s14] sm:$0xf]  ;;  %v981_v8 = vsub.s32 1, %v976_v5  ;;  %v989_v9 = vsub.s32 3, %v976_v5  ;;  %s470_s25 = scalar_lea.vmem %s1753_s4, %s1184_s11 }
  0x50   : > { %v999_v10 = vld [vmem:[%s460_s22] sm:$0xff]  ;;  %v1000_v11 = vld [vmem:[%s460_s22 + $0x8] sm:$0xff] }
  0x51   : > { %v978_v12 = vrot.slane %v973_v7, %v977_v0  ;;  %v986_v13 = vrot.slane %v973_v7, %v985_v6  ;;  %v982_v14 = vrot.slane %v973_v7, %v981_v8  ;;  %v990_v15 = vrot.slane %v973_v7, %v989_v9 }
  0x52   : > { %889 = vmatpush1.bf16.msra.mxu0 %v1340_v28  ;;  %930 = vmatpush1.bf16.msra.mxu1 %v1341_v29  ;;  %v1001_v16 = vunpack.c.l.bf16 %v999_v10  ;;  %v1003_v17 = vunpack.c.l.bf16 %v1000_v11  ;;  %v1002_v20 = vunpack.c.h.bf16 %v999_v10  ;;  %v1004_v21 = vunpack.c.h.bf16 %v1000_v11 }
  0x53   : > { %890 = vmatprep.subr.bf16.mxu0 %v1342_v30  ;;  %931 = vmatprep.subr.bf16.mxu1 %v1344_v31 }
  0x56   : > { %891 = vmatpush1.bf16.msra.mxu0 %v1346_v32  ;;  %932 = vmatpush1.bf16.msra.mxu1 %v1347_v33 }
  0x57   : > { %892 = vmatprep.subr.bf16.mxu0 %v1348_v34  ;;  %933 = vmatprep.subr.bf16.mxu1 %v1350_v35 }
  0x5a   : > { %893 = vmatpush1.bf16.msra.mxu0 %v1352_v36  ;;  %934 = vmatpush1.bf16.msra.mxu1 %v1353_v37 }
  0x5b   : > { %894 = vmatprep.subr.bf16.mxu0 %v1354_v38  ;;  %935 = vmatprep.subr.bf16.mxu1 %v1356_v39 }
  0x5e   : > { %895 = vmatpush1.bf16.msra.mxu0 %v1358_v40  ;;  %936 = vmatpush1.bf16.msra.mxu1 %v1359_v41 }
  0x5f   : > { %896 = vmatprep.subr.bf16.mxu0 %v1360_v42  ;;  %937 = vmatprep.subr.bf16.mxu1 %v1362_v43 }
  0x62   : > { %897 = vmatpush1.bf16.msra.mxu0 %v1364_v44  ;;  %938 = vmatpush1.bf16.msra.mxu1 %v1365_v45 }
  0x63   : > { %898 = vmatprep.subr.bf16.mxu0 %v1366_v46  ;;  %939 = vmatprep.subr.bf16.mxu1 %v1368_v47 }
  0x66   : > { %899 = vmatpush1.bf16.msra.mxu0 %v1370_v48  ;;  %940 = vmatpush1.bf16.msra.mxu1 %v1371_v49 }
  0x67   : > { %900 = vmatprep.subr.bf16.mxu0 %v1372_v50  ;;  %941 = vmatprep.subr.bf16.mxu1 %v1374_v51 }
  0x6a   : > { %901 = vmatpush1.bf16.msra.mxu0 %v1376_v52  ;;  %942 = vmatpush1.bf16.msra.mxu1 %v1377_v53 }
  0x6b   : > { %902 = vmatprep.subr.bf16.mxu0 %v1378_v54  ;;  %943 = vmatprep.subr.bf16.mxu1 %v1380_v55 }
  0x6e   : > { %903 = vmatpush1.bf16.msra.mxu0 %v1382_v56  ;;  %944 = vmatpush1.bf16.msra.mxu1 %v1383_v57 }
  0x6f   : > { %904 = vmatprep.subr.bf16.mxu0 %v1384_v58  ;;  %945 = vmatprep.subr.bf16.mxu1 %v1386_v59 }
  0x72   : > { %905 = vmatpush1.bf16.msra.mxu0 %v1388_v60  ;;  %946 = vmatpush1.bf16.msra.mxu1 %v1389_v61 }
  0x73   : > { %906 = vmatprep.subr.bf16.mxu0 %v1390_v62  ;;  %947 = vmatprep.subr.bf16.mxu1 %v1392_v63 }
  0x76   : > { %907 = vmatpush1.bf16.msra.mxu0 %v1394_v1  ;;  %948 = vmatpush1.bf16.msra.mxu1 %v1395_v2 }
  0x79   : > { %909 = vmatmul.mubr.bf16.vlgmr.msra.gmra.mrb[0].mxu0 %v1187_v3  ;;  %950 = vmatmul.mubr.bf16.vlgmr.msra.gmra.mrb[0].mxu1 %v1187_v3 }
 0x14c   : > { %v910_v18 = vpop.f32.mrb[0].mxu0  ;;  %v951_v19 = vpop.f32.mrb[0].mxu1 }
 0x14d   : > { %v995_v22 = vadd.f32 %v978_v12, %v910_v18  ;;  %v997_v23 = vadd.f32 %v986_v13, %v951_v19  ;;  %v912_v24 = vpop.f32.mrb[1].mxu0  ;;  %v953_v25 = vpop.f32.mrb[1].mxu1 }
 0x14e   : > { %v996_v26 = vadd.f32 %v982_v14, %v912_v24  ;;  %v998_v27 = vadd.f32 %v990_v15, %v953_v25  ;;  %v914_v28 = vpop.f32.mrb[2].mxu0  ;;  %v955_v29 = vpop.f32.mrb[2].mxu1 }
 0x14f   : > { %v1005_v30 = vadd.f32 %v1001_v16, %v995_v22  ;;  %v1007_v31 = vadd.f32 %v1003_v17, %v997_v23  ;;  %v915_v32 = vpop.f32.mrb[3].mxu0  ;;  %v956_v33 = vpop.f32.mrb[3].mxu1 }
 0x150   : > { %v1006_v34 = vadd.f32 %v1002_v20, %v996_v26  ;;  %v1008_v35 = vadd.f32 %v1004_v21, %v998_v27 }
 0x151   : > { %v1009_v36 = vmax.f32 %v1005_v30, 0.0  ;;  %v1011_v37 = vmax.f32 %v1007_v31, 0.0 }
 0x152   : > { %v1010_v38 = vmax.f32 %v1006_v34, 0.0  ;;  %v1012_v39 = vmax.f32 %v1008_v35, 0.0 }
 0x154   : > { %v1258_v40 = vpack.c.bf16 %v1010_v38, %v1009_v36  ;;  %v1259_v41 = vpack.c.bf16 %v1012_v39, %v1011_v37 }
 0x156   : > { %1029 = vst [vmem:[%s470_s25] sm:$0xff] %v1258_v40  ;;  %1030 = vst [vmem:[%s470_s25 + $0x8] sm:$0xff] %v1259_v41 }
 0x157 PF: > { %s14_s19 = sadd.s32 1, %s1436_s19   ;;  %s1754_s15 = smov %s1424_s16 }
 0x158   : > { %p11_p10 = scmp.ge.s32.totalorder %s14_s19, 4   ;;  %s1755_s16 = smov %s1498_s23 }
 0x159   : > { %s1756_s17 = smov %s1432_s18  ;;  %s1757_s18 = smov %s1759_s20 }
 0x15a   :  { %13 = sbr.rel (!%p11_p10) target bundleno = 3 (0x3), region = 111 }

// kernel: _lambda_.73
= control target key start
LH: loop header
LB: loop body
LE: loop exit
PB: predicated region body
PF: predicated region fallthrough
CT: control target
= control target key end

     0   :  { %s1176_s12 = smov 0   ;;  %s1178_s13 = smov 0   ;;  %s1291_s0 = inlined_call_operand.vmem [shape: bf16[8,1024], index: 0, kind: input, shape index: {}]   ;;  %s1292_s1 = inlined_call_operand.vmem [shape: bf16[1024,256], index: 1, kind: input, shape index: {}]   ;;  %s1293_s2 = inlined_call_operand.vmem [shape: f32[1,256], index: 2, kind: input, shape index: {}]   ;;  %s1294_s3 = inlined_call_operand.vmem [shape: bf16[8,256], index: 3, kind: output, shape index: {}]  }
   0x1   :  { %s1180_s14 = smov 0  }
   0x2 LB: > { %s25_s15 = sadd.s32 1, %s1149_s13  ;;  %p923_p0 = scmp.ge.s32.totalorder %s1153_s14, 1  ;;  %s1153_s14 = sphi %s1180_s14, %s13_s14   ;;  %s1149_s13 = sphi %s1178_s13, %s1296_s13   ;;  %s1145_s12 = sphi %s1176_s12, %s1295_s12  }
   0x3   : > { %p26_p1 = scmp.ge.s32.totalorder %s25_s15, 2  ;;  %p194_p2 = scmp.lt.s32.totalorder %s1153_s14, 3 }
   0x5   : > { %s1298_s15 = smov (%p26_p1, %s25_s15), 0  ;;  %p195_p3 = pnand %p923_p0, %p194_p2 }
   0x6   : > { %s924_s16 = sshll.u32 (!%p195_p3), %s1145_s12, 2  ;;  %s926_s17 = sshll.u32 (!%p195_p3), %s1145_s12, 6 }
   0x7   : > { %198 = sbr.rel (%p195_p3) target bundleno = 322 (0x142), region = 32  ;;  %p243_p4 = scmp.lt.s32.totalorder (!%p195_p3), %s924_s16, 7 }
   0x8   : > { %p252_p5 = scmp.lt.s32.totalorder (!%p195_p3), %s926_s17, 127  ;;  %p929_p6 = scmp.ne.s32.totalorder (!%p195_p3), %s1145_s12, 0 }
   0xe   : > { %s1300_s16 = smov (!%p243_p4, %s924_s16), 7  ;;  %s1302_s17 = smov (!%p252_p5, %s926_s17), 127 }
   0xf   : > { %s925_s18 = sshll.u32 %s1300_s16, 2  ;;  %s1004_s22 = sshll.u32 %s1302_s17, 3  ;;  %v1155_v0 = vmov (!%p929_p6), 0.0  }
  0x10   : > { %s1201_s21 = scalar_lea.vmem %s1291_s0, %s925_s18  ;;  %s1206_s25 = scalar_lea.vmem %s1292_s1, %s1004_s22  ;;  %281 = vst [vmem:[#allocation2] sm:$0xff] (!%p929_p6), %v1155_v0  ;;  %282 = vst [vmem:[#allocation2 + $0x8] sm:$0xff] (!%p929_p6), %v1155_v0 }
  0x11   : > { %280 = sbr.rel (%p929_p6) target bundleno = 24 (0x18), region = 36 }
  0x18 PF: > { %v1031_v1 = vld [vmem:[%s1206_s25 + $0x4] ss:$8 sps:$4 sm:$0xff]   ;;  %v1035_v3 = vld [vmem:[%s1206_s25] ss:$8 sps:$4 sm:$0xff]   ;;  %v1037_v5 = vld [vmem:[%s1206_s25 + $0x14] ss:$8 sps:$4 sm:$0xff]  }
  0x19   : > { %v1033_v2 = vld [vmem:[%s1206_s25 + $0x104] ss:$8 sps:$4 sm:$0xff]   ;;  %685 = vmatprep.subr.bf16.mxu0 %v1031_v1  ;;  %v1036_v4 = vld [vmem:[%s1206_s25 + $0x100] ss:$8 sps:$4 sm:$0xff]   ;;  %v1039_v6 = vld [vmem:[%s1206_s25 + $0x114] ss:$8 sps:$4 sm:$0xff]  }
  0x1a   : > { %726 = vmatprep.subr.bf16.mxu1 %v1033_v2  ;;  %686 = vmatpush1.bf16.msra.mxu0 %v1035_v3  ;;  %v1041_v7 = vld [vmem:[%s1206_s25 + $0x10] ss:$8 sps:$4 sm:$0xff]   ;;  %v1043_v9 = vld [vmem:[%s1206_s25 + $0x24] ss:$8 sps:$4 sm:$0xff]   ;;  %v1047_v11 = vld [vmem:[%s1206_s25 + $0x20] ss:$8 sps:$4 sm:$0xff]  }
  0x1b   : > { %727 = vmatpush1.bf16.msra.mxu1 %v1036_v4  ;;  %687 = vmatprep.subr.bf16.mxu0 %v1037_v5  ;;  %v1042_v8 = vld [vmem:[%s1206_s25 + $0x110] ss:$8 sps:$4 sm:$0xff]   ;;  %v1045_v10 = vld [vmem:[%s1206_s25 + $0x124] ss:$8 sps:$4 sm:$0xff]   ;;  %v1048_v12 = vld [vmem:[%s1206_s25 + $0x120] ss:$8 sps:$4 sm:$0xff]  }
  0x1c   : > { %728 = vmatprep.subr.bf16.mxu1 %v1039_v6  ;;  %v1049_v13 = vld [vmem:[%s1206_s25 + $0x34] ss:$8 sps:$4 sm:$0xff]   ;;  %v1053_v15 = vld [vmem:[%s1206_s25 + $0x30] ss:$8 sps:$4 sm:$0xff]   ;;  %v1055_v17 = vld [vmem:[%s1206_s25 + $0x44] ss:$8 sps:$4 sm:$0xff]  }
  0x1d   : > { %v1051_v14 = vld [vmem:[%s1206_s25 + $0x134] ss:$8 sps:$4 sm:$0xff]   ;;  %v1054_v16 = vld [vmem:[%s1206_s25 + $0x130] ss:$8 sps:$4 sm:$0xff]   ;;  %v1057_v18 = vld [vmem:[%s1206_s25 + $0x144] ss:$8 sps:$4 sm:$0xff]  }
  0x1e   : > { %688 = vmatpush1.bf16.msra.mxu0 %v1041_v7  ;;  %v1059_v19 = vld [vmem:[%s1206_s25 + $0x40] ss:$8 sps:$4 sm:$0xff]   ;;  %v1061_v21 = vld [vmem:[%s1206_s25 + $0x54] ss:$8 sps:$4 sm:$0xff]   ;;  %v1065_v23 = vld [vmem:[%s1206_s25 + $0x50] ss:$8 sps:$4 sm:$0xff]  }
  0x1f   : > { %729 = vmatpush1.bf16.msra.mxu1 %v1042_v8  ;;  %689 = vmatprep.subr.bf16.mxu0 %v1043_v9  ;;  %v1060_v20 = vld [vmem:[%s1206_s25 + $0x140] ss:$8 sps:$4 sm:$0xff]   ;;  %v1063_v22 = vld [vmem:[%s1206_s25 + $0x154] ss:$8 sps:$4 sm:$0xff]   ;;  %v1066_v24 = vld [vmem:[%s1206_s25 + $0x150] ss:$8 sps:$4 sm:$0xff]  }
  0x20   : > { %730 = vmatprep.subr.bf16.mxu1 %v1045_v10  ;;  %v1067_v25 = vld [vmem:[%s1206_s25 + $0x64] ss:$8 sps:$4 sm:$0xff]   ;;  %v1071_v27 = vld [vmem:[%s1206_s25 + $0x60] ss:$8 sps:$4 sm:$0xff]   ;;  %v1073_v29 = vld [vmem:[%s1206_s25 + $0x74] ss:$8 sps:$4 sm:$0xff]  }
  0x21   : > { %v1069_v26 = vld [vmem:[%s1206_s25 + $0x164] ss:$8 sps:$4 sm:$0xff]   ;;  %v1072_v28 = vld [vmem:[%s1206_s25 + $0x160] ss:$8 sps:$4 sm:$0xff]   ;;  %v1075_v30 = vld [vmem:[%s1206_s25 + $0x174] ss:$8 sps:$4 sm:$0xff]  }
  0x22   : > { %690 = vmatpush1.bf16.msra.mxu0 %v1047_v11  ;;  %v1077_v31 = vld [vmem:[%s1206_s25 + $0x70] ss:$8 sps:$4 sm:$0xff]   ;;  %v1079_v33 = vld [vmem:[%s1206_s25 + $0x84] ss:$8 sps:$4 sm:$0xff]   ;;  %v1083_v35 = vld [vmem:[%s1206_s25 + $0x80] ss:$8 sps:$4 sm:$0xff]  }
  0x23   : > { %731 = vmatpush1.bf16.msra.mxu1 %v1048_v12  ;;  %691 = vmatprep.subr.bf16.mxu0 %v1049_v13  ;;  %v1078_v32 = vld [vmem:[%s1206_s25 + $0x170] ss:$8 sps:$4 sm:$0xff]   ;;  %v1081_v34 = vld [vmem:[%s1206_s25 + $0x184] ss:$8 sps:$4 sm:$0xff]   ;;  %v1084_v36 = vld [vmem:[%s1206_s25 + $0x180] ss:$8 sps:$4 sm:$0xff]  }
  0x24   : > { %732 = vmatprep.subr.bf16.mxu1 %v1051_v14  ;;  %v1085_v37 = vld [vmem:[%s1206_s25 + $0x94] ss:$8 sps:$4 sm:$0xff]   ;;  %v1089_v39 = vld [vmem:[%s1206_s25 + $0x90] ss:$8 sps:$4 sm:$0xff]   ;;  %v1091_v41 = vld [vmem:[%s1206_s25 + $0xa4] ss:$8 sps:$4 sm:$0xff]  }
  0x25   : > { %v1087_v38 = vld [vmem:[%s1206_s25 + $0x194] ss:$8 sps:$4 sm:$0xff]   ;;  %v1090_v40 = vld [vmem:[%s1206_s25 + $0x190] ss:$8 sps:$4 sm:$0xff]   ;;  %v1093_v42 = vld [vmem:[%s1206_s25 + $0x1a4] ss:$8 sps:$4 sm:$0xff]  }
  0x26   : > { %692 = vmatpush1.bf16.msra.mxu0 %v1053_v15  ;;  %v1095_v43 = vld [vmem:[%s1206_s25 + $0xa0] ss:$8 sps:$4 sm:$0xff]   ;;  %v1097_v45 = vld [vmem:[%s1206_s25 + $0xb4] ss:$8 sps:$4 sm:$0xff]   ;;  %v1101_v50 = vld [vmem:[%s1206_s25 + $0xb0] ss:$8 sps:$4 sm:$0xff]  }
  0x27   : > { %733 = vmatpush1.bf16.msra.mxu1 %v1054_v16  ;;  %693 = vmatprep.subr.bf16.mxu0 %v1055_v17  ;;  %v1096_v44 = vld [vmem:[%s1206_s25 + $0x1a0] ss:$8 sps:$4 sm:$0xff]   ;;  %v1099_v46 = vld [vmem:[%s1206_s25 + $0x1b4] ss:$8 sps:$4 sm:$0xff]   ;;  %v1102_v51 = vld [vmem:[%s1206_s25 + $0x1b0] ss:$8 sps:$4 sm:$0xff]  }
  0x28   : > { %734 = vmatprep.subr.bf16.mxu1 %v1057_v18  ;;  %v285_v47 = vld [vmem:[%s1201_s21] sm:$0xff]  ;;  %v286_v49 = vld [vmem:[%s1201_s21 + $0x8] sm:$0xff]  ;;  %v1109_v57 = vld [vmem:[%s1206_s25 + $0xd4] ss:$8 sps:$4 sm:$0xff]   ;;  %p998_p7 = scmp.ne.s32.totalorder %s1145_s12, 1 }
  0x29   : > { %v931_v48 = vcombine.high %v285_v47, %v285_v47  ;;  %v933_v52 = vcombine.high %v286_v49, %v286_v49  ;;  %v1103_v53 = vld [vmem:[%s1206_s25 + $0xc4] ss:$8 sps:$4 sm:$0xff]   ;;  %v1107_v55 = vld [vmem:[%s1206_s25 + $0xc0] ss:$8 sps:$4 sm:$0xff]   ;;  %v1111_v58 = vld [vmem:[%s1206_s25 + $0x1d4] ss:$8 sps:$4 sm:$0xff]   ;;  %v930_v5 = vcombine.low %v285_v47, %v285_v47  ;;  %v932_v6 = vcombine.low %v286_v49, %v286_v49 }
  0x2a   : > { %694 = vmatpush1.bf16.msra.mxu0 %v1059_v19  ;;  %v1105_v54 = vld [vmem:[%s1206_s25 + $0x1c4] ss:$8 sps:$4 sm:$0xff]   ;;  %v1108_v56 = vld [vmem:[%s1206_s25 + $0x1c0] ss:$8 sps:$4 sm:$0xff]   ;;  %v1113_v59 = vld [vmem:[%s1206_s25 + $0xd0] ss:$8 sps:$4 sm:$0xff]  }
  0x2b   : > { %735 = vmatpush1.bf16.msra.mxu1 %v1060_v20  ;;  %695 = vmatprep.subr.bf16.mxu0 %v1061_v21  ;;  %v1114_v60 = vld [vmem:[%s1206_s25 + $0x1d0] ss:$8 sps:$4 sm:$0xff]   ;;  %v1115_v61 = vld [vmem:[%s1206_s25 + $0xe4] ss:$8 sps:$4 sm:$0xff]   ;;  %v1119_v63 = vld [vmem:[%s1206_s25 + $0xe0] ss:$8 sps:$4 sm:$0xff]   ;;  %v779_v21 = vlaneseq (!%p998_p7) }
  0x2c   : > { %736 = vmatprep.subr.bf16.mxu1 %v1063_v22  ;;  %717 = vmatprep.mubr.bf16.mxu0 %v931_v48  ;;  %v1117_v62 = vld [vmem:[%s1206_s25 + $0x1e4] ss:$8 sps:$4 sm:$0xff]   ;;  %v1120_v0 = vld [vmem:[%s1206_s25 + $0x1e0] ss:$8 sps:$4 sm:$0xff]   ;;  %v1121_v1 = vld [vmem:[%s1206_s25 + $0xf4] ss:$8 sps:$4 sm:$0xff]  }
  0x2d   : > { %758 = vmatprep.mubr.bf16.mxu1 %v933_v52  ;;  %v1123_v2 = vld [vmem:[%s1206_s25 + $0x1f4] ss:$8 sps:$4 sm:$0xff]   ;;  %v1125_v3 = vld [vmem:[%s1206_s25 + $0xf0] ss:$8 sps:$4 sm:$0xff]   ;;  %v283_v8 = vld [vmem:[#allocation2] sm:$0xff]  ;;  %v780_v22 = vshrl.u32 (!%p998_p7), %v779_v21, 7 }
  0x2e   : > { %696 = vmatpush1.bf16.msra.mxu0 %v1065_v23  ;;  %v1126_v4 = vld [vmem:[%s1206_s25 + $0x1f0] ss:$8 sps:$4 sm:$0xff]   ;;  %v284_v12 = vld [vmem:[#allocation2 + $0x8] sm:$0xff]  ;;  %v777_v23 = vld [vmem:[%s1293_s2] sm:$0x3] (!%p998_p7) }
  0x2f   : > { %737 = vmatpush1.bf16.msra.mxu1 %v1066_v24  ;;  %697 = vmatprep.subr.bf16.mxu0 %v1067_v25  ;;  %v781_v24 = vsub.s32 (!%p998_p7), 0, %v780_v22  ;;  %v785_v25 = vsub.s32 (!%p998_p7), 1, %v780_v22 }
  0x30   : > { %738 = vmatprep.subr.bf16.mxu1 %v1069_v26 }
  0x32   : > { %698 = vmatpush1.bf16.msra.mxu0 %v1071_v27 }
  0x33   : > { %739 = vmatpush1.bf16.msra.mxu1 %v1072_v28  ;;  %699 = vmatprep.subr.bf16.mxu0 %v1073_v29  ;;  %v782_v28 = vrot.slane (!%p998_p7), %v777_v23, %v781_v24  ;;  %v786_v29 = vrot.slane (!%p998_p7), %v777_v23, %v785_v25 }
  0x34   : > { %740 = vmatprep.subr.bf16.mxu1 %v1075_v30 }
  0x36   : > { %700 = vmatpush1.bf16.msra.mxu0 %v1077_v31 }
  0x37   : > { %741 = vmatpush1.bf16.msra.mxu1 %v1078_v32  ;;  %701 = vmatprep.subr.bf16.mxu0 %v1079_v33 }
  0x38   : > { %742 = vmatprep.subr.bf16.mxu1 %v1081_v34 }
  0x3a   : > { %702 = vmatpush1.bf16.msra.mxu0 %v1083_v35 }
  0x3b   : > { %743 = vmatpush1.bf16.msra.mxu1 %v1084_v36  ;;  %703 = vmatprep.subr.bf16.mxu0 %v1085_v37 }
  0x3c   : > { %744 = vmatprep.subr.bf16.mxu1 %v1087_v38 }
  0x3e   : > { %704 = vmatpush1.bf16.msra.mxu0 %v1089_v39 }
  0x3f   : > { %745 = vmatpush1.bf16.msra.mxu1 %v1090_v40  ;;  %705 = vmatprep.subr.bf16.mxu0 %v1091_v41 }
  0x40   : > { %746 = vmatprep.subr.bf16.mxu1 %v1093_v42 }
  0x42   : > { %706 = vmatpush1.bf16.msra.mxu0 %v1095_v43 }
  0x43   : > { %747 = vmatpush1.bf16.msra.mxu1 %v1096_v44  ;;  %707 = vmatprep.subr.bf16.mxu0 %v1097_v45 }
  0x44   : > { %748 = vmatprep.subr.bf16.mxu1 %v1099_v46 }
  0x46   : > { %708 = vmatpush1.bf16.msra.mxu0 %v1101_v50 }
  0x47   : > { %749 = vmatpush1.bf16.msra.mxu1 %v1102_v51  ;;  %709 = vmatprep.subr.bf16.mxu0 %v1103_v53 }
  0x48   : > { %750 = vmatprep.subr.bf16.mxu1 %v1105_v54 }
  0x4a   : > { %710 = vmatpush1.bf16.msra.mxu0 %v1107_v55 }
  0x4b   : > { %751 = vmatpush1.bf16.msra.mxu1 %v1108_v56  ;;  %711 = vmatprep.subr.bf16.mxu0 %v1109_v57 }
  0x4c   : > { %752 = vmatprep.subr.bf16.mxu1 %v1111_v58 }
  0x4e   : > { %712 = vmatpush1.bf16.msra.mxu0 %v1113_v59 }
  0x4f   : > { %753 = vmatpush1.bf16.msra.mxu1 %v1114_v60  ;;  %713 = vmatprep.subr.bf16.mxu0 %v1115_v61 }
  0x50   : > { %754 = vmatprep.subr.bf16.mxu1 %v1117_v62 }
  0x52   : > { %714 = vmatpush1.bf16.msra.mxu0 %v1119_v63 }
  0x53   : > { %755 = vmatpush1.bf16.msra.mxu1 %v1120_v0  ;;  %715 = vmatprep.subr.bf16.mxu0 %v1121_v1 }
  0x54   : > { %756 = vmatprep.subr.bf16.mxu1 %v1123_v2 }
  0x56   : > { %716 = vmatpush1.bf16.msra.mxu0 %v1125_v3 }
  0x57   : > { %757 = vmatpush1.bf16.msra.mxu1 %v1126_v4 }
  0x59   : > { %718 = vmatmul.mubr.bf16.vlgmr.msra.gmra.mrb[0].mxu0 %v930_v5 }
  0x5a   : > { %759 = vmatmul.mubr.bf16.vlgmr.msra.gmra.mrb[0].mxu1 %v932_v6 }
 0x12c   : > { %v719_v7 = vpop.f32.mrb[0].mxu0 }
 0x12d   : > { %v760_v9 = vpop.f32.mrb[0].mxu1  ;;  %v721_v11 = vpop.f32.mrb[1].mxu0  ;;  %774 = sbr.rel (%p998_p7) target bundleno = 322 (0x142), region = 40 }
 0x12e   : > { %v761_v10 = vadd.f32 %v760_v9, %v719_v7  ;;  %v762_v13 = vpop.f32.mrb[1].mxu1  ;;  %v723_v15 = vpop.f32.mrb[2].mxu0 }
 0x12f   : > { %v763_v14 = vadd.f32 %v762_v13, %v721_v11  ;;  %v764_v16 = vpop.f32.mrb[2].mxu1  ;;  %v724_v18 = vpop.f32.mrb[3].mxu0 }
 0x130   : > { %v767_v17 = vadd.f32 %v761_v10, %v283_v8  ;;  %v765_v19 = vpop.f32.mrb[3].mxu1 }
 0x131   : > { %v768_v20 = vadd.f32 %v763_v14, %v284_v12 }
 0x132   : > { %769 = vst [vmem:[#allocation2] sm:$0xff] %v767_v17 }
 0x133   : > { %770 = vst [vmem:[#allocation2 + $0x8] sm:$0xff] %v768_v20 }
 0x139   : > { %v775_v26 = vld [vmem:[#allocation2] sm:$0xff] }
 0x13a   : > { %v776_v27 = vld [vmem:[#allocation2 + $0x8] sm:$0xff]  ;;  %v789_v30 = vadd.f32 %v782_v28, %v775_v26 }
 0x13b   : > { %v790_v31 = vadd.f32 %v786_v29, %v776_v27 }
 0x13c   : > { %v791_v32 = vmax.f32 %v789_v30, 0.0 }
 0x13d   : > { %v792_v33 = vmax.f32 %v790_v31, 0.0 }
 0x13f   : > { %v1005_v34 = vpack.c.bf16 %v792_v33, %v791_v32 }
 0x141   : > { %801 = vst [vmem:[%s1294_s3] sm:$0xff] %v1005_v34 }
 0x142 PF: > { %s13_s14 = sadd.s32 1, %s1153_s14   ;;  %s1295_s12 = smov %s1149_s13 }
 0x143   : > { %p10_p8 = scmp.ge.s32.totalorder %s13_s14, 4   ;;  %s1296_s13 = smov %s1298_s15 }
 0x145   :  { %12 = sbr.rel (!%p10_p8) target bundleno = 2 (0x2), region = 76 }

</bundles_post_ra>
